<compile_context>
chip_gen: v6e
topology: v6e:2x2x1
jax: 0.10.0
libtpu: 0.0.40
codegen_flags: <defaults>
</compile_context>

<pallas_src>
import math

import jax
import jax.numpy as jnp
import numpy as np
from jax.experimental import pallas as pl
from jax.experimental.pallas import tpu as pltpu

NUM_EDGE_CLASSES = 23
NUM_CLS_PAD = 32          # classes padded to a clean sublane multiple
NEG_INF = -1e30


def _round_up(x, m):
    return ((x + m - 1) // m) * m


def _mm(a, b):
    # a @ b with f32 accumulation on the MXU
    return jax.lax.dot_general(a, b, (((1,), (0,)), ((), ())),
                               preferred_element_type=jnp.float32)


def _pad2(a, rows, cols):
    out = jnp.zeros((rows, cols), a.dtype)
    return out.at[:a.shape[0], :a.shape[1]].set(a)


# -------------------- K / V source projections (computed once) --------------------
def make_src_proj_kernel(hc_p):
    def kernel(x_ref, wkv_ref, bkv_ref, kt_ref, v_ref):
        x = x_ref[...]                                   # bf16 [ts, Din_p]
        kv = _mm(x, wkv_ref[...]) + bkv_ref[...]         # f32  [ts, 2*HC_p]
        k = kv[:, :hc_p]
        v = kv[:, hc_p:]
        kt_ref[...] = k.T.astype(jnp.bfloat16)           # store K transposed
        v_ref[...] = v.astype(jnp.bfloat16)
    return kernel


def project_src(x_src, wkv, bkv, hc_p, *, tile=128):
    ns_p, din_p = x_src.shape
    const = lambda i: (0, 0)
    return pl.pallas_call(
        make_src_proj_kernel(hc_p),
        out_shape=(jax.ShapeDtypeStruct((hc_p, ns_p), jnp.bfloat16),
                   jax.ShapeDtypeStruct((ns_p, hc_p), jnp.bfloat16)),
        grid=(ns_p // tile,),
        in_specs=[pl.BlockSpec((tile, din_p), lambda i: (i, 0)),
                  pl.BlockSpec((din_p, 2 * hc_p), const),
                  pl.BlockSpec((1, 2 * hc_p), const)],
        out_specs=(pl.BlockSpec((hc_p, tile), lambda i: (0, i)),
                   pl.BlockSpec((tile, hc_p), lambda i: (i, 0))),
        compiler_params=pltpu.CompilerParams(
            dimension_semantics=("parallel",),
            vmem_limit_bytes=32 * 1024 * 1024),
    )(x_src, wkv, bkv)


# -------------------- one TransformerConv layer (+LN/ReLU or log_softmax) --------------------
def make_attn_kernel(heads, c_head, hc_p, dout_p, d_out, concat, apply_ln,
                     apply_logsm):
    def kernel(*refs):
        it = iter(refs)
        x_ref = next(it)        # bf16 [T, Din_p]
        cls_ref = next(it)      # int32 [T, Ns_p]  (-1 = no edge)
        kT_ref = next(it)       # bf16 [HC_p, Ns_p]
        v_ref = next(it)        # bf16 [Ns_p, HC_p]
        wqs_ref = next(it)      # bf16 [Din_p, HC_p + Dout_p] = (wq*scale | wskip)
        bqs_ref = next(it)      # f32  [1, HC_p + Dout_p]
        weT_ref = next(it)      # bf16 [HC_p, 32]
        wst_ref = next(it)      # bf16 [heads*32, HC_p]  per-head-masked We rows
        wbo_ref = next(it)      # f32  [1, Dout_p]  (wb1 + wb3)
        wbx_ref = next(it)      # f32  [1, Dout_p]  (wb2 - wb3)
        mix_ref = None if concat else next(it)
        ln_g_ref = next(it) if apply_ln else None
        ln_b_ref = next(it) if apply_ln else None
        out_ref = next(it)

        f32, bf16 = jnp.float32, jnp.bfloat16
        x_dst = x_ref[...]
        cls = cls_ref[...]
        kT = kT_ref[...]
        v = v_ref[...]
        weT = weT_ref[...]
        t, ns = cls.shape

        # fused q | skip projection (attention scale pre-folded into wq/bq)
        qs = _mm(x_dst, wqs_ref[...]) + bqs_ref[...]      # f32 [T, HC_p+Dout_p]
        q = qs[:, :hc_p]
        x_r = qs[:, hc_p:]

        neg_bias = jnp.where(cls >= 0, 0.0, NEG_INF).astype(f32)   # [T, Ns]

        col = jax.lax.broadcasted_iota(jnp.int32, (1, hc_p), 1)
        head_mask, s_list, qe_list = [], [], []
        for h in range(heads):
            hm = ((col >= h * c_head) & (col < (h + 1) * c_head)).astype(f32)
            head_mask.append(hm)
            q_h = (q * hm).astype(bf16)
            s_list.append(_mm(q_h, kT) + neg_bias)        # [T, Ns]  q_i . k_j
            qe_list.append(_mm(q_h, weT))                 # [T, 32]  q_i . We[c]

        # ---- class loop 1: logit bias  s_ij += q_i . We[cls_ij] ----
        # one mask per class shared by all heads; two accumulation chains/head
        bias = [jnp.zeros((t, ns), f32) for _ in range(heads)]
        for c in range(NUM_EDGE_CLASSES):
            mcls = cls == c
            for h in range(heads):
                qe_c = qe_list[h][:, c:c + 1]             # [T, 1]
                upd = jnp.where(mcls, qe_c, 0.0)
                if c % 2 == 0:
                    s_list[h] = s_list[h] + upd
                else:
                    bias[h] = bias[h] + upd
        s_list = [s_list[h] + bias[h] for h in range(heads)]

        # ---- masked softmax over sources + value aggregation per head ----
        alpha_list = []
        out_attn = jnp.zeros((t, hc_p), f32)
        for h in range(heads):
            s = s_list[h]
            m = jnp.max(s, axis=-1, keepdims=True)
            p = jnp.exp(s - m)
            denom = jnp.sum(p, axis=-1, keepdims=True)
            alpha = p * pl.reciprocal(denom, approx=True)           # [T, Ns]
            alpha_list.append(alpha)
            # mask the [T,HC] output instead of V (cheaper for Ns >> T)
            out_attn = out_attn + _mm(alpha.astype(bf16), v) * head_mask[h]

        # ---- class loop 2: edge-value contribution, lifted onto the MXU ----
        n_amat = heads * NUM_CLS_PAD
        col_a = jax.lax.broadcasted_iota(jnp.int32, (1, n_amat), 1)
        a_parts = [jnp.zeros((t, n_amat), f32), jnp.zeros((t, n_amat), f32)]
        for c in range(NUM_EDGE_CLASSES):
            mcls = cls == c
            for h in range(heads):
                a_c = jnp.sum(jnp.where(mcls, alpha_list[h], 0.0),
                              axis=-1, keepdims=True)     # [T, 1]
                a_parts[c % 2] = a_parts[c % 2] + jnp.where(
                    col_a == h * NUM_CLS_PAD + c, a_c, 0.0)
        a_mat = (a_parts[0] + a_parts[1]).astype(bf16)    # [T, heads*32]
        out_attn = out_attn + _mm(a_mat, wst_ref[...])    # [T, HC_p]

        out = out_attn if concat else _mm(out_attn, mix_ref[...])

        # beta gate (folded: wbo = wb1 + wb3, wbx = wb2 - wb3)
        beta_logit = (jnp.sum(out * wbo_ref[...], axis=-1, keepdims=True)
                      + jnp.sum(x_r * wbx_ref[...], axis=-1, keepdims=True))
        beta = jax.nn.sigmoid(beta_logit)
        out = beta * x_r + (1.0 - beta) * out

        dcol = jax.lax.broadcasted_iota(jnp.int32, (1, dout_p), 1)
        feat_mask = (dcol < d_out).astype(f32)            # real feature lanes

        if apply_ln:
            inv_d = 1.0 / d_out
            mu = jnp.sum(out, axis=-1, keepdims=True) * inv_d
            cen = (out - mu) * feat_mask
            var = jnp.sum(cen * cen, axis=-1, keepdims=True) * inv_d
            out = cen * jax.lax.rsqrt(var + 1e-5) * ln_g_ref[...] + ln_b_ref[...]
            out = jnp.maximum(out, 0.0)

        if apply_logsm:
            mx = jnp.max(jnp.where(feat_mask > 0, out, NEG_INF),
                         axis=-1, keepdims=True)
            sh = out - mx
            lse = jnp.log(jnp.sum(jnp.exp(sh) * feat_mask,
                                  axis=-1, keepdims=True))
            out = sh - lse

        out_ref[...] = out.astype(out_ref.dtype)

    return kernel


def run_layer(x, n_dst, edge_index, eid_class, params, *, heads, c_per_head,
              concat, ln_params, apply_log_softmax, out_dtype=jnp.float32):
    n_src, d_in = x.shape
    hc = heads * c_per_head
    d_out = hc if concat else c_per_head
    apply_ln = ln_params is not None
    scale = 1.0 / math.sqrt(c_per_head)

    din_p = _round_up(d_in, 128)
    ns_p = _round_up(n_src, 128)
    hc_p = _round_up(hc, 128)
    dout_p = _round_up(d_out, 128)

    # dst tiling: >= 2 grid steps when n_dst > 8 (v7x 2 TCs), tile capped at 256
    nd_min = _round_up(n_dst, 8)
    if nd_min <= 8:
        tile_d = nd_min
    else:
        tile_d = min(256, _round_up((n_dst + 1) // 2, 8))
    nd_p = _round_up(n_dst, tile_d)

    bf = jnp.bfloat16
    x_src_pad = jnp.zeros((ns_p, din_p), bf).at[:n_src, :d_in].set(x.astype(bf))
    x_dst_pad = jnp.zeros((nd_p, din_p), bf).at[:n_dst, :d_in].set(
        x[:n_dst].astype(bf))

    # dense class-index matrix: cls[i, j] = edge class of edge j->i, -1 = none
    # TODO(synk): dense cls drops duplicate (src, dst) multigraph edges.
    src, dst = edge_index[0], edge_index[1]
    cls_dense = jnp.full((nd_p, ns_p), -1, jnp.int32)
    cls_dense = cls_dense.at[dst, src].set(eid_class.astype(jnp.int32))

    # --- fused / padded parameters (matmul weights bf16, rest f32) ---
    wq = _pad2(params['wq'] * scale, din_p, hc_p)         # scale folded in
    bq = _pad2(params['bq'] * scale, 1, hc_p)
    wskip = _pad2(params['wskip'], din_p, dout_p)
    bskip = _pad2(params['bskip'], 1, dout_p)
    wqs = jnp.concatenate([wq, wskip], axis=1).astype(bf)   # [din_p, hc_p+dout_p]
    bqs = jnp.concatenate([bq, bskip], axis=1)

    wk = _pad2(params['wk'], din_p, hc_p)
    wv = _pad2(params['wv'], din_p, hc_p)
    bk = _pad2(params['bk'], 1, hc_p)
    bv = _pad2(params['bv'], 1, hc_p)
    wkv = jnp.concatenate([wk, wv], axis=1).astype(bf)      # [din_p, 2*hc_p]
    bkv = jnp.concatenate([bk, bv], axis=1)

    we = _pad2(params['we'], NUM_CLS_PAD, hc_p)             # [32, hc_p] f32
    weT = we.T.astype(bf)                                   # [hc_p, 32]
    hmask = np.zeros((heads, hc_p), np.float32)
    for h in range(heads):
        hmask[h, h * c_per_head:(h + 1) * c_per_head] = 1.0
    we_stack = jnp.concatenate(
        [we * jnp.asarray(hmask[h:h + 1]) for h in range(heads)],
        axis=0).astype(bf)                                  # [heads*32, hc_p]

    wb = params['wbeta']
    wb1 = _pad2(wb[:, :d_out], 1, dout_p)
    wb2 = _pad2(wb[:, d_out:2 * d_out], 1, dout_p)
    wb3 = _pad2(wb[:, 2 * d_out:], 1, dout_p)
    wb_out = wb1 + wb3
    wb_xr = wb2 - wb3

    # K (transposed) / V projections of all source nodes, computed once
    kT_pad, v_pad = project_src(x_src_pad, wkv, bkv, hc_p, tile=128)

    const = lambda i: (0, 0)
    row = lambda i: (i, 0)
    inputs = [x_dst_pad, cls_dense, kT_pad, v_pad, wqs, bqs, weT, we_stack,
              wb_out, wb_xr]
    in_specs = [pl.BlockSpec((tile_d, din_p), row),
                pl.BlockSpec((tile_d, ns_p), row),
                pl.BlockSpec((hc_p, ns_p), const),
                pl.BlockSpec((ns_p, hc_p), const),
                pl.BlockSpec((din_p, hc_p + dout_p), const),
                pl.BlockSpec((1, hc_p + dout_p), const),
                pl.BlockSpec((hc_p, NUM_CLS_PAD), const),
                pl.BlockSpec((heads * NUM_CLS_PAD, hc_p), const),
                pl.BlockSpec((1, dout_p), const),
                pl.BlockSpec((1, dout_p), const)]

    if not concat:
        mix = np.zeros((hc_p, dout_p), np.float32)          # head-mean mixer
        for h in range(heads):
            for c in range(c_per_head):
                mix[h * c_per_head + c, c] = 1.0 / heads
        inputs.append(jnp.asarray(mix))
        in_specs.append(pl.BlockSpec((hc_p, dout_p), const))

    if apply_ln:
        inputs += [_pad2(ln_params[0], 1, dout_p), _pad2(ln_params[1], 1, dout_p)]
        in_specs += [pl.BlockSpec((1, dout_p), const),
                     pl.BlockSpec((1, dout_p), const)]

    kernel = make_attn_kernel(heads, c_per_head, hc_p, dout_p, d_out, concat,
                              apply_ln, apply_log_softmax)

    flops = int(2 * nd_p * din_p * (hc_p + dout_p)
                + heads * (4 * nd_p * ns_p * hc_p + 2 * nd_p * hc_p * NUM_CLS_PAD)
                + 2 * nd_p * heads * NUM_CLS_PAD * hc_p
                + 10 * heads * nd_p * ns_p * NUM_EDGE_CLASSES)
    bytes_accessed = int(sum(int(np.prod(a.shape)) * a.dtype.itemsize
                             for a in inputs)
                         + nd_p * dout_p * jnp.dtype(out_dtype).itemsize)
    cost = pl.CostEstimate(flops=flops,
                           transcendentals=int(heads * nd_p * ns_p + nd_p),
                           bytes_accessed=bytes_accessed)

    out_pad = pl.pallas_call(
        kernel,
        out_shape=jax.ShapeDtypeStruct((nd_p, dout_p), out_dtype),
        grid=(nd_p // tile_d,),
        in_specs=in_specs,
        out_specs=pl.BlockSpec((tile_d, dout_p), row),
        compiler_params=pltpu.CompilerParams(
            dimension_semantics=("parallel",),
            vmem_limit_bytes=32 * 1024 * 1024),
        cost_estimate=cost,
    )(*inputs)
    return out_pad[:n_dst, :d_out]


# -------------------- pure-JAX reference (edge-list semantics) --------------------
def ref_layer(x, n_dst, edge_index, eid_class, p, *, heads, c_per_head,
              concat, ln_params, apply_log_softmax):
    x = x.astype(jnp.float32)
    src, dst = edge_index[0], edge_index[1]
    x_src, x_dst = x, x[:n_dst]
    hc = heads * c_per_head
    q = (x_src[:n_dst] @ p['wq'] + p['bq']).reshape(n_dst, heads, c_per_head)
    k = (x_src @ p['wk'] + p['bk']).reshape(-1, heads, c_per_head)
    v = (x_src @ p['wv'] + p['bv']).reshape(-1, heads, c_per_head)
    e = (jax.nn.one_hot(eid_class, NUM_EDGE_CLASSES, dtype=jnp.float32)
         @ p['we']).reshape(-1, heads, c_per_head)
    kj = k[src] + e
    alpha = (q[dst] * kj).sum(-1) / math.sqrt(c_per_head)          # [E, H]
    amax = jax.ops.segment_max(alpha, dst, num_segments=n_dst)
    ex = jnp.exp(alpha - amax[dst])
    denom = jax.ops.segment_sum(ex, dst, num_segments=n_dst)
    a = ex / denom[dst]
    msg = (v[src] + e) * a[:, :, None]
    out = jax.ops.segment_sum(msg, dst, num_segments=n_dst)        # [Nd, H, C]
    out = out.reshape(n_dst, hc) if concat else out.mean(axis=1)
    x_r = x_dst @ p['wskip'] + p['bskip']
    beta = jax.nn.sigmoid(jnp.sum(jnp.concatenate([out, x_r, out - x_r], -1)
                                  * p['wbeta'], -1, keepdims=True))
    out = beta * x_r + (1.0 - beta) * out
    if ln_params is not None:
        g, b = ln_params
        mu = out.mean(-1, keepdims=True)
        var = ((out - mu) ** 2).mean(-1, keepdims=True)
        out = (out - mu) / jnp.sqrt(var + 1e-5) * g + b
        out = jnp.maximum(out, 0.0)
    if apply_log_softmax:
        out = jax.nn.log_softmax(out, axis=-1)
    return out


# -------------------- deterministic parameter init --------------------
def init_linear(key, fan_in, fan_out, bias=True):
    kw, kb = jax.random.split(key)
    w = 0.1 * jax.random.normal(kw, (fan_in, fan_out), jnp.float32)
    b = (0.01 * jax.random.normal(kb, (1, fan_out), jnp.float32)
         if bias else None)
    return w, b


def init_conv_params(key, in_ch, c_per_head, heads, concat):
    hc = heads * c_per_head
    d_out = hc if concat else c_per_head
    ks = jax.random.split(key, 6)
    wq, bq = init_linear(ks[0], in_ch, hc)
    wk, bk = init_linear(ks[1], in_ch, hc)
    wv, bv = init_linear(ks[2], in_ch, hc)
    we, _ = init_linear(ks[3], NUM_EDGE_CLASSES, hc, bias=False)
    wskip, bskip = init_linear(ks[4], in_ch, d_out)
    wbeta = 0.1 * jax.random.normal(ks[5], (1, 3 * d_out), jnp.float32)
    return dict(wq=wq, bq=bq, wk=wk, bk=bk, wv=wv, bv=bv, we=we,
                wskip=wskip, bskip=bskip, wbeta=wbeta)


def make_adj(n_src, n_dst, fanout, key_cls):
    dst = np.repeat(np.arange(n_dst), fanout)
    src = (dst * fanout + np.tile(np.arange(fanout), n_dst) * 2 + 1) % n_src
    edge_index = jnp.asarray(np.stack([src, dst]), jnp.int32)   # [src, dst]
    eid_class = jax.random.randint(key_cls, (n_dst * fanout,), 0,
                                   NUM_EDGE_CLASSES, dtype=jnp.int32)
    return edge_index, eid_class


if __name__ == "__main__":
    key = jax.random.PRNGKey(0)
    in_channels, hidden, out_channels, heads = 6, 8, 5, 2
    n_nodes = [12, 8, 4]   # sampled-neighborhood sizes per hop (2 layers)

    k_feat, k_cls0, k_cls1, k_p0, k_p1 = jax.random.split(key, 5)
    x = jax.random.normal(k_feat, (n_nodes[0], in_channels), jnp.float32)

    ei0, cls0 = make_adj(n_nodes[0], n_nodes[1], 3, k_cls0)
    ei1, cls1 = make_adj(n_nodes[1], n_nodes[2], 3, k_cls1)

    # layer 0: concat=True  -> out dim hidden*heads, then LayerNorm + ReLU
    params0 = init_conv_params(k_p0, in_channels, hidden, heads, concat=True)
    ln_g = jnp.ones((1, hidden * heads), jnp.float32)
    ln_b = jnp.zeros((1, hidden * heads), jnp.float32)
    # layer 1: concat=False -> out dim out_channels, then log_softmax
    params1 = init_conv_params(k_p1, hidden * heads, out_channels, heads,
                               concat=False)

    @jax.jit
    def forward(x, ei0, cls0, ei1, cls1, p0, ln, p1):
        h1 = run_layer(x, n_nodes[1], ei0, cls0, p0, heads=heads,
                       c_per_head=hidden, concat=True, ln_params=ln,
                       apply_log_softmax=False, out_dtype=jnp.bfloat16)
        return run_layer(h1, n_nodes[2], ei1, cls1, p1, heads=heads,
                         c_per_head=out_channels, concat=False, ln_params=None,
                         apply_log_softmax=True, out_dtype=jnp.float32)

    out = jax.block_until_ready(
        forward(x, ei0, cls0, ei1, cls1, params0, (ln_g, ln_b), params1))

    # sanity check against a pure-JAX edge-list reference (f32)
    r1 = ref_layer(x, n_nodes[1], ei0, cls0, params0, heads=heads,
                   c_per_head=hidden, concat=True, ln_params=(ln_g, ln_b),
                   apply_log_softmax=False)
    r_out = ref_layer(r1, n_nodes[2], ei1, cls1, params1, heads=heads,
                      c_per_head=out_channels, concat=False, ln_params=None,
                      apply_log_softmax=True)
    np.testing.assert_allclose(np.asarray(out), np.asarray(r_out),
                               rtol=5e-2, atol=5e-2)
    print("KERNEL_OK")
</pallas_src>

<mosaic_0001>
module attributes {stable_mosaic.version = 11 : i64} {
  func.func @kernel(%arg0: i32, %arg1: memref<128x128xbf16, #tpu.memory_space<vmem>>, %arg2: memref<128x256xbf16, #tpu.memory_space<vmem>>, %arg3: memref<1x256xf32, #tpu.memory_space<vmem>>, %arg4: memref<128x128xbf16, #tpu.memory_space<vmem>>, %arg5: memref<128x128xbf16, #tpu.memory_space<vmem>>) attributes {dimension_semantics = [#tpu.dimension_semantics<parallel>], iteration_bounds = array<i64: 1>, scalar_prefetch = 0 : i64, scratch_operands = 0 : i64, tpu.core_type = #tpu.core_type<tc>, window_params = [{transform_indices = @transform_0, window_bounds = array<i64: 128, 128>}, {pipeline_mode = #tpu.pipeline_mode<synchronous>, transform_indices = @transform_1, window_bounds = array<i64: 128, 256>}, {pipeline_mode = #tpu.pipeline_mode<synchronous>, transform_indices = @transform_2, window_bounds = array<i64: 1, 256>}, {transform_indices = @transform_3, window_bounds = array<i64: 128, 128>}, {transform_indices = @transform_4, window_bounds = array<i64: 128, 128>}]} {
    %c0 = arith.constant 0 : index
    %c0_0 = arith.constant 0 : index
    %0 = vector.load %arg1[%c0, %c0_0] : memref<128x128xbf16, #tpu.memory_space<vmem>>, vector<128x128xbf16>
    %c0_1 = arith.constant 0 : index
    %c0_2 = arith.constant 0 : index
    %1 = vector.load %arg2[%c0_1, %c0_2] : memref<128x256xbf16, #tpu.memory_space<vmem>>, vector<128x256xbf16>
    %cst = arith.constant dense<0.000000e+00> : vector<128x256xf32>
    %2 = tpu.matmul %0, %1, %cst {dimension_numbers = #tpu.dot_dimension_numbers<[1], [0], [0], [1], [0, 0, 1, 1], [], []>} : vector<128x128xbf16>, vector<128x256xbf16>, vector<128x256xf32> -> vector<128x256xf32>
    %c0_3 = arith.constant 0 : index
    %c0_4 = arith.constant 0 : index
    %3 = vector.load %arg3[%c0_3, %c0_4] : memref<1x256xf32, #tpu.memory_space<vmem>>, vector<1x256xf32>
    %4 = vector.broadcast %3 : vector<1x256xf32> to vector<128x256xf32>
    %5 = arith.addf %2, %4 : vector<128x256xf32>
    %6 = vector.extract_strided_slice %5 {offsets = [0, 0], sizes = [128, 128], strides = [1, 1]} : vector<128x256xf32> to vector<128x128xf32>
    %7 = vector.extract_strided_slice %5 {offsets = [0, 128], sizes = [128, 128], strides = [1, 1]} : vector<128x256xf32> to vector<128x128xf32>
    %8 = tpu.transpose %6, [1, 0] : vector<128x128xf32> -> vector<128x128xf32>
    %9 = arith.truncf %8 : vector<128x128xf32> to vector<128x128xbf16>
    %c0_5 = arith.constant 0 : index
    %c0_6 = arith.constant 0 : index
    %10 = vector.load %arg4[%c0_5, %c0_6] : memref<128x128xbf16, #tpu.memory_space<vmem>>, vector<128x128xbf16>
    tpu.vector_store %arg4[%c0_5, %c0_6], %9 {strides = array<i32>} : memref<128x128xbf16, #tpu.memory_space<vmem>>, vector<128x128xbf16>,
    %11 = arith.truncf %7 : vector<128x128xf32> to vector<128x128xbf16>
    %c0_7 = arith.constant 0 : index
    %c0_8 = arith.constant 0 : index
    %12 = vector.load %arg5[%c0_7, %c0_8] : memref<128x128xbf16, #tpu.memory_space<vmem>>, vector<128x128xbf16>
    tpu.vector_store %arg5[%c0_7, %c0_8], %11 {strides = array<i32>} : memref<128x128xbf16, #tpu.memory_space<vmem>>, vector<128x128xbf16>,
    return
  }
  func.func @transform_0(%arg0: i32) -> (i32, i32) {
    %c0_i32 = arith.constant 0 : i32
    %c0_i32_0 = arith.constant 0 : i32
    return %arg0, %c0_i32 : i32, i32
  }
  func.func @transform_1(%arg0: i32) -> (i32, i32) {
    %c0_i32 = arith.constant 0 : i32
    %c0_i32_0 = arith.constant 0 : i32
    %c0_i32_1 = arith.constant 0 : i32
    return %c0_i32, %c0_i32_0 : i32, i32
  }
  func.func @transform_2(%arg0: i32) -> (i32, i32) {
    %c0_i32 = arith.constant 0 : i32
    %c0_i32_0 = arith.constant 0 : i32
    %c0_i32_1 = arith.constant 0 : i32
    return %c0_i32, %c0_i32_0 : i32, i32
  }
  func.func @transform_3(%arg0: i32) -> (i32, i32) {
    %c0_i32 = arith.constant 0 : i32
    %c0_i32_0 = arith.constant 0 : i32
    return %c0_i32, %arg0 : i32, i32
  }
  func.func @transform_4(%arg0: i32) -> (i32, i32) {
    %c0_i32 = arith.constant 0 : i32
    %c0_i32_0 = arith.constant 0 : i32
    return %arg0, %c0_i32 : i32, i32
  }
}

module attributes {stable_mosaic.version = 11 : i64} {
  func.func @kernel(%arg0: i32, %arg1: memref<8x128xbf16, #tpu.memory_space<vmem>>, %arg2: memref<8x128xi32, #tpu.memory_space<vmem>>, %arg3: memref<128x128xbf16, #tpu.memory_space<vmem>>, %arg4: memref<128x128xbf16, #tpu.memory_space<vmem>>, %arg5: memref<128x256xbf16, #tpu.memory_space<vmem>>, %arg6: memref<1x256xf32, #tpu.memory_space<vmem>>, %arg7: memref<128x32xbf16, #tpu.memory_space<vmem>>, %arg8: memref<64x128xbf16, #tpu.memory_space<vmem>>, %arg9: memref<1x128xf32, #tpu.memory_space<vmem>>, %arg10: memref<1x128xf32, #tpu.memory_space<vmem>>, %arg11: memref<1x128xf32, #tpu.memory_space<vmem>>, %arg12: memref<1x128xf32, #tpu.memory_space<vmem>>, %arg13: memref<8x128xbf16, #tpu.memory_space<vmem>>) attributes {dimension_semantics = [#tpu.dimension_semantics<parallel>], iteration_bounds = array<i64: 1>, scalar_prefetch = 0 : i64, scratch_operands = 0 : i64, tpu.core_type = #tpu.core_type<tc>, window_params = [{transform_indices = @transform_0, window_bounds = array<i64: 8, 128>}, {transform_indices = @transform_1, window_bounds = array<i64: 8, 128>}, {pipeline_mode = #tpu.pipeline_mode<synchronous>, transform_indices = @transform_2, window_bounds = array<i64: 128, 128>}, {pipeline_mode = #tpu.pipeline_mode<synchronous>, transform_indices = @transform_3, window_bounds = array<i64: 128, 128>}, {pipeline_mode = #tpu.pipeline_mode<synchronous>, transform_indices = @transform_4, window_bounds = array<i64: 128, 256>}, {pipeline_mode = #tpu.pipeline_mode<synchronous>, transform_indices = @transform_5, window_bounds = array<i64: 1, 256>}, {pipeline_mode = #tpu.pipeline_mode<synchronous>, transform_indices = @transform_6, window_bounds = array<i64: 128, 32>}, {pipeline_mode = #tpu.pipeline_mode<synchronous>, transform_indices = @transform_7, window_bounds = array<i64: 64, 128>}, {pipeline_mode = #tpu.pipeline_mode<synchronous>, transform_indices = @transform_8, window_bounds = array<i64: 1, 128>}, {pipeline_mode = #tpu.pipeline_mode<synchronous>, transform_indices = @transform_9, window_bounds = array<i64: 1, 128>}, {pipeline_mode = #tpu.pipeline_mode<synchronous>, transform_indices = @transform_10, window_bounds = array<i64: 1, 128>}, {pipeline_mode = #tpu.pipeline_mode<synchronous>, transform_indices = @transform_11, window_bounds = array<i64: 1, 128>}, {transform_indices = @transform_12, window_bounds = array<i64: 8, 128>}]} {
    %c0 = arith.constant 0 : index
    %c0_0 = arith.constant 0 : index
    %0 = vector.load %arg1[%c0, %c0_0] : memref<8x128xbf16, #tpu.memory_space<vmem>>, vector<8x128xbf16>
    %c0_1 = arith.constant 0 : index
    %c0_2 = arith.constant 0 : index
    %1 = vector.load %arg2[%c0_1, %c0_2] : memref<8x128xi32, #tpu.memory_space<vmem>>, vector<8x128xi32>
    %c0_3 = arith.constant 0 : index
    %c0_4 = arith.constant 0 : index
    %2 = vector.load %arg3[%c0_3, %c0_4] : memref<128x128xbf16, #tpu.memory_space<vmem>>, vector<128x128xbf16>
    %c0_5 = arith.constant 0 : index
    %c0_6 = arith.constant 0 : index
    %3 = vector.load %arg4[%c0_5, %c0_6] : memref<128x128xbf16, #tpu.memory_space<vmem>>, vector<128x128xbf16>
    %c0_7 = arith.constant 0 : index
    %c0_8 = arith.constant 0 : index
    %4 = vector.load %arg7[%c0_7, %c0_8] : memref<128x32xbf16, #tpu.memory_space<vmem>>, vector<128x32xbf16>
    %c0_9 = arith.constant 0 : index
    %c0_10 = arith.constant 0 : index
    %5 = vector.load %arg5[%c0_9, %c0_10] : memref<128x256xbf16, #tpu.memory_space<vmem>>, vector<128x256xbf16>
    %cst = arith.constant dense<0.000000e+00> : vector<8x256xf32>
    %6 = tpu.matmul %0, %5, %cst {dimension_numbers = #tpu.dot_dimension_numbers<[1], [0], [0], [1], [0, 0, 1, 1], [], []>} : vector<8x128xbf16>, vector<128x256xbf16>, vector<8x256xf32> -> vector<8x256xf32>
    %c0_11 = arith.constant 0 : index
    %c0_12 = arith.constant 0 : index
    %7 = vector.load %arg6[%c0_11, %c0_12] : memref<1x256xf32, #tpu.memory_space<vmem>>, vector<1x256xf32>
    %8 = vector.broadcast %7 : vector<1x256xf32> to vector<8x256xf32>
    %9 = arith.addf %6, %8 : vector<8x256xf32>
    %10 = vector.extract_strided_slice %9 {offsets = [0, 0], sizes = [8, 128], strides = [1, 1]} : vector<8x256xf32> to vector<8x128xf32>
    %11 = vector.extract_strided_slice %9 {offsets = [0, 128], sizes = [8, 128], strides = [1, 1]} : vector<8x256xf32> to vector<8x128xf32>
    %c0_i32 = arith.constant 0 : i32
    %12 = vector.broadcast %c0_i32 : i32 to vector<8x128xi32>
    %13 = arith.cmpi sge, %1, %12 : vector<8x128xi32>
    %cst_13 = arith.constant 0.000000e+00 : f32
    %cst_14 = arith.constant -1.000000e+30 : f32
    %14 = vector.broadcast %cst_13 : f32 to vector<8x128xf32>
    %15 = vector.broadcast %cst_14 : f32 to vector<8x128xf32>
    %16 = arith.select %13, %14, %15 : vector<8x128xi1>, vector<8x128xf32>
    %17 = tpu.iota {dimensions = array<i32: 1>} : vector<1x128xi32>
    %c0_i32_15 = arith.constant 0 : i32
    %18 = vector.broadcast %c0_i32_15 : i32 to vector<1x128xi32>
    %19 = arith.cmpi sge, %17, %18 : vector<1x128xi32>
    %c8_i32 = arith.constant 8 : i32
    %20 = vector.broadcast %c8_i32 : i32 to vector<1x128xi32>
    %21 = arith.cmpi slt, %17, %20 : vector<1x128xi32>
    %22 = arith.andi %19, %21 : vector<1x128xi1>
    %23 = arith.extui %22 : vector<1x128xi1> to vector<1x128xi32>
    %24 = arith.sitofp %23 : vector<1x128xi32> to vector<1x128xf32>
    %25 = vector.broadcast %24 : vector<1x128xf32> to vector<8x128xf32>
    %26 = arith.mulf %10, %25 : vector<8x128xf32>
    %27 = arith.truncf %26 : vector<8x128xf32> to vector<8x128xbf16>
    %cst_16 = arith.constant dense<0.000000e+00> : vector<8x128xf32>
    %28 = tpu.matmul %27, %2, %cst_16 {dimension_numbers = #tpu.dot_dimension_numbers<[1], [0], [0], [1], [0, 0, 1, 1], [], []>} : vector<8x128xbf16>, vector<128x128xbf16>, vector<8x128xf32> -> vector<8x128xf32>
    %29 = arith.addf %28, %16 : vector<8x128xf32>
    %cst_17 = arith.constant dense<0.000000e+00> : vector<8x32xf32>
    %30 = tpu.matmul %27, %4, %cst_17 {dimension_numbers = #tpu.dot_dimension_numbers<[1], [0], [0], [1], [0, 0, 1, 1], [], []>} : vector<8x128xbf16>, vector<128x32xbf16>, vector<8x32xf32> -> vector<8x32xf32>
    %c8_i32_18 = arith.constant 8 : i32
    %31 = vector.broadcast %c8_i32_18 : i32 to vector<1x128xi32>
    %32 = arith.cmpi sge, %17, %31 : vector<1x128xi32>
    %c16_i32 = arith.constant 16 : i32
    %33 = vector.broadcast %c16_i32 : i32 to vector<1x128xi32>
    %34 = arith.cmpi slt, %17, %33 : vector<1x128xi32>
    %35 = arith.andi %32, %34 : vector<1x128xi1>
    %36 = arith.extui %35 : vector<1x128xi1> to vector<1x128xi32>
    %37 = arith.sitofp %36 : vector<1x128xi32> to vector<1x128xf32>
    %38 = vector.broadcast %37 : vector<1x128xf32> to vector<8x128xf32>
    %39 = arith.mulf %10, %38 : vector<8x128xf32>
    %40 = arith.truncf %39 : vector<8x128xf32> to vector<8x128xbf16>
    %cst_19 = arith.constant dense<0.000000e+00> : vector<8x128xf32>
    %41 = tpu.matmul %40, %2, %cst_19 {dimension_numbers = #tpu.dot_dimension_numbers<[1], [0], [0], [1], [0, 0, 1, 1], [], []>} : vector<8x128xbf16>, vector<128x128xbf16>, vector<8x128xf32> -> vector<8x128xf32>
    %42 = arith.addf %41, %16 : vector<8x128xf32>
    %cst_20 = arith.constant dense<0.000000e+00> : vector<8x32xf32>
    %43 = tpu.matmul %40, %4, %cst_20 {dimension_numbers = #tpu.dot_dimension_numbers<[1], [0], [0], [1], [0, 0, 1, 1], [], []>} : vector<8x128xbf16>, vector<128x32xbf16>, vector<8x32xf32> -> vector<8x32xf32>
    %cst_21 = arith.constant 0.000000e+00 : f32
    %44 = vector.broadcast %cst_21 : f32 to vector<8x128xf32>
    %cst_22 = arith.constant 0.000000e+00 : f32
    %45 = vector.broadcast %cst_22 : f32 to vector<8x128xf32>
    %c0_i32_23 = arith.constant 0 : i32
    %46 = vector.broadcast %c0_i32_23 : i32 to vector<8x128xi32>
    %47 = arith.cmpi eq, %1, %46 : vector<8x128xi32>
    %48 = vector.extract_strided_slice %30 {offsets = [0, 0], sizes = [8, 1], strides = [1, 1]} : vector<8x32xf32> to vector<8x1xf32>
    %cst_24 = arith.constant 0.000000e+00 : f32
    %49 = vector.shape_cast %48 : vector<8x1xf32> to vector<8x1xf32>
    %50 = vector.broadcast %49 : vector<8x1xf32> to vector<8x128xf32>
    %51 = vector.broadcast %cst_24 : f32 to vector<8x128xf32>
    %52 = arith.select %47, %50, %51 : vector<8x128xi1>, vector<8x128xf32>
    %53 = arith.addf %29, %52 : vector<8x128xf32>
    %54 = vector.extract_strided_slice %43 {offsets = [0, 0], sizes = [8, 1], strides = [1, 1]} : vector<8x32xf32> to vector<8x1xf32>
    %cst_25 = arith.constant 0.000000e+00 : f32
    %55 = vector.shape_cast %54 : vector<8x1xf32> to vector<8x1xf32>
    %56 = vector.broadcast %55 : vector<8x1xf32> to vector<8x128xf32>
    %57 = vector.broadcast %cst_25 : f32 to vector<8x128xf32>
    %58 = arith.select %47, %56, %57 : vector<8x128xi1>, vector<8x128xf32>
    %59 = arith.addf %42, %58 : vector<8x128xf32>
    %c1_i32 = arith.constant 1 : i32
    %60 = vector.broadcast %c1_i32 : i32 to vector<8x128xi32>
    %61 = arith.cmpi eq, %1, %60 : vector<8x128xi32>
    %62 = vector.extract_strided_slice %30 {offsets = [0, 1], sizes = [8, 1], strides = [1, 1]} : vector<8x32xf32> to vector<8x1xf32>
    %cst_26 = arith.constant 0.000000e+00 : f32
    %63 = vector.shape_cast %62 : vector<8x1xf32> to vector<8x1xf32>
    %64 = vector.broadcast %63 : vector<8x1xf32> to vector<8x128xf32>
    %65 = vector.broadcast %cst_26 : f32 to vector<8x128xf32>
    %66 = arith.select %61, %64, %65 : vector<8x128xi1>, vector<8x128xf32>
    %67 = arith.addf %44, %66 : vector<8x128xf32>
    %68 = vector.extract_strided_slice %43 {offsets = [0, 1], sizes = [8, 1], strides = [1, 1]} : vector<8x32xf32> to vector<8x1xf32>
    %cst_27 = arith.constant 0.000000e+00 : f32
    %69 = vector.shape_cast %68 : vector<8x1xf32> to vector<8x1xf32>
    %70 = vector.broadcast %69 : vector<8x1xf32> to vector<8x128xf32>
    %71 = vector.broadcast %cst_27 : f32 to vector<8x128xf32>
    %72 = arith.select %61, %70, %71 : vector<8x128xi1>, vector<8x128xf32>
    %73 = arith.addf %45, %72 : vector<8x128xf32>
    %c2_i32 = arith.constant 2 : i32
    %74 = vector.broadcast %c2_i32 : i32 to vector<8x128xi32>
    %75 = arith.cmpi eq, %1, %74 : vector<8x128xi32>
    %76 = vector.extract_strided_slice %30 {offsets = [0, 2], sizes = [8, 1], strides = [1, 1]} : vector<8x32xf32> to vector<8x1xf32>
    %cst_28 = arith.constant 0.000000e+00 : f32
    %77 = vector.shape_cast %76 : vector<8x1xf32> to vector<8x1xf32>
    %78 = vector.broadcast %77 : vector<8x1xf32> to vector<8x128xf32>
    %79 = vector.broadcast %cst_28 : f32 to vector<8x128xf32>
    %80 = arith.select %75, %78, %79 : vector<8x128xi1>, vector<8x128xf32>
    %81 = arith.addf %53, %80 : vector<8x128xf32>
    %82 = vector.extract_strided_slice %43 {offsets = [0, 2], sizes = [8, 1], strides = [1, 1]} : vector<8x32xf32> to vector<8x1xf32>
    %cst_29 = arith.constant 0.000000e+00 : f32
    %83 = vector.shape_cast %82 : vector<8x1xf32> to vector<8x1xf32>
    %84 = vector.broadcast %83 : vector<8x1xf32> to vector<8x128xf32>
    %85 = vector.broadcast %cst_29 : f32 to vector<8x128xf32>
    %86 = arith.select %75, %84, %85 : vector<8x128xi1>, vector<8x128xf32>
    %87 = arith.addf %59, %86 : vector<8x128xf32>
    %c3_i32 = arith.constant 3 : i32
    %88 = vector.broadcast %c3_i32 : i32 to vector<8x128xi32>
    %89 = arith.cmpi eq, %1, %88 : vector<8x128xi32>
    %90 = vector.extract_strided_slice %30 {offsets = [0, 3], sizes = [8, 1], strides = [1, 1]} : vector<8x32xf32> to vector<8x1xf32>
    %cst_30 = arith.constant 0.000000e+00 : f32
    %91 = vector.shape_cast %90 : vector<8x1xf32> to vector<8x1xf32>
    %92 = vector.broadcast %91 : vector<8x1xf32> to vector<8x128xf32>
    %93 = vector.broadcast %cst_30 : f32 to vector<8x128xf32>
    %94 = arith.select %89, %92, %93 : vector<8x128xi1>, vector<8x128xf32>
    %95 = arith.addf %67, %94 : vector<8x128xf32>
    %96 = vector.extract_strided_slice %43 {offsets = [0, 3], sizes = [8, 1], strides = [1, 1]} : vector<8x32xf32> to vector<8x1xf32>
    %cst_31 = arith.constant 0.000000e+00 : f32
    %97 = vector.shape_cast %96 : vector<8x1xf32> to vector<8x1xf32>
    %98 = vector.broadcast %97 : vector<8x1xf32> to vector<8x128xf32>
    %99 = vector.broadcast %cst_31 : f32 to vector<8x128xf32>
    %100 = arith.select %89, %98, %99 : vector<8x128xi1>, vector<8x128xf32>
    %101 = arith.addf %73, %100 : vector<8x128xf32>
    %c4_i32 = arith.constant 4 : i32
    %102 = vector.broadcast %c4_i32 : i32 to vector<8x128xi32>
    %103 = arith.cmpi eq, %1, %102 : vector<8x128xi32>
    %104 = vector.extract_strided_slice %30 {offsets = [0, 4], sizes = [8, 1], strides = [1, 1]} : vector<8x32xf32> to vector<8x1xf32>
    %cst_32 = arith.constant 0.000000e+00 : f32
    %105 = vector.shape_cast %104 : vector<8x1xf32> to vector<8x1xf32>
    %106 = vector.broadcast %105 : vector<8x1xf32> to vector<8x128xf32>
    %107 = vector.broadcast %cst_32 : f32 to vector<8x128xf32>
    %108 = arith.select %103, %106, %107 : vector<8x128xi1>, vector<8x128xf32>
    %109 = arith.addf %81, %108 : vector<8x128xf32>
    %110 = vector.extract_strided_slice %43 {offsets = [0, 4], sizes = [8, 1], strides = [1, 1]} : vector<8x32xf32> to vector<8x1xf32>
    %cst_33 = arith.constant 0.000000e+00 : f32
    %111 = vector.shape_cast %110 : vector<8x1xf32> to vector<8x1xf32>
    %112 = vector.broadcast %111 : vector<8x1xf32> to vector<8x128xf32>
    %113 = vector.broadcast %cst_33 : f32 to vector<8x128xf32>
    %114 = arith.select %103, %112, %113 : vector<8x128xi1>, vector<8x128xf32>
    %115 = arith.addf %87, %114 : vector<8x128xf32>
    %c5_i32 = arith.constant 5 : i32
    %116 = vector.broadcast %c5_i32 : i32 to vector<8x128xi32>
    %117 = arith.cmpi eq, %1, %116 : vector<8x128xi32>
    %118 = vector.extract_strided_slice %30 {offsets = [0, 5], sizes = [8, 1], strides = [1, 1]} : vector<8x32xf32> to vector<8x1xf32>
    %cst_34 = arith.constant 0.000000e+00 : f32
    %119 = vector.shape_cast %118 : vector<8x1xf32> to vector<8x1xf32>
    %120 = vector.broadcast %119 : vector<8x1xf32> to vector<8x128xf32>
    %121 = vector.broadcast %cst_34 : f32 to vector<8x128xf32>
    %122 = arith.select %117, %120, %121 : vector<8x128xi1>, vector<8x128xf32>
    %123 = arith.addf %95, %122 : vector<8x128xf32>
    %124 = vector.extract_strided_slice %43 {offsets = [0, 5], sizes = [8, 1], strides = [1, 1]} : vector<8x32xf32> to vector<8x1xf32>
    %cst_35 = arith.constant 0.000000e+00 : f32
    %125 = vector.shape_cast %124 : vector<8x1xf32> to vector<8x1xf32>
    %126 = vector.broadcast %125 : vector<8x1xf32> to vector<8x128xf32>
    %127 = vector.broadcast %cst_35 : f32 to vector<8x128xf32>
    %128 = arith.select %117, %126, %127 : vector<8x128xi1>, vector<8x128xf32>
    %129 = arith.addf %101, %128 : vector<8x128xf32>
    %c6_i32 = arith.constant 6 : i32
    %130 = vector.broadcast %c6_i32 : i32 to vector<8x128xi32>
    %131 = arith.cmpi eq, %1, %130 : vector<8x128xi32>
    %132 = vector.extract_strided_slice %30 {offsets = [0, 6], sizes = [8, 1], strides = [1, 1]} : vector<8x32xf32> to vector<8x1xf32>
    %cst_36 = arith.constant 0.000000e+00 : f32
    %133 = vector.shape_cast %132 : vector<8x1xf32> to vector<8x1xf32>
    %134 = vector.broadcast %133 : vector<8x1xf32> to vector<8x128xf32>
    %135 = vector.broadcast %cst_36 : f32 to vector<8x128xf32>
    %136 = arith.select %131, %134, %135 : vector<8x128xi1>, vector<8x128xf32>
    %137 = arith.addf %109, %136 : vector<8x128xf32>
    %138 = vector.extract_strided_slice %43 {offsets = [0, 6], sizes = [8, 1], strides = [1, 1]} : vector<8x32xf32> to vector<8x1xf32>
    %cst_37 = arith.constant 0.000000e+00 : f32
    %139 = vector.shape_cast %138 : vector<8x1xf32> to vector<8x1xf32>
    %140 = vector.broadcast %139 : vector<8x1xf32> to vector<8x128xf32>
    %141 = vector.broadcast %cst_37 : f32 to vector<8x128xf32>
    %142 = arith.select %131, %140, %141 : vector<8x128xi1>, vector<8x128xf32>
    %143 = arith.addf %115, %142 : vector<8x128xf32>
    %c7_i32 = arith.constant 7 : i32
    %144 = vector.broadcast %c7_i32 : i32 to vector<8x128xi32>
    %145 = arith.cmpi eq, %1, %144 : vector<8x128xi32>
    %146 = vector.extract_strided_slice %30 {offsets = [0, 7], sizes = [8, 1], strides = [1, 1]} : vector<8x32xf32> to vector<8x1xf32>
    %cst_38 = arith.constant 0.000000e+00 : f32
    %147 = vector.shape_cast %146 : vector<8x1xf32> to vector<8x1xf32>
    %148 = vector.broadcast %147 : vector<8x1xf32> to vector<8x128xf32>
    %149 = vector.broadcast %cst_38 : f32 to vector<8x128xf32>
    %150 = arith.select %145, %148, %149 : vector<8x128xi1>, vector<8x128xf32>
    %151 = arith.addf %123, %150 : vector<8x128xf32>
    %152 = vector.extract_strided_slice %43 {offsets = [0, 7], sizes = [8, 1], strides = [1, 1]} : vector<8x32xf32> to vector<8x1xf32>
    %cst_39 = arith.constant 0.000000e+00 : f32
    %153 = vector.shape_cast %152 : vector<8x1xf32> to vector<8x1xf32>
    %154 = vector.broadcast %153 : vector<8x1xf32> to vector<8x128xf32>
    %155 = vector.broadcast %cst_39 : f32 to vector<8x128xf32>
    %156 = arith.select %145, %154, %155 : vector<8x128xi1>, vector<8x128xf32>
    %157 = arith.addf %129, %156 : vector<8x128xf32>
    %c8_i32_40 = arith.constant 8 : i32
    %158 = vector.broadcast %c8_i32_40 : i32 to vector<8x128xi32>
    %159 = arith.cmpi eq, %1, %158 : vector<8x128xi32>
    %160 = vector.extract_strided_slice %30 {offsets = [0, 8], sizes = [8, 1], strides = [1, 1]} : vector<8x32xf32> to vector<8x1xf32>
    %cst_41 = arith.constant 0.000000e+00 : f32
    %161 = vector.shape_cast %160 : vector<8x1xf32> to vector<8x1xf32>
    %162 = vector.broadcast %161 : vector<8x1xf32> to vector<8x128xf32>
    %163 = vector.broadcast %cst_41 : f32 to vector<8x128xf32>
    %164 = arith.select %159, %162, %163 : vector<8x128xi1>, vector<8x128xf32>
    %165 = arith.addf %137, %164 : vector<8x128xf32>
    %166 = vector.extract_strided_slice %43 {offsets = [0, 8], sizes = [8, 1], strides = [1, 1]} : vector<8x32xf32> to vector<8x1xf32>
    %cst_42 = arith.constant 0.000000e+00 : f32
    %167 = vector.shape_cast %166 : vector<8x1xf32> to vector<8x1xf32>
    %168 = vector.broadcast %167 : vector<8x1xf32> to vector<8x128xf32>
    %169 = vector.broadcast %cst_42 : f32 to vector<8x128xf32>
    %170 = arith.select %159, %168, %169 : vector<8x128xi1>, vector<8x128xf32>
    %171 = arith.addf %143, %170 : vector<8x128xf32>
    %c9_i32 = arith.constant 9 : i32
    %172 = vector.broadcast %c9_i32 : i32 to vector<8x128xi32>
    %173 = arith.cmpi eq, %1, %172 : vector<8x128xi32>
    %174 = vector.extract_strided_slice %30 {offsets = [0, 9], sizes = [8, 1], strides = [1, 1]} : vector<8x32xf32> to vector<8x1xf32>
    %cst_43 = arith.constant 0.000000e+00 : f32
    %175 = vector.shape_cast %174 : vector<8x1xf32> to vector<8x1xf32>
    %176 = vector.broadcast %175 : vector<8x1xf32> to vector<8x128xf32>
    %177 = vector.broadcast %cst_43 : f32 to vector<8x128xf32>
    %178 = arith.select %173, %176, %177 : vector<8x128xi1>, vector<8x128xf32>
    %179 = arith.addf %151, %178 : vector<8x128xf32>
    %180 = vector.extract_strided_slice %43 {offsets = [0, 9], sizes = [8, 1], strides = [1, 1]} : vector<8x32xf32> to vector<8x1xf32>
    %cst_44 = arith.constant 0.000000e+00 : f32
    %181 = vector.shape_cast %180 : vector<8x1xf32> to vector<8x1xf32>
    %182 = vector.broadcast %181 : vector<8x1xf32> to vector<8x128xf32>
    %183 = vector.broadcast %cst_44 : f32 to vector<8x128xf32>
    %184 = arith.select %173, %182, %183 : vector<8x128xi1>, vector<8x128xf32>
    %185 = arith.addf %157, %184 : vector<8x128xf32>
    %c10_i32 = arith.constant 10 : i32
    %186 = vector.broadcast %c10_i32 : i32 to vector<8x128xi32>
    %187 = arith.cmpi eq, %1, %186 : vector<8x128xi32>
    %188 = vector.extract_strided_slice %30 {offsets = [0, 10], sizes = [8, 1], strides = [1, 1]} : vector<8x32xf32> to vector<8x1xf32>
    %cst_45 = arith.constant 0.000000e+00 : f32
    %189 = vector.shape_cast %188 : vector<8x1xf32> to vector<8x1xf32>
    %190 = vector.broadcast %189 : vector<8x1xf32> to vector<8x128xf32>
    %191 = vector.broadcast %cst_45 : f32 to vector<8x128xf32>
    %192 = arith.select %187, %190, %191 : vector<8x128xi1>, vector<8x128xf32>
    %193 = arith.addf %165, %192 : vector<8x128xf32>
    %194 = vector.extract_strided_slice %43 {offsets = [0, 10], sizes = [8, 1], strides = [1, 1]} : vector<8x32xf32> to vector<8x1xf32>
    %cst_46 = arith.constant 0.000000e+00 : f32
    %195 = vector.shape_cast %194 : vector<8x1xf32> to vector<8x1xf32>
    %196 = vector.broadcast %195 : vector<8x1xf32> to vector<8x128xf32>
    %197 = vector.broadcast %cst_46 : f32 to vector<8x128xf32>
    %198 = arith.select %187, %196, %197 : vector<8x128xi1>, vector<8x128xf32>
    %199 = arith.addf %171, %198 : vector<8x128xf32>
    %c11_i32 = arith.constant 11 : i32
    %200 = vector.broadcast %c11_i32 : i32 to vector<8x128xi32>
    %201 = arith.cmpi eq, %1, %200 : vector<8x128xi32>
    %202 = vector.extract_strided_slice %30 {offsets = [0, 11], sizes = [8, 1], strides = [1, 1]} : vector<8x32xf32> to vector<8x1xf32>
    %cst_47 = arith.constant 0.000000e+00 : f32
    %203 = vector.shape_cast %202 : vector<8x1xf32> to vector<8x1xf32>
    %204 = vector.broadcast %203 : vector<8x1xf32> to vector<8x128xf32>
    %205 = vector.broadcast %cst_47 : f32 to vector<8x128xf32>
    %206 = arith.select %201, %204, %205 : vector<8x128xi1>, vector<8x128xf32>
    %207 = arith.addf %179, %206 : vector<8x128xf32>
    %208 = vector.extract_strided_slice %43 {offsets = [0, 11], sizes = [8, 1], strides = [1, 1]} : vector<8x32xf32> to vector<8x1xf32>
    %cst_48 = arith.constant 0.000000e+00 : f32
    %209 = vector.shape_cast %208 : vector<8x1xf32> to vector<8x1xf32>
    %210 = vector.broadcast %209 : vector<8x1xf32> to vector<8x128xf32>
    %211 = vector.broadcast %cst_48 : f32 to vector<8x128xf32>
    %212 = arith.select %201, %210, %211 : vector<8x128xi1>, vector<8x128xf32>
    %213 = arith.addf %185, %212 : vector<8x128xf32>
    %c12_i32 = arith.constant 12 : i32
    %214 = vector.broadcast %c12_i32 : i32 to vector<8x128xi32>
    %215 = arith.cmpi eq, %1, %214 : vector<8x128xi32>
    %216 = vector.extract_strided_slice %30 {offsets = [0, 12], sizes = [8, 1], strides = [1, 1]} : vector<8x32xf32> to vector<8x1xf32>
    %cst_49 = arith.constant 0.000000e+00 : f32
    %217 = vector.shape_cast %216 : vector<8x1xf32> to vector<8x1xf32>
    %218 = vector.broadcast %217 : vector<8x1xf32> to vector<8x128xf32>
    %219 = vector.broadcast %cst_49 : f32 to vector<8x128xf32>
    %220 = arith.select %215, %218, %219 : vector<8x128xi1>, vector<8x128xf32>
    %221 = arith.addf %193, %220 : vector<8x128xf32>
    %222 = vector.extract_strided_slice %43 {offsets = [0, 12], sizes = [8, 1], strides = [1, 1]} : vector<8x32xf32> to vector<8x1xf32>
    %cst_50 = arith.constant 0.000000e+00 : f32
    %223 = vector.shape_cast %222 : vector<8x1xf32> to vector<8x1xf32>
    %224 = vector.broadcast %223 : vector<8x1xf32> to vector<8x128xf32>
    %225 = vector.broadcast %cst_50 : f32 to vector<8x128xf32>
    %226 = arith.select %215, %224, %225 : vector<8x128xi1>, vector<8x128xf32>
    %227 = arith.addf %199, %226 : vector<8x128xf32>
    %c13_i32 = arith.constant 13 : i32
    %228 = vector.broadcast %c13_i32 : i32 to vector<8x128xi32>
    %229 = arith.cmpi eq, %1, %228 : vector<8x128xi32>
    %230 = vector.extract_strided_slice %30 {offsets = [0, 13], sizes = [8, 1], strides = [1, 1]} : vector<8x32xf32> to vector<8x1xf32>
    %cst_51 = arith.constant 0.000000e+00 : f32
    %231 = vector.shape_cast %230 : vector<8x1xf32> to vector<8x1xf32>
    %232 = vector.broadcast %231 : vector<8x1xf32> to vector<8x128xf32>
    %233 = vector.broadcast %cst_51 : f32 to vector<8x128xf32>
    %234 = arith.select %229, %232, %233 : vector<8x128xi1>, vector<8x128xf32>
    %235 = arith.addf %207, %234 : vector<8x128xf32>
    %236 = vector.extract_strided_slice %43 {offsets = [0, 13], sizes = [8, 1], strides = [1, 1]} : vector<8x32xf32> to vector<8x1xf32>
    %cst_52 = arith.constant 0.000000e+00 : f32
    %237 = vector.shape_cast %236 : vector<8x1xf32> to vector<8x1xf32>
    %238 = vector.broadcast %237 : vector<8x1xf32> to vector<8x128xf32>
    %239 = vector.broadcast %cst_52 : f32 to vector<8x128xf32>
    %240 = arith.select %229, %238, %239 : vector<8x128xi1>, vector<8x128xf32>
    %241 = arith.addf %213, %240 : vector<8x128xf32>
    %c14_i32 = arith.constant 14 : i32
    %242 = vector.broadcast %c14_i32 : i32 to vector<8x128xi32>
    %243 = arith.cmpi eq, %1, %242 : vector<8x128xi32>
    %244 = vector.extract_strided_slice %30 {offsets = [0, 14], sizes = [8, 1], strides = [1, 1]} : vector<8x32xf32> to vector<8x1xf32>
    %cst_53 = arith.constant 0.000000e+00 : f32
    %245 = vector.shape_cast %244 : vector<8x1xf32> to vector<8x1xf32>
    %246 = vector.broadcast %245 : vector<8x1xf32> to vector<8x128xf32>
    %247 = vector.broadcast %cst_53 : f32 to vector<8x128xf32>
    %248 = arith.select %243, %246, %247 : vector<8x128xi1>, vector<8x128xf32>
    %249 = arith.addf %221, %248 : vector<8x128xf32>
    %250 = vector.extract_strided_slice %43 {offsets = [0, 14], sizes = [8, 1], strides = [1, 1]} : vector<8x32xf32> to vector<8x1xf32>
    %cst_54 = arith.constant 0.000000e+00 : f32
    %251 = vector.shape_cast %250 : vector<8x1xf32> to vector<8x1xf32>
    %252 = vector.broadcast %251 : vector<8x1xf32> to vector<8x128xf32>
    %253 = vector.broadcast %cst_54 : f32 to vector<8x128xf32>
    %254 = arith.select %243, %252, %253 : vector<8x128xi1>, vector<8x128xf32>
    %255 = arith.addf %227, %254 : vector<8x128xf32>
    %c15_i32 = arith.constant 15 : i32
    %256 = vector.broadcast %c15_i32 : i32 to vector<8x128xi32>
    %257 = arith.cmpi eq, %1, %256 : vector<8x128xi32>
    %258 = vector.extract_strided_slice %30 {offsets = [0, 15], sizes = [8, 1], strides = [1, 1]} : vector<8x32xf32> to vector<8x1xf32>
    %cst_55 = arith.constant 0.000000e+00 : f32
    %259 = vector.shape_cast %258 : vector<8x1xf32> to vector<8x1xf32>
    %260 = vector.broadcast %259 : vector<8x1xf32> to vector<8x128xf32>
    %261 = vector.broadcast %cst_55 : f32 to vector<8x128xf32>
    %262 = arith.select %257, %260, %261 : vector<8x128xi1>, vector<8x128xf32>
    %263 = arith.addf %235, %262 : vector<8x128xf32>
    %264 = vector.extract_strided_slice %43 {offsets = [0, 15], sizes = [8, 1], strides = [1, 1]} : vector<8x32xf32> to vector<8x1xf32>
    %cst_56 = arith.constant 0.000000e+00 : f32
    %265 = vector.shape_cast %264 : vector<8x1xf32> to vector<8x1xf32>
    %266 = vector.broadcast %265 : vector<8x1xf32> to vector<8x128xf32>
    %267 = vector.broadcast %cst_56 : f32 to vector<8x128xf32>
    %268 = arith.select %257, %266, %267 : vector<8x128xi1>, vector<8x128xf32>
    %269 = arith.addf %241, %268 : vector<8x128xf32>
    %c16_i32_57 = arith.constant 16 : i32
    %270 = vector.broadcast %c16_i32_57 : i32 to vector<8x128xi32>
    %271 = arith.cmpi eq, %1, %270 : vector<8x128xi32>
    %272 = vector.extract_strided_slice %30 {offsets = [0, 16], sizes = [8, 1], strides = [1, 1]} : vector<8x32xf32> to vector<8x1xf32>
    %cst_58 = arith.constant 0.000000e+00 : f32
    %273 = vector.shape_cast %272 : vector<8x1xf32> to vector<8x1xf32>
    %274 = vector.broadcast %273 : vector<8x1xf32> to vector<8x128xf32>
    %275 = vector.broadcast %cst_58 : f32 to vector<8x128xf32>
    %276 = arith.select %271, %274, %275 : vector<8x128xi1>, vector<8x128xf32>
    %277 = arith.addf %249, %276 : vector<8x128xf32>
    %278 = vector.extract_strided_slice %43 {offsets = [0, 16], sizes = [8, 1], strides = [1, 1]} : vector<8x32xf32> to vector<8x1xf32>
    %cst_59 = arith.constant 0.000000e+00 : f32
    %279 = vector.shape_cast %278 : vector<8x1xf32> to vector<8x1xf32>
    %280 = vector.broadcast %279 : vector<8x1xf32> to vector<8x128xf32>
    %281 = vector.broadcast %cst_59 : f32 to vector<8x128xf32>
    %282 = arith.select %271, %280, %281 : vector<8x128xi1>, vector<8x128xf32>
    %283 = arith.addf %255, %282 : vector<8x128xf32>
    %c17_i32 = arith.constant 17 : i32
    %284 = vector.broadcast %c17_i32 : i32 to vector<8x128xi32>
    %285 = arith.cmpi eq, %1, %284 : vector<8x128xi32>
    %286 = vector.extract_strided_slice %30 {offsets = [0, 17], sizes = [8, 1], strides = [1, 1]} : vector<8x32xf32> to vector<8x1xf32>
    %cst_60 = arith.constant 0.000000e+00 : f32
    %287 = vector.shape_cast %286 : vector<8x1xf32> to vector<8x1xf32>
    %288 = vector.broadcast %287 : vector<8x1xf32> to vector<8x128xf32>
    %289 = vector.broadcast %cst_60 : f32 to vector<8x128xf32>
    %290 = arith.select %285, %288, %289 : vector<8x128xi1>, vector<8x128xf32>
    %291 = arith.addf %263, %290 : vector<8x128xf32>
    %292 = vector.extract_strided_slice %43 {offsets = [0, 17], sizes = [8, 1], strides = [1, 1]} : vector<8x32xf32> to vector<8x1xf32>
    %cst_61 = arith.constant 0.000000e+00 : f32
    %293 = vector.shape_cast %292 : vector<8x1xf32> to vector<8x1xf32>
    %294 = vector.broadcast %293 : vector<8x1xf32> to vector<8x128xf32>
    %295 = vector.broadcast %cst_61 : f32 to vector<8x128xf32>
    %296 = arith.select %285, %294, %295 : vector<8x128xi1>, vector<8x128xf32>
    %297 = arith.addf %269, %296 : vector<8x128xf32>
    %c18_i32 = arith.constant 18 : i32
    %298 = vector.broadcast %c18_i32 : i32 to vector<8x128xi32>
    %299 = arith.cmpi eq, %1, %298 : vector<8x128xi32>
    %300 = vector.extract_strided_slice %30 {offsets = [0, 18], sizes = [8, 1], strides = [1, 1]} : vector<8x32xf32> to vector<8x1xf32>
    %cst_62 = arith.constant 0.000000e+00 : f32
    %301 = vector.shape_cast %300 : vector<8x1xf32> to vector<8x1xf32>
    %302 = vector.broadcast %301 : vector<8x1xf32> to vector<8x128xf32>
    %303 = vector.broadcast %cst_62 : f32 to vector<8x128xf32>
    %304 = arith.select %299, %302, %303 : vector<8x128xi1>, vector<8x128xf32>
    %305 = arith.addf %277, %304 : vector<8x128xf32>
    %306 = vector.extract_strided_slice %43 {offsets = [0, 18], sizes = [8, 1], strides = [1, 1]} : vector<8x32xf32> to vector<8x1xf32>
    %cst_63 = arith.constant 0.000000e+00 : f32
    %307 = vector.shape_cast %306 : vector<8x1xf32> to vector<8x1xf32>
    %308 = vector.broadcast %307 : vector<8x1xf32> to vector<8x128xf32>
    %309 = vector.broadcast %cst_63 : f32 to vector<8x128xf32>
    %310 = arith.select %299, %308, %309 : vector<8x128xi1>, vector<8x128xf32>
    %311 = arith.addf %283, %310 : vector<8x128xf32>
    %c19_i32 = arith.constant 19 : i32
    %312 = vector.broadcast %c19_i32 : i32 to vector<8x128xi32>
    %313 = arith.cmpi eq, %1, %312 : vector<8x128xi32>
    %314 = vector.extract_strided_slice %30 {offsets = [0, 19], sizes = [8, 1], strides = [1, 1]} : vector<8x32xf32> to vector<8x1xf32>
    %cst_64 = arith.constant 0.000000e+00 : f32
    %315 = vector.shape_cast %314 : vector<8x1xf32> to vector<8x1xf32>
    %316 = vector.broadcast %315 : vector<8x1xf32> to vector<8x128xf32>
    %317 = vector.broadcast %cst_64 : f32 to vector<8x128xf32>
    %318 = arith.select %313, %316, %317 : vector<8x128xi1>, vector<8x128xf32>
    %319 = arith.addf %291, %318 : vector<8x128xf32>
    %320 = vector.extract_strided_slice %43 {offsets = [0, 19], sizes = [8, 1], strides = [1, 1]} : vector<8x32xf32> to vector<8x1xf32>
    %cst_65 = arith.constant 0.000000e+00 : f32
    %321 = vector.shape_cast %320 : vector<8x1xf32> to vector<8x1xf32>
    %322 = vector.broadcast %321 : vector<8x1xf32> to vector<8x128xf32>
    %323 = vector.broadcast %cst_65 : f32 to vector<8x128xf32>
    %324 = arith.select %313, %322, %323 : vector<8x128xi1>, vector<8x128xf32>
    %325 = arith.addf %297, %324 : vector<8x128xf32>
    %c20_i32 = arith.constant 20 : i32
    %326 = vector.broadcast %c20_i32 : i32 to vector<8x128xi32>
    %327 = arith.cmpi eq, %1, %326 : vector<8x128xi32>
    %328 = vector.extract_strided_slice %30 {offsets = [0, 20], sizes = [8, 1], strides = [1, 1]} : vector<8x32xf32> to vector<8x1xf32>
    %cst_66 = arith.constant 0.000000e+00 : f32
    %329 = vector.shape_cast %328 : vector<8x1xf32> to vector<8x1xf32>
    %330 = vector.broadcast %329 : vector<8x1xf32> to vector<8x128xf32>
    %331 = vector.broadcast %cst_66 : f32 to vector<8x128xf32>
    %332 = arith.select %327, %330, %331 : vector<8x128xi1>, vector<8x128xf32>
    %333 = arith.addf %305, %332 : vector<8x128xf32>
    %334 = vector.extract_strided_slice %43 {offsets = [0, 20], sizes = [8, 1], strides = [1, 1]} : vector<8x32xf32> to vector<8x1xf32>
    %cst_67 = arith.constant 0.000000e+00 : f32
    %335 = vector.shape_cast %334 : vector<8x1xf32> to vector<8x1xf32>
    %336 = vector.broadcast %335 : vector<8x1xf32> to vector<8x128xf32>
    %337 = vector.broadcast %cst_67 : f32 to vector<8x128xf32>
    %338 = arith.select %327, %336, %337 : vector<8x128xi1>, vector<8x128xf32>
    %339 = arith.addf %311, %338 : vector<8x128xf32>
    %c21_i32 = arith.constant 21 : i32
    %340 = vector.broadcast %c21_i32 : i32 to vector<8x128xi32>
    %341 = arith.cmpi eq, %1, %340 : vector<8x128xi32>
    %342 = vector.extract_strided_slice %30 {offsets = [0, 21], sizes = [8, 1], strides = [1, 1]} : vector<8x32xf32> to vector<8x1xf32>
    %cst_68 = arith.constant 0.000000e+00 : f32
    %343 = vector.shape_cast %342 : vector<8x1xf32> to vector<8x1xf32>
    %344 = vector.broadcast %343 : vector<8x1xf32> to vector<8x128xf32>
    %345 = vector.broadcast %cst_68 : f32 to vector<8x128xf32>
    %346 = arith.select %341, %344, %345 : vector<8x128xi1>, vector<8x128xf32>
    %347 = arith.addf %319, %346 : vector<8x128xf32>
    %348 = vector.extract_strided_slice %43 {offsets = [0, 21], sizes = [8, 1], strides = [1, 1]} : vector<8x32xf32> to vector<8x1xf32>
    %cst_69 = arith.constant 0.000000e+00 : f32
    %349 = vector.shape_cast %348 : vector<8x1xf32> to vector<8x1xf32>
    %350 = vector.broadcast %349 : vector<8x1xf32> to vector<8x128xf32>
    %351 = vector.broadcast %cst_69 : f32 to vector<8x128xf32>
    %352 = arith.select %341, %350, %351 : vector<8x128xi1>, vector<8x128xf32>
    %353 = arith.addf %325, %352 : vector<8x128xf32>
    %c22_i32 = arith.constant 22 : i32
    %354 = vector.broadcast %c22_i32 : i32 to vector<8x128xi32>
    %355 = arith.cmpi eq, %1, %354 : vector<8x128xi32>
    %356 = vector.extract_strided_slice %30 {offsets = [0, 22], sizes = [8, 1], strides = [1, 1]} : vector<8x32xf32> to vector<8x1xf32>
    %cst_70 = arith.constant 0.000000e+00 : f32
    %357 = vector.shape_cast %356 : vector<8x1xf32> to vector<8x1xf32>
    %358 = vector.broadcast %357 : vector<8x1xf32> to vector<8x128xf32>
    %359 = vector.broadcast %cst_70 : f32 to vector<8x128xf32>
    %360 = arith.select %355, %358, %359 : vector<8x128xi1>, vector<8x128xf32>
    %361 = arith.addf %333, %360 : vector<8x128xf32>
    %362 = vector.extract_strided_slice %43 {offsets = [0, 22], sizes = [8, 1], strides = [1, 1]} : vector<8x32xf32> to vector<8x1xf32>
    %cst_71 = arith.constant 0.000000e+00 : f32
    %363 = vector.shape_cast %362 : vector<8x1xf32> to vector<8x1xf32>
    %364 = vector.broadcast %363 : vector<8x1xf32> to vector<8x128xf32>
    %365 = vector.broadcast %cst_71 : f32 to vector<8x128xf32>
    %366 = arith.select %355, %364, %365 : vector<8x128xi1>, vector<8x128xf32>
    %367 = arith.addf %339, %366 : vector<8x128xf32>
    %368 = arith.addf %361, %347 : vector<8x128xf32>
    %369 = arith.addf %367, %353 : vector<8x128xf32>
    %cst_72 = arith.constant 0.000000e+00 : f32
    %370 = vector.broadcast %cst_72 : f32 to vector<8x128xf32>
    %cst_73 = arith.constant dense<0xFF800000> : vector<8xf32>
    %371 = vector.multi_reduction <maximumf>, %368, %cst_73 [1] : vector<8x128xf32> to vector<8xf32>
    %372 = vector.shape_cast %371 : vector<8xf32> to vector<8x1xf32>
    %373 = vector.broadcast %372 : vector<8x1xf32> to vector<8x128xf32>
    %374 = arith.subf %368, %373 : vector<8x128xf32>
    %375 = math.exp %374 : vector<8x128xf32>
    %cst_74 = arith.constant dense<0.000000e+00> : vector<8xf32>
    %376 = vector.multi_reduction <add>, %375, %cst_74 [1] : vector<8x128xf32> to vector<8xf32>
    %377 = vector.shape_cast %376 : vector<8xf32> to vector<8x1xf32>
    %378 = tpu.reciprocal %377 {approx = true} : vector<8x1xf32> -> vector<8x1xf32>
    %379 = vector.broadcast %378 : vector<8x1xf32> to vector<8x128xf32>
    %380 = arith.mulf %375, %379 : vector<8x128xf32>
    %381 = arith.truncf %380 : vector<8x128xf32> to vector<8x128xbf16>
    %cst_75 = arith.constant dense<0.000000e+00> : vector<8x128xf32>
    %382 = tpu.matmul %381, %3, %cst_75 {dimension_numbers = #tpu.dot_dimension_numbers<[1], [0], [0], [1], [0, 0, 1, 1], [], []>} : vector<8x128xbf16>, vector<128x128xbf16>, vector<8x128xf32> -> vector<8x128xf32>
    %383 = vector.broadcast %24 : vector<1x128xf32> to vector<8x128xf32>
    %384 = arith.mulf %382, %383 : vector<8x128xf32>
    %385 = arith.addf %370, %384 : vector<8x128xf32>
    %cst_76 = arith.constant dense<0xFF800000> : vector<8xf32>
    %386 = vector.multi_reduction <maximumf>, %369, %cst_76 [1] : vector<8x128xf32> to vector<8xf32>
    %387 = vector.shape_cast %386 : vector<8xf32> to vector<8x1xf32>
    %388 = vector.broadcast %387 : vector<8x1xf32> to vector<8x128xf32>
    %389 = arith.subf %369, %388 : vector<8x128xf32>
    %390 = math.exp %389 : vector<8x128xf32>
    %cst_77 = arith.constant dense<0.000000e+00> : vector<8xf32>
    %391 = vector.multi_reduction <add>, %390, %cst_77 [1] : vector<8x128xf32> to vector<8xf32>
    %392 = vector.shape_cast %391 : vector<8xf32> to vector<8x1xf32>
    %393 = tpu.reciprocal %392 {approx = true} : vector<8x1xf32> -> vector<8x1xf32>
    %394 = vector.broadcast %393 : vector<8x1xf32> to vector<8x128xf32>
    %395 = arith.mulf %390, %394 : vector<8x128xf32>
    %396 = arith.truncf %395 : vector<8x128xf32> to vector<8x128xbf16>
    %cst_78 = arith.constant dense<0.000000e+00> : vector<8x128xf32>
    %397 = tpu.matmul %396, %3, %cst_78 {dimension_numbers = #tpu.dot_dimension_numbers<[1], [0], [0], [1], [0, 0, 1, 1], [], []>} : vector<8x128xbf16>, vector<128x128xbf16>, vector<8x128xf32> -> vector<8x128xf32>
    %398 = vector.broadcast %37 : vector<1x128xf32> to vector<8x128xf32>
    %399 = arith.mulf %397, %398 : vector<8x128xf32>
    %400 = arith.addf %385, %399 : vector<8x128xf32>
    %401 = tpu.iota {dimensions = array<i32: 1>} : vector<1x64xi32>
    %cst_79 = arith.constant 0.000000e+00 : f32
    %402 = vector.broadcast %cst_79 : f32 to vector<8x64xf32>
    %cst_80 = arith.constant 0.000000e+00 : f32
    %403 = vector.broadcast %cst_80 : f32 to vector<8x64xf32>
    %c0_i32_81 = arith.constant 0 : i32
    %404 = vector.broadcast %c0_i32_81 : i32 to vector<8x128xi32>
    %405 = arith.cmpi eq, %1, %404 : vector<8x128xi32>
    %cst_82 = arith.constant 0.000000e+00 : f32
    %406 = vector.broadcast %cst_82 : f32 to vector<8x128xf32>
    %407 = arith.select %405, %380, %406 : vector<8x128xi1>, vector<8x128xf32>
    %cst_83 = arith.constant dense<0.000000e+00> : vector<8xf32>
    %408 = vector.multi_reduction <add>, %407, %cst_83 [1] : vector<8x128xf32> to vector<8xf32>
    %409 = vector.shape_cast %408 : vector<8xf32> to vector<8x1xf32>
    %c0_i32_84 = arith.constant 0 : i32
    %410 = vector.broadcast %c0_i32_84 : i32 to vector<1x64xi32>
    %411 = arith.cmpi eq, %401, %410 : vector<1x64xi32>
    %cst_85 = arith.constant 0.000000e+00 : f32
    %412 = vector.shape_cast %411 : vector<1x64xi1> to vector<1x64xi1>
    %413 = vector.broadcast %412 : vector<1x64xi1> to vector<8x64xi1>
    %414 = vector.shape_cast %409 : vector<8x1xf32> to vector<8x1xf32>
    %415 = vector.broadcast %414 : vector<8x1xf32> to vector<8x64xf32>
    %416 = vector.broadcast %cst_85 : f32 to vector<8x64xf32>
    %417 = arith.select %413, %415, %416 : vector<8x64xi1>, vector<8x64xf32>
    %418 = arith.addf %402, %417 : vector<8x64xf32>
    %cst_86 = arith.constant 0.000000e+00 : f32
    %419 = vector.broadcast %cst_86 : f32 to vector<8x128xf32>
    %420 = arith.select %405, %395, %419 : vector<8x128xi1>, vector<8x128xf32>
    %cst_87 = arith.constant dense<0.000000e+00> : vector<8xf32>
    %421 = vector.multi_reduction <add>, %420, %cst_87 [1] : vector<8x128xf32> to vector<8xf32>
    %422 = vector.shape_cast %421 : vector<8xf32> to vector<8x1xf32>
    %c32_i32 = arith.constant 32 : i32
    %423 = vector.broadcast %c32_i32 : i32 to vector<1x64xi32>
    %424 = arith.cmpi eq, %401, %423 : vector<1x64xi32>
    %cst_88 = arith.constant 0.000000e+00 : f32
    %425 = vector.shape_cast %424 : vector<1x64xi1> to vector<1x64xi1>
    %426 = vector.broadcast %425 : vector<1x64xi1> to vector<8x64xi1>
    %427 = vector.shape_cast %422 : vector<8x1xf32> to vector<8x1xf32>
    %428 = vector.broadcast %427 : vector<8x1xf32> to vector<8x64xf32>
    %429 = vector.broadcast %cst_88 : f32 to vector<8x64xf32>
    %430 = arith.select %426, %428, %429 : vector<8x64xi1>, vector<8x64xf32>
    %431 = arith.addf %418, %430 : vector<8x64xf32>
    %c1_i32_89 = arith.constant 1 : i32
    %432 = vector.broadcast %c1_i32_89 : i32 to vector<8x128xi32>
    %433 = arith.cmpi eq, %1, %432 : vector<8x128xi32>
    %cst_90 = arith.constant 0.000000e+00 : f32
    %434 = vector.broadcast %cst_90 : f32 to vector<8x128xf32>
    %435 = arith.select %433, %380, %434 : vector<8x128xi1>, vector<8x128xf32>
    %cst_91 = arith.constant dense<0.000000e+00> : vector<8xf32>
    %436 = vector.multi_reduction <add>, %435, %cst_91 [1] : vector<8x128xf32> to vector<8xf32>
    %437 = vector.shape_cast %436 : vector<8xf32> to vector<8x1xf32>
    %c1_i32_92 = arith.constant 1 : i32
    %438 = vector.broadcast %c1_i32_92 : i32 to vector<1x64xi32>
    %439 = arith.cmpi eq, %401, %438 : vector<1x64xi32>
    %cst_93 = arith.constant 0.000000e+00 : f32
    %440 = vector.shape_cast %439 : vector<1x64xi1> to vector<1x64xi1>
    %441 = vector.broadcast %440 : vector<1x64xi1> to vector<8x64xi1>
    %442 = vector.shape_cast %437 : vector<8x1xf32> to vector<8x1xf32>
    %443 = vector.broadcast %442 : vector<8x1xf32> to vector<8x64xf32>
    %444 = vector.broadcast %cst_93 : f32 to vector<8x64xf32>
    %445 = arith.select %441, %443, %444 : vector<8x64xi1>, vector<8x64xf32>
    %446 = arith.addf %403, %445 : vector<8x64xf32>
    %cst_94 = arith.constant 0.000000e+00 : f32
    %447 = vector.broadcast %cst_94 : f32 to vector<8x128xf32>
    %448 = arith.select %433, %395, %447 : vector<8x128xi1>, vector<8x128xf32>
    %cst_95 = arith.constant dense<0.000000e+00> : vector<8xf32>
    %449 = vector.multi_reduction <add>, %448, %cst_95 [1] : vector<8x128xf32> to vector<8xf32>
    %450 = vector.shape_cast %449 : vector<8xf32> to vector<8x1xf32>
    %c33_i32 = arith.constant 33 : i32
    %451 = vector.broadcast %c33_i32 : i32 to vector<1x64xi32>
    %452 = arith.cmpi eq, %401, %451 : vector<1x64xi32>
    %cst_96 = arith.constant 0.000000e+00 : f32
    %453 = vector.shape_cast %452 : vector<1x64xi1> to vector<1x64xi1>
    %454 = vector.broadcast %453 : vector<1x64xi1> to vector<8x64xi1>
    %455 = vector.shape_cast %450 : vector<8x1xf32> to vector<8x1xf32>
    %456 = vector.broadcast %455 : vector<8x1xf32> to vector<8x64xf32>
    %457 = vector.broadcast %cst_96 : f32 to vector<8x64xf32>
    %458 = arith.select %454, %456, %457 : vector<8x64xi1>, vector<8x64xf32>
    %459 = arith.addf %446, %458 : vector<8x64xf32>
    %c2_i32_97 = arith.constant 2 : i32
    %460 = vector.broadcast %c2_i32_97 : i32 to vector<8x128xi32>
    %461 = arith.cmpi eq, %1, %460 : vector<8x128xi32>
    %cst_98 = arith.constant 0.000000e+00 : f32
    %462 = vector.broadcast %cst_98 : f32 to vector<8x128xf32>
    %463 = arith.select %461, %380, %462 : vector<8x128xi1>, vector<8x128xf32>
    %cst_99 = arith.constant dense<0.000000e+00> : vector<8xf32>
    %464 = vector.multi_reduction <add>, %463, %cst_99 [1] : vector<8x128xf32> to vector<8xf32>
    %465 = vector.shape_cast %464 : vector<8xf32> to vector<8x1xf32>
    %c2_i32_100 = arith.constant 2 : i32
    %466 = vector.broadcast %c2_i32_100 : i32 to vector<1x64xi32>
    %467 = arith.cmpi eq, %401, %466 : vector<1x64xi32>
    %cst_101 = arith.constant 0.000000e+00 : f32
    %468 = vector.shape_cast %467 : vector<1x64xi1> to vector<1x64xi1>
    %469 = vector.broadcast %468 : vector<1x64xi1> to vector<8x64xi1>
    %470 = vector.shape_cast %465 : vector<8x1xf32> to vector<8x1xf32>
    %471 = vector.broadcast %470 : vector<8x1xf32> to vector<8x64xf32>
    %472 = vector.broadcast %cst_101 : f32 to vector<8x64xf32>
    %473 = arith.select %469, %471, %472 : vector<8x64xi1>, vector<8x64xf32>
    %474 = arith.addf %431, %473 : vector<8x64xf32>
    %cst_102 = arith.constant 0.000000e+00 : f32
    %475 = vector.broadcast %cst_102 : f32 to vector<8x128xf32>
    %476 = arith.select %461, %395, %475 : vector<8x128xi1>, vector<8x128xf32>
    %cst_103 = arith.constant dense<0.000000e+00> : vector<8xf32>
    %477 = vector.multi_reduction <add>, %476, %cst_103 [1] : vector<8x128xf32> to vector<8xf32>
    %478 = vector.shape_cast %477 : vector<8xf32> to vector<8x1xf32>
    %c34_i32 = arith.constant 34 : i32
    %479 = vector.broadcast %c34_i32 : i32 to vector<1x64xi32>
    %480 = arith.cmpi eq, %401, %479 : vector<1x64xi32>
    %cst_104 = arith.constant 0.000000e+00 : f32
    %481 = vector.shape_cast %480 : vector<1x64xi1> to vector<1x64xi1>
    %482 = vector.broadcast %481 : vector<1x64xi1> to vector<8x64xi1>
    %483 = vector.shape_cast %478 : vector<8x1xf32> to vector<8x1xf32>
    %484 = vector.broadcast %483 : vector<8x1xf32> to vector<8x64xf32>
    %485 = vector.broadcast %cst_104 : f32 to vector<8x64xf32>
    %486 = arith.select %482, %484, %485 : vector<8x64xi1>, vector<8x64xf32>
    %487 = arith.addf %474, %486 : vector<8x64xf32>
    %c3_i32_105 = arith.constant 3 : i32
    %488 = vector.broadcast %c3_i32_105 : i32 to vector<8x128xi32>
    %489 = arith.cmpi eq, %1, %488 : vector<8x128xi32>
    %cst_106 = arith.constant 0.000000e+00 : f32
    %490 = vector.broadcast %cst_106 : f32 to vector<8x128xf32>
    %491 = arith.select %489, %380, %490 : vector<8x128xi1>, vector<8x128xf32>
    %cst_107 = arith.constant dense<0.000000e+00> : vector<8xf32>
    %492 = vector.multi_reduction <add>, %491, %cst_107 [1] : vector<8x128xf32> to vector<8xf32>
    %493 = vector.shape_cast %492 : vector<8xf32> to vector<8x1xf32>
    %c3_i32_108 = arith.constant 3 : i32
    %494 = vector.broadcast %c3_i32_108 : i32 to vector<1x64xi32>
    %495 = arith.cmpi eq, %401, %494 : vector<1x64xi32>
    %cst_109 = arith.constant 0.000000e+00 : f32
    %496 = vector.shape_cast %495 : vector<1x64xi1> to vector<1x64xi1>
    %497 = vector.broadcast %496 : vector<1x64xi1> to vector<8x64xi1>
    %498 = vector.shape_cast %493 : vector<8x1xf32> to vector<8x1xf32>
    %499 = vector.broadcast %498 : vector<8x1xf32> to vector<8x64xf32>
    %500 = vector.broadcast %cst_109 : f32 to vector<8x64xf32>
    %501 = arith.select %497, %499, %500 : vector<8x64xi1>, vector<8x64xf32>
    %502 = arith.addf %459, %501 : vector<8x64xf32>
    %cst_110 = arith.constant 0.000000e+00 : f32
    %503 = vector.broadcast %cst_110 : f32 to vector<8x128xf32>
    %504 = arith.select %489, %395, %503 : vector<8x128xi1>, vector<8x128xf32>
    %cst_111 = arith.constant dense<0.000000e+00> : vector<8xf32>
    %505 = vector.multi_reduction <add>, %504, %cst_111 [1] : vector<8x128xf32> to vector<8xf32>
    %506 = vector.shape_cast %505 : vector<8xf32> to vector<8x1xf32>
    %c35_i32 = arith.constant 35 : i32
    %507 = vector.broadcast %c35_i32 : i32 to vector<1x64xi32>
    %508 = arith.cmpi eq, %401, %507 : vector<1x64xi32>
    %cst_112 = arith.constant 0.000000e+00 : f32
    %509 = vector.shape_cast %508 : vector<1x64xi1> to vector<1x64xi1>
    %510 = vector.broadcast %509 : vector<1x64xi1> to vector<8x64xi1>
    %511 = vector.shape_cast %506 : vector<8x1xf32> to vector<8x1xf32>
    %512 = vector.broadcast %511 : vector<8x1xf32> to vector<8x64xf32>
    %513 = vector.broadcast %cst_112 : f32 to vector<8x64xf32>
    %514 = arith.select %510, %512, %513 : vector<8x64xi1>, vector<8x64xf32>
    %515 = arith.addf %502, %514 : vector<8x64xf32>
    %c4_i32_113 = arith.constant 4 : i32
    %516 = vector.broadcast %c4_i32_113 : i32 to vector<8x128xi32>
    %517 = arith.cmpi eq, %1, %516 : vector<8x128xi32>
    %cst_114 = arith.constant 0.000000e+00 : f32
    %518 = vector.broadcast %cst_114 : f32 to vector<8x128xf32>
    %519 = arith.select %517, %380, %518 : vector<8x128xi1>, vector<8x128xf32>
    %cst_115 = arith.constant dense<0.000000e+00> : vector<8xf32>
    %520 = vector.multi_reduction <add>, %519, %cst_115 [1] : vector<8x128xf32> to vector<8xf32>
    %521 = vector.shape_cast %520 : vector<8xf32> to vector<8x1xf32>
    %c4_i32_116 = arith.constant 4 : i32
    %522 = vector.broadcast %c4_i32_116 : i32 to vector<1x64xi32>
    %523 = arith.cmpi eq, %401, %522 : vector<1x64xi32>
    %cst_117 = arith.constant 0.000000e+00 : f32
    %524 = vector.shape_cast %523 : vector<1x64xi1> to vector<1x64xi1>
    %525 = vector.broadcast %524 : vector<1x64xi1> to vector<8x64xi1>
    %526 = vector.shape_cast %521 : vector<8x1xf32> to vector<8x1xf32>
    %527 = vector.broadcast %526 : vector<8x1xf32> to vector<8x64xf32>
    %528 = vector.broadcast %cst_117 : f32 to vector<8x64xf32>
    %529 = arith.select %525, %527, %528 : vector<8x64xi1>, vector<8x64xf32>
    %530 = arith.addf %487, %529 : vector<8x64xf32>
    %cst_118 = arith.constant 0.000000e+00 : f32
    %531 = vector.broadcast %cst_118 : f32 to vector<8x128xf32>
    %532 = arith.select %517, %395, %531 : vector<8x128xi1>, vector<8x128xf32>
    %cst_119 = arith.constant dense<0.000000e+00> : vector<8xf32>
    %533 = vector.multi_reduction <add>, %532, %cst_119 [1] : vector<8x128xf32> to vector<8xf32>
    %534 = vector.shape_cast %533 : vector<8xf32> to vector<8x1xf32>
    %c36_i32 = arith.constant 36 : i32
    %535 = vector.broadcast %c36_i32 : i32 to vector<1x64xi32>
    %536 = arith.cmpi eq, %401, %535 : vector<1x64xi32>
    %cst_120 = arith.constant 0.000000e+00 : f32
    %537 = vector.shape_cast %536 : vector<1x64xi1> to vector<1x64xi1>
    %538 = vector.broadcast %537 : vector<1x64xi1> to vector<8x64xi1>
    %539 = vector.shape_cast %534 : vector<8x1xf32> to vector<8x1xf32>
    %540 = vector.broadcast %539 : vector<8x1xf32> to vector<8x64xf32>
    %541 = vector.broadcast %cst_120 : f32 to vector<8x64xf32>
    %542 = arith.select %538, %540, %541 : vector<8x64xi1>, vector<8x64xf32>
    %543 = arith.addf %530, %542 : vector<8x64xf32>
    %c5_i32_121 = arith.constant 5 : i32
    %544 = vector.broadcast %c5_i32_121 : i32 to vector<8x128xi32>
    %545 = arith.cmpi eq, %1, %544 : vector<8x128xi32>
    %cst_122 = arith.constant 0.000000e+00 : f32
    %546 = vector.broadcast %cst_122 : f32 to vector<8x128xf32>
    %547 = arith.select %545, %380, %546 : vector<8x128xi1>, vector<8x128xf32>
    %cst_123 = arith.constant dense<0.000000e+00> : vector<8xf32>
    %548 = vector.multi_reduction <add>, %547, %cst_123 [1] : vector<8x128xf32> to vector<8xf32>
    %549 = vector.shape_cast %548 : vector<8xf32> to vector<8x1xf32>
    %c5_i32_124 = arith.constant 5 : i32
    %550 = vector.broadcast %c5_i32_124 : i32 to vector<1x64xi32>
    %551 = arith.cmpi eq, %401, %550 : vector<1x64xi32>
    %cst_125 = arith.constant 0.000000e+00 : f32
    %552 = vector.shape_cast %551 : vector<1x64xi1> to vector<1x64xi1>
    %553 = vector.broadcast %552 : vector<1x64xi1> to vector<8x64xi1>
    %554 = vector.shape_cast %549 : vector<8x1xf32> to vector<8x1xf32>
    %555 = vector.broadcast %554 : vector<8x1xf32> to vector<8x64xf32>
    %556 = vector.broadcast %cst_125 : f32 to vector<8x64xf32>
    %557 = arith.select %553, %555, %556 : vector<8x64xi1>, vector<8x64xf32>
    %558 = arith.addf %515, %557 : vector<8x64xf32>
    %cst_126 = arith.constant 0.000000e+00 : f32
    %559 = vector.broadcast %cst_126 : f32 to vector<8x128xf32>
    %560 = arith.select %545, %395, %559 : vector<8x128xi1>, vector<8x128xf32>
    %cst_127 = arith.constant dense<0.000000e+00> : vector<8xf32>
    %561 = vector.multi_reduction <add>, %560, %cst_127 [1] : vector<8x128xf32> to vector<8xf32>
    %562 = vector.shape_cast %561 : vector<8xf32> to vector<8x1xf32>
    %c37_i32 = arith.constant 37 : i32
    %563 = vector.broadcast %c37_i32 : i32 to vector<1x64xi32>
    %564 = arith.cmpi eq, %401, %563 : vector<1x64xi32>
    %cst_128 = arith.constant 0.000000e+00 : f32
    %565 = vector.shape_cast %564 : vector<1x64xi1> to vector<1x64xi1>
    %566 = vector.broadcast %565 : vector<1x64xi1> to vector<8x64xi1>
    %567 = vector.shape_cast %562 : vector<8x1xf32> to vector<8x1xf32>
    %568 = vector.broadcast %567 : vector<8x1xf32> to vector<8x64xf32>
    %569 = vector.broadcast %cst_128 : f32 to vector<8x64xf32>
    %570 = arith.select %566, %568, %569 : vector<8x64xi1>, vector<8x64xf32>
    %571 = arith.addf %558, %570 : vector<8x64xf32>
    %c6_i32_129 = arith.constant 6 : i32
    %572 = vector.broadcast %c6_i32_129 : i32 to vector<8x128xi32>
    %573 = arith.cmpi eq, %1, %572 : vector<8x128xi32>
    %cst_130 = arith.constant 0.000000e+00 : f32
    %574 = vector.broadcast %cst_130 : f32 to vector<8x128xf32>
    %575 = arith.select %573, %380, %574 : vector<8x128xi1>, vector<8x128xf32>
    %cst_131 = arith.constant dense<0.000000e+00> : vector<8xf32>
    %576 = vector.multi_reduction <add>, %575, %cst_131 [1] : vector<8x128xf32> to vector<8xf32>
    %577 = vector.shape_cast %576 : vector<8xf32> to vector<8x1xf32>
    %c6_i32_132 = arith.constant 6 : i32
    %578 = vector.broadcast %c6_i32_132 : i32 to vector<1x64xi32>
    %579 = arith.cmpi eq, %401, %578 : vector<1x64xi32>
    %cst_133 = arith.constant 0.000000e+00 : f32
    %580 = vector.shape_cast %579 : vector<1x64xi1> to vector<1x64xi1>
    %581 = vector.broadcast %580 : vector<1x64xi1> to vector<8x64xi1>
    %582 = vector.shape_cast %577 : vector<8x1xf32> to vector<8x1xf32>
    %583 = vector.broadcast %582 : vector<8x1xf32> to vector<8x64xf32>
    %584 = vector.broadcast %cst_133 : f32 to vector<8x64xf32>
    %585 = arith.select %581, %583, %584 : vector<8x64xi1>, vector<8x64xf32>
    %586 = arith.addf %543, %585 : vector<8x64xf32>
    %cst_134 = arith.constant 0.000000e+00 : f32
    %587 = vector.broadcast %cst_134 : f32 to vector<8x128xf32>
    %588 = arith.select %573, %395, %587 : vector<8x128xi1>, vector<8x128xf32>
    %cst_135 = arith.constant dense<0.000000e+00> : vector<8xf32>
    %589 = vector.multi_reduction <add>, %588, %cst_135 [1] : vector<8x128xf32> to vector<8xf32>
    %590 = vector.shape_cast %589 : vector<8xf32> to vector<8x1xf32>
    %c38_i32 = arith.constant 38 : i32
    %591 = vector.broadcast %c38_i32 : i32 to vector<1x64xi32>
    %592 = arith.cmpi eq, %401, %591 : vector<1x64xi32>
    %cst_136 = arith.constant 0.000000e+00 : f32
    %593 = vector.shape_cast %592 : vector<1x64xi1> to vector<1x64xi1>
    %594 = vector.broadcast %593 : vector<1x64xi1> to vector<8x64xi1>
    %595 = vector.shape_cast %590 : vector<8x1xf32> to vector<8x1xf32>
    %596 = vector.broadcast %595 : vector<8x1xf32> to vector<8x64xf32>
    %597 = vector.broadcast %cst_136 : f32 to vector<8x64xf32>
    %598 = arith.select %594, %596, %597 : vector<8x64xi1>, vector<8x64xf32>
    %599 = arith.addf %586, %598 : vector<8x64xf32>
    %c7_i32_137 = arith.constant 7 : i32
    %600 = vector.broadcast %c7_i32_137 : i32 to vector<8x128xi32>
    %601 = arith.cmpi eq, %1, %600 : vector<8x128xi32>
    %cst_138 = arith.constant 0.000000e+00 : f32
    %602 = vector.broadcast %cst_138 : f32 to vector<8x128xf32>
    %603 = arith.select %601, %380, %602 : vector<8x128xi1>, vector<8x128xf32>
    %cst_139 = arith.constant dense<0.000000e+00> : vector<8xf32>
    %604 = vector.multi_reduction <add>, %603, %cst_139 [1] : vector<8x128xf32> to vector<8xf32>
    %605 = vector.shape_cast %604 : vector<8xf32> to vector<8x1xf32>
    %c7_i32_140 = arith.constant 7 : i32
    %606 = vector.broadcast %c7_i32_140 : i32 to vector<1x64xi32>
    %607 = arith.cmpi eq, %401, %606 : vector<1x64xi32>
    %cst_141 = arith.constant 0.000000e+00 : f32
    %608 = vector.shape_cast %607 : vector<1x64xi1> to vector<1x64xi1>
    %609 = vector.broadcast %608 : vector<1x64xi1> to vector<8x64xi1>
    %610 = vector.shape_cast %605 : vector<8x1xf32> to vector<8x1xf32>
    %611 = vector.broadcast %610 : vector<8x1xf32> to vector<8x64xf32>
    %612 = vector.broadcast %cst_141 : f32 to vector<8x64xf32>
    %613 = arith.select %609, %611, %612 : vector<8x64xi1>, vector<8x64xf32>
    %614 = arith.addf %571, %613 : vector<8x64xf32>
    %cst_142 = arith.constant 0.000000e+00 : f32
    %615 = vector.broadcast %cst_142 : f32 to vector<8x128xf32>
    %616 = arith.select %601, %395, %615 : vector<8x128xi1>, vector<8x128xf32>
    %cst_143 = arith.constant dense<0.000000e+00> : vector<8xf32>
    %617 = vector.multi_reduction <add>, %616, %cst_143 [1] : vector<8x128xf32> to vector<8xf32>
    %618 = vector.shape_cast %617 : vector<8xf32> to vector<8x1xf32>
    %c39_i32 = arith.constant 39 : i32
    %619 = vector.broadcast %c39_i32 : i32 to vector<1x64xi32>
    %620 = arith.cmpi eq, %401, %619 : vector<1x64xi32>
    %cst_144 = arith.constant 0.000000e+00 : f32
    %621 = vector.shape_cast %620 : vector<1x64xi1> to vector<1x64xi1>
    %622 = vector.broadcast %621 : vector<1x64xi1> to vector<8x64xi1>
    %623 = vector.shape_cast %618 : vector<8x1xf32> to vector<8x1xf32>
    %624 = vector.broadcast %623 : vector<8x1xf32> to vector<8x64xf32>
    %625 = vector.broadcast %cst_144 : f32 to vector<8x64xf32>
    %626 = arith.select %622, %624, %625 : vector<8x64xi1>, vector<8x64xf32>
    %627 = arith.addf %614, %626 : vector<8x64xf32>
    %c8_i32_145 = arith.constant 8 : i32
    %628 = vector.broadcast %c8_i32_145 : i32 to vector<8x128xi32>
    %629 = arith.cmpi eq, %1, %628 : vector<8x128xi32>
    %cst_146 = arith.constant 0.000000e+00 : f32
    %630 = vector.broadcast %cst_146 : f32 to vector<8x128xf32>
    %631 = arith.select %629, %380, %630 : vector<8x128xi1>, vector<8x128xf32>
    %cst_147 = arith.constant dense<0.000000e+00> : vector<8xf32>
    %632 = vector.multi_reduction <add>, %631, %cst_147 [1] : vector<8x128xf32> to vector<8xf32>
    %633 = vector.shape_cast %632 : vector<8xf32> to vector<8x1xf32>
    %c8_i32_148 = arith.constant 8 : i32
    %634 = vector.broadcast %c8_i32_148 : i32 to vector<1x64xi32>
    %635 = arith.cmpi eq, %401, %634 : vector<1x64xi32>
    %cst_149 = arith.constant 0.000000e+00 : f32
    %636 = vector.shape_cast %635 : vector<1x64xi1> to vector<1x64xi1>
    %637 = vector.broadcast %636 : vector<1x64xi1> to vector<8x64xi1>
    %638 = vector.shape_cast %633 : vector<8x1xf32> to vector<8x1xf32>
    %639 = vector.broadcast %638 : vector<8x1xf32> to vector<8x64xf32>
    %640 = vector.broadcast %cst_149 : f32 to vector<8x64xf32>
    %641 = arith.select %637, %639, %640 : vector<8x64xi1>, vector<8x64xf32>
    %642 = arith.addf %599, %641 : vector<8x64xf32>
    %cst_150 = arith.constant 0.000000e+00 : f32
    %643 = vector.broadcast %cst_150 : f32 to vector<8x128xf32>
    %644 = arith.select %629, %395, %643 : vector<8x128xi1>, vector<8x128xf32>
    %cst_151 = arith.constant dense<0.000000e+00> : vector<8xf32>
    %645 = vector.multi_reduction <add>, %644, %cst_151 [1] : vector<8x128xf32> to vector<8xf32>
    %646 = vector.shape_cast %645 : vector<8xf32> to vector<8x1xf32>
    %c40_i32 = arith.constant 40 : i32
    %647 = vector.broadcast %c40_i32 : i32 to vector<1x64xi32>
    %648 = arith.cmpi eq, %401, %647 : vector<1x64xi32>
    %cst_152 = arith.constant 0.000000e+00 : f32
    %649 = vector.shape_cast %648 : vector<1x64xi1> to vector<1x64xi1>
    %650 = vector.broadcast %649 : vector<1x64xi1> to vector<8x64xi1>
    %651 = vector.shape_cast %646 : vector<8x1xf32> to vector<8x1xf32>
    %652 = vector.broadcast %651 : vector<8x1xf32> to vector<8x64xf32>
    %653 = vector.broadcast %cst_152 : f32 to vector<8x64xf32>
    %654 = arith.select %650, %652, %653 : vector<8x64xi1>, vector<8x64xf32>
    %655 = arith.addf %642, %654 : vector<8x64xf32>
    %c9_i32_153 = arith.constant 9 : i32
    %656 = vector.broadcast %c9_i32_153 : i32 to vector<8x128xi32>
    %657 = arith.cmpi eq, %1, %656 : vector<8x128xi32>
    %cst_154 = arith.constant 0.000000e+00 : f32
    %658 = vector.broadcast %cst_154 : f32 to vector<8x128xf32>
    %659 = arith.select %657, %380, %658 : vector<8x128xi1>, vector<8x128xf32>
    %cst_155 = arith.constant dense<0.000000e+00> : vector<8xf32>
    %660 = vector.multi_reduction <add>, %659, %cst_155 [1] : vector<8x128xf32> to vector<8xf32>
    %661 = vector.shape_cast %660 : vector<8xf32> to vector<8x1xf32>
    %c9_i32_156 = arith.constant 9 : i32
    %662 = vector.broadcast %c9_i32_156 : i32 to vector<1x64xi32>
    %663 = arith.cmpi eq, %401, %662 : vector<1x64xi32>
    %cst_157 = arith.constant 0.000000e+00 : f32
    %664 = vector.shape_cast %663 : vector<1x64xi1> to vector<1x64xi1>
    %665 = vector.broadcast %664 : vector<1x64xi1> to vector<8x64xi1>
    %666 = vector.shape_cast %661 : vector<8x1xf32> to vector<8x1xf32>
    %667 = vector.broadcast %666 : vector<8x1xf32> to vector<8x64xf32>
    %668 = vector.broadcast %cst_157 : f32 to vector<8x64xf32>
    %669 = arith.select %665, %667, %668 : vector<8x64xi1>, vector<8x64xf32>
    %670 = arith.addf %627, %669 : vector<8x64xf32>
    %cst_158 = arith.constant 0.000000e+00 : f32
    %671 = vector.broadcast %cst_158 : f32 to vector<8x128xf32>
    %672 = arith.select %657, %395, %671 : vector<8x128xi1>, vector<8x128xf32>
    %cst_159 = arith.constant dense<0.000000e+00> : vector<8xf32>
    %673 = vector.multi_reduction <add>, %672, %cst_159 [1] : vector<8x128xf32> to vector<8xf32>
    %674 = vector.shape_cast %673 : vector<8xf32> to vector<8x1xf32>
    %c41_i32 = arith.constant 41 : i32
    %675 = vector.broadcast %c41_i32 : i32 to vector<1x64xi32>
    %676 = arith.cmpi eq, %401, %675 : vector<1x64xi32>
    %cst_160 = arith.constant 0.000000e+00 : f32
    %677 = vector.shape_cast %676 : vector<1x64xi1> to vector<1x64xi1>
    %678 = vector.broadcast %677 : vector<1x64xi1> to vector<8x64xi1>
    %679 = vector.shape_cast %674 : vector<8x1xf32> to vector<8x1xf32>
    %680 = vector.broadcast %679 : vector<8x1xf32> to vector<8x64xf32>
    %681 = vector.broadcast %cst_160 : f32 to vector<8x64xf32>
    %682 = arith.select %678, %680, %681 : vector<8x64xi1>, vector<8x64xf32>
    %683 = arith.addf %670, %682 : vector<8x64xf32>
    %c10_i32_161 = arith.constant 10 : i32
    %684 = vector.broadcast %c10_i32_161 : i32 to vector<8x128xi32>
    %685 = arith.cmpi eq, %1, %684 : vector<8x128xi32>
    %cst_162 = arith.constant 0.000000e+00 : f32
    %686 = vector.broadcast %cst_162 : f32 to vector<8x128xf32>
    %687 = arith.select %685, %380, %686 : vector<8x128xi1>, vector<8x128xf32>
    %cst_163 = arith.constant dense<0.000000e+00> : vector<8xf32>
    %688 = vector.multi_reduction <add>, %687, %cst_163 [1] : vector<8x128xf32> to vector<8xf32>
    %689 = vector.shape_cast %688 : vector<8xf32> to vector<8x1xf32>
    %c10_i32_164 = arith.constant 10 : i32
    %690 = vector.broadcast %c10_i32_164 : i32 to vector<1x64xi32>
    %691 = arith.cmpi eq, %401, %690 : vector<1x64xi32>
    %cst_165 = arith.constant 0.000000e+00 : f32
    %692 = vector.shape_cast %691 : vector<1x64xi1> to vector<1x64xi1>
    %693 = vector.broadcast %692 : vector<1x64xi1> to vector<8x64xi1>
    %694 = vector.shape_cast %689 : vector<8x1xf32> to vector<8x1xf32>
    %695 = vector.broadcast %694 : vector<8x1xf32> to vector<8x64xf32>
    %696 = vector.broadcast %cst_165 : f32 to vector<8x64xf32>
    %697 = arith.select %693, %695, %696 : vector<8x64xi1>, vector<8x64xf32>
    %698 = arith.addf %655, %697 : vector<8x64xf32>
    %cst_166 = arith.constant 0.000000e+00 : f32
    %699 = vector.broadcast %cst_166 : f32 to vector<8x128xf32>
    %700 = arith.select %685, %395, %699 : vector<8x128xi1>, vector<8x128xf32>
    %cst_167 = arith.constant dense<0.000000e+00> : vector<8xf32>
    %701 = vector.multi_reduction <add>, %700, %cst_167 [1] : vector<8x128xf32> to vector<8xf32>
    %702 = vector.shape_cast %701 : vector<8xf32> to vector<8x1xf32>
    %c42_i32 = arith.constant 42 : i32
    %703 = vector.broadcast %c42_i32 : i32 to vector<1x64xi32>
    %704 = arith.cmpi eq, %401, %703 : vector<1x64xi32>
    %cst_168 = arith.constant 0.000000e+00 : f32
    %705 = vector.shape_cast %704 : vector<1x64xi1> to vector<1x64xi1>
    %706 = vector.broadcast %705 : vector<1x64xi1> to vector<8x64xi1>
    %707 = vector.shape_cast %702 : vector<8x1xf32> to vector<8x1xf32>
    %708 = vector.broadcast %707 : vector<8x1xf32> to vector<8x64xf32>
    %709 = vector.broadcast %cst_168 : f32 to vector<8x64xf32>
    %710 = arith.select %706, %708, %709 : vector<8x64xi1>, vector<8x64xf32>
    %711 = arith.addf %698, %710 : vector<8x64xf32>
    %c11_i32_169 = arith.constant 11 : i32
    %712 = vector.broadcast %c11_i32_169 : i32 to vector<8x128xi32>
    %713 = arith.cmpi eq, %1, %712 : vector<8x128xi32>
    %cst_170 = arith.constant 0.000000e+00 : f32
    %714 = vector.broadcast %cst_170 : f32 to vector<8x128xf32>
    %715 = arith.select %713, %380, %714 : vector<8x128xi1>, vector<8x128xf32>
    %cst_171 = arith.constant dense<0.000000e+00> : vector<8xf32>
    %716 = vector.multi_reduction <add>, %715, %cst_171 [1] : vector<8x128xf32> to vector<8xf32>
    %717 = vector.shape_cast %716 : vector<8xf32> to vector<8x1xf32>
    %c11_i32_172 = arith.constant 11 : i32
    %718 = vector.broadcast %c11_i32_172 : i32 to vector<1x64xi32>
    %719 = arith.cmpi eq, %401, %718 : vector<1x64xi32>
    %cst_173 = arith.constant 0.000000e+00 : f32
    %720 = vector.shape_cast %719 : vector<1x64xi1> to vector<1x64xi1>
    %721 = vector.broadcast %720 : vector<1x64xi1> to vector<8x64xi1>
    %722 = vector.shape_cast %717 : vector<8x1xf32> to vector<8x1xf32>
    %723 = vector.broadcast %722 : vector<8x1xf32> to vector<8x64xf32>
    %724 = vector.broadcast %cst_173 : f32 to vector<8x64xf32>
    %725 = arith.select %721, %723, %724 : vector<8x64xi1>, vector<8x64xf32>
    %726 = arith.addf %683, %725 : vector<8x64xf32>
    %cst_174 = arith.constant 0.000000e+00 : f32
    %727 = vector.broadcast %cst_174 : f32 to vector<8x128xf32>
    %728 = arith.select %713, %395, %727 : vector<8x128xi1>, vector<8x128xf32>
    %cst_175 = arith.constant dense<0.000000e+00> : vector<8xf32>
    %729 = vector.multi_reduction <add>, %728, %cst_175 [1] : vector<8x128xf32> to vector<8xf32>
    %730 = vector.shape_cast %729 : vector<8xf32> to vector<8x1xf32>
    %c43_i32 = arith.constant 43 : i32
    %731 = vector.broadcast %c43_i32 : i32 to vector<1x64xi32>
    %732 = arith.cmpi eq, %401, %731 : vector<1x64xi32>
    %cst_176 = arith.constant 0.000000e+00 : f32
    %733 = vector.shape_cast %732 : vector<1x64xi1> to vector<1x64xi1>
    %734 = vector.broadcast %733 : vector<1x64xi1> to vector<8x64xi1>
    %735 = vector.shape_cast %730 : vector<8x1xf32> to vector<8x1xf32>
    %736 = vector.broadcast %735 : vector<8x1xf32> to vector<8x64xf32>
    %737 = vector.broadcast %cst_176 : f32 to vector<8x64xf32>
    %738 = arith.select %734, %736, %737 : vector<8x64xi1>, vector<8x64xf32>
    %739 = arith.addf %726, %738 : vector<8x64xf32>
    %c12_i32_177 = arith.constant 12 : i32
    %740 = vector.broadcast %c12_i32_177 : i32 to vector<8x128xi32>
    %741 = arith.cmpi eq, %1, %740 : vector<8x128xi32>
    %cst_178 = arith.constant 0.000000e+00 : f32
    %742 = vector.broadcast %cst_178 : f32 to vector<8x128xf32>
    %743 = arith.select %741, %380, %742 : vector<8x128xi1>, vector<8x128xf32>
    %cst_179 = arith.constant dense<0.000000e+00> : vector<8xf32>
    %744 = vector.multi_reduction <add>, %743, %cst_179 [1] : vector<8x128xf32> to vector<8xf32>
    %745 = vector.shape_cast %744 : vector<8xf32> to vector<8x1xf32>
    %c12_i32_180 = arith.constant 12 : i32
    %746 = vector.broadcast %c12_i32_180 : i32 to vector<1x64xi32>
    %747 = arith.cmpi eq, %401, %746 : vector<1x64xi32>
    %cst_181 = arith.constant 0.000000e+00 : f32
    %748 = vector.shape_cast %747 : vector<1x64xi1> to vector<1x64xi1>
    %749 = vector.broadcast %748 : vector<1x64xi1> to vector<8x64xi1>
    %750 = vector.shape_cast %745 : vector<8x1xf32> to vector<8x1xf32>
    %751 = vector.broadcast %750 : vector<8x1xf32> to vector<8x64xf32>
    %752 = vector.broadcast %cst_181 : f32 to vector<8x64xf32>
    %753 = arith.select %749, %751, %752 : vector<8x64xi1>, vector<8x64xf32>
    %754 = arith.addf %711, %753 : vector<8x64xf32>
    %cst_182 = arith.constant 0.000000e+00 : f32
    %755 = vector.broadcast %cst_182 : f32 to vector<8x128xf32>
    %756 = arith.select %741, %395, %755 : vector<8x128xi1>, vector<8x128xf32>
    %cst_183 = arith.constant dense<0.000000e+00> : vector<8xf32>
    %757 = vector.multi_reduction <add>, %756, %cst_183 [1] : vector<8x128xf32> to vector<8xf32>
    %758 = vector.shape_cast %757 : vector<8xf32> to vector<8x1xf32>
    %c44_i32 = arith.constant 44 : i32
    %759 = vector.broadcast %c44_i32 : i32 to vector<1x64xi32>
    %760 = arith.cmpi eq, %401, %759 : vector<1x64xi32>
    %cst_184 = arith.constant 0.000000e+00 : f32
    %761 = vector.shape_cast %760 : vector<1x64xi1> to vector<1x64xi1>
    %762 = vector.broadcast %761 : vector<1x64xi1> to vector<8x64xi1>
    %763 = vector.shape_cast %758 : vector<8x1xf32> to vector<8x1xf32>
    %764 = vector.broadcast %763 : vector<8x1xf32> to vector<8x64xf32>
    %765 = vector.broadcast %cst_184 : f32 to vector<8x64xf32>
    %766 = arith.select %762, %764, %765 : vector<8x64xi1>, vector<8x64xf32>
    %767 = arith.addf %754, %766 : vector<8x64xf32>
    %c13_i32_185 = arith.constant 13 : i32
    %768 = vector.broadcast %c13_i32_185 : i32 to vector<8x128xi32>
    %769 = arith.cmpi eq, %1, %768 : vector<8x128xi32>
    %cst_186 = arith.constant 0.000000e+00 : f32
    %770 = vector.broadcast %cst_186 : f32 to vector<8x128xf32>
    %771 = arith.select %769, %380, %770 : vector<8x128xi1>, vector<8x128xf32>
    %cst_187 = arith.constant dense<0.000000e+00> : vector<8xf32>
    %772 = vector.multi_reduction <add>, %771, %cst_187 [1] : vector<8x128xf32> to vector<8xf32>
    %773 = vector.shape_cast %772 : vector<8xf32> to vector<8x1xf32>
    %c13_i32_188 = arith.constant 13 : i32
    %774 = vector.broadcast %c13_i32_188 : i32 to vector<1x64xi32>
    %775 = arith.cmpi eq, %401, %774 : vector<1x64xi32>
    %cst_189 = arith.constant 0.000000e+00 : f32
    %776 = vector.shape_cast %775 : vector<1x64xi1> to vector<1x64xi1>
    %777 = vector.broadcast %776 : vector<1x64xi1> to vector<8x64xi1>
    %778 = vector.shape_cast %773 : vector<8x1xf32> to vector<8x1xf32>
    %779 = vector.broadcast %778 : vector<8x1xf32> to vector<8x64xf32>
    %780 = vector.broadcast %cst_189 : f32 to vector<8x64xf32>
    %781 = arith.select %777, %779, %780 : vector<8x64xi1>, vector<8x64xf32>
    %782 = arith.addf %739, %781 : vector<8x64xf32>
    %cst_190 = arith.constant 0.000000e+00 : f32
    %783 = vector.broadcast %cst_190 : f32 to vector<8x128xf32>
    %784 = arith.select %769, %395, %783 : vector<8x128xi1>, vector<8x128xf32>
    %cst_191 = arith.constant dense<0.000000e+00> : vector<8xf32>
    %785 = vector.multi_reduction <add>, %784, %cst_191 [1] : vector<8x128xf32> to vector<8xf32>
    %786 = vector.shape_cast %785 : vector<8xf32> to vector<8x1xf32>
    %c45_i32 = arith.constant 45 : i32
    %787 = vector.broadcast %c45_i32 : i32 to vector<1x64xi32>
    %788 = arith.cmpi eq, %401, %787 : vector<1x64xi32>
    %cst_192 = arith.constant 0.000000e+00 : f32
    %789 = vector.shape_cast %788 : vector<1x64xi1> to vector<1x64xi1>
    %790 = vector.broadcast %789 : vector<1x64xi1> to vector<8x64xi1>
    %791 = vector.shape_cast %786 : vector<8x1xf32> to vector<8x1xf32>
    %792 = vector.broadcast %791 : vector<8x1xf32> to vector<8x64xf32>
    %793 = vector.broadcast %cst_192 : f32 to vector<8x64xf32>
    %794 = arith.select %790, %792, %793 : vector<8x64xi1>, vector<8x64xf32>
    %795 = arith.addf %782, %794 : vector<8x64xf32>
    %c14_i32_193 = arith.constant 14 : i32
    %796 = vector.broadcast %c14_i32_193 : i32 to vector<8x128xi32>
    %797 = arith.cmpi eq, %1, %796 : vector<8x128xi32>
    %cst_194 = arith.constant 0.000000e+00 : f32
    %798 = vector.broadcast %cst_194 : f32 to vector<8x128xf32>
    %799 = arith.select %797, %380, %798 : vector<8x128xi1>, vector<8x128xf32>
    %cst_195 = arith.constant dense<0.000000e+00> : vector<8xf32>
    %800 = vector.multi_reduction <add>, %799, %cst_195 [1] : vector<8x128xf32> to vector<8xf32>
    %801 = vector.shape_cast %800 : vector<8xf32> to vector<8x1xf32>
    %c14_i32_196 = arith.constant 14 : i32
    %802 = vector.broadcast %c14_i32_196 : i32 to vector<1x64xi32>
    %803 = arith.cmpi eq, %401, %802 : vector<1x64xi32>
    %cst_197 = arith.constant 0.000000e+00 : f32
    %804 = vector.shape_cast %803 : vector<1x64xi1> to vector<1x64xi1>
    %805 = vector.broadcast %804 : vector<1x64xi1> to vector<8x64xi1>
    %806 = vector.shape_cast %801 : vector<8x1xf32> to vector<8x1xf32>
    %807 = vector.broadcast %806 : vector<8x1xf32> to vector<8x64xf32>
    %808 = vector.broadcast %cst_197 : f32 to vector<8x64xf32>
    %809 = arith.select %805, %807, %808 : vector<8x64xi1>, vector<8x64xf32>
    %810 = arith.addf %767, %809 : vector<8x64xf32>
    %cst_198 = arith.constant 0.000000e+00 : f32
    %811 = vector.broadcast %cst_198 : f32 to vector<8x128xf32>
    %812 = arith.select %797, %395, %811 : vector<8x128xi1>, vector<8x128xf32>
    %cst_199 = arith.constant dense<0.000000e+00> : vector<8xf32>
    %813 = vector.multi_reduction <add>, %812, %cst_199 [1] : vector<8x128xf32> to vector<8xf32>
    %814 = vector.shape_cast %813 : vector<8xf32> to vector<8x1xf32>
    %c46_i32 = arith.constant 46 : i32
    %815 = vector.broadcast %c46_i32 : i32 to vector<1x64xi32>
    %816 = arith.cmpi eq, %401, %815 : vector<1x64xi32>
    %cst_200 = arith.constant 0.000000e+00 : f32
    %817 = vector.shape_cast %816 : vector<1x64xi1> to vector<1x64xi1>
    %818 = vector.broadcast %817 : vector<1x64xi1> to vector<8x64xi1>
    %819 = vector.shape_cast %814 : vector<8x1xf32> to vector<8x1xf32>
    %820 = vector.broadcast %819 : vector<8x1xf32> to vector<8x64xf32>
    %821 = vector.broadcast %cst_200 : f32 to vector<8x64xf32>
    %822 = arith.select %818, %820, %821 : vector<8x64xi1>, vector<8x64xf32>
    %823 = arith.addf %810, %822 : vector<8x64xf32>
    %c15_i32_201 = arith.constant 15 : i32
    %824 = vector.broadcast %c15_i32_201 : i32 to vector<8x128xi32>
    %825 = arith.cmpi eq, %1, %824 : vector<8x128xi32>
    %cst_202 = arith.constant 0.000000e+00 : f32
    %826 = vector.broadcast %cst_202 : f32 to vector<8x128xf32>
    %827 = arith.select %825, %380, %826 : vector<8x128xi1>, vector<8x128xf32>
    %cst_203 = arith.constant dense<0.000000e+00> : vector<8xf32>
    %828 = vector.multi_reduction <add>, %827, %cst_203 [1] : vector<8x128xf32> to vector<8xf32>
    %829 = vector.shape_cast %828 : vector<8xf32> to vector<8x1xf32>
    %c15_i32_204 = arith.constant 15 : i32
    %830 = vector.broadcast %c15_i32_204 : i32 to vector<1x64xi32>
    %831 = arith.cmpi eq, %401, %830 : vector<1x64xi32>
    %cst_205 = arith.constant 0.000000e+00 : f32
    %832 = vector.shape_cast %831 : vector<1x64xi1> to vector<1x64xi1>
    %833 = vector.broadcast %832 : vector<1x64xi1> to vector<8x64xi1>
    %834 = vector.shape_cast %829 : vector<8x1xf32> to vector<8x1xf32>
    %835 = vector.broadcast %834 : vector<8x1xf32> to vector<8x64xf32>
    %836 = vector.broadcast %cst_205 : f32 to vector<8x64xf32>
    %837 = arith.select %833, %835, %836 : vector<8x64xi1>, vector<8x64xf32>
    %838 = arith.addf %795, %837 : vector<8x64xf32>
    %cst_206 = arith.constant 0.000000e+00 : f32
    %839 = vector.broadcast %cst_206 : f32 to vector<8x128xf32>
    %840 = arith.select %825, %395, %839 : vector<8x128xi1>, vector<8x128xf32>
    %cst_207 = arith.constant dense<0.000000e+00> : vector<8xf32>
    %841 = vector.multi_reduction <add>, %840, %cst_207 [1] : vector<8x128xf32> to vector<8xf32>
    %842 = vector.shape_cast %841 : vector<8xf32> to vector<8x1xf32>
    %c47_i32 = arith.constant 47 : i32
    %843 = vector.broadcast %c47_i32 : i32 to vector<1x64xi32>
    %844 = arith.cmpi eq, %401, %843 : vector<1x64xi32>
    %cst_208 = arith.constant 0.000000e+00 : f32
    %845 = vector.shape_cast %844 : vector<1x64xi1> to vector<1x64xi1>
    %846 = vector.broadcast %845 : vector<1x64xi1> to vector<8x64xi1>
    %847 = vector.shape_cast %842 : vector<8x1xf32> to vector<8x1xf32>
    %848 = vector.broadcast %847 : vector<8x1xf32> to vector<8x64xf32>
    %849 = vector.broadcast %cst_208 : f32 to vector<8x64xf32>
    %850 = arith.select %846, %848, %849 : vector<8x64xi1>, vector<8x64xf32>
    %851 = arith.addf %838, %850 : vector<8x64xf32>
    %c16_i32_209 = arith.constant 16 : i32
    %852 = vector.broadcast %c16_i32_209 : i32 to vector<8x128xi32>
    %853 = arith.cmpi eq, %1, %852 : vector<8x128xi32>
    %cst_210 = arith.constant 0.000000e+00 : f32
    %854 = vector.broadcast %cst_210 : f32 to vector<8x128xf32>
    %855 = arith.select %853, %380, %854 : vector<8x128xi1>, vector<8x128xf32>
    %cst_211 = arith.constant dense<0.000000e+00> : vector<8xf32>
    %856 = vector.multi_reduction <add>, %855, %cst_211 [1] : vector<8x128xf32> to vector<8xf32>
    %857 = vector.shape_cast %856 : vector<8xf32> to vector<8x1xf32>
    %c16_i32_212 = arith.constant 16 : i32
    %858 = vector.broadcast %c16_i32_212 : i32 to vector<1x64xi32>
    %859 = arith.cmpi eq, %401, %858 : vector<1x64xi32>
    %cst_213 = arith.constant 0.000000e+00 : f32
    %860 = vector.shape_cast %859 : vector<1x64xi1> to vector<1x64xi1>
    %861 = vector.broadcast %860 : vector<1x64xi1> to vector<8x64xi1>
    %862 = vector.shape_cast %857 : vector<8x1xf32> to vector<8x1xf32>
    %863 = vector.broadcast %862 : vector<8x1xf32> to vector<8x64xf32>
    %864 = vector.broadcast %cst_213 : f32 to vector<8x64xf32>
    %865 = arith.select %861, %863, %864 : vector<8x64xi1>, vector<8x64xf32>
    %866 = arith.addf %823, %865 : vector<8x64xf32>
    %cst_214 = arith.constant 0.000000e+00 : f32
    %867 = vector.broadcast %cst_214 : f32 to vector<8x128xf32>
    %868 = arith.select %853, %395, %867 : vector<8x128xi1>, vector<8x128xf32>
    %cst_215 = arith.constant dense<0.000000e+00> : vector<8xf32>
    %869 = vector.multi_reduction <add>, %868, %cst_215 [1] : vector<8x128xf32> to vector<8xf32>
    %870 = vector.shape_cast %869 : vector<8xf32> to vector<8x1xf32>
    %c48_i32 = arith.constant 48 : i32
    %871 = vector.broadcast %c48_i32 : i32 to vector<1x64xi32>
    %872 = arith.cmpi eq, %401, %871 : vector<1x64xi32>
    %cst_216 = arith.constant 0.000000e+00 : f32
    %873 = vector.shape_cast %872 : vector<1x64xi1> to vector<1x64xi1>
    %874 = vector.broadcast %873 : vector<1x64xi1> to vector<8x64xi1>
    %875 = vector.shape_cast %870 : vector<8x1xf32> to vector<8x1xf32>
    %876 = vector.broadcast %875 : vector<8x1xf32> to vector<8x64xf32>
    %877 = vector.broadcast %cst_216 : f32 to vector<8x64xf32>
    %878 = arith.select %874, %876, %877 : vector<8x64xi1>, vector<8x64xf32>
    %879 = arith.addf %866, %878 : vector<8x64xf32>
    %c17_i32_217 = arith.constant 17 : i32
    %880 = vector.broadcast %c17_i32_217 : i32 to vector<8x128xi32>
    %881 = arith.cmpi eq, %1, %880 : vector<8x128xi32>
    %cst_218 = arith.constant 0.000000e+00 : f32
    %882 = vector.broadcast %cst_218 : f32 to vector<8x128xf32>
    %883 = arith.select %881, %380, %882 : vector<8x128xi1>, vector<8x128xf32>
    %cst_219 = arith.constant dense<0.000000e+00> : vector<8xf32>
    %884 = vector.multi_reduction <add>, %883, %cst_219 [1] : vector<8x128xf32> to vector<8xf32>
    %885 = vector.shape_cast %884 : vector<8xf32> to vector<8x1xf32>
    %c17_i32_220 = arith.constant 17 : i32
    %886 = vector.broadcast %c17_i32_220 : i32 to vector<1x64xi32>
    %887 = arith.cmpi eq, %401, %886 : vector<1x64xi32>
    %cst_221 = arith.constant 0.000000e+00 : f32
    %888 = vector.shape_cast %887 : vector<1x64xi1> to vector<1x64xi1>
    %889 = vector.broadcast %888 : vector<1x64xi1> to vector<8x64xi1>
    %890 = vector.shape_cast %885 : vector<8x1xf32> to vector<8x1xf32>
    %891 = vector.broadcast %890 : vector<8x1xf32> to vector<8x64xf32>
    %892 = vector.broadcast %cst_221 : f32 to vector<8x64xf32>
    %893 = arith.select %889, %891, %892 : vector<8x64xi1>, vector<8x64xf32>
    %894 = arith.addf %851, %893 : vector<8x64xf32>
    %cst_222 = arith.constant 0.000000e+00 : f32
    %895 = vector.broadcast %cst_222 : f32 to vector<8x128xf32>
    %896 = arith.select %881, %395, %895 : vector<8x128xi1>, vector<8x128xf32>
    %cst_223 = arith.constant dense<0.000000e+00> : vector<8xf32>
    %897 = vector.multi_reduction <add>, %896, %cst_223 [1] : vector<8x128xf32> to vector<8xf32>
    %898 = vector.shape_cast %897 : vector<8xf32> to vector<8x1xf32>
    %c49_i32 = arith.constant 49 : i32
    %899 = vector.broadcast %c49_i32 : i32 to vector<1x64xi32>
    %900 = arith.cmpi eq, %401, %899 : vector<1x64xi32>
    %cst_224 = arith.constant 0.000000e+00 : f32
    %901 = vector.shape_cast %900 : vector<1x64xi1> to vector<1x64xi1>
    %902 = vector.broadcast %901 : vector<1x64xi1> to vector<8x64xi1>
    %903 = vector.shape_cast %898 : vector<8x1xf32> to vector<8x1xf32>
    %904 = vector.broadcast %903 : vector<8x1xf32> to vector<8x64xf32>
    %905 = vector.broadcast %cst_224 : f32 to vector<8x64xf32>
    %906 = arith.select %902, %904, %905 : vector<8x64xi1>, vector<8x64xf32>
    %907 = arith.addf %894, %906 : vector<8x64xf32>
    %c18_i32_225 = arith.constant 18 : i32
    %908 = vector.broadcast %c18_i32_225 : i32 to vector<8x128xi32>
    %909 = arith.cmpi eq, %1, %908 : vector<8x128xi32>
    %cst_226 = arith.constant 0.000000e+00 : f32
    %910 = vector.broadcast %cst_226 : f32 to vector<8x128xf32>
    %911 = arith.select %909, %380, %910 : vector<8x128xi1>, vector<8x128xf32>
    %cst_227 = arith.constant dense<0.000000e+00> : vector<8xf32>
    %912 = vector.multi_reduction <add>, %911, %cst_227 [1] : vector<8x128xf32> to vector<8xf32>
    %913 = vector.shape_cast %912 : vector<8xf32> to vector<8x1xf32>
    %c18_i32_228 = arith.constant 18 : i32
    %914 = vector.broadcast %c18_i32_228 : i32 to vector<1x64xi32>
    %915 = arith.cmpi eq, %401, %914 : vector<1x64xi32>
    %cst_229 = arith.constant 0.000000e+00 : f32
    %916 = vector.shape_cast %915 : vector<1x64xi1> to vector<1x64xi1>
    %917 = vector.broadcast %916 : vector<1x64xi1> to vector<8x64xi1>
    %918 = vector.shape_cast %913 : vector<8x1xf32> to vector<8x1xf32>
    %919 = vector.broadcast %918 : vector<8x1xf32> to vector<8x64xf32>
    %920 = vector.broadcast %cst_229 : f32 to vector<8x64xf32>
    %921 = arith.select %917, %919, %920 : vector<8x64xi1>, vector<8x64xf32>
    %922 = arith.addf %879, %921 : vector<8x64xf32>
    %cst_230 = arith.constant 0.000000e+00 : f32
    %923 = vector.broadcast %cst_230 : f32 to vector<8x128xf32>
    %924 = arith.select %909, %395, %923 : vector<8x128xi1>, vector<8x128xf32>
    %cst_231 = arith.constant dense<0.000000e+00> : vector<8xf32>
    %925 = vector.multi_reduction <add>, %924, %cst_231 [1] : vector<8x128xf32> to vector<8xf32>
    %926 = vector.shape_cast %925 : vector<8xf32> to vector<8x1xf32>
    %c50_i32 = arith.constant 50 : i32
    %927 = vector.broadcast %c50_i32 : i32 to vector<1x64xi32>
    %928 = arith.cmpi eq, %401, %927 : vector<1x64xi32>
    %cst_232 = arith.constant 0.000000e+00 : f32
    %929 = vector.shape_cast %928 : vector<1x64xi1> to vector<1x64xi1>
    %930 = vector.broadcast %929 : vector<1x64xi1> to vector<8x64xi1>
    %931 = vector.shape_cast %926 : vector<8x1xf32> to vector<8x1xf32>
    %932 = vector.broadcast %931 : vector<8x1xf32> to vector<8x64xf32>
    %933 = vector.broadcast %cst_232 : f32 to vector<8x64xf32>
    %934 = arith.select %930, %932, %933 : vector<8x64xi1>, vector<8x64xf32>
    %935 = arith.addf %922, %934 : vector<8x64xf32>
    %c19_i32_233 = arith.constant 19 : i32
    %936 = vector.broadcast %c19_i32_233 : i32 to vector<8x128xi32>
    %937 = arith.cmpi eq, %1, %936 : vector<8x128xi32>
    %cst_234 = arith.constant 0.000000e+00 : f32
    %938 = vector.broadcast %cst_234 : f32 to vector<8x128xf32>
    %939 = arith.select %937, %380, %938 : vector<8x128xi1>, vector<8x128xf32>
    %cst_235 = arith.constant dense<0.000000e+00> : vector<8xf32>
    %940 = vector.multi_reduction <add>, %939, %cst_235 [1] : vector<8x128xf32> to vector<8xf32>
    %941 = vector.shape_cast %940 : vector<8xf32> to vector<8x1xf32>
    %c19_i32_236 = arith.constant 19 : i32
    %942 = vector.broadcast %c19_i32_236 : i32 to vector<1x64xi32>
    %943 = arith.cmpi eq, %401, %942 : vector<1x64xi32>
    %cst_237 = arith.constant 0.000000e+00 : f32
    %944 = vector.shape_cast %943 : vector<1x64xi1> to vector<1x64xi1>
    %945 = vector.broadcast %944 : vector<1x64xi1> to vector<8x64xi1>
    %946 = vector.shape_cast %941 : vector<8x1xf32> to vector<8x1xf32>
    %947 = vector.broadcast %946 : vector<8x1xf32> to vector<8x64xf32>
    %948 = vector.broadcast %cst_237 : f32 to vector<8x64xf32>
    %949 = arith.select %945, %947, %948 : vector<8x64xi1>, vector<8x64xf32>
    %950 = arith.addf %907, %949 : vector<8x64xf32>
    %cst_238 = arith.constant 0.000000e+00 : f32
    %951 = vector.broadcast %cst_238 : f32 to vector<8x128xf32>
    %952 = arith.select %937, %395, %951 : vector<8x128xi1>, vector<8x128xf32>
    %cst_239 = arith.constant dense<0.000000e+00> : vector<8xf32>
    %953 = vector.multi_reduction <add>, %952, %cst_239 [1] : vector<8x128xf32> to vector<8xf32>
    %954 = vector.shape_cast %953 : vector<8xf32> to vector<8x1xf32>
    %c51_i32 = arith.constant 51 : i32
    %955 = vector.broadcast %c51_i32 : i32 to vector<1x64xi32>
    %956 = arith.cmpi eq, %401, %955 : vector<1x64xi32>
    %cst_240 = arith.constant 0.000000e+00 : f32
    %957 = vector.shape_cast %956 : vector<1x64xi1> to vector<1x64xi1>
    %958 = vector.broadcast %957 : vector<1x64xi1> to vector<8x64xi1>
    %959 = vector.shape_cast %954 : vector<8x1xf32> to vector<8x1xf32>
    %960 = vector.broadcast %959 : vector<8x1xf32> to vector<8x64xf32>
    %961 = vector.broadcast %cst_240 : f32 to vector<8x64xf32>
    %962 = arith.select %958, %960, %961 : vector<8x64xi1>, vector<8x64xf32>
    %963 = arith.addf %950, %962 : vector<8x64xf32>
    %c20_i32_241 = arith.constant 20 : i32
    %964 = vector.broadcast %c20_i32_241 : i32 to vector<8x128xi32>
    %965 = arith.cmpi eq, %1, %964 : vector<8x128xi32>
    %cst_242 = arith.constant 0.000000e+00 : f32
    %966 = vector.broadcast %cst_242 : f32 to vector<8x128xf32>
    %967 = arith.select %965, %380, %966 : vector<8x128xi1>, vector<8x128xf32>
    %cst_243 = arith.constant dense<0.000000e+00> : vector<8xf32>
    %968 = vector.multi_reduction <add>, %967, %cst_243 [1] : vector<8x128xf32> to vector<8xf32>
    %969 = vector.shape_cast %968 : vector<8xf32> to vector<8x1xf32>
    %c20_i32_244 = arith.constant 20 : i32
    %970 = vector.broadcast %c20_i32_244 : i32 to vector<1x64xi32>
    %971 = arith.cmpi eq, %401, %970 : vector<1x64xi32>
    %cst_245 = arith.constant 0.000000e+00 : f32
    %972 = vector.shape_cast %971 : vector<1x64xi1> to vector<1x64xi1>
    %973 = vector.broadcast %972 : vector<1x64xi1> to vector<8x64xi1>
    %974 = vector.shape_cast %969 : vector<8x1xf32> to vector<8x1xf32>
    %975 = vector.broadcast %974 : vector<8x1xf32> to vector<8x64xf32>
    %976 = vector.broadcast %cst_245 : f32 to vector<8x64xf32>
    %977 = arith.select %973, %975, %976 : vector<8x64xi1>, vector<8x64xf32>
    %978 = arith.addf %935, %977 : vector<8x64xf32>
    %cst_246 = arith.constant 0.000000e+00 : f32
    %979 = vector.broadcast %cst_246 : f32 to vector<8x128xf32>
    %980 = arith.select %965, %395, %979 : vector<8x128xi1>, vector<8x128xf32>
    %cst_247 = arith.constant dense<0.000000e+00> : vector<8xf32>
    %981 = vector.multi_reduction <add>, %980, %cst_247 [1] : vector<8x128xf32> to vector<8xf32>
    %982 = vector.shape_cast %981 : vector<8xf32> to vector<8x1xf32>
    %c52_i32 = arith.constant 52 : i32
    %983 = vector.broadcast %c52_i32 : i32 to vector<1x64xi32>
    %984 = arith.cmpi eq, %401, %983 : vector<1x64xi32>
    %cst_248 = arith.constant 0.000000e+00 : f32
    %985 = vector.shape_cast %984 : vector<1x64xi1> to vector<1x64xi1>
    %986 = vector.broadcast %985 : vector<1x64xi1> to vector<8x64xi1>
    %987 = vector.shape_cast %982 : vector<8x1xf32> to vector<8x1xf32>
    %988 = vector.broadcast %987 : vector<8x1xf32> to vector<8x64xf32>
    %989 = vector.broadcast %cst_248 : f32 to vector<8x64xf32>
    %990 = arith.select %986, %988, %989 : vector<8x64xi1>, vector<8x64xf32>
    %991 = arith.addf %978, %990 : vector<8x64xf32>
    %c21_i32_249 = arith.constant 21 : i32
    %992 = vector.broadcast %c21_i32_249 : i32 to vector<8x128xi32>
    %993 = arith.cmpi eq, %1, %992 : vector<8x128xi32>
    %cst_250 = arith.constant 0.000000e+00 : f32
    %994 = vector.broadcast %cst_250 : f32 to vector<8x128xf32>
    %995 = arith.select %993, %380, %994 : vector<8x128xi1>, vector<8x128xf32>
    %cst_251 = arith.constant dense<0.000000e+00> : vector<8xf32>
    %996 = vector.multi_reduction <add>, %995, %cst_251 [1] : vector<8x128xf32> to vector<8xf32>
    %997 = vector.shape_cast %996 : vector<8xf32> to vector<8x1xf32>
    %c21_i32_252 = arith.constant 21 : i32
    %998 = vector.broadcast %c21_i32_252 : i32 to vector<1x64xi32>
    %999 = arith.cmpi eq, %401, %998 : vector<1x64xi32>
    %cst_253 = arith.constant 0.000000e+00 : f32
    %1000 = vector.shape_cast %999 : vector<1x64xi1> to vector<1x64xi1>
    %1001 = vector.broadcast %1000 : vector<1x64xi1> to vector<8x64xi1>
    %1002 = vector.shape_cast %997 : vector<8x1xf32> to vector<8x1xf32>
    %1003 = vector.broadcast %1002 : vector<8x1xf32> to vector<8x64xf32>
    %1004 = vector.broadcast %cst_253 : f32 to vector<8x64xf32>
    %1005 = arith.select %1001, %1003, %1004 : vector<8x64xi1>, vector<8x64xf32>
    %1006 = arith.addf %963, %1005 : vector<8x64xf32>
    %cst_254 = arith.constant 0.000000e+00 : f32
    %1007 = vector.broadcast %cst_254 : f32 to vector<8x128xf32>
    %1008 = arith.select %993, %395, %1007 : vector<8x128xi1>, vector<8x128xf32>
    %cst_255 = arith.constant dense<0.000000e+00> : vector<8xf32>
    %1009 = vector.multi_reduction <add>, %1008, %cst_255 [1] : vector<8x128xf32> to vector<8xf32>
    %1010 = vector.shape_cast %1009 : vector<8xf32> to vector<8x1xf32>
    %c53_i32 = arith.constant 53 : i32
    %1011 = vector.broadcast %c53_i32 : i32 to vector<1x64xi32>
    %1012 = arith.cmpi eq, %401, %1011 : vector<1x64xi32>
    %cst_256 = arith.constant 0.000000e+00 : f32
    %1013 = vector.shape_cast %1012 : vector<1x64xi1> to vector<1x64xi1>
    %1014 = vector.broadcast %1013 : vector<1x64xi1> to vector<8x64xi1>
    %1015 = vector.shape_cast %1010 : vector<8x1xf32> to vector<8x1xf32>
    %1016 = vector.broadcast %1015 : vector<8x1xf32> to vector<8x64xf32>
    %1017 = vector.broadcast %cst_256 : f32 to vector<8x64xf32>
    %1018 = arith.select %1014, %1016, %1017 : vector<8x64xi1>, vector<8x64xf32>
    %1019 = arith.addf %1006, %1018 : vector<8x64xf32>
    %c22_i32_257 = arith.constant 22 : i32
    %1020 = vector.broadcast %c22_i32_257 : i32 to vector<8x128xi32>
    %1021 = arith.cmpi eq, %1, %1020 : vector<8x128xi32>
    %cst_258 = arith.constant 0.000000e+00 : f32
    %1022 = vector.broadcast %cst_258 : f32 to vector<8x128xf32>
    %1023 = arith.select %1021, %380, %1022 : vector<8x128xi1>, vector<8x128xf32>
    %cst_259 = arith.constant dense<0.000000e+00> : vector<8xf32>
    %1024 = vector.multi_reduction <add>, %1023, %cst_259 [1] : vector<8x128xf32> to vector<8xf32>
    %1025 = vector.shape_cast %1024 : vector<8xf32> to vector<8x1xf32>
    %c22_i32_260 = arith.constant 22 : i32
    %1026 = vector.broadcast %c22_i32_260 : i32 to vector<1x64xi32>
    %1027 = arith.cmpi eq, %401, %1026 : vector<1x64xi32>
    %cst_261 = arith.constant 0.000000e+00 : f32
    %1028 = vector.shape_cast %1027 : vector<1x64xi1> to vector<1x64xi1>
    %1029 = vector.broadcast %1028 : vector<1x64xi1> to vector<8x64xi1>
    %1030 = vector.shape_cast %1025 : vector<8x1xf32> to vector<8x1xf32>
    %1031 = vector.broadcast %1030 : vector<8x1xf32> to vector<8x64xf32>
    %1032 = vector.broadcast %cst_261 : f32 to vector<8x64xf32>
    %1033 = arith.select %1029, %1031, %1032 : vector<8x64xi1>, vector<8x64xf32>
    %1034 = arith.addf %991, %1033 : vector<8x64xf32>
    %cst_262 = arith.constant 0.000000e+00 : f32
    %1035 = vector.broadcast %cst_262 : f32 to vector<8x128xf32>
    %1036 = arith.select %1021, %395, %1035 : vector<8x128xi1>, vector<8x128xf32>
    %cst_263 = arith.constant dense<0.000000e+00> : vector<8xf32>
    %1037 = vector.multi_reduction <add>, %1036, %cst_263 [1] : vector<8x128xf32> to vector<8xf32>
    %1038 = vector.shape_cast %1037 : vector<8xf32> to vector<8x1xf32>
    %c54_i32 = arith.constant 54 : i32
    %1039 = vector.broadcast %c54_i32 : i32 to vector<1x64xi32>
    %1040 = arith.cmpi eq, %401, %1039 : vector<1x64xi32>
    %cst_264 = arith.constant 0.000000e+00 : f32
    %1041 = vector.shape_cast %1040 : vector<1x64xi1> to vector<1x64xi1>
    %1042 = vector.broadcast %1041 : vector<1x64xi1> to vector<8x64xi1>
    %1043 = vector.shape_cast %1038 : vector<8x1xf32> to vector<8x1xf32>
    %1044 = vector.broadcast %1043 : vector<8x1xf32> to vector<8x64xf32>
    %1045 = vector.broadcast %cst_264 : f32 to vector<8x64xf32>
    %1046 = arith.select %1042, %1044, %1045 : vector<8x64xi1>, vector<8x64xf32>
    %1047 = arith.addf %1034, %1046 : vector<8x64xf32>
    %1048 = arith.addf %1047, %1019 : vector<8x64xf32>
    %1049 = arith.truncf %1048 : vector<8x64xf32> to vector<8x64xbf16>
    %c0_265 = arith.constant 0 : index
    %c0_266 = arith.constant 0 : index
    %1050 = vector.load %arg8[%c0_265, %c0_266] : memref<64x128xbf16, #tpu.memory_space<vmem>>, vector<64x128xbf16>
    %cst_267 = arith.constant dense<0.000000e+00> : vector<8x128xf32>
    %1051 = tpu.matmul %1049, %1050, %cst_267 {dimension_numbers = #tpu.dot_dimension_numbers<[1], [0], [0], [1], [0, 0, 1, 1], [], []>} : vector<8x64xbf16>, vector<64x128xbf16>, vector<8x128xf32> -> vector<8x128xf32>
    %1052 = arith.addf %400, %1051 : vector<8x128xf32>
    %c0_268 = arith.constant 0 : index
    %c0_269 = arith.constant 0 : index
    %1053 = vector.load %arg9[%c0_268, %c0_269] : memref<1x128xf32, #tpu.memory_space<vmem>>, vector<1x128xf32>
    %1054 = vector.broadcast %1053 : vector<1x128xf32> to vector<8x128xf32>
    %1055 = arith.mulf %1052, %1054 : vector<8x128xf32>
    %cst_270 = arith.constant dense<0.000000e+00> : vector<8xf32>
    %1056 = vector.multi_reduction <add>, %1055, %cst_270 [1] : vector<8x128xf32> to vector<8xf32>
    %1057 = vector.shape_cast %1056 : vector<8xf32> to vector<8x1xf32>
    %c0_271 = arith.constant 0 : index
    %c0_272 = arith.constant 0 : index
    %1058 = vector.load %arg10[%c0_271, %c0_272] : memref<1x128xf32, #tpu.memory_space<vmem>>, vector<1x128xf32>
    %1059 = vector.broadcast %1058 : vector<1x128xf32> to vector<8x128xf32>
    %1060 = arith.mulf %11, %1059 : vector<8x128xf32>
    %cst_273 = arith.constant dense<0.000000e+00> : vector<8xf32>
    %1061 = vector.multi_reduction <add>, %1060, %cst_273 [1] : vector<8x128xf32> to vector<8xf32>
    %1062 = vector.shape_cast %1061 : vector<8xf32> to vector<8x1xf32>
    %1063 = arith.addf %1057, %1062 : vector<8x1xf32>
    %1064 = arith.negf %1063 : vector<8x1xf32>
    %1065 = math.exp %1064 : vector<8x1xf32>
    %cst_274 = arith.constant 1.000000e+00 : f32
    %1066 = vector.broadcast %cst_274 : f32 to vector<8x1xf32>
    %1067 = arith.addf %1066, %1065 : vector<8x1xf32>
    %1068 = arith.divf %1066, %1067 : vector<8x1xf32>
    %1069 = vector.broadcast %1068 : vector<8x1xf32> to vector<8x128xf32>
    %1070 = arith.mulf %1069, %11 : vector<8x128xf32>
    %cst_275 = arith.constant 1.000000e+00 : f32
    %1071 = vector.broadcast %cst_275 : f32 to vector<8x1xf32>
    %1072 = arith.subf %1071, %1068 : vector<8x1xf32>
    %1073 = vector.broadcast %1072 : vector<8x1xf32> to vector<8x128xf32>
    %1074 = arith.mulf %1073, %1052 : vector<8x128xf32>
    %1075 = arith.addf %1070, %1074 : vector<8x128xf32>
    %1076 = tpu.iota {dimensions = array<i32: 1>} : vector<1x128xi32>
    %c16_i32_276 = arith.constant 16 : i32
    %1077 = vector.broadcast %c16_i32_276 : i32 to vector<1x128xi32>
    %1078 = arith.cmpi slt, %1076, %1077 : vector<1x128xi32>
    %1079 = arith.extui %1078 : vector<1x128xi1> to vector<1x128xi32>
    %1080 = arith.sitofp %1079 : vector<1x128xi32> to vector<1x128xf32>
    %cst_277 = arith.constant dense<0.000000e+00> : vector<8xf32>
    %1081 = vector.multi_reduction <add>, %1075, %cst_277 [1] : vector<8x128xf32> to vector<8xf32>
    %1082 = vector.shape_cast %1081 : vector<8xf32> to vector<8x1xf32>
    %cst_278 = arith.constant 6.250000e-02 : f32
    %1083 = vector.broadcast %cst_278 : f32 to vector<8x1xf32>
    %1084 = arith.mulf %1082, %1083 : vector<8x1xf32>
    %1085 = vector.broadcast %1084 : vector<8x1xf32> to vector<8x128xf32>
    %1086 = arith.subf %1075, %1085 : vector<8x128xf32>
    %1087 = vector.broadcast %1080 : vector<1x128xf32> to vector<8x128xf32>
    %1088 = arith.mulf %1086, %1087 : vector<8x128xf32>
    %1089 = arith.mulf %1088, %1088 : vector<8x128xf32>
    %cst_279 = arith.constant dense<0.000000e+00> : vector<8xf32>
    %1090 = vector.multi_reduction <add>, %1089, %cst_279 [1] : vector<8x128xf32> to vector<8xf32>
    %1091 = vector.shape_cast %1090 : vector<8xf32> to vector<8x1xf32>
    %cst_280 = arith.constant 6.250000e-02 : f32
    %1092 = vector.broadcast %cst_280 : f32 to vector<8x1xf32>
    %1093 = arith.mulf %1091, %1092 : vector<8x1xf32>
    %cst_281 = arith.constant 9.99999974E-6 : f32
    %1094 = vector.broadcast %cst_281 : f32 to vector<8x1xf32>
    %1095 = arith.addf %1093, %1094 : vector<8x1xf32>
    %1096 = math.rsqrt %1095 : vector<8x1xf32>
    %1097 = vector.broadcast %1096 : vector<8x1xf32> to vector<8x128xf32>
    %1098 = arith.mulf %1088, %1097 : vector<8x128xf32>
    %c0_282 = arith.constant 0 : index
    %c0_283 = arith.constant 0 : index
    %1099 = vector.load %arg11[%c0_282, %c0_283] : memref<1x128xf32, #tpu.memory_space<vmem>>, vector<1x128xf32>
    %1100 = vector.broadcast %1099 : vector<1x128xf32> to vector<8x128xf32>
    %1101 = arith.mulf %1098, %1100 : vector<8x128xf32>
    %c0_284 = arith.constant 0 : index
    %c0_285 = arith.constant 0 : index
    %1102 = vector.load %arg12[%c0_284, %c0_285] : memref<1x128xf32, #tpu.memory_space<vmem>>, vector<1x128xf32>
    %1103 = vector.broadcast %1102 : vector<1x128xf32> to vector<8x128xf32>
    %1104 = arith.addf %1101, %1103 : vector<8x128xf32>
    %cst_286 = arith.constant 0.000000e+00 : f32
    %1105 = vector.broadcast %cst_286 : f32 to vector<8x128xf32>
    %1106 = arith.maximumf %1104, %1105 : vector<8x128xf32>
    %1107 = arith.truncf %1106 : vector<8x128xf32> to vector<8x128xbf16>
    %c0_287 = arith.constant 0 : index
    %c0_288 = arith.constant 0 : index
    %1108 = vector.load %arg13[%c0_287, %c0_288] : memref<8x128xbf16, #tpu.memory_space<vmem>>, vector<8x128xbf16>
    tpu.vector_store %arg13[%c0_287, %c0_288], %1107 {strides = array<i32>} : memref<8x128xbf16, #tpu.memory_space<vmem>>, vector<8x128xbf16>,
    return
  }
  func.func @transform_0(%arg0: i32) -> (i32, i32) {
    %c0_i32 = arith.constant 0 : i32
    %c0_i32_0 = arith.constant 0 : i32
    return %arg0, %c0_i32 : i32, i32
  }
  func.func @transform_1(%arg0: i32) -> (i32, i32) {
    %c0_i32 = arith.constant 0 : i32
    %c0_i32_0 = arith.constant 0 : i32
    return %arg0, %c0_i32 : i32, i32
  }
  func.func @transform_2(%arg0: i32) -> (i32, i32) {
    %c0_i32 = arith.constant 0 : i32
    %c0_i32_0 = arith.constant 0 : i32
    %c0_i32_1 = arith.constant 0 : i32
    return %c0_i32, %c0_i32_0 : i32, i32
  }
  func.func @transform_3(%arg0: i32) -> (i32, i32) {
    %c0_i32 = arith.constant 0 : i32
    %c0_i32_0 = arith.constant 0 : i32
    %c0_i32_1 = arith.constant 0 : i32
    return %c0_i32, %c0_i32_0 : i32, i32
  }
  func.func @transform_4(%arg0: i32) -> (i32, i32) {
    %c0_i32 = arith.constant 0 : i32
    %c0_i32_0 = arith.constant 0 : i32
    %c0_i32_1 = arith.constant 0 : i32
    return %c0_i32, %c0_i32_0 : i32, i32
  }
  func.func @transform_5(%arg0: i32) -> (i32, i32) {
    %c0_i32 = arith.constant 0 : i32
    %c0_i32_0 = arith.constant 0 : i32
    %c0_i32_1 = arith.constant 0 : i32
    return %c0_i32, %c0_i32_0 : i32, i32
  }
  func.func @transform_6(%arg0: i32) -> (i32, i32) {
    %c0_i32 = arith.constant 0 : i32
    %c0_i32_0 = arith.constant 0 : i32
    %c0_i32_1 = arith.constant 0 : i32
    return %c0_i32, %c0_i32_0 : i32, i32
  }
  func.func @transform_7(%arg0: i32) -> (i32, i32) {
    %c0_i32 = arith.constant 0 : i32
    %c0_i32_0 = arith.constant 0 : i32
    %c0_i32_1 = arith.constant 0 : i32
    return %c0_i32, %c0_i32_0 : i32, i32
  }
  func.func @transform_8(%arg0: i32) -> (i32, i32) {
    %c0_i32 = arith.constant 0 : i32
    %c0_i32_0 = arith.constant 0 : i32
    %c0_i32_1 = arith.constant 0 : i32
    return %c0_i32, %c0_i32_0 : i32, i32
  }
  func.func @transform_9(%arg0: i32) -> (i32, i32) {
    %c0_i32 = arith.constant 0 : i32
    %c0_i32_0 = arith.constant 0 : i32
    %c0_i32_1 = arith.constant 0 : i32
    return %c0_i32, %c0_i32_0 : i32, i32
  }
  func.func @transform_10(%arg0: i32) -> (i32, i32) {
    %c0_i32 = arith.constant 0 : i32
    %c0_i32_0 = arith.constant 0 : i32
    %c0_i32_1 = arith.constant 0 : i32
    return %c0_i32, %c0_i32_0 : i32, i32
  }
  func.func @transform_11(%arg0: i32) -> (i32, i32) {
    %c0_i32 = arith.constant 0 : i32
    %c0_i32_0 = arith.constant 0 : i32
    %c0_i32_1 = arith.constant 0 : i32
    return %c0_i32, %c0_i32_0 : i32, i32
  }
  func.func @transform_12(%arg0: i32) -> (i32, i32) {
    %c0_i32 = arith.constant 0 : i32
    %c0_i32_0 = arith.constant 0 : i32
    return %arg0, %c0_i32 : i32, i32
  }
}

module attributes {stable_mosaic.version = 11 : i64} {
  func.func @kernel(%arg0: i32, %arg1: memref<8x128xbf16, #tpu.memory_space<vmem>>, %arg2: memref<8x128xi32, #tpu.memory_space<vmem>>, %arg3: memref<128x128xbf16, #tpu.memory_space<vmem>>, %arg4: memref<128x128xbf16, #tpu.memory_space<vmem>>, %arg5: memref<128x256xbf16, #tpu.memory_space<vmem>>, %arg6: memref<1x256xf32, #tpu.memory_space<vmem>>, %arg7: memref<128x32xbf16, #tpu.memory_space<vmem>>, %arg8: memref<64x128xbf16, #tpu.memory_space<vmem>>, %arg9: memref<1x128xf32, #tpu.memory_space<vmem>>, %arg10: memref<1x128xf32, #tpu.memory_space<vmem>>, %arg11: memref<128x128xf32, #tpu.memory_space<vmem>>, %arg12: memref<8x128xf32, #tpu.memory_space<vmem>>) attributes {dimension_semantics = [#tpu.dimension_semantics<parallel>], iteration_bounds = array<i64: 1>, scalar_prefetch = 0 : i64, scratch_operands = 0 : i64, tpu.core_type = #tpu.core_type<tc>, window_params = [{transform_indices = @transform_0, window_bounds = array<i64: 8, 128>}, {transform_indices = @transform_1, window_bounds = array<i64: 8, 128>}, {pipeline_mode = #tpu.pipeline_mode<synchronous>, transform_indices = @transform_2, window_bounds = array<i64: 128, 128>}, {pipeline_mode = #tpu.pipeline_mode<synchronous>, transform_indices = @transform_3, window_bounds = array<i64: 128, 128>}, {pipeline_mode = #tpu.pipeline_mode<synchronous>, transform_indices = @transform_4, window_bounds = array<i64: 128, 256>}, {pipeline_mode = #tpu.pipeline_mode<synchronous>, transform_indices = @transform_5, window_bounds = array<i64: 1, 256>}, {pipeline_mode = #tpu.pipeline_mode<synchronous>, transform_indices = @transform_6, window_bounds = array<i64: 128, 32>}, {pipeline_mode = #tpu.pipeline_mode<synchronous>, transform_indices = @transform_7, window_bounds = array<i64: 64, 128>}, {pipeline_mode = #tpu.pipeline_mode<synchronous>, transform_indices = @transform_8, window_bounds = array<i64: 1, 128>}, {pipeline_mode = #tpu.pipeline_mode<synchronous>, transform_indices = @transform_9, window_bounds = array<i64: 1, 128>}, {pipeline_mode = #tpu.pipeline_mode<synchronous>, transform_indices = @transform_10, window_bounds = array<i64: 128, 128>}, {transform_indices = @transform_11, window_bounds = array<i64: 8, 128>}]} {
    %c0 = arith.constant 0 : index
    %c0_0 = arith.constant 0 : index
    %0 = vector.load %arg1[%c0, %c0_0] : memref<8x128xbf16, #tpu.memory_space<vmem>>, vector<8x128xbf16>
    %c0_1 = arith.constant 0 : index
    %c0_2 = arith.constant 0 : index
    %1 = vector.load %arg2[%c0_1, %c0_2] : memref<8x128xi32, #tpu.memory_space<vmem>>, vector<8x128xi32>
    %c0_3 = arith.constant 0 : index
    %c0_4 = arith.constant 0 : index
    %2 = vector.load %arg3[%c0_3, %c0_4] : memref<128x128xbf16, #tpu.memory_space<vmem>>, vector<128x128xbf16>
    %c0_5 = arith.constant 0 : index
    %c0_6 = arith.constant 0 : index
    %3 = vector.load %arg4[%c0_5, %c0_6] : memref<128x128xbf16, #tpu.memory_space<vmem>>, vector<128x128xbf16>
    %c0_7 = arith.constant 0 : index
    %c0_8 = arith.constant 0 : index
    %4 = vector.load %arg7[%c0_7, %c0_8] : memref<128x32xbf16, #tpu.memory_space<vmem>>, vector<128x32xbf16>
    %c0_9 = arith.constant 0 : index
    %c0_10 = arith.constant 0 : index
    %5 = vector.load %arg5[%c0_9, %c0_10] : memref<128x256xbf16, #tpu.memory_space<vmem>>, vector<128x256xbf16>
    %cst = arith.constant dense<0.000000e+00> : vector<8x256xf32>
    %6 = tpu.matmul %0, %5, %cst {dimension_numbers = #tpu.dot_dimension_numbers<[1], [0], [0], [1], [0, 0, 1, 1], [], []>} : vector<8x128xbf16>, vector<128x256xbf16>, vector<8x256xf32> -> vector<8x256xf32>
    %c0_11 = arith.constant 0 : index
    %c0_12 = arith.constant 0 : index
    %7 = vector.load %arg6[%c0_11, %c0_12] : memref<1x256xf32, #tpu.memory_space<vmem>>, vector<1x256xf32>
    %8 = vector.broadcast %7 : vector<1x256xf32> to vector<8x256xf32>
    %9 = arith.addf %6, %8 : vector<8x256xf32>
    %10 = vector.extract_strided_slice %9 {offsets = [0, 0], sizes = [8, 128], strides = [1, 1]} : vector<8x256xf32> to vector<8x128xf32>
    %11 = vector.extract_strided_slice %9 {offsets = [0, 128], sizes = [8, 128], strides = [1, 1]} : vector<8x256xf32> to vector<8x128xf32>
    %c0_i32 = arith.constant 0 : i32
    %12 = vector.broadcast %c0_i32 : i32 to vector<8x128xi32>
    %13 = arith.cmpi sge, %1, %12 : vector<8x128xi32>
    %cst_13 = arith.constant 0.000000e+00 : f32
    %cst_14 = arith.constant -1.000000e+30 : f32
    %14 = vector.broadcast %cst_13 : f32 to vector<8x128xf32>
    %15 = vector.broadcast %cst_14 : f32 to vector<8x128xf32>
    %16 = arith.select %13, %14, %15 : vector<8x128xi1>, vector<8x128xf32>
    %17 = tpu.iota {dimensions = array<i32: 1>} : vector<1x128xi32>
    %c0_i32_15 = arith.constant 0 : i32
    %18 = vector.broadcast %c0_i32_15 : i32 to vector<1x128xi32>
    %19 = arith.cmpi sge, %17, %18 : vector<1x128xi32>
    %c5_i32 = arith.constant 5 : i32
    %20 = vector.broadcast %c5_i32 : i32 to vector<1x128xi32>
    %21 = arith.cmpi slt, %17, %20 : vector<1x128xi32>
    %22 = arith.andi %19, %21 : vector<1x128xi1>
    %23 = arith.extui %22 : vector<1x128xi1> to vector<1x128xi32>
    %24 = arith.sitofp %23 : vector<1x128xi32> to vector<1x128xf32>
    %25 = vector.broadcast %24 : vector<1x128xf32> to vector<8x128xf32>
    %26 = arith.mulf %10, %25 : vector<8x128xf32>
    %27 = arith.truncf %26 : vector<8x128xf32> to vector<8x128xbf16>
    %cst_16 = arith.constant dense<0.000000e+00> : vector<8x128xf32>
    %28 = tpu.matmul %27, %2, %cst_16 {dimension_numbers = #tpu.dot_dimension_numbers<[1], [0], [0], [1], [0, 0, 1, 1], [], []>} : vector<8x128xbf16>, vector<128x128xbf16>, vector<8x128xf32> -> vector<8x128xf32>
    %29 = arith.addf %28, %16 : vector<8x128xf32>
    %cst_17 = arith.constant dense<0.000000e+00> : vector<8x32xf32>
    %30 = tpu.matmul %27, %4, %cst_17 {dimension_numbers = #tpu.dot_dimension_numbers<[1], [0], [0], [1], [0, 0, 1, 1], [], []>} : vector<8x128xbf16>, vector<128x32xbf16>, vector<8x32xf32> -> vector<8x32xf32>
    %c5_i32_18 = arith.constant 5 : i32
    %31 = vector.broadcast %c5_i32_18 : i32 to vector<1x128xi32>
    %32 = arith.cmpi sge, %17, %31 : vector<1x128xi32>
    %c10_i32 = arith.constant 10 : i32
    %33 = vector.broadcast %c10_i32 : i32 to vector<1x128xi32>
    %34 = arith.cmpi slt, %17, %33 : vector<1x128xi32>
    %35 = arith.andi %32, %34 : vector<1x128xi1>
    %36 = arith.extui %35 : vector<1x128xi1> to vector<1x128xi32>
    %37 = arith.sitofp %36 : vector<1x128xi32> to vector<1x128xf32>
    %38 = vector.broadcast %37 : vector<1x128xf32> to vector<8x128xf32>
    %39 = arith.mulf %10, %38 : vector<8x128xf32>
    %40 = arith.truncf %39 : vector<8x128xf32> to vector<8x128xbf16>
    %cst_19 = arith.constant dense<0.000000e+00> : vector<8x128xf32>
    %41 = tpu.matmul %40, %2, %cst_19 {dimension_numbers = #tpu.dot_dimension_numbers<[1], [0], [0], [1], [0, 0, 1, 1], [], []>} : vector<8x128xbf16>, vector<128x128xbf16>, vector<8x128xf32> -> vector<8x128xf32>
    %42 = arith.addf %41, %16 : vector<8x128xf32>
    %cst_20 = arith.constant dense<0.000000e+00> : vector<8x32xf32>
    %43 = tpu.matmul %40, %4, %cst_20 {dimension_numbers = #tpu.dot_dimension_numbers<[1], [0], [0], [1], [0, 0, 1, 1], [], []>} : vector<8x128xbf16>, vector<128x32xbf16>, vector<8x32xf32> -> vector<8x32xf32>
    %cst_21 = arith.constant 0.000000e+00 : f32
    %44 = vector.broadcast %cst_21 : f32 to vector<8x128xf32>
    %cst_22 = arith.constant 0.000000e+00 : f32
    %45 = vector.broadcast %cst_22 : f32 to vector<8x128xf32>
    %c0_i32_23 = arith.constant 0 : i32
    %46 = vector.broadcast %c0_i32_23 : i32 to vector<8x128xi32>
    %47 = arith.cmpi eq, %1, %46 : vector<8x128xi32>
    %48 = vector.extract_strided_slice %30 {offsets = [0, 0], sizes = [8, 1], strides = [1, 1]} : vector<8x32xf32> to vector<8x1xf32>
    %cst_24 = arith.constant 0.000000e+00 : f32
    %49 = vector.shape_cast %48 : vector<8x1xf32> to vector<8x1xf32>
    %50 = vector.broadcast %49 : vector<8x1xf32> to vector<8x128xf32>
    %51 = vector.broadcast %cst_24 : f32 to vector<8x128xf32>
    %52 = arith.select %47, %50, %51 : vector<8x128xi1>, vector<8x128xf32>
    %53 = arith.addf %29, %52 : vector<8x128xf32>
    %54 = vector.extract_strided_slice %43 {offsets = [0, 0], sizes = [8, 1], strides = [1, 1]} : vector<8x32xf32> to vector<8x1xf32>
    %cst_25 = arith.constant 0.000000e+00 : f32
    %55 = vector.shape_cast %54 : vector<8x1xf32> to vector<8x1xf32>
    %56 = vector.broadcast %55 : vector<8x1xf32> to vector<8x128xf32>
    %57 = vector.broadcast %cst_25 : f32 to vector<8x128xf32>
    %58 = arith.select %47, %56, %57 : vector<8x128xi1>, vector<8x128xf32>
    %59 = arith.addf %42, %58 : vector<8x128xf32>
    %c1_i32 = arith.constant 1 : i32
    %60 = vector.broadcast %c1_i32 : i32 to vector<8x128xi32>
    %61 = arith.cmpi eq, %1, %60 : vector<8x128xi32>
    %62 = vector.extract_strided_slice %30 {offsets = [0, 1], sizes = [8, 1], strides = [1, 1]} : vector<8x32xf32> to vector<8x1xf32>
    %cst_26 = arith.constant 0.000000e+00 : f32
    %63 = vector.shape_cast %62 : vector<8x1xf32> to vector<8x1xf32>
    %64 = vector.broadcast %63 : vector<8x1xf32> to vector<8x128xf32>
    %65 = vector.broadcast %cst_26 : f32 to vector<8x128xf32>
    %66 = arith.select %61, %64, %65 : vector<8x128xi1>, vector<8x128xf32>
    %67 = arith.addf %44, %66 : vector<8x128xf32>
    %68 = vector.extract_strided_slice %43 {offsets = [0, 1], sizes = [8, 1], strides = [1, 1]} : vector<8x32xf32> to vector<8x1xf32>
    %cst_27 = arith.constant 0.000000e+00 : f32
    %69 = vector.shape_cast %68 : vector<8x1xf32> to vector<8x1xf32>
    %70 = vector.broadcast %69 : vector<8x1xf32> to vector<8x128xf32>
    %71 = vector.broadcast %cst_27 : f32 to vector<8x128xf32>
    %72 = arith.select %61, %70, %71 : vector<8x128xi1>, vector<8x128xf32>
    %73 = arith.addf %45, %72 : vector<8x128xf32>
    %c2_i32 = arith.constant 2 : i32
    %74 = vector.broadcast %c2_i32 : i32 to vector<8x128xi32>
    %75 = arith.cmpi eq, %1, %74 : vector<8x128xi32>
    %76 = vector.extract_strided_slice %30 {offsets = [0, 2], sizes = [8, 1], strides = [1, 1]} : vector<8x32xf32> to vector<8x1xf32>
    %cst_28 = arith.constant 0.000000e+00 : f32
    %77 = vector.shape_cast %76 : vector<8x1xf32> to vector<8x1xf32>
    %78 = vector.broadcast %77 : vector<8x1xf32> to vector<8x128xf32>
    %79 = vector.broadcast %cst_28 : f32 to vector<8x128xf32>
    %80 = arith.select %75, %78, %79 : vector<8x128xi1>, vector<8x128xf32>
    %81 = arith.addf %53, %80 : vector<8x128xf32>
    %82 = vector.extract_strided_slice %43 {offsets = [0, 2], sizes = [8, 1], strides = [1, 1]} : vector<8x32xf32> to vector<8x1xf32>
    %cst_29 = arith.constant 0.000000e+00 : f32
    %83 = vector.shape_cast %82 : vector<8x1xf32> to vector<8x1xf32>
    %84 = vector.broadcast %83 : vector<8x1xf32> to vector<8x128xf32>
    %85 = vector.broadcast %cst_29 : f32 to vector<8x128xf32>
    %86 = arith.select %75, %84, %85 : vector<8x128xi1>, vector<8x128xf32>
    %87 = arith.addf %59, %86 : vector<8x128xf32>
    %c3_i32 = arith.constant 3 : i32
    %88 = vector.broadcast %c3_i32 : i32 to vector<8x128xi32>
    %89 = arith.cmpi eq, %1, %88 : vector<8x128xi32>
    %90 = vector.extract_strided_slice %30 {offsets = [0, 3], sizes = [8, 1], strides = [1, 1]} : vector<8x32xf32> to vector<8x1xf32>
    %cst_30 = arith.constant 0.000000e+00 : f32
    %91 = vector.shape_cast %90 : vector<8x1xf32> to vector<8x1xf32>
    %92 = vector.broadcast %91 : vector<8x1xf32> to vector<8x128xf32>
    %93 = vector.broadcast %cst_30 : f32 to vector<8x128xf32>
    %94 = arith.select %89, %92, %93 : vector<8x128xi1>, vector<8x128xf32>
    %95 = arith.addf %67, %94 : vector<8x128xf32>
    %96 = vector.extract_strided_slice %43 {offsets = [0, 3], sizes = [8, 1], strides = [1, 1]} : vector<8x32xf32> to vector<8x1xf32>
    %cst_31 = arith.constant 0.000000e+00 : f32
    %97 = vector.shape_cast %96 : vector<8x1xf32> to vector<8x1xf32>
    %98 = vector.broadcast %97 : vector<8x1xf32> to vector<8x128xf32>
    %99 = vector.broadcast %cst_31 : f32 to vector<8x128xf32>
    %100 = arith.select %89, %98, %99 : vector<8x128xi1>, vector<8x128xf32>
    %101 = arith.addf %73, %100 : vector<8x128xf32>
    %c4_i32 = arith.constant 4 : i32
    %102 = vector.broadcast %c4_i32 : i32 to vector<8x128xi32>
    %103 = arith.cmpi eq, %1, %102 : vector<8x128xi32>
    %104 = vector.extract_strided_slice %30 {offsets = [0, 4], sizes = [8, 1], strides = [1, 1]} : vector<8x32xf32> to vector<8x1xf32>
    %cst_32 = arith.constant 0.000000e+00 : f32
    %105 = vector.shape_cast %104 : vector<8x1xf32> to vector<8x1xf32>
    %106 = vector.broadcast %105 : vector<8x1xf32> to vector<8x128xf32>
    %107 = vector.broadcast %cst_32 : f32 to vector<8x128xf32>
    %108 = arith.select %103, %106, %107 : vector<8x128xi1>, vector<8x128xf32>
    %109 = arith.addf %81, %108 : vector<8x128xf32>
    %110 = vector.extract_strided_slice %43 {offsets = [0, 4], sizes = [8, 1], strides = [1, 1]} : vector<8x32xf32> to vector<8x1xf32>
    %cst_33 = arith.constant 0.000000e+00 : f32
    %111 = vector.shape_cast %110 : vector<8x1xf32> to vector<8x1xf32>
    %112 = vector.broadcast %111 : vector<8x1xf32> to vector<8x128xf32>
    %113 = vector.broadcast %cst_33 : f32 to vector<8x128xf32>
    %114 = arith.select %103, %112, %113 : vector<8x128xi1>, vector<8x128xf32>
    %115 = arith.addf %87, %114 : vector<8x128xf32>
    %c5_i32_34 = arith.constant 5 : i32
    %116 = vector.broadcast %c5_i32_34 : i32 to vector<8x128xi32>
    %117 = arith.cmpi eq, %1, %116 : vector<8x128xi32>
    %118 = vector.extract_strided_slice %30 {offsets = [0, 5], sizes = [8, 1], strides = [1, 1]} : vector<8x32xf32> to vector<8x1xf32>
    %cst_35 = arith.constant 0.000000e+00 : f32
    %119 = vector.shape_cast %118 : vector<8x1xf32> to vector<8x1xf32>
    %120 = vector.broadcast %119 : vector<8x1xf32> to vector<8x128xf32>
    %121 = vector.broadcast %cst_35 : f32 to vector<8x128xf32>
    %122 = arith.select %117, %120, %121 : vector<8x128xi1>, vector<8x128xf32>
    %123 = arith.addf %95, %122 : vector<8x128xf32>
    %124 = vector.extract_strided_slice %43 {offsets = [0, 5], sizes = [8, 1], strides = [1, 1]} : vector<8x32xf32> to vector<8x1xf32>
    %cst_36 = arith.constant 0.000000e+00 : f32
    %125 = vector.shape_cast %124 : vector<8x1xf32> to vector<8x1xf32>
    %126 = vector.broadcast %125 : vector<8x1xf32> to vector<8x128xf32>
    %127 = vector.broadcast %cst_36 : f32 to vector<8x128xf32>
    %128 = arith.select %117, %126, %127 : vector<8x128xi1>, vector<8x128xf32>
    %129 = arith.addf %101, %128 : vector<8x128xf32>
    %c6_i32 = arith.constant 6 : i32
    %130 = vector.broadcast %c6_i32 : i32 to vector<8x128xi32>
    %131 = arith.cmpi eq, %1, %130 : vector<8x128xi32>
    %132 = vector.extract_strided_slice %30 {offsets = [0, 6], sizes = [8, 1], strides = [1, 1]} : vector<8x32xf32> to vector<8x1xf32>
    %cst_37 = arith.constant 0.000000e+00 : f32
    %133 = vector.shape_cast %132 : vector<8x1xf32> to vector<8x1xf32>
    %134 = vector.broadcast %133 : vector<8x1xf32> to vector<8x128xf32>
    %135 = vector.broadcast %cst_37 : f32 to vector<8x128xf32>
    %136 = arith.select %131, %134, %135 : vector<8x128xi1>, vector<8x128xf32>
    %137 = arith.addf %109, %136 : vector<8x128xf32>
    %138 = vector.extract_strided_slice %43 {offsets = [0, 6], sizes = [8, 1], strides = [1, 1]} : vector<8x32xf32> to vector<8x1xf32>
    %cst_38 = arith.constant 0.000000e+00 : f32
    %139 = vector.shape_cast %138 : vector<8x1xf32> to vector<8x1xf32>
    %140 = vector.broadcast %139 : vector<8x1xf32> to vector<8x128xf32>
    %141 = vector.broadcast %cst_38 : f32 to vector<8x128xf32>
    %142 = arith.select %131, %140, %141 : vector<8x128xi1>, vector<8x128xf32>
    %143 = arith.addf %115, %142 : vector<8x128xf32>
    %c7_i32 = arith.constant 7 : i32
    %144 = vector.broadcast %c7_i32 : i32 to vector<8x128xi32>
    %145 = arith.cmpi eq, %1, %144 : vector<8x128xi32>
    %146 = vector.extract_strided_slice %30 {offsets = [0, 7], sizes = [8, 1], strides = [1, 1]} : vector<8x32xf32> to vector<8x1xf32>
    %cst_39 = arith.constant 0.000000e+00 : f32
    %147 = vector.shape_cast %146 : vector<8x1xf32> to vector<8x1xf32>
    %148 = vector.broadcast %147 : vector<8x1xf32> to vector<8x128xf32>
    %149 = vector.broadcast %cst_39 : f32 to vector<8x128xf32>
    %150 = arith.select %145, %148, %149 : vector<8x128xi1>, vector<8x128xf32>
    %151 = arith.addf %123, %150 : vector<8x128xf32>
    %152 = vector.extract_strided_slice %43 {offsets = [0, 7], sizes = [8, 1], strides = [1, 1]} : vector<8x32xf32> to vector<8x1xf32>
    %cst_40 = arith.constant 0.000000e+00 : f32
    %153 = vector.shape_cast %152 : vector<8x1xf32> to vector<8x1xf32>
    %154 = vector.broadcast %153 : vector<8x1xf32> to vector<8x128xf32>
    %155 = vector.broadcast %cst_40 : f32 to vector<8x128xf32>
    %156 = arith.select %145, %154, %155 : vector<8x128xi1>, vector<8x128xf32>
    %157 = arith.addf %129, %156 : vector<8x128xf32>
    %c8_i32 = arith.constant 8 : i32
    %158 = vector.broadcast %c8_i32 : i32 to vector<8x128xi32>
    %159 = arith.cmpi eq, %1, %158 : vector<8x128xi32>
    %160 = vector.extract_strided_slice %30 {offsets = [0, 8], sizes = [8, 1], strides = [1, 1]} : vector<8x32xf32> to vector<8x1xf32>
    %cst_41 = arith.constant 0.000000e+00 : f32
    %161 = vector.shape_cast %160 : vector<8x1xf32> to vector<8x1xf32>
    %162 = vector.broadcast %161 : vector<8x1xf32> to vector<8x128xf32>
    %163 = vector.broadcast %cst_41 : f32 to vector<8x128xf32>
    %164 = arith.select %159, %162, %163 : vector<8x128xi1>, vector<8x128xf32>
    %165 = arith.addf %137, %164 : vector<8x128xf32>
    %166 = vector.extract_strided_slice %43 {offsets = [0, 8], sizes = [8, 1], strides = [1, 1]} : vector<8x32xf32> to vector<8x1xf32>
    %cst_42 = arith.constant 0.000000e+00 : f32
    %167 = vector.shape_cast %166 : vector<8x1xf32> to vector<8x1xf32>
    %168 = vector.broadcast %167 : vector<8x1xf32> to vector<8x128xf32>
    %169 = vector.broadcast %cst_42 : f32 to vector<8x128xf32>
    %170 = arith.select %159, %168, %169 : vector<8x128xi1>, vector<8x128xf32>
    %171 = arith.addf %143, %170 : vector<8x128xf32>
    %c9_i32 = arith.constant 9 : i32
    %172 = vector.broadcast %c9_i32 : i32 to vector<8x128xi32>
    %173 = arith.cmpi eq, %1, %172 : vector<8x128xi32>
    %174 = vector.extract_strided_slice %30 {offsets = [0, 9], sizes = [8, 1], strides = [1, 1]} : vector<8x32xf32> to vector<8x1xf32>
    %cst_43 = arith.constant 0.000000e+00 : f32
    %175 = vector.shape_cast %174 : vector<8x1xf32> to vector<8x1xf32>
    %176 = vector.broadcast %175 : vector<8x1xf32> to vector<8x128xf32>
    %177 = vector.broadcast %cst_43 : f32 to vector<8x128xf32>
    %178 = arith.select %173, %176, %177 : vector<8x128xi1>, vector<8x128xf32>
    %179 = arith.addf %151, %178 : vector<8x128xf32>
    %180 = vector.extract_strided_slice %43 {offsets = [0, 9], sizes = [8, 1], strides = [1, 1]} : vector<8x32xf32> to vector<8x1xf32>
    %cst_44 = arith.constant 0.000000e+00 : f32
    %181 = vector.shape_cast %180 : vector<8x1xf32> to vector<8x1xf32>
    %182 = vector.broadcast %181 : vector<8x1xf32> to vector<8x128xf32>
    %183 = vector.broadcast %cst_44 : f32 to vector<8x128xf32>
    %184 = arith.select %173, %182, %183 : vector<8x128xi1>, vector<8x128xf32>
    %185 = arith.addf %157, %184 : vector<8x128xf32>
    %c10_i32_45 = arith.constant 10 : i32
    %186 = vector.broadcast %c10_i32_45 : i32 to vector<8x128xi32>
    %187 = arith.cmpi eq, %1, %186 : vector<8x128xi32>
    %188 = vector.extract_strided_slice %30 {offsets = [0, 10], sizes = [8, 1], strides = [1, 1]} : vector<8x32xf32> to vector<8x1xf32>
    %cst_46 = arith.constant 0.000000e+00 : f32
    %189 = vector.shape_cast %188 : vector<8x1xf32> to vector<8x1xf32>
    %190 = vector.broadcast %189 : vector<8x1xf32> to vector<8x128xf32>
    %191 = vector.broadcast %cst_46 : f32 to vector<8x128xf32>
    %192 = arith.select %187, %190, %191 : vector<8x128xi1>, vector<8x128xf32>
    %193 = arith.addf %165, %192 : vector<8x128xf32>
    %194 = vector.extract_strided_slice %43 {offsets = [0, 10], sizes = [8, 1], strides = [1, 1]} : vector<8x32xf32> to vector<8x1xf32>
    %cst_47 = arith.constant 0.000000e+00 : f32
    %195 = vector.shape_cast %194 : vector<8x1xf32> to vector<8x1xf32>
    %196 = vector.broadcast %195 : vector<8x1xf32> to vector<8x128xf32>
    %197 = vector.broadcast %cst_47 : f32 to vector<8x128xf32>
    %198 = arith.select %187, %196, %197 : vector<8x128xi1>, vector<8x128xf32>
    %199 = arith.addf %171, %198 : vector<8x128xf32>
    %c11_i32 = arith.constant 11 : i32
    %200 = vector.broadcast %c11_i32 : i32 to vector<8x128xi32>
    %201 = arith.cmpi eq, %1, %200 : vector<8x128xi32>
    %202 = vector.extract_strided_slice %30 {offsets = [0, 11], sizes = [8, 1], strides = [1, 1]} : vector<8x32xf32> to vector<8x1xf32>
    %cst_48 = arith.constant 0.000000e+00 : f32
    %203 = vector.shape_cast %202 : vector<8x1xf32> to vector<8x1xf32>
    %204 = vector.broadcast %203 : vector<8x1xf32> to vector<8x128xf32>
    %205 = vector.broadcast %cst_48 : f32 to vector<8x128xf32>
    %206 = arith.select %201, %204, %205 : vector<8x128xi1>, vector<8x128xf32>
    %207 = arith.addf %179, %206 : vector<8x128xf32>
    %208 = vector.extract_strided_slice %43 {offsets = [0, 11], sizes = [8, 1], strides = [1, 1]} : vector<8x32xf32> to vector<8x1xf32>
    %cst_49 = arith.constant 0.000000e+00 : f32
    %209 = vector.shape_cast %208 : vector<8x1xf32> to vector<8x1xf32>
    %210 = vector.broadcast %209 : vector<8x1xf32> to vector<8x128xf32>
    %211 = vector.broadcast %cst_49 : f32 to vector<8x128xf32>
    %212 = arith.select %201, %210, %211 : vector<8x128xi1>, vector<8x128xf32>
    %213 = arith.addf %185, %212 : vector<8x128xf32>
    %c12_i32 = arith.constant 12 : i32
    %214 = vector.broadcast %c12_i32 : i32 to vector<8x128xi32>
    %215 = arith.cmpi eq, %1, %214 : vector<8x128xi32>
    %216 = vector.extract_strided_slice %30 {offsets = [0, 12], sizes = [8, 1], strides = [1, 1]} : vector<8x32xf32> to vector<8x1xf32>
    %cst_50 = arith.constant 0.000000e+00 : f32
    %217 = vector.shape_cast %216 : vector<8x1xf32> to vector<8x1xf32>
    %218 = vector.broadcast %217 : vector<8x1xf32> to vector<8x128xf32>
    %219 = vector.broadcast %cst_50 : f32 to vector<8x128xf32>
    %220 = arith.select %215, %218, %219 : vector<8x128xi1>, vector<8x128xf32>
    %221 = arith.addf %193, %220 : vector<8x128xf32>
    %222 = vector.extract_strided_slice %43 {offsets = [0, 12], sizes = [8, 1], strides = [1, 1]} : vector<8x32xf32> to vector<8x1xf32>
    %cst_51 = arith.constant 0.000000e+00 : f32
    %223 = vector.shape_cast %222 : vector<8x1xf32> to vector<8x1xf32>
    %224 = vector.broadcast %223 : vector<8x1xf32> to vector<8x128xf32>
    %225 = vector.broadcast %cst_51 : f32 to vector<8x128xf32>
    %226 = arith.select %215, %224, %225 : vector<8x128xi1>, vector<8x128xf32>
    %227 = arith.addf %199, %226 : vector<8x128xf32>
    %c13_i32 = arith.constant 13 : i32
    %228 = vector.broadcast %c13_i32 : i32 to vector<8x128xi32>
    %229 = arith.cmpi eq, %1, %228 : vector<8x128xi32>
    %230 = vector.extract_strided_slice %30 {offsets = [0, 13], sizes = [8, 1], strides = [1, 1]} : vector<8x32xf32> to vector<8x1xf32>
    %cst_52 = arith.constant 0.000000e+00 : f32
    %231 = vector.shape_cast %230 : vector<8x1xf32> to vector<8x1xf32>
    %232 = vector.broadcast %231 : vector<8x1xf32> to vector<8x128xf32>
    %233 = vector.broadcast %cst_52 : f32 to vector<8x128xf32>
    %234 = arith.select %229, %232, %233 : vector<8x128xi1>, vector<8x128xf32>
    %235 = arith.addf %207, %234 : vector<8x128xf32>
    %236 = vector.extract_strided_slice %43 {offsets = [0, 13], sizes = [8, 1], strides = [1, 1]} : vector<8x32xf32> to vector<8x1xf32>
    %cst_53 = arith.constant 0.000000e+00 : f32
    %237 = vector.shape_cast %236 : vector<8x1xf32> to vector<8x1xf32>
    %238 = vector.broadcast %237 : vector<8x1xf32> to vector<8x128xf32>
    %239 = vector.broadcast %cst_53 : f32 to vector<8x128xf32>
    %240 = arith.select %229, %238, %239 : vector<8x128xi1>, vector<8x128xf32>
    %241 = arith.addf %213, %240 : vector<8x128xf32>
    %c14_i32 = arith.constant 14 : i32
    %242 = vector.broadcast %c14_i32 : i32 to vector<8x128xi32>
    %243 = arith.cmpi eq, %1, %242 : vector<8x128xi32>
    %244 = vector.extract_strided_slice %30 {offsets = [0, 14], sizes = [8, 1], strides = [1, 1]} : vector<8x32xf32> to vector<8x1xf32>
    %cst_54 = arith.constant 0.000000e+00 : f32
    %245 = vector.shape_cast %244 : vector<8x1xf32> to vector<8x1xf32>
    %246 = vector.broadcast %245 : vector<8x1xf32> to vector<8x128xf32>
    %247 = vector.broadcast %cst_54 : f32 to vector<8x128xf32>
    %248 = arith.select %243, %246, %247 : vector<8x128xi1>, vector<8x128xf32>
    %249 = arith.addf %221, %248 : vector<8x128xf32>
    %250 = vector.extract_strided_slice %43 {offsets = [0, 14], sizes = [8, 1], strides = [1, 1]} : vector<8x32xf32> to vector<8x1xf32>
    %cst_55 = arith.constant 0.000000e+00 : f32
    %251 = vector.shape_cast %250 : vector<8x1xf32> to vector<8x1xf32>
    %252 = vector.broadcast %251 : vector<8x1xf32> to vector<8x128xf32>
    %253 = vector.broadcast %cst_55 : f32 to vector<8x128xf32>
    %254 = arith.select %243, %252, %253 : vector<8x128xi1>, vector<8x128xf32>
    %255 = arith.addf %227, %254 : vector<8x128xf32>
    %c15_i32 = arith.constant 15 : i32
    %256 = vector.broadcast %c15_i32 : i32 to vector<8x128xi32>
    %257 = arith.cmpi eq, %1, %256 : vector<8x128xi32>
    %258 = vector.extract_strided_slice %30 {offsets = [0, 15], sizes = [8, 1], strides = [1, 1]} : vector<8x32xf32> to vector<8x1xf32>
    %cst_56 = arith.constant 0.000000e+00 : f32
    %259 = vector.shape_cast %258 : vector<8x1xf32> to vector<8x1xf32>
    %260 = vector.broadcast %259 : vector<8x1xf32> to vector<8x128xf32>
    %261 = vector.broadcast %cst_56 : f32 to vector<8x128xf32>
    %262 = arith.select %257, %260, %261 : vector<8x128xi1>, vector<8x128xf32>
    %263 = arith.addf %235, %262 : vector<8x128xf32>
    %264 = vector.extract_strided_slice %43 {offsets = [0, 15], sizes = [8, 1], strides = [1, 1]} : vector<8x32xf32> to vector<8x1xf32>
    %cst_57 = arith.constant 0.000000e+00 : f32
    %265 = vector.shape_cast %264 : vector<8x1xf32> to vector<8x1xf32>
    %266 = vector.broadcast %265 : vector<8x1xf32> to vector<8x128xf32>
    %267 = vector.broadcast %cst_57 : f32 to vector<8x128xf32>
    %268 = arith.select %257, %266, %267 : vector<8x128xi1>, vector<8x128xf32>
    %269 = arith.addf %241, %268 : vector<8x128xf32>
    %c16_i32 = arith.constant 16 : i32
    %270 = vector.broadcast %c16_i32 : i32 to vector<8x128xi32>
    %271 = arith.cmpi eq, %1, %270 : vector<8x128xi32>
    %272 = vector.extract_strided_slice %30 {offsets = [0, 16], sizes = [8, 1], strides = [1, 1]} : vector<8x32xf32> to vector<8x1xf32>
    %cst_58 = arith.constant 0.000000e+00 : f32
    %273 = vector.shape_cast %272 : vector<8x1xf32> to vector<8x1xf32>
    %274 = vector.broadcast %273 : vector<8x1xf32> to vector<8x128xf32>
    %275 = vector.broadcast %cst_58 : f32 to vector<8x128xf32>
    %276 = arith.select %271, %274, %275 : vector<8x128xi1>, vector<8x128xf32>
    %277 = arith.addf %249, %276 : vector<8x128xf32>
    %278 = vector.extract_strided_slice %43 {offsets = [0, 16], sizes = [8, 1], strides = [1, 1]} : vector<8x32xf32> to vector<8x1xf32>
    %cst_59 = arith.constant 0.000000e+00 : f32
    %279 = vector.shape_cast %278 : vector<8x1xf32> to vector<8x1xf32>
    %280 = vector.broadcast %279 : vector<8x1xf32> to vector<8x128xf32>
    %281 = vector.broadcast %cst_59 : f32 to vector<8x128xf32>
    %282 = arith.select %271, %280, %281 : vector<8x128xi1>, vector<8x128xf32>
    %283 = arith.addf %255, %282 : vector<8x128xf32>
    %c17_i32 = arith.constant 17 : i32
    %284 = vector.broadcast %c17_i32 : i32 to vector<8x128xi32>
    %285 = arith.cmpi eq, %1, %284 : vector<8x128xi32>
    %286 = vector.extract_strided_slice %30 {offsets = [0, 17], sizes = [8, 1], strides = [1, 1]} : vector<8x32xf32> to vector<8x1xf32>
    %cst_60 = arith.constant 0.000000e+00 : f32
    %287 = vector.shape_cast %286 : vector<8x1xf32> to vector<8x1xf32>
    %288 = vector.broadcast %287 : vector<8x1xf32> to vector<8x128xf32>
    %289 = vector.broadcast %cst_60 : f32 to vector<8x128xf32>
    %290 = arith.select %285, %288, %289 : vector<8x128xi1>, vector<8x128xf32>
    %291 = arith.addf %263, %290 : vector<8x128xf32>
    %292 = vector.extract_strided_slice %43 {offsets = [0, 17], sizes = [8, 1], strides = [1, 1]} : vector<8x32xf32> to vector<8x1xf32>
    %cst_61 = arith.constant 0.000000e+00 : f32
    %293 = vector.shape_cast %292 : vector<8x1xf32> to vector<8x1xf32>
    %294 = vector.broadcast %293 : vector<8x1xf32> to vector<8x128xf32>
    %295 = vector.broadcast %cst_61 : f32 to vector<8x128xf32>
    %296 = arith.select %285, %294, %295 : vector<8x128xi1>, vector<8x128xf32>
    %297 = arith.addf %269, %296 : vector<8x128xf32>
    %c18_i32 = arith.constant 18 : i32
    %298 = vector.broadcast %c18_i32 : i32 to vector<8x128xi32>
    %299 = arith.cmpi eq, %1, %298 : vector<8x128xi32>
    %300 = vector.extract_strided_slice %30 {offsets = [0, 18], sizes = [8, 1], strides = [1, 1]} : vector<8x32xf32> to vector<8x1xf32>
    %cst_62 = arith.constant 0.000000e+00 : f32
    %301 = vector.shape_cast %300 : vector<8x1xf32> to vector<8x1xf32>
    %302 = vector.broadcast %301 : vector<8x1xf32> to vector<8x128xf32>
    %303 = vector.broadcast %cst_62 : f32 to vector<8x128xf32>
    %304 = arith.select %299, %302, %303 : vector<8x128xi1>, vector<8x128xf32>
    %305 = arith.addf %277, %304 : vector<8x128xf32>
    %306 = vector.extract_strided_slice %43 {offsets = [0, 18], sizes = [8, 1], strides = [1, 1]} : vector<8x32xf32> to vector<8x1xf32>
    %cst_63 = arith.constant 0.000000e+00 : f32
    %307 = vector.shape_cast %306 : vector<8x1xf32> to vector<8x1xf32>
    %308 = vector.broadcast %307 : vector<8x1xf32> to vector<8x128xf32>
    %309 = vector.broadcast %cst_63 : f32 to vector<8x128xf32>
    %310 = arith.select %299, %308, %309 : vector<8x128xi1>, vector<8x128xf32>
    %311 = arith.addf %283, %310 : vector<8x128xf32>
    %c19_i32 = arith.constant 19 : i32
    %312 = vector.broadcast %c19_i32 : i32 to vector<8x128xi32>
    %313 = arith.cmpi eq, %1, %312 : vector<8x128xi32>
    %314 = vector.extract_strided_slice %30 {offsets = [0, 19], sizes = [8, 1], strides = [1, 1]} : vector<8x32xf32> to vector<8x1xf32>
    %cst_64 = arith.constant 0.000000e+00 : f32
    %315 = vector.shape_cast %314 : vector<8x1xf32> to vector<8x1xf32>
    %316 = vector.broadcast %315 : vector<8x1xf32> to vector<8x128xf32>
    %317 = vector.broadcast %cst_64 : f32 to vector<8x128xf32>
    %318 = arith.select %313, %316, %317 : vector<8x128xi1>, vector<8x128xf32>
    %319 = arith.addf %291, %318 : vector<8x128xf32>
    %320 = vector.extract_strided_slice %43 {offsets = [0, 19], sizes = [8, 1], strides = [1, 1]} : vector<8x32xf32> to vector<8x1xf32>
    %cst_65 = arith.constant 0.000000e+00 : f32
    %321 = vector.shape_cast %320 : vector<8x1xf32> to vector<8x1xf32>
    %322 = vector.broadcast %321 : vector<8x1xf32> to vector<8x128xf32>
    %323 = vector.broadcast %cst_65 : f32 to vector<8x128xf32>
    %324 = arith.select %313, %322, %323 : vector<8x128xi1>, vector<8x128xf32>
    %325 = arith.addf %297, %324 : vector<8x128xf32>
    %c20_i32 = arith.constant 20 : i32
    %326 = vector.broadcast %c20_i32 : i32 to vector<8x128xi32>
    %327 = arith.cmpi eq, %1, %326 : vector<8x128xi32>
    %328 = vector.extract_strided_slice %30 {offsets = [0, 20], sizes = [8, 1], strides = [1, 1]} : vector<8x32xf32> to vector<8x1xf32>
    %cst_66 = arith.constant 0.000000e+00 : f32
    %329 = vector.shape_cast %328 : vector<8x1xf32> to vector<8x1xf32>
    %330 = vector.broadcast %329 : vector<8x1xf32> to vector<8x128xf32>
    %331 = vector.broadcast %cst_66 : f32 to vector<8x128xf32>
    %332 = arith.select %327, %330, %331 : vector<8x128xi1>, vector<8x128xf32>
    %333 = arith.addf %305, %332 : vector<8x128xf32>
    %334 = vector.extract_strided_slice %43 {offsets = [0, 20], sizes = [8, 1], strides = [1, 1]} : vector<8x32xf32> to vector<8x1xf32>
    %cst_67 = arith.constant 0.000000e+00 : f32
    %335 = vector.shape_cast %334 : vector<8x1xf32> to vector<8x1xf32>
    %336 = vector.broadcast %335 : vector<8x1xf32> to vector<8x128xf32>
    %337 = vector.broadcast %cst_67 : f32 to vector<8x128xf32>
    %338 = arith.select %327, %336, %337 : vector<8x128xi1>, vector<8x128xf32>
    %339 = arith.addf %311, %338 : vector<8x128xf32>
    %c21_i32 = arith.constant 21 : i32
    %340 = vector.broadcast %c21_i32 : i32 to vector<8x128xi32>
    %341 = arith.cmpi eq, %1, %340 : vector<8x128xi32>
    %342 = vector.extract_strided_slice %30 {offsets = [0, 21], sizes = [8, 1], strides = [1, 1]} : vector<8x32xf32> to vector<8x1xf32>
    %cst_68 = arith.constant 0.000000e+00 : f32
    %343 = vector.shape_cast %342 : vector<8x1xf32> to vector<8x1xf32>
    %344 = vector.broadcast %343 : vector<8x1xf32> to vector<8x128xf32>
    %345 = vector.broadcast %cst_68 : f32 to vector<8x128xf32>
    %346 = arith.select %341, %344, %345 : vector<8x128xi1>, vector<8x128xf32>
    %347 = arith.addf %319, %346 : vector<8x128xf32>
    %348 = vector.extract_strided_slice %43 {offsets = [0, 21], sizes = [8, 1], strides = [1, 1]} : vector<8x32xf32> to vector<8x1xf32>
    %cst_69 = arith.constant 0.000000e+00 : f32
    %349 = vector.shape_cast %348 : vector<8x1xf32> to vector<8x1xf32>
    %350 = vector.broadcast %349 : vector<8x1xf32> to vector<8x128xf32>
    %351 = vector.broadcast %cst_69 : f32 to vector<8x128xf32>
    %352 = arith.select %341, %350, %351 : vector<8x128xi1>, vector<8x128xf32>
    %353 = arith.addf %325, %352 : vector<8x128xf32>
    %c22_i32 = arith.constant 22 : i32
    %354 = vector.broadcast %c22_i32 : i32 to vector<8x128xi32>
    %355 = arith.cmpi eq, %1, %354 : vector<8x128xi32>
    %356 = vector.extract_strided_slice %30 {offsets = [0, 22], sizes = [8, 1], strides = [1, 1]} : vector<8x32xf32> to vector<8x1xf32>
    %cst_70 = arith.constant 0.000000e+00 : f32
    %357 = vector.shape_cast %356 : vector<8x1xf32> to vector<8x1xf32>
    %358 = vector.broadcast %357 : vector<8x1xf32> to vector<8x128xf32>
    %359 = vector.broadcast %cst_70 : f32 to vector<8x128xf32>
    %360 = arith.select %355, %358, %359 : vector<8x128xi1>, vector<8x128xf32>
    %361 = arith.addf %333, %360 : vector<8x128xf32>
    %362 = vector.extract_strided_slice %43 {offsets = [0, 22], sizes = [8, 1], strides = [1, 1]} : vector<8x32xf32> to vector<8x1xf32>
    %cst_71 = arith.constant 0.000000e+00 : f32
    %363 = vector.shape_cast %362 : vector<8x1xf32> to vector<8x1xf32>
    %364 = vector.broadcast %363 : vector<8x1xf32> to vector<8x128xf32>
    %365 = vector.broadcast %cst_71 : f32 to vector<8x128xf32>
    %366 = arith.select %355, %364, %365 : vector<8x128xi1>, vector<8x128xf32>
    %367 = arith.addf %339, %366 : vector<8x128xf32>
    %368 = arith.addf %361, %347 : vector<8x128xf32>
    %369 = arith.addf %367, %353 : vector<8x128xf32>
    %cst_72 = arith.constant 0.000000e+00 : f32
    %370 = vector.broadcast %cst_72 : f32 to vector<8x128xf32>
    %cst_73 = arith.constant dense<0xFF800000> : vector<8xf32>
    %371 = vector.multi_reduction <maximumf>, %368, %cst_73 [1] : vector<8x128xf32> to vector<8xf32>
    %372 = vector.shape_cast %371 : vector<8xf32> to vector<8x1xf32>
    %373 = vector.broadcast %372 : vector<8x1xf32> to vector<8x128xf32>
    %374 = arith.subf %368, %373 : vector<8x128xf32>
    %375 = math.exp %374 : vector<8x128xf32>
    %cst_74 = arith.constant dense<0.000000e+00> : vector<8xf32>
    %376 = vector.multi_reduction <add>, %375, %cst_74 [1] : vector<8x128xf32> to vector<8xf32>
    %377 = vector.shape_cast %376 : vector<8xf32> to vector<8x1xf32>
    %378 = tpu.reciprocal %377 {approx = true} : vector<8x1xf32> -> vector<8x1xf32>
    %379 = vector.broadcast %378 : vector<8x1xf32> to vector<8x128xf32>
    %380 = arith.mulf %375, %379 : vector<8x128xf32>
    %381 = arith.truncf %380 : vector<8x128xf32> to vector<8x128xbf16>
    %cst_75 = arith.constant dense<0.000000e+00> : vector<8x128xf32>
    %382 = tpu.matmul %381, %3, %cst_75 {dimension_numbers = #tpu.dot_dimension_numbers<[1], [0], [0], [1], [0, 0, 1, 1], [], []>} : vector<8x128xbf16>, vector<128x128xbf16>, vector<8x128xf32> -> vector<8x128xf32>
    %383 = vector.broadcast %24 : vector<1x128xf32> to vector<8x128xf32>
    %384 = arith.mulf %382, %383 : vector<8x128xf32>
    %385 = arith.addf %370, %384 : vector<8x128xf32>
    %cst_76 = arith.constant dense<0xFF800000> : vector<8xf32>
    %386 = vector.multi_reduction <maximumf>, %369, %cst_76 [1] : vector<8x128xf32> to vector<8xf32>
    %387 = vector.shape_cast %386 : vector<8xf32> to vector<8x1xf32>
    %388 = vector.broadcast %387 : vector<8x1xf32> to vector<8x128xf32>
    %389 = arith.subf %369, %388 : vector<8x128xf32>
    %390 = math.exp %389 : vector<8x128xf32>
    %cst_77 = arith.constant dense<0.000000e+00> : vector<8xf32>
    %391 = vector.multi_reduction <add>, %390, %cst_77 [1] : vector<8x128xf32> to vector<8xf32>
    %392 = vector.shape_cast %391 : vector<8xf32> to vector<8x1xf32>
    %393 = tpu.reciprocal %392 {approx = true} : vector<8x1xf32> -> vector<8x1xf32>
    %394 = vector.broadcast %393 : vector<8x1xf32> to vector<8x128xf32>
    %395 = arith.mulf %390, %394 : vector<8x128xf32>
    %396 = arith.truncf %395 : vector<8x128xf32> to vector<8x128xbf16>
    %cst_78 = arith.constant dense<0.000000e+00> : vector<8x128xf32>
    %397 = tpu.matmul %396, %3, %cst_78 {dimension_numbers = #tpu.dot_dimension_numbers<[1], [0], [0], [1], [0, 0, 1, 1], [], []>} : vector<8x128xbf16>, vector<128x128xbf16>, vector<8x128xf32> -> vector<8x128xf32>
    %398 = vector.broadcast %37 : vector<1x128xf32> to vector<8x128xf32>
    %399 = arith.mulf %397, %398 : vector<8x128xf32>
    %400 = arith.addf %385, %399 : vector<8x128xf32>
    %401 = tpu.iota {dimensions = array<i32: 1>} : vector<1x64xi32>
    %cst_79 = arith.constant 0.000000e+00 : f32
    %402 = vector.broadcast %cst_79 : f32 to vector<8x64xf32>
    %cst_80 = arith.constant 0.000000e+00 : f32
    %403 = vector.broadcast %cst_80 : f32 to vector<8x64xf32>
    %c0_i32_81 = arith.constant 0 : i32
    %404 = vector.broadcast %c0_i32_81 : i32 to vector<8x128xi32>
    %405 = arith.cmpi eq, %1, %404 : vector<8x128xi32>
    %cst_82 = arith.constant 0.000000e+00 : f32
    %406 = vector.broadcast %cst_82 : f32 to vector<8x128xf32>
    %407 = arith.select %405, %380, %406 : vector<8x128xi1>, vector<8x128xf32>
    %cst_83 = arith.constant dense<0.000000e+00> : vector<8xf32>
    %408 = vector.multi_reduction <add>, %407, %cst_83 [1] : vector<8x128xf32> to vector<8xf32>
    %409 = vector.shape_cast %408 : vector<8xf32> to vector<8x1xf32>
    %c0_i32_84 = arith.constant 0 : i32
    %410 = vector.broadcast %c0_i32_84 : i32 to vector<1x64xi32>
    %411 = arith.cmpi eq, %401, %410 : vector<1x64xi32>
    %cst_85 = arith.constant 0.000000e+00 : f32
    %412 = vector.shape_cast %411 : vector<1x64xi1> to vector<1x64xi1>
    %413 = vector.broadcast %412 : vector<1x64xi1> to vector<8x64xi1>
    %414 = vector.shape_cast %409 : vector<8x1xf32> to vector<8x1xf32>
    %415 = vector.broadcast %414 : vector<8x1xf32> to vector<8x64xf32>
    %416 = vector.broadcast %cst_85 : f32 to vector<8x64xf32>
    %417 = arith.select %413, %415, %416 : vector<8x64xi1>, vector<8x64xf32>
    %418 = arith.addf %402, %417 : vector<8x64xf32>
    %cst_86 = arith.constant 0.000000e+00 : f32
    %419 = vector.broadcast %cst_86 : f32 to vector<8x128xf32>
    %420 = arith.select %405, %395, %419 : vector<8x128xi1>, vector<8x128xf32>
    %cst_87 = arith.constant dense<0.000000e+00> : vector<8xf32>
    %421 = vector.multi_reduction <add>, %420, %cst_87 [1] : vector<8x128xf32> to vector<8xf32>
    %422 = vector.shape_cast %421 : vector<8xf32> to vector<8x1xf32>
    %c32_i32 = arith.constant 32 : i32
    %423 = vector.broadcast %c32_i32 : i32 to vector<1x64xi32>
    %424 = arith.cmpi eq, %401, %423 : vector<1x64xi32>
    %cst_88 = arith.constant 0.000000e+00 : f32
    %425 = vector.shape_cast %424 : vector<1x64xi1> to vector<1x64xi1>
    %426 = vector.broadcast %425 : vector<1x64xi1> to vector<8x64xi1>
    %427 = vector.shape_cast %422 : vector<8x1xf32> to vector<8x1xf32>
    %428 = vector.broadcast %427 : vector<8x1xf32> to vector<8x64xf32>
    %429 = vector.broadcast %cst_88 : f32 to vector<8x64xf32>
    %430 = arith.select %426, %428, %429 : vector<8x64xi1>, vector<8x64xf32>
    %431 = arith.addf %418, %430 : vector<8x64xf32>
    %c1_i32_89 = arith.constant 1 : i32
    %432 = vector.broadcast %c1_i32_89 : i32 to vector<8x128xi32>
    %433 = arith.cmpi eq, %1, %432 : vector<8x128xi32>
    %cst_90 = arith.constant 0.000000e+00 : f32
    %434 = vector.broadcast %cst_90 : f32 to vector<8x128xf32>
    %435 = arith.select %433, %380, %434 : vector<8x128xi1>, vector<8x128xf32>
    %cst_91 = arith.constant dense<0.000000e+00> : vector<8xf32>
    %436 = vector.multi_reduction <add>, %435, %cst_91 [1] : vector<8x128xf32> to vector<8xf32>
    %437 = vector.shape_cast %436 : vector<8xf32> to vector<8x1xf32>
    %c1_i32_92 = arith.constant 1 : i32
    %438 = vector.broadcast %c1_i32_92 : i32 to vector<1x64xi32>
    %439 = arith.cmpi eq, %401, %438 : vector<1x64xi32>
    %cst_93 = arith.constant 0.000000e+00 : f32
    %440 = vector.shape_cast %439 : vector<1x64xi1> to vector<1x64xi1>
    %441 = vector.broadcast %440 : vector<1x64xi1> to vector<8x64xi1>
    %442 = vector.shape_cast %437 : vector<8x1xf32> to vector<8x1xf32>
    %443 = vector.broadcast %442 : vector<8x1xf32> to vector<8x64xf32>
    %444 = vector.broadcast %cst_93 : f32 to vector<8x64xf32>
    %445 = arith.select %441, %443, %444 : vector<8x64xi1>, vector<8x64xf32>
    %446 = arith.addf %403, %445 : vector<8x64xf32>
    %cst_94 = arith.constant 0.000000e+00 : f32
    %447 = vector.broadcast %cst_94 : f32 to vector<8x128xf32>
    %448 = arith.select %433, %395, %447 : vector<8x128xi1>, vector<8x128xf32>
    %cst_95 = arith.constant dense<0.000000e+00> : vector<8xf32>
    %449 = vector.multi_reduction <add>, %448, %cst_95 [1] : vector<8x128xf32> to vector<8xf32>
    %450 = vector.shape_cast %449 : vector<8xf32> to vector<8x1xf32>
    %c33_i32 = arith.constant 33 : i32
    %451 = vector.broadcast %c33_i32 : i32 to vector<1x64xi32>
    %452 = arith.cmpi eq, %401, %451 : vector<1x64xi32>
    %cst_96 = arith.constant 0.000000e+00 : f32
    %453 = vector.shape_cast %452 : vector<1x64xi1> to vector<1x64xi1>
    %454 = vector.broadcast %453 : vector<1x64xi1> to vector<8x64xi1>
    %455 = vector.shape_cast %450 : vector<8x1xf32> to vector<8x1xf32>
    %456 = vector.broadcast %455 : vector<8x1xf32> to vector<8x64xf32>
    %457 = vector.broadcast %cst_96 : f32 to vector<8x64xf32>
    %458 = arith.select %454, %456, %457 : vector<8x64xi1>, vector<8x64xf32>
    %459 = arith.addf %446, %458 : vector<8x64xf32>
    %c2_i32_97 = arith.constant 2 : i32
    %460 = vector.broadcast %c2_i32_97 : i32 to vector<8x128xi32>
    %461 = arith.cmpi eq, %1, %460 : vector<8x128xi32>
    %cst_98 = arith.constant 0.000000e+00 : f32
    %462 = vector.broadcast %cst_98 : f32 to vector<8x128xf32>
    %463 = arith.select %461, %380, %462 : vector<8x128xi1>, vector<8x128xf32>
    %cst_99 = arith.constant dense<0.000000e+00> : vector<8xf32>
    %464 = vector.multi_reduction <add>, %463, %cst_99 [1] : vector<8x128xf32> to vector<8xf32>
    %465 = vector.shape_cast %464 : vector<8xf32> to vector<8x1xf32>
    %c2_i32_100 = arith.constant 2 : i32
    %466 = vector.broadcast %c2_i32_100 : i32 to vector<1x64xi32>
    %467 = arith.cmpi eq, %401, %466 : vector<1x64xi32>
    %cst_101 = arith.constant 0.000000e+00 : f32
    %468 = vector.shape_cast %467 : vector<1x64xi1> to vector<1x64xi1>
    %469 = vector.broadcast %468 : vector<1x64xi1> to vector<8x64xi1>
    %470 = vector.shape_cast %465 : vector<8x1xf32> to vector<8x1xf32>
    %471 = vector.broadcast %470 : vector<8x1xf32> to vector<8x64xf32>
    %472 = vector.broadcast %cst_101 : f32 to vector<8x64xf32>
    %473 = arith.select %469, %471, %472 : vector<8x64xi1>, vector<8x64xf32>
    %474 = arith.addf %431, %473 : vector<8x64xf32>
    %cst_102 = arith.constant 0.000000e+00 : f32
    %475 = vector.broadcast %cst_102 : f32 to vector<8x128xf32>
    %476 = arith.select %461, %395, %475 : vector<8x128xi1>, vector<8x128xf32>
    %cst_103 = arith.constant dense<0.000000e+00> : vector<8xf32>
    %477 = vector.multi_reduction <add>, %476, %cst_103 [1] : vector<8x128xf32> to vector<8xf32>
    %478 = vector.shape_cast %477 : vector<8xf32> to vector<8x1xf32>
    %c34_i32 = arith.constant 34 : i32
    %479 = vector.broadcast %c34_i32 : i32 to vector<1x64xi32>
    %480 = arith.cmpi eq, %401, %479 : vector<1x64xi32>
    %cst_104 = arith.constant 0.000000e+00 : f32
    %481 = vector.shape_cast %480 : vector<1x64xi1> to vector<1x64xi1>
    %482 = vector.broadcast %481 : vector<1x64xi1> to vector<8x64xi1>
    %483 = vector.shape_cast %478 : vector<8x1xf32> to vector<8x1xf32>
    %484 = vector.broadcast %483 : vector<8x1xf32> to vector<8x64xf32>
    %485 = vector.broadcast %cst_104 : f32 to vector<8x64xf32>
    %486 = arith.select %482, %484, %485 : vector<8x64xi1>, vector<8x64xf32>
    %487 = arith.addf %474, %486 : vector<8x64xf32>
    %c3_i32_105 = arith.constant 3 : i32
    %488 = vector.broadcast %c3_i32_105 : i32 to vector<8x128xi32>
    %489 = arith.cmpi eq, %1, %488 : vector<8x128xi32>
    %cst_106 = arith.constant 0.000000e+00 : f32
    %490 = vector.broadcast %cst_106 : f32 to vector<8x128xf32>
    %491 = arith.select %489, %380, %490 : vector<8x128xi1>, vector<8x128xf32>
    %cst_107 = arith.constant dense<0.000000e+00> : vector<8xf32>
    %492 = vector.multi_reduction <add>, %491, %cst_107 [1] : vector<8x128xf32> to vector<8xf32>
    %493 = vector.shape_cast %492 : vector<8xf32> to vector<8x1xf32>
    %c3_i32_108 = arith.constant 3 : i32
    %494 = vector.broadcast %c3_i32_108 : i32 to vector<1x64xi32>
    %495 = arith.cmpi eq, %401, %494 : vector<1x64xi32>
    %cst_109 = arith.constant 0.000000e+00 : f32
    %496 = vector.shape_cast %495 : vector<1x64xi1> to vector<1x64xi1>
    %497 = vector.broadcast %496 : vector<1x64xi1> to vector<8x64xi1>
    %498 = vector.shape_cast %493 : vector<8x1xf32> to vector<8x1xf32>
    %499 = vector.broadcast %498 : vector<8x1xf32> to vector<8x64xf32>
    %500 = vector.broadcast %cst_109 : f32 to vector<8x64xf32>
    %501 = arith.select %497, %499, %500 : vector<8x64xi1>, vector<8x64xf32>
    %502 = arith.addf %459, %501 : vector<8x64xf32>
    %cst_110 = arith.constant 0.000000e+00 : f32
    %503 = vector.broadcast %cst_110 : f32 to vector<8x128xf32>
    %504 = arith.select %489, %395, %503 : vector<8x128xi1>, vector<8x128xf32>
    %cst_111 = arith.constant dense<0.000000e+00> : vector<8xf32>
    %505 = vector.multi_reduction <add>, %504, %cst_111 [1] : vector<8x128xf32> to vector<8xf32>
    %506 = vector.shape_cast %505 : vector<8xf32> to vector<8x1xf32>
    %c35_i32 = arith.constant 35 : i32
    %507 = vector.broadcast %c35_i32 : i32 to vector<1x64xi32>
    %508 = arith.cmpi eq, %401, %507 : vector<1x64xi32>
    %cst_112 = arith.constant 0.000000e+00 : f32
    %509 = vector.shape_cast %508 : vector<1x64xi1> to vector<1x64xi1>
    %510 = vector.broadcast %509 : vector<1x64xi1> to vector<8x64xi1>
    %511 = vector.shape_cast %506 : vector<8x1xf32> to vector<8x1xf32>
    %512 = vector.broadcast %511 : vector<8x1xf32> to vector<8x64xf32>
    %513 = vector.broadcast %cst_112 : f32 to vector<8x64xf32>
    %514 = arith.select %510, %512, %513 : vector<8x64xi1>, vector<8x64xf32>
    %515 = arith.addf %502, %514 : vector<8x64xf32>
    %c4_i32_113 = arith.constant 4 : i32
    %516 = vector.broadcast %c4_i32_113 : i32 to vector<8x128xi32>
    %517 = arith.cmpi eq, %1, %516 : vector<8x128xi32>
    %cst_114 = arith.constant 0.000000e+00 : f32
    %518 = vector.broadcast %cst_114 : f32 to vector<8x128xf32>
    %519 = arith.select %517, %380, %518 : vector<8x128xi1>, vector<8x128xf32>
    %cst_115 = arith.constant dense<0.000000e+00> : vector<8xf32>
    %520 = vector.multi_reduction <add>, %519, %cst_115 [1] : vector<8x128xf32> to vector<8xf32>
    %521 = vector.shape_cast %520 : vector<8xf32> to vector<8x1xf32>
    %c4_i32_116 = arith.constant 4 : i32
    %522 = vector.broadcast %c4_i32_116 : i32 to vector<1x64xi32>
    %523 = arith.cmpi eq, %401, %522 : vector<1x64xi32>
    %cst_117 = arith.constant 0.000000e+00 : f32
    %524 = vector.shape_cast %523 : vector<1x64xi1> to vector<1x64xi1>
    %525 = vector.broadcast %524 : vector<1x64xi1> to vector<8x64xi1>
    %526 = vector.shape_cast %521 : vector<8x1xf32> to vector<8x1xf32>
    %527 = vector.broadcast %526 : vector<8x1xf32> to vector<8x64xf32>
    %528 = vector.broadcast %cst_117 : f32 to vector<8x64xf32>
    %529 = arith.select %525, %527, %528 : vector<8x64xi1>, vector<8x64xf32>
    %530 = arith.addf %487, %529 : vector<8x64xf32>
    %cst_118 = arith.constant 0.000000e+00 : f32
    %531 = vector.broadcast %cst_118 : f32 to vector<8x128xf32>
    %532 = arith.select %517, %395, %531 : vector<8x128xi1>, vector<8x128xf32>
    %cst_119 = arith.constant dense<0.000000e+00> : vector<8xf32>
    %533 = vector.multi_reduction <add>, %532, %cst_119 [1] : vector<8x128xf32> to vector<8xf32>
    %534 = vector.shape_cast %533 : vector<8xf32> to vector<8x1xf32>
    %c36_i32 = arith.constant 36 : i32
    %535 = vector.broadcast %c36_i32 : i32 to vector<1x64xi32>
    %536 = arith.cmpi eq, %401, %535 : vector<1x64xi32>
    %cst_120 = arith.constant 0.000000e+00 : f32
    %537 = vector.shape_cast %536 : vector<1x64xi1> to vector<1x64xi1>
    %538 = vector.broadcast %537 : vector<1x64xi1> to vector<8x64xi1>
    %539 = vector.shape_cast %534 : vector<8x1xf32> to vector<8x1xf32>
    %540 = vector.broadcast %539 : vector<8x1xf32> to vector<8x64xf32>
    %541 = vector.broadcast %cst_120 : f32 to vector<8x64xf32>
    %542 = arith.select %538, %540, %541 : vector<8x64xi1>, vector<8x64xf32>
    %543 = arith.addf %530, %542 : vector<8x64xf32>
    %c5_i32_121 = arith.constant 5 : i32
    %544 = vector.broadcast %c5_i32_121 : i32 to vector<8x128xi32>
    %545 = arith.cmpi eq, %1, %544 : vector<8x128xi32>
    %cst_122 = arith.constant 0.000000e+00 : f32
    %546 = vector.broadcast %cst_122 : f32 to vector<8x128xf32>
    %547 = arith.select %545, %380, %546 : vector<8x128xi1>, vector<8x128xf32>
    %cst_123 = arith.constant dense<0.000000e+00> : vector<8xf32>
    %548 = vector.multi_reduction <add>, %547, %cst_123 [1] : vector<8x128xf32> to vector<8xf32>
    %549 = vector.shape_cast %548 : vector<8xf32> to vector<8x1xf32>
    %c5_i32_124 = arith.constant 5 : i32
    %550 = vector.broadcast %c5_i32_124 : i32 to vector<1x64xi32>
    %551 = arith.cmpi eq, %401, %550 : vector<1x64xi32>
    %cst_125 = arith.constant 0.000000e+00 : f32
    %552 = vector.shape_cast %551 : vector<1x64xi1> to vector<1x64xi1>
    %553 = vector.broadcast %552 : vector<1x64xi1> to vector<8x64xi1>
    %554 = vector.shape_cast %549 : vector<8x1xf32> to vector<8x1xf32>
    %555 = vector.broadcast %554 : vector<8x1xf32> to vector<8x64xf32>
    %556 = vector.broadcast %cst_125 : f32 to vector<8x64xf32>
    %557 = arith.select %553, %555, %556 : vector<8x64xi1>, vector<8x64xf32>
    %558 = arith.addf %515, %557 : vector<8x64xf32>
    %cst_126 = arith.constant 0.000000e+00 : f32
    %559 = vector.broadcast %cst_126 : f32 to vector<8x128xf32>
    %560 = arith.select %545, %395, %559 : vector<8x128xi1>, vector<8x128xf32>
    %cst_127 = arith.constant dense<0.000000e+00> : vector<8xf32>
    %561 = vector.multi_reduction <add>, %560, %cst_127 [1] : vector<8x128xf32> to vector<8xf32>
    %562 = vector.shape_cast %561 : vector<8xf32> to vector<8x1xf32>
    %c37_i32 = arith.constant 37 : i32
    %563 = vector.broadcast %c37_i32 : i32 to vector<1x64xi32>
    %564 = arith.cmpi eq, %401, %563 : vector<1x64xi32>
    %cst_128 = arith.constant 0.000000e+00 : f32
    %565 = vector.shape_cast %564 : vector<1x64xi1> to vector<1x64xi1>
    %566 = vector.broadcast %565 : vector<1x64xi1> to vector<8x64xi1>
    %567 = vector.shape_cast %562 : vector<8x1xf32> to vector<8x1xf32>
    %568 = vector.broadcast %567 : vector<8x1xf32> to vector<8x64xf32>
    %569 = vector.broadcast %cst_128 : f32 to vector<8x64xf32>
    %570 = arith.select %566, %568, %569 : vector<8x64xi1>, vector<8x64xf32>
    %571 = arith.addf %558, %570 : vector<8x64xf32>
    %c6_i32_129 = arith.constant 6 : i32
    %572 = vector.broadcast %c6_i32_129 : i32 to vector<8x128xi32>
    %573 = arith.cmpi eq, %1, %572 : vector<8x128xi32>
    %cst_130 = arith.constant 0.000000e+00 : f32
    %574 = vector.broadcast %cst_130 : f32 to vector<8x128xf32>
    %575 = arith.select %573, %380, %574 : vector<8x128xi1>, vector<8x128xf32>
    %cst_131 = arith.constant dense<0.000000e+00> : vector<8xf32>
    %576 = vector.multi_reduction <add>, %575, %cst_131 [1] : vector<8x128xf32> to vector<8xf32>
    %577 = vector.shape_cast %576 : vector<8xf32> to vector<8x1xf32>
    %c6_i32_132 = arith.constant 6 : i32
    %578 = vector.broadcast %c6_i32_132 : i32 to vector<1x64xi32>
    %579 = arith.cmpi eq, %401, %578 : vector<1x64xi32>
    %cst_133 = arith.constant 0.000000e+00 : f32
    %580 = vector.shape_cast %579 : vector<1x64xi1> to vector<1x64xi1>
    %581 = vector.broadcast %580 : vector<1x64xi1> to vector<8x64xi1>
    %582 = vector.shape_cast %577 : vector<8x1xf32> to vector<8x1xf32>
    %583 = vector.broadcast %582 : vector<8x1xf32> to vector<8x64xf32>
    %584 = vector.broadcast %cst_133 : f32 to vector<8x64xf32>
    %585 = arith.select %581, %583, %584 : vector<8x64xi1>, vector<8x64xf32>
    %586 = arith.addf %543, %585 : vector<8x64xf32>
    %cst_134 = arith.constant 0.000000e+00 : f32
    %587 = vector.broadcast %cst_134 : f32 to vector<8x128xf32>
    %588 = arith.select %573, %395, %587 : vector<8x128xi1>, vector<8x128xf32>
    %cst_135 = arith.constant dense<0.000000e+00> : vector<8xf32>
    %589 = vector.multi_reduction <add>, %588, %cst_135 [1] : vector<8x128xf32> to vector<8xf32>
    %590 = vector.shape_cast %589 : vector<8xf32> to vector<8x1xf32>
    %c38_i32 = arith.constant 38 : i32
    %591 = vector.broadcast %c38_i32 : i32 to vector<1x64xi32>
    %592 = arith.cmpi eq, %401, %591 : vector<1x64xi32>
    %cst_136 = arith.constant 0.000000e+00 : f32
    %593 = vector.shape_cast %592 : vector<1x64xi1> to vector<1x64xi1>
    %594 = vector.broadcast %593 : vector<1x64xi1> to vector<8x64xi1>
    %595 = vector.shape_cast %590 : vector<8x1xf32> to vector<8x1xf32>
    %596 = vector.broadcast %595 : vector<8x1xf32> to vector<8x64xf32>
    %597 = vector.broadcast %cst_136 : f32 to vector<8x64xf32>
    %598 = arith.select %594, %596, %597 : vector<8x64xi1>, vector<8x64xf32>
    %599 = arith.addf %586, %598 : vector<8x64xf32>
    %c7_i32_137 = arith.constant 7 : i32
    %600 = vector.broadcast %c7_i32_137 : i32 to vector<8x128xi32>
    %601 = arith.cmpi eq, %1, %600 : vector<8x128xi32>
    %cst_138 = arith.constant 0.000000e+00 : f32
    %602 = vector.broadcast %cst_138 : f32 to vector<8x128xf32>
    %603 = arith.select %601, %380, %602 : vector<8x128xi1>, vector<8x128xf32>
    %cst_139 = arith.constant dense<0.000000e+00> : vector<8xf32>
    %604 = vector.multi_reduction <add>, %603, %cst_139 [1] : vector<8x128xf32> to vector<8xf32>
    %605 = vector.shape_cast %604 : vector<8xf32> to vector<8x1xf32>
    %c7_i32_140 = arith.constant 7 : i32
    %606 = vector.broadcast %c7_i32_140 : i32 to vector<1x64xi32>
    %607 = arith.cmpi eq, %401, %606 : vector<1x64xi32>
    %cst_141 = arith.constant 0.000000e+00 : f32
    %608 = vector.shape_cast %607 : vector<1x64xi1> to vector<1x64xi1>
    %609 = vector.broadcast %608 : vector<1x64xi1> to vector<8x64xi1>
    %610 = vector.shape_cast %605 : vector<8x1xf32> to vector<8x1xf32>
    %611 = vector.broadcast %610 : vector<8x1xf32> to vector<8x64xf32>
    %612 = vector.broadcast %cst_141 : f32 to vector<8x64xf32>
    %613 = arith.select %609, %611, %612 : vector<8x64xi1>, vector<8x64xf32>
    %614 = arith.addf %571, %613 : vector<8x64xf32>
    %cst_142 = arith.constant 0.000000e+00 : f32
    %615 = vector.broadcast %cst_142 : f32 to vector<8x128xf32>
    %616 = arith.select %601, %395, %615 : vector<8x128xi1>, vector<8x128xf32>
    %cst_143 = arith.constant dense<0.000000e+00> : vector<8xf32>
    %617 = vector.multi_reduction <add>, %616, %cst_143 [1] : vector<8x128xf32> to vector<8xf32>
    %618 = vector.shape_cast %617 : vector<8xf32> to vector<8x1xf32>
    %c39_i32 = arith.constant 39 : i32
    %619 = vector.broadcast %c39_i32 : i32 to vector<1x64xi32>
    %620 = arith.cmpi eq, %401, %619 : vector<1x64xi32>
    %cst_144 = arith.constant 0.000000e+00 : f32
    %621 = vector.shape_cast %620 : vector<1x64xi1> to vector<1x64xi1>
    %622 = vector.broadcast %621 : vector<1x64xi1> to vector<8x64xi1>
    %623 = vector.shape_cast %618 : vector<8x1xf32> to vector<8x1xf32>
    %624 = vector.broadcast %623 : vector<8x1xf32> to vector<8x64xf32>
    %625 = vector.broadcast %cst_144 : f32 to vector<8x64xf32>
    %626 = arith.select %622, %624, %625 : vector<8x64xi1>, vector<8x64xf32>
    %627 = arith.addf %614, %626 : vector<8x64xf32>
    %c8_i32_145 = arith.constant 8 : i32
    %628 = vector.broadcast %c8_i32_145 : i32 to vector<8x128xi32>
    %629 = arith.cmpi eq, %1, %628 : vector<8x128xi32>
    %cst_146 = arith.constant 0.000000e+00 : f32
    %630 = vector.broadcast %cst_146 : f32 to vector<8x128xf32>
    %631 = arith.select %629, %380, %630 : vector<8x128xi1>, vector<8x128xf32>
    %cst_147 = arith.constant dense<0.000000e+00> : vector<8xf32>
    %632 = vector.multi_reduction <add>, %631, %cst_147 [1] : vector<8x128xf32> to vector<8xf32>
    %633 = vector.shape_cast %632 : vector<8xf32> to vector<8x1xf32>
    %c8_i32_148 = arith.constant 8 : i32
    %634 = vector.broadcast %c8_i32_148 : i32 to vector<1x64xi32>
    %635 = arith.cmpi eq, %401, %634 : vector<1x64xi32>
    %cst_149 = arith.constant 0.000000e+00 : f32
    %636 = vector.shape_cast %635 : vector<1x64xi1> to vector<1x64xi1>
    %637 = vector.broadcast %636 : vector<1x64xi1> to vector<8x64xi1>
    %638 = vector.shape_cast %633 : vector<8x1xf32> to vector<8x1xf32>
    %639 = vector.broadcast %638 : vector<8x1xf32> to vector<8x64xf32>
    %640 = vector.broadcast %cst_149 : f32 to vector<8x64xf32>
    %641 = arith.select %637, %639, %640 : vector<8x64xi1>, vector<8x64xf32>
    %642 = arith.addf %599, %641 : vector<8x64xf32>
    %cst_150 = arith.constant 0.000000e+00 : f32
    %643 = vector.broadcast %cst_150 : f32 to vector<8x128xf32>
    %644 = arith.select %629, %395, %643 : vector<8x128xi1>, vector<8x128xf32>
    %cst_151 = arith.constant dense<0.000000e+00> : vector<8xf32>
    %645 = vector.multi_reduction <add>, %644, %cst_151 [1] : vector<8x128xf32> to vector<8xf32>
    %646 = vector.shape_cast %645 : vector<8xf32> to vector<8x1xf32>
    %c40_i32 = arith.constant 40 : i32
    %647 = vector.broadcast %c40_i32 : i32 to vector<1x64xi32>
    %648 = arith.cmpi eq, %401, %647 : vector<1x64xi32>
    %cst_152 = arith.constant 0.000000e+00 : f32
    %649 = vector.shape_cast %648 : vector<1x64xi1> to vector<1x64xi1>
    %650 = vector.broadcast %649 : vector<1x64xi1> to vector<8x64xi1>
    %651 = vector.shape_cast %646 : vector<8x1xf32> to vector<8x1xf32>
    %652 = vector.broadcast %651 : vector<8x1xf32> to vector<8x64xf32>
    %653 = vector.broadcast %cst_152 : f32 to vector<8x64xf32>
    %654 = arith.select %650, %652, %653 : vector<8x64xi1>, vector<8x64xf32>
    %655 = arith.addf %642, %654 : vector<8x64xf32>
    %c9_i32_153 = arith.constant 9 : i32
    %656 = vector.broadcast %c9_i32_153 : i32 to vector<8x128xi32>
    %657 = arith.cmpi eq, %1, %656 : vector<8x128xi32>
    %cst_154 = arith.constant 0.000000e+00 : f32
    %658 = vector.broadcast %cst_154 : f32 to vector<8x128xf32>
    %659 = arith.select %657, %380, %658 : vector<8x128xi1>, vector<8x128xf32>
    %cst_155 = arith.constant dense<0.000000e+00> : vector<8xf32>
    %660 = vector.multi_reduction <add>, %659, %cst_155 [1] : vector<8x128xf32> to vector<8xf32>
    %661 = vector.shape_cast %660 : vector<8xf32> to vector<8x1xf32>
    %c9_i32_156 = arith.constant 9 : i32
    %662 = vector.broadcast %c9_i32_156 : i32 to vector<1x64xi32>
    %663 = arith.cmpi eq, %401, %662 : vector<1x64xi32>
    %cst_157 = arith.constant 0.000000e+00 : f32
    %664 = vector.shape_cast %663 : vector<1x64xi1> to vector<1x64xi1>
    %665 = vector.broadcast %664 : vector<1x64xi1> to vector<8x64xi1>
    %666 = vector.shape_cast %661 : vector<8x1xf32> to vector<8x1xf32>
    %667 = vector.broadcast %666 : vector<8x1xf32> to vector<8x64xf32>
    %668 = vector.broadcast %cst_157 : f32 to vector<8x64xf32>
    %669 = arith.select %665, %667, %668 : vector<8x64xi1>, vector<8x64xf32>
    %670 = arith.addf %627, %669 : vector<8x64xf32>
    %cst_158 = arith.constant 0.000000e+00 : f32
    %671 = vector.broadcast %cst_158 : f32 to vector<8x128xf32>
    %672 = arith.select %657, %395, %671 : vector<8x128xi1>, vector<8x128xf32>
    %cst_159 = arith.constant dense<0.000000e+00> : vector<8xf32>
    %673 = vector.multi_reduction <add>, %672, %cst_159 [1] : vector<8x128xf32> to vector<8xf32>
    %674 = vector.shape_cast %673 : vector<8xf32> to vector<8x1xf32>
    %c41_i32 = arith.constant 41 : i32
    %675 = vector.broadcast %c41_i32 : i32 to vector<1x64xi32>
    %676 = arith.cmpi eq, %401, %675 : vector<1x64xi32>
    %cst_160 = arith.constant 0.000000e+00 : f32
    %677 = vector.shape_cast %676 : vector<1x64xi1> to vector<1x64xi1>
    %678 = vector.broadcast %677 : vector<1x64xi1> to vector<8x64xi1>
    %679 = vector.shape_cast %674 : vector<8x1xf32> to vector<8x1xf32>
    %680 = vector.broadcast %679 : vector<8x1xf32> to vector<8x64xf32>
    %681 = vector.broadcast %cst_160 : f32 to vector<8x64xf32>
    %682 = arith.select %678, %680, %681 : vector<8x64xi1>, vector<8x64xf32>
    %683 = arith.addf %670, %682 : vector<8x64xf32>
    %c10_i32_161 = arith.constant 10 : i32
    %684 = vector.broadcast %c10_i32_161 : i32 to vector<8x128xi32>
    %685 = arith.cmpi eq, %1, %684 : vector<8x128xi32>
    %cst_162 = arith.constant 0.000000e+00 : f32
    %686 = vector.broadcast %cst_162 : f32 to vector<8x128xf32>
    %687 = arith.select %685, %380, %686 : vector<8x128xi1>, vector<8x128xf32>
    %cst_163 = arith.constant dense<0.000000e+00> : vector<8xf32>
    %688 = vector.multi_reduction <add>, %687, %cst_163 [1] : vector<8x128xf32> to vector<8xf32>
    %689 = vector.shape_cast %688 : vector<8xf32> to vector<8x1xf32>
    %c10_i32_164 = arith.constant 10 : i32
    %690 = vector.broadcast %c10_i32_164 : i32 to vector<1x64xi32>
    %691 = arith.cmpi eq, %401, %690 : vector<1x64xi32>
    %cst_165 = arith.constant 0.000000e+00 : f32
    %692 = vector.shape_cast %691 : vector<1x64xi1> to vector<1x64xi1>
    %693 = vector.broadcast %692 : vector<1x64xi1> to vector<8x64xi1>
    %694 = vector.shape_cast %689 : vector<8x1xf32> to vector<8x1xf32>
    %695 = vector.broadcast %694 : vector<8x1xf32> to vector<8x64xf32>
    %696 = vector.broadcast %cst_165 : f32 to vector<8x64xf32>
    %697 = arith.select %693, %695, %696 : vector<8x64xi1>, vector<8x64xf32>
    %698 = arith.addf %655, %697 : vector<8x64xf32>
    %cst_166 = arith.constant 0.000000e+00 : f32
    %699 = vector.broadcast %cst_166 : f32 to vector<8x128xf32>
    %700 = arith.select %685, %395, %699 : vector<8x128xi1>, vector<8x128xf32>
    %cst_167 = arith.constant dense<0.000000e+00> : vector<8xf32>
    %701 = vector.multi_reduction <add>, %700, %cst_167 [1] : vector<8x128xf32> to vector<8xf32>
    %702 = vector.shape_cast %701 : vector<8xf32> to vector<8x1xf32>
    %c42_i32 = arith.constant 42 : i32
    %703 = vector.broadcast %c42_i32 : i32 to vector<1x64xi32>
    %704 = arith.cmpi eq, %401, %703 : vector<1x64xi32>
    %cst_168 = arith.constant 0.000000e+00 : f32
    %705 = vector.shape_cast %704 : vector<1x64xi1> to vector<1x64xi1>
    %706 = vector.broadcast %705 : vector<1x64xi1> to vector<8x64xi1>
    %707 = vector.shape_cast %702 : vector<8x1xf32> to vector<8x1xf32>
    %708 = vector.broadcast %707 : vector<8x1xf32> to vector<8x64xf32>
    %709 = vector.broadcast %cst_168 : f32 to vector<8x64xf32>
    %710 = arith.select %706, %708, %709 : vector<8x64xi1>, vector<8x64xf32>
    %711 = arith.addf %698, %710 : vector<8x64xf32>
    %c11_i32_169 = arith.constant 11 : i32
    %712 = vector.broadcast %c11_i32_169 : i32 to vector<8x128xi32>
    %713 = arith.cmpi eq, %1, %712 : vector<8x128xi32>
    %cst_170 = arith.constant 0.000000e+00 : f32
    %714 = vector.broadcast %cst_170 : f32 to vector<8x128xf32>
    %715 = arith.select %713, %380, %714 : vector<8x128xi1>, vector<8x128xf32>
    %cst_171 = arith.constant dense<0.000000e+00> : vector<8xf32>
    %716 = vector.multi_reduction <add>, %715, %cst_171 [1] : vector<8x128xf32> to vector<8xf32>
    %717 = vector.shape_cast %716 : vector<8xf32> to vector<8x1xf32>
    %c11_i32_172 = arith.constant 11 : i32
    %718 = vector.broadcast %c11_i32_172 : i32 to vector<1x64xi32>
    %719 = arith.cmpi eq, %401, %718 : vector<1x64xi32>
    %cst_173 = arith.constant 0.000000e+00 : f32
    %720 = vector.shape_cast %719 : vector<1x64xi1> to vector<1x64xi1>
    %721 = vector.broadcast %720 : vector<1x64xi1> to vector<8x64xi1>
    %722 = vector.shape_cast %717 : vector<8x1xf32> to vector<8x1xf32>
    %723 = vector.broadcast %722 : vector<8x1xf32> to vector<8x64xf32>
    %724 = vector.broadcast %cst_173 : f32 to vector<8x64xf32>
    %725 = arith.select %721, %723, %724 : vector<8x64xi1>, vector<8x64xf32>
    %726 = arith.addf %683, %725 : vector<8x64xf32>
    %cst_174 = arith.constant 0.000000e+00 : f32
    %727 = vector.broadcast %cst_174 : f32 to vector<8x128xf32>
    %728 = arith.select %713, %395, %727 : vector<8x128xi1>, vector<8x128xf32>
    %cst_175 = arith.constant dense<0.000000e+00> : vector<8xf32>
    %729 = vector.multi_reduction <add>, %728, %cst_175 [1] : vector<8x128xf32> to vector<8xf32>
    %730 = vector.shape_cast %729 : vector<8xf32> to vector<8x1xf32>
    %c43_i32 = arith.constant 43 : i32
    %731 = vector.broadcast %c43_i32 : i32 to vector<1x64xi32>
    %732 = arith.cmpi eq, %401, %731 : vector<1x64xi32>
    %cst_176 = arith.constant 0.000000e+00 : f32
    %733 = vector.shape_cast %732 : vector<1x64xi1> to vector<1x64xi1>
    %734 = vector.broadcast %733 : vector<1x64xi1> to vector<8x64xi1>
    %735 = vector.shape_cast %730 : vector<8x1xf32> to vector<8x1xf32>
    %736 = vector.broadcast %735 : vector<8x1xf32> to vector<8x64xf32>
    %737 = vector.broadcast %cst_176 : f32 to vector<8x64xf32>
    %738 = arith.select %734, %736, %737 : vector<8x64xi1>, vector<8x64xf32>
    %739 = arith.addf %726, %738 : vector<8x64xf32>
    %c12_i32_177 = arith.constant 12 : i32
    %740 = vector.broadcast %c12_i32_177 : i32 to vector<8x128xi32>
    %741 = arith.cmpi eq, %1, %740 : vector<8x128xi32>
    %cst_178 = arith.constant 0.000000e+00 : f32
    %742 = vector.broadcast %cst_178 : f32 to vector<8x128xf32>
    %743 = arith.select %741, %380, %742 : vector<8x128xi1>, vector<8x128xf32>
    %cst_179 = arith.constant dense<0.000000e+00> : vector<8xf32>
    %744 = vector.multi_reduction <add>, %743, %cst_179 [1] : vector<8x128xf32> to vector<8xf32>
    %745 = vector.shape_cast %744 : vector<8xf32> to vector<8x1xf32>
    %c12_i32_180 = arith.constant 12 : i32
    %746 = vector.broadcast %c12_i32_180 : i32 to vector<1x64xi32>
    %747 = arith.cmpi eq, %401, %746 : vector<1x64xi32>
    %cst_181 = arith.constant 0.000000e+00 : f32
    %748 = vector.shape_cast %747 : vector<1x64xi1> to vector<1x64xi1>
    %749 = vector.broadcast %748 : vector<1x64xi1> to vector<8x64xi1>
    %750 = vector.shape_cast %745 : vector<8x1xf32> to vector<8x1xf32>
    %751 = vector.broadcast %750 : vector<8x1xf32> to vector<8x64xf32>
    %752 = vector.broadcast %cst_181 : f32 to vector<8x64xf32>
    %753 = arith.select %749, %751, %752 : vector<8x64xi1>, vector<8x64xf32>
    %754 = arith.addf %711, %753 : vector<8x64xf32>
    %cst_182 = arith.constant 0.000000e+00 : f32
    %755 = vector.broadcast %cst_182 : f32 to vector<8x128xf32>
    %756 = arith.select %741, %395, %755 : vector<8x128xi1>, vector<8x128xf32>
    %cst_183 = arith.constant dense<0.000000e+00> : vector<8xf32>
    %757 = vector.multi_reduction <add>, %756, %cst_183 [1] : vector<8x128xf32> to vector<8xf32>
    %758 = vector.shape_cast %757 : vector<8xf32> to vector<8x1xf32>
    %c44_i32 = arith.constant 44 : i32
    %759 = vector.broadcast %c44_i32 : i32 to vector<1x64xi32>
    %760 = arith.cmpi eq, %401, %759 : vector<1x64xi32>
    %cst_184 = arith.constant 0.000000e+00 : f32
    %761 = vector.shape_cast %760 : vector<1x64xi1> to vector<1x64xi1>
    %762 = vector.broadcast %761 : vector<1x64xi1> to vector<8x64xi1>
    %763 = vector.shape_cast %758 : vector<8x1xf32> to vector<8x1xf32>
    %764 = vector.broadcast %763 : vector<8x1xf32> to vector<8x64xf32>
    %765 = vector.broadcast %cst_184 : f32 to vector<8x64xf32>
    %766 = arith.select %762, %764, %765 : vector<8x64xi1>, vector<8x64xf32>
    %767 = arith.addf %754, %766 : vector<8x64xf32>
    %c13_i32_185 = arith.constant 13 : i32
    %768 = vector.broadcast %c13_i32_185 : i32 to vector<8x128xi32>
    %769 = arith.cmpi eq, %1, %768 : vector<8x128xi32>
    %cst_186 = arith.constant 0.000000e+00 : f32
    %770 = vector.broadcast %cst_186 : f32 to vector<8x128xf32>
    %771 = arith.select %769, %380, %770 : vector<8x128xi1>, vector<8x128xf32>
    %cst_187 = arith.constant dense<0.000000e+00> : vector<8xf32>
    %772 = vector.multi_reduction <add>, %771, %cst_187 [1] : vector<8x128xf32> to vector<8xf32>
    %773 = vector.shape_cast %772 : vector<8xf32> to vector<8x1xf32>
    %c13_i32_188 = arith.constant 13 : i32
    %774 = vector.broadcast %c13_i32_188 : i32 to vector<1x64xi32>
    %775 = arith.cmpi eq, %401, %774 : vector<1x64xi32>
    %cst_189 = arith.constant 0.000000e+00 : f32
    %776 = vector.shape_cast %775 : vector<1x64xi1> to vector<1x64xi1>
    %777 = vector.broadcast %776 : vector<1x64xi1> to vector<8x64xi1>
    %778 = vector.shape_cast %773 : vector<8x1xf32> to vector<8x1xf32>
    %779 = vector.broadcast %778 : vector<8x1xf32> to vector<8x64xf32>
    %780 = vector.broadcast %cst_189 : f32 to vector<8x64xf32>
    %781 = arith.select %777, %779, %780 : vector<8x64xi1>, vector<8x64xf32>
    %782 = arith.addf %739, %781 : vector<8x64xf32>
    %cst_190 = arith.constant 0.000000e+00 : f32
    %783 = vector.broadcast %cst_190 : f32 to vector<8x128xf32>
    %784 = arith.select %769, %395, %783 : vector<8x128xi1>, vector<8x128xf32>
    %cst_191 = arith.constant dense<0.000000e+00> : vector<8xf32>
    %785 = vector.multi_reduction <add>, %784, %cst_191 [1] : vector<8x128xf32> to vector<8xf32>
    %786 = vector.shape_cast %785 : vector<8xf32> to vector<8x1xf32>
    %c45_i32 = arith.constant 45 : i32
    %787 = vector.broadcast %c45_i32 : i32 to vector<1x64xi32>
    %788 = arith.cmpi eq, %401, %787 : vector<1x64xi32>
    %cst_192 = arith.constant 0.000000e+00 : f32
    %789 = vector.shape_cast %788 : vector<1x64xi1> to vector<1x64xi1>
    %790 = vector.broadcast %789 : vector<1x64xi1> to vector<8x64xi1>
    %791 = vector.shape_cast %786 : vector<8x1xf32> to vector<8x1xf32>
    %792 = vector.broadcast %791 : vector<8x1xf32> to vector<8x64xf32>
    %793 = vector.broadcast %cst_192 : f32 to vector<8x64xf32>
    %794 = arith.select %790, %792, %793 : vector<8x64xi1>, vector<8x64xf32>
    %795 = arith.addf %782, %794 : vector<8x64xf32>
    %c14_i32_193 = arith.constant 14 : i32
    %796 = vector.broadcast %c14_i32_193 : i32 to vector<8x128xi32>
    %797 = arith.cmpi eq, %1, %796 : vector<8x128xi32>
    %cst_194 = arith.constant 0.000000e+00 : f32
    %798 = vector.broadcast %cst_194 : f32 to vector<8x128xf32>
    %799 = arith.select %797, %380, %798 : vector<8x128xi1>, vector<8x128xf32>
    %cst_195 = arith.constant dense<0.000000e+00> : vector<8xf32>
    %800 = vector.multi_reduction <add>, %799, %cst_195 [1] : vector<8x128xf32> to vector<8xf32>
    %801 = vector.shape_cast %800 : vector<8xf32> to vector<8x1xf32>
    %c14_i32_196 = arith.constant 14 : i32
    %802 = vector.broadcast %c14_i32_196 : i32 to vector<1x64xi32>
    %803 = arith.cmpi eq, %401, %802 : vector<1x64xi32>
    %cst_197 = arith.constant 0.000000e+00 : f32
    %804 = vector.shape_cast %803 : vector<1x64xi1> to vector<1x64xi1>
    %805 = vector.broadcast %804 : vector<1x64xi1> to vector<8x64xi1>
    %806 = vector.shape_cast %801 : vector<8x1xf32> to vector<8x1xf32>
    %807 = vector.broadcast %806 : vector<8x1xf32> to vector<8x64xf32>
    %808 = vector.broadcast %cst_197 : f32 to vector<8x64xf32>
    %809 = arith.select %805, %807, %808 : vector<8x64xi1>, vector<8x64xf32>
    %810 = arith.addf %767, %809 : vector<8x64xf32>
    %cst_198 = arith.constant 0.000000e+00 : f32
    %811 = vector.broadcast %cst_198 : f32 to vector<8x128xf32>
    %812 = arith.select %797, %395, %811 : vector<8x128xi1>, vector<8x128xf32>
    %cst_199 = arith.constant dense<0.000000e+00> : vector<8xf32>
    %813 = vector.multi_reduction <add>, %812, %cst_199 [1] : vector<8x128xf32> to vector<8xf32>
    %814 = vector.shape_cast %813 : vector<8xf32> to vector<8x1xf32>
    %c46_i32 = arith.constant 46 : i32
    %815 = vector.broadcast %c46_i32 : i32 to vector<1x64xi32>
    %816 = arith.cmpi eq, %401, %815 : vector<1x64xi32>
    %cst_200 = arith.constant 0.000000e+00 : f32
    %817 = vector.shape_cast %816 : vector<1x64xi1> to vector<1x64xi1>
    %818 = vector.broadcast %817 : vector<1x64xi1> to vector<8x64xi1>
    %819 = vector.shape_cast %814 : vector<8x1xf32> to vector<8x1xf32>
    %820 = vector.broadcast %819 : vector<8x1xf32> to vector<8x64xf32>
    %821 = vector.broadcast %cst_200 : f32 to vector<8x64xf32>
    %822 = arith.select %818, %820, %821 : vector<8x64xi1>, vector<8x64xf32>
    %823 = arith.addf %810, %822 : vector<8x64xf32>
    %c15_i32_201 = arith.constant 15 : i32
    %824 = vector.broadcast %c15_i32_201 : i32 to vector<8x128xi32>
    %825 = arith.cmpi eq, %1, %824 : vector<8x128xi32>
    %cst_202 = arith.constant 0.000000e+00 : f32
    %826 = vector.broadcast %cst_202 : f32 to vector<8x128xf32>
    %827 = arith.select %825, %380, %826 : vector<8x128xi1>, vector<8x128xf32>
    %cst_203 = arith.constant dense<0.000000e+00> : vector<8xf32>
    %828 = vector.multi_reduction <add>, %827, %cst_203 [1] : vector<8x128xf32> to vector<8xf32>
    %829 = vector.shape_cast %828 : vector<8xf32> to vector<8x1xf32>
    %c15_i32_204 = arith.constant 15 : i32
    %830 = vector.broadcast %c15_i32_204 : i32 to vector<1x64xi32>
    %831 = arith.cmpi eq, %401, %830 : vector<1x64xi32>
    %cst_205 = arith.constant 0.000000e+00 : f32
    %832 = vector.shape_cast %831 : vector<1x64xi1> to vector<1x64xi1>
    %833 = vector.broadcast %832 : vector<1x64xi1> to vector<8x64xi1>
    %834 = vector.shape_cast %829 : vector<8x1xf32> to vector<8x1xf32>
    %835 = vector.broadcast %834 : vector<8x1xf32> to vector<8x64xf32>
    %836 = vector.broadcast %cst_205 : f32 to vector<8x64xf32>
    %837 = arith.select %833, %835, %836 : vector<8x64xi1>, vector<8x64xf32>
    %838 = arith.addf %795, %837 : vector<8x64xf32>
    %cst_206 = arith.constant 0.000000e+00 : f32
    %839 = vector.broadcast %cst_206 : f32 to vector<8x128xf32>
    %840 = arith.select %825, %395, %839 : vector<8x128xi1>, vector<8x128xf32>
    %cst_207 = arith.constant dense<0.000000e+00> : vector<8xf32>
    %841 = vector.multi_reduction <add>, %840, %cst_207 [1] : vector<8x128xf32> to vector<8xf32>
    %842 = vector.shape_cast %841 : vector<8xf32> to vector<8x1xf32>
    %c47_i32 = arith.constant 47 : i32
    %843 = vector.broadcast %c47_i32 : i32 to vector<1x64xi32>
    %844 = arith.cmpi eq, %401, %843 : vector<1x64xi32>
    %cst_208 = arith.constant 0.000000e+00 : f32
    %845 = vector.shape_cast %844 : vector<1x64xi1> to vector<1x64xi1>
    %846 = vector.broadcast %845 : vector<1x64xi1> to vector<8x64xi1>
    %847 = vector.shape_cast %842 : vector<8x1xf32> to vector<8x1xf32>
    %848 = vector.broadcast %847 : vector<8x1xf32> to vector<8x64xf32>
    %849 = vector.broadcast %cst_208 : f32 to vector<8x64xf32>
    %850 = arith.select %846, %848, %849 : vector<8x64xi1>, vector<8x64xf32>
    %851 = arith.addf %838, %850 : vector<8x64xf32>
    %c16_i32_209 = arith.constant 16 : i32
    %852 = vector.broadcast %c16_i32_209 : i32 to vector<8x128xi32>
    %853 = arith.cmpi eq, %1, %852 : vector<8x128xi32>
    %cst_210 = arith.constant 0.000000e+00 : f32
    %854 = vector.broadcast %cst_210 : f32 to vector<8x128xf32>
    %855 = arith.select %853, %380, %854 : vector<8x128xi1>, vector<8x128xf32>
    %cst_211 = arith.constant dense<0.000000e+00> : vector<8xf32>
    %856 = vector.multi_reduction <add>, %855, %cst_211 [1] : vector<8x128xf32> to vector<8xf32>
    %857 = vector.shape_cast %856 : vector<8xf32> to vector<8x1xf32>
    %c16_i32_212 = arith.constant 16 : i32
    %858 = vector.broadcast %c16_i32_212 : i32 to vector<1x64xi32>
    %859 = arith.cmpi eq, %401, %858 : vector<1x64xi32>
    %cst_213 = arith.constant 0.000000e+00 : f32
    %860 = vector.shape_cast %859 : vector<1x64xi1> to vector<1x64xi1>
    %861 = vector.broadcast %860 : vector<1x64xi1> to vector<8x64xi1>
    %862 = vector.shape_cast %857 : vector<8x1xf32> to vector<8x1xf32>
    %863 = vector.broadcast %862 : vector<8x1xf32> to vector<8x64xf32>
    %864 = vector.broadcast %cst_213 : f32 to vector<8x64xf32>
    %865 = arith.select %861, %863, %864 : vector<8x64xi1>, vector<8x64xf32>
    %866 = arith.addf %823, %865 : vector<8x64xf32>
    %cst_214 = arith.constant 0.000000e+00 : f32
    %867 = vector.broadcast %cst_214 : f32 to vector<8x128xf32>
    %868 = arith.select %853, %395, %867 : vector<8x128xi1>, vector<8x128xf32>
    %cst_215 = arith.constant dense<0.000000e+00> : vector<8xf32>
    %869 = vector.multi_reduction <add>, %868, %cst_215 [1] : vector<8x128xf32> to vector<8xf32>
    %870 = vector.shape_cast %869 : vector<8xf32> to vector<8x1xf32>
    %c48_i32 = arith.constant 48 : i32
    %871 = vector.broadcast %c48_i32 : i32 to vector<1x64xi32>
    %872 = arith.cmpi eq, %401, %871 : vector<1x64xi32>
    %cst_216 = arith.constant 0.000000e+00 : f32
    %873 = vector.shape_cast %872 : vector<1x64xi1> to vector<1x64xi1>
    %874 = vector.broadcast %873 : vector<1x64xi1> to vector<8x64xi1>
    %875 = vector.shape_cast %870 : vector<8x1xf32> to vector<8x1xf32>
    %876 = vector.broadcast %875 : vector<8x1xf32> to vector<8x64xf32>
    %877 = vector.broadcast %cst_216 : f32 to vector<8x64xf32>
    %878 = arith.select %874, %876, %877 : vector<8x64xi1>, vector<8x64xf32>
    %879 = arith.addf %866, %878 : vector<8x64xf32>
    %c17_i32_217 = arith.constant 17 : i32
    %880 = vector.broadcast %c17_i32_217 : i32 to vector<8x128xi32>
    %881 = arith.cmpi eq, %1, %880 : vector<8x128xi32>
    %cst_218 = arith.constant 0.000000e+00 : f32
    %882 = vector.broadcast %cst_218 : f32 to vector<8x128xf32>
    %883 = arith.select %881, %380, %882 : vector<8x128xi1>, vector<8x128xf32>
    %cst_219 = arith.constant dense<0.000000e+00> : vector<8xf32>
    %884 = vector.multi_reduction <add>, %883, %cst_219 [1] : vector<8x128xf32> to vector<8xf32>
    %885 = vector.shape_cast %884 : vector<8xf32> to vector<8x1xf32>
    %c17_i32_220 = arith.constant 17 : i32
    %886 = vector.broadcast %c17_i32_220 : i32 to vector<1x64xi32>
    %887 = arith.cmpi eq, %401, %886 : vector<1x64xi32>
    %cst_221 = arith.constant 0.000000e+00 : f32
    %888 = vector.shape_cast %887 : vector<1x64xi1> to vector<1x64xi1>
    %889 = vector.broadcast %888 : vector<1x64xi1> to vector<8x64xi1>
    %890 = vector.shape_cast %885 : vector<8x1xf32> to vector<8x1xf32>
    %891 = vector.broadcast %890 : vector<8x1xf32> to vector<8x64xf32>
    %892 = vector.broadcast %cst_221 : f32 to vector<8x64xf32>
    %893 = arith.select %889, %891, %892 : vector<8x64xi1>, vector<8x64xf32>
    %894 = arith.addf %851, %893 : vector<8x64xf32>
    %cst_222 = arith.constant 0.000000e+00 : f32
    %895 = vector.broadcast %cst_222 : f32 to vector<8x128xf32>
    %896 = arith.select %881, %395, %895 : vector<8x128xi1>, vector<8x128xf32>
    %cst_223 = arith.constant dense<0.000000e+00> : vector<8xf32>
    %897 = vector.multi_reduction <add>, %896, %cst_223 [1] : vector<8x128xf32> to vector<8xf32>
    %898 = vector.shape_cast %897 : vector<8xf32> to vector<8x1xf32>
    %c49_i32 = arith.constant 49 : i32
    %899 = vector.broadcast %c49_i32 : i32 to vector<1x64xi32>
    %900 = arith.cmpi eq, %401, %899 : vector<1x64xi32>
    %cst_224 = arith.constant 0.000000e+00 : f32
    %901 = vector.shape_cast %900 : vector<1x64xi1> to vector<1x64xi1>
    %902 = vector.broadcast %901 : vector<1x64xi1> to vector<8x64xi1>
    %903 = vector.shape_cast %898 : vector<8x1xf32> to vector<8x1xf32>
    %904 = vector.broadcast %903 : vector<8x1xf32> to vector<8x64xf32>
    %905 = vector.broadcast %cst_224 : f32 to vector<8x64xf32>
    %906 = arith.select %902, %904, %905 : vector<8x64xi1>, vector<8x64xf32>
    %907 = arith.addf %894, %906 : vector<8x64xf32>
    %c18_i32_225 = arith.constant 18 : i32
    %908 = vector.broadcast %c18_i32_225 : i32 to vector<8x128xi32>
    %909 = arith.cmpi eq, %1, %908 : vector<8x128xi32>
    %cst_226 = arith.constant 0.000000e+00 : f32
    %910 = vector.broadcast %cst_226 : f32 to vector<8x128xf32>
    %911 = arith.select %909, %380, %910 : vector<8x128xi1>, vector<8x128xf32>
    %cst_227 = arith.constant dense<0.000000e+00> : vector<8xf32>
    %912 = vector.multi_reduction <add>, %911, %cst_227 [1] : vector<8x128xf32> to vector<8xf32>
    %913 = vector.shape_cast %912 : vector<8xf32> to vector<8x1xf32>
    %c18_i32_228 = arith.constant 18 : i32
    %914 = vector.broadcast %c18_i32_228 : i32 to vector<1x64xi32>
    %915 = arith.cmpi eq, %401, %914 : vector<1x64xi32>
    %cst_229 = arith.constant 0.000000e+00 : f32
    %916 = vector.shape_cast %915 : vector<1x64xi1> to vector<1x64xi1>
    %917 = vector.broadcast %916 : vector<1x64xi1> to vector<8x64xi1>
    %918 = vector.shape_cast %913 : vector<8x1xf32> to vector<8x1xf32>
    %919 = vector.broadcast %918 : vector<8x1xf32> to vector<8x64xf32>
    %920 = vector.broadcast %cst_229 : f32 to vector<8x64xf32>
    %921 = arith.select %917, %919, %920 : vector<8x64xi1>, vector<8x64xf32>
    %922 = arith.addf %879, %921 : vector<8x64xf32>
    %cst_230 = arith.constant 0.000000e+00 : f32
    %923 = vector.broadcast %cst_230 : f32 to vector<8x128xf32>
    %924 = arith.select %909, %395, %923 : vector<8x128xi1>, vector<8x128xf32>
    %cst_231 = arith.constant dense<0.000000e+00> : vector<8xf32>
    %925 = vector.multi_reduction <add>, %924, %cst_231 [1] : vector<8x128xf32> to vector<8xf32>
    %926 = vector.shape_cast %925 : vector<8xf32> to vector<8x1xf32>
    %c50_i32 = arith.constant 50 : i32
    %927 = vector.broadcast %c50_i32 : i32 to vector<1x64xi32>
    %928 = arith.cmpi eq, %401, %927 : vector<1x64xi32>
    %cst_232 = arith.constant 0.000000e+00 : f32
    %929 = vector.shape_cast %928 : vector<1x64xi1> to vector<1x64xi1>
    %930 = vector.broadcast %929 : vector<1x64xi1> to vector<8x64xi1>
    %931 = vector.shape_cast %926 : vector<8x1xf32> to vector<8x1xf32>
    %932 = vector.broadcast %931 : vector<8x1xf32> to vector<8x64xf32>
    %933 = vector.broadcast %cst_232 : f32 to vector<8x64xf32>
    %934 = arith.select %930, %932, %933 : vector<8x64xi1>, vector<8x64xf32>
    %935 = arith.addf %922, %934 : vector<8x64xf32>
    %c19_i32_233 = arith.constant 19 : i32
    %936 = vector.broadcast %c19_i32_233 : i32 to vector<8x128xi32>
    %937 = arith.cmpi eq, %1, %936 : vector<8x128xi32>
    %cst_234 = arith.constant 0.000000e+00 : f32
    %938 = vector.broadcast %cst_234 : f32 to vector<8x128xf32>
    %939 = arith.select %937, %380, %938 : vector<8x128xi1>, vector<8x128xf32>
    %cst_235 = arith.constant dense<0.000000e+00> : vector<8xf32>
    %940 = vector.multi_reduction <add>, %939, %cst_235 [1] : vector<8x128xf32> to vector<8xf32>
    %941 = vector.shape_cast %940 : vector<8xf32> to vector<8x1xf32>
    %c19_i32_236 = arith.constant 19 : i32
    %942 = vector.broadcast %c19_i32_236 : i32 to vector<1x64xi32>
    %943 = arith.cmpi eq, %401, %942 : vector<1x64xi32>
    %cst_237 = arith.constant 0.000000e+00 : f32
    %944 = vector.shape_cast %943 : vector<1x64xi1> to vector<1x64xi1>
    %945 = vector.broadcast %944 : vector<1x64xi1> to vector<8x64xi1>
    %946 = vector.shape_cast %941 : vector<8x1xf32> to vector<8x1xf32>
    %947 = vector.broadcast %946 : vector<8x1xf32> to vector<8x64xf32>
    %948 = vector.broadcast %cst_237 : f32 to vector<8x64xf32>
    %949 = arith.select %945, %947, %948 : vector<8x64xi1>, vector<8x64xf32>
    %950 = arith.addf %907, %949 : vector<8x64xf32>
    %cst_238 = arith.constant 0.000000e+00 : f32
    %951 = vector.broadcast %cst_238 : f32 to vector<8x128xf32>
    %952 = arith.select %937, %395, %951 : vector<8x128xi1>, vector<8x128xf32>
    %cst_239 = arith.constant dense<0.000000e+00> : vector<8xf32>
    %953 = vector.multi_reduction <add>, %952, %cst_239 [1] : vector<8x128xf32> to vector<8xf32>
    %954 = vector.shape_cast %953 : vector<8xf32> to vector<8x1xf32>
    %c51_i32 = arith.constant 51 : i32
    %955 = vector.broadcast %c51_i32 : i32 to vector<1x64xi32>
    %956 = arith.cmpi eq, %401, %955 : vector<1x64xi32>
    %cst_240 = arith.constant 0.000000e+00 : f32
    %957 = vector.shape_cast %956 : vector<1x64xi1> to vector<1x64xi1>
    %958 = vector.broadcast %957 : vector<1x64xi1> to vector<8x64xi1>
    %959 = vector.shape_cast %954 : vector<8x1xf32> to vector<8x1xf32>
    %960 = vector.broadcast %959 : vector<8x1xf32> to vector<8x64xf32>
    %961 = vector.broadcast %cst_240 : f32 to vector<8x64xf32>
    %962 = arith.select %958, %960, %961 : vector<8x64xi1>, vector<8x64xf32>
    %963 = arith.addf %950, %962 : vector<8x64xf32>
    %c20_i32_241 = arith.constant 20 : i32
    %964 = vector.broadcast %c20_i32_241 : i32 to vector<8x128xi32>
    %965 = arith.cmpi eq, %1, %964 : vector<8x128xi32>
    %cst_242 = arith.constant 0.000000e+00 : f32
    %966 = vector.broadcast %cst_242 : f32 to vector<8x128xf32>
    %967 = arith.select %965, %380, %966 : vector<8x128xi1>, vector<8x128xf32>
    %cst_243 = arith.constant dense<0.000000e+00> : vector<8xf32>
    %968 = vector.multi_reduction <add>, %967, %cst_243 [1] : vector<8x128xf32> to vector<8xf32>
    %969 = vector.shape_cast %968 : vector<8xf32> to vector<8x1xf32>
    %c20_i32_244 = arith.constant 20 : i32
    %970 = vector.broadcast %c20_i32_244 : i32 to vector<1x64xi32>
    %971 = arith.cmpi eq, %401, %970 : vector<1x64xi32>
    %cst_245 = arith.constant 0.000000e+00 : f32
    %972 = vector.shape_cast %971 : vector<1x64xi1> to vector<1x64xi1>
    %973 = vector.broadcast %972 : vector<1x64xi1> to vector<8x64xi1>
    %974 = vector.shape_cast %969 : vector<8x1xf32> to vector<8x1xf32>
    %975 = vector.broadcast %974 : vector<8x1xf32> to vector<8x64xf32>
    %976 = vector.broadcast %cst_245 : f32 to vector<8x64xf32>
    %977 = arith.select %973, %975, %976 : vector<8x64xi1>, vector<8x64xf32>
    %978 = arith.addf %935, %977 : vector<8x64xf32>
    %cst_246 = arith.constant 0.000000e+00 : f32
    %979 = vector.broadcast %cst_246 : f32 to vector<8x128xf32>
    %980 = arith.select %965, %395, %979 : vector<8x128xi1>, vector<8x128xf32>
    %cst_247 = arith.constant dense<0.000000e+00> : vector<8xf32>
    %981 = vector.multi_reduction <add>, %980, %cst_247 [1] : vector<8x128xf32> to vector<8xf32>
    %982 = vector.shape_cast %981 : vector<8xf32> to vector<8x1xf32>
    %c52_i32 = arith.constant 52 : i32
    %983 = vector.broadcast %c52_i32 : i32 to vector<1x64xi32>
    %984 = arith.cmpi eq, %401, %983 : vector<1x64xi32>
    %cst_248 = arith.constant 0.000000e+00 : f32
    %985 = vector.shape_cast %984 : vector<1x64xi1> to vector<1x64xi1>
    %986 = vector.broadcast %985 : vector<1x64xi1> to vector<8x64xi1>
    %987 = vector.shape_cast %982 : vector<8x1xf32> to vector<8x1xf32>
    %988 = vector.broadcast %987 : vector<8x1xf32> to vector<8x64xf32>
    %989 = vector.broadcast %cst_248 : f32 to vector<8x64xf32>
    %990 = arith.select %986, %988, %989 : vector<8x64xi1>, vector<8x64xf32>
    %991 = arith.addf %978, %990 : vector<8x64xf32>
    %c21_i32_249 = arith.constant 21 : i32
    %992 = vector.broadcast %c21_i32_249 : i32 to vector<8x128xi32>
    %993 = arith.cmpi eq, %1, %992 : vector<8x128xi32>
    %cst_250 = arith.constant 0.000000e+00 : f32
    %994 = vector.broadcast %cst_250 : f32 to vector<8x128xf32>
    %995 = arith.select %993, %380, %994 : vector<8x128xi1>, vector<8x128xf32>
    %cst_251 = arith.constant dense<0.000000e+00> : vector<8xf32>
    %996 = vector.multi_reduction <add>, %995, %cst_251 [1] : vector<8x128xf32> to vector<8xf32>
    %997 = vector.shape_cast %996 : vector<8xf32> to vector<8x1xf32>
    %c21_i32_252 = arith.constant 21 : i32
    %998 = vector.broadcast %c21_i32_252 : i32 to vector<1x64xi32>
    %999 = arith.cmpi eq, %401, %998 : vector<1x64xi32>
    %cst_253 = arith.constant 0.000000e+00 : f32
    %1000 = vector.shape_cast %999 : vector<1x64xi1> to vector<1x64xi1>
    %1001 = vector.broadcast %1000 : vector<1x64xi1> to vector<8x64xi1>
    %1002 = vector.shape_cast %997 : vector<8x1xf32> to vector<8x1xf32>
    %1003 = vector.broadcast %1002 : vector<8x1xf32> to vector<8x64xf32>
    %1004 = vector.broadcast %cst_253 : f32 to vector<8x64xf32>
    %1005 = arith.select %1001, %1003, %1004 : vector<8x64xi1>, vector<8x64xf32>
    %1006 = arith.addf %963, %1005 : vector<8x64xf32>
    %cst_254 = arith.constant 0.000000e+00 : f32
    %1007 = vector.broadcast %cst_254 : f32 to vector<8x128xf32>
    %1008 = arith.select %993, %395, %1007 : vector<8x128xi1>, vector<8x128xf32>
    %cst_255 = arith.constant dense<0.000000e+00> : vector<8xf32>
    %1009 = vector.multi_reduction <add>, %1008, %cst_255 [1] : vector<8x128xf32> to vector<8xf32>
    %1010 = vector.shape_cast %1009 : vector<8xf32> to vector<8x1xf32>
    %c53_i32 = arith.constant 53 : i32
    %1011 = vector.broadcast %c53_i32 : i32 to vector<1x64xi32>
    %1012 = arith.cmpi eq, %401, %1011 : vector<1x64xi32>
    %cst_256 = arith.constant 0.000000e+00 : f32
    %1013 = vector.shape_cast %1012 : vector<1x64xi1> to vector<1x64xi1>
    %1014 = vector.broadcast %1013 : vector<1x64xi1> to vector<8x64xi1>
    %1015 = vector.shape_cast %1010 : vector<8x1xf32> to vector<8x1xf32>
    %1016 = vector.broadcast %1015 : vector<8x1xf32> to vector<8x64xf32>
    %1017 = vector.broadcast %cst_256 : f32 to vector<8x64xf32>
    %1018 = arith.select %1014, %1016, %1017 : vector<8x64xi1>, vector<8x64xf32>
    %1019 = arith.addf %1006, %1018 : vector<8x64xf32>
    %c22_i32_257 = arith.constant 22 : i32
    %1020 = vector.broadcast %c22_i32_257 : i32 to vector<8x128xi32>
    %1021 = arith.cmpi eq, %1, %1020 : vector<8x128xi32>
    %cst_258 = arith.constant 0.000000e+00 : f32
    %1022 = vector.broadcast %cst_258 : f32 to vector<8x128xf32>
    %1023 = arith.select %1021, %380, %1022 : vector<8x128xi1>, vector<8x128xf32>
    %cst_259 = arith.constant dense<0.000000e+00> : vector<8xf32>
    %1024 = vector.multi_reduction <add>, %1023, %cst_259 [1] : vector<8x128xf32> to vector<8xf32>
    %1025 = vector.shape_cast %1024 : vector<8xf32> to vector<8x1xf32>
    %c22_i32_260 = arith.constant 22 : i32
    %1026 = vector.broadcast %c22_i32_260 : i32 to vector<1x64xi32>
    %1027 = arith.cmpi eq, %401, %1026 : vector<1x64xi32>
    %cst_261 = arith.constant 0.000000e+00 : f32
    %1028 = vector.shape_cast %1027 : vector<1x64xi1> to vector<1x64xi1>
    %1029 = vector.broadcast %1028 : vector<1x64xi1> to vector<8x64xi1>
    %1030 = vector.shape_cast %1025 : vector<8x1xf32> to vector<8x1xf32>
    %1031 = vector.broadcast %1030 : vector<8x1xf32> to vector<8x64xf32>
    %1032 = vector.broadcast %cst_261 : f32 to vector<8x64xf32>
    %1033 = arith.select %1029, %1031, %1032 : vector<8x64xi1>, vector<8x64xf32>
    %1034 = arith.addf %991, %1033 : vector<8x64xf32>
    %cst_262 = arith.constant 0.000000e+00 : f32
    %1035 = vector.broadcast %cst_262 : f32 to vector<8x128xf32>
    %1036 = arith.select %1021, %395, %1035 : vector<8x128xi1>, vector<8x128xf32>
    %cst_263 = arith.constant dense<0.000000e+00> : vector<8xf32>
    %1037 = vector.multi_reduction <add>, %1036, %cst_263 [1] : vector<8x128xf32> to vector<8xf32>
    %1038 = vector.shape_cast %1037 : vector<8xf32> to vector<8x1xf32>
    %c54_i32 = arith.constant 54 : i32
    %1039 = vector.broadcast %c54_i32 : i32 to vector<1x64xi32>
    %1040 = arith.cmpi eq, %401, %1039 : vector<1x64xi32>
    %cst_264 = arith.constant 0.000000e+00 : f32
    %1041 = vector.shape_cast %1040 : vector<1x64xi1> to vector<1x64xi1>
    %1042 = vector.broadcast %1041 : vector<1x64xi1> to vector<8x64xi1>
    %1043 = vector.shape_cast %1038 : vector<8x1xf32> to vector<8x1xf32>
    %1044 = vector.broadcast %1043 : vector<8x1xf32> to vector<8x64xf32>
    %1045 = vector.broadcast %cst_264 : f32 to vector<8x64xf32>
    %1046 = arith.select %1042, %1044, %1045 : vector<8x64xi1>, vector<8x64xf32>
    %1047 = arith.addf %1034, %1046 : vector<8x64xf32>
    %1048 = arith.addf %1047, %1019 : vector<8x64xf32>
    %1049 = arith.truncf %1048 : vector<8x64xf32> to vector<8x64xbf16>
    %c0_265 = arith.constant 0 : index
    %c0_266 = arith.constant 0 : index
    %1050 = vector.load %arg8[%c0_265, %c0_266] : memref<64x128xbf16, #tpu.memory_space<vmem>>, vector<64x128xbf16>
    %cst_267 = arith.constant dense<0.000000e+00> : vector<8x128xf32>
    %1051 = tpu.matmul %1049, %1050, %cst_267 {dimension_numbers = #tpu.dot_dimension_numbers<[1], [0], [0], [1], [0, 0, 1, 1], [], []>} : vector<8x64xbf16>, vector<64x128xbf16>, vector<8x128xf32> -> vector<8x128xf32>
    %1052 = arith.addf %400, %1051 : vector<8x128xf32>
    %c0_268 = arith.constant 0 : index
    %c0_269 = arith.constant 0 : index
    %1053 = vector.load %arg11[%c0_268, %c0_269] : memref<128x128xf32, #tpu.memory_space<vmem>>, vector<128x128xf32>
    %cst_270 = arith.constant dense<0.000000e+00> : vector<8x128xf32>
    %1054 = tpu.matmul %1052, %1053, %cst_270 {dimension_numbers = #tpu.dot_dimension_numbers<[1], [0], [0], [1], [0, 0, 1, 1], [], []>} : vector<8x128xf32>, vector<128x128xf32>, vector<8x128xf32> -> vector<8x128xf32>
    %c0_271 = arith.constant 0 : index
    %c0_272 = arith.constant 0 : index
    %1055 = vector.load %arg9[%c0_271, %c0_272] : memref<1x128xf32, #tpu.memory_space<vmem>>, vector<1x128xf32>
    %1056 = vector.broadcast %1055 : vector<1x128xf32> to vector<8x128xf32>
    %1057 = arith.mulf %1054, %1056 : vector<8x128xf32>
    %cst_273 = arith.constant dense<0.000000e+00> : vector<8xf32>
    %1058 = vector.multi_reduction <add>, %1057, %cst_273 [1] : vector<8x128xf32> to vector<8xf32>
    %1059 = vector.shape_cast %1058 : vector<8xf32> to vector<8x1xf32>
    %c0_274 = arith.constant 0 : index
    %c0_275 = arith.constant 0 : index
    %1060 = vector.load %arg10[%c0_274, %c0_275] : memref<1x128xf32, #tpu.memory_space<vmem>>, vector<1x128xf32>
    %1061 = vector.broadcast %1060 : vector<1x128xf32> to vector<8x128xf32>
    %1062 = arith.mulf %11, %1061 : vector<8x128xf32>
    %cst_276 = arith.constant dense<0.000000e+00> : vector<8xf32>
    %1063 = vector.multi_reduction <add>, %1062, %cst_276 [1] : vector<8x128xf32> to vector<8xf32>
    %1064 = vector.shape_cast %1063 : vector<8xf32> to vector<8x1xf32>
    %1065 = arith.addf %1059, %1064 : vector<8x1xf32>
    %1066 = arith.negf %1065 : vector<8x1xf32>
    %1067 = math.exp %1066 : vector<8x1xf32>
    %cst_277 = arith.constant 1.000000e+00 : f32
    %1068 = vector.broadcast %cst_277 : f32 to vector<8x1xf32>
    %1069 = arith.addf %1068, %1067 : vector<8x1xf32>
    %1070 = arith.divf %1068, %1069 : vector<8x1xf32>
    %1071 = vector.broadcast %1070 : vector<8x1xf32> to vector<8x128xf32>
    %1072 = arith.mulf %1071, %11 : vector<8x128xf32>
    %cst_278 = arith.constant 1.000000e+00 : f32
    %1073 = vector.broadcast %cst_278 : f32 to vector<8x1xf32>
    %1074 = arith.subf %1073, %1070 : vector<8x1xf32>
    %1075 = vector.broadcast %1074 : vector<8x1xf32> to vector<8x128xf32>
    %1076 = arith.mulf %1075, %1054 : vector<8x128xf32>
    %1077 = arith.addf %1072, %1076 : vector<8x128xf32>
    %1078 = tpu.iota {dimensions = array<i32: 1>} : vector<1x128xi32>
    %c5_i32_279 = arith.constant 5 : i32
    %1079 = vector.broadcast %c5_i32_279 : i32 to vector<1x128xi32>
    %1080 = arith.cmpi slt, %1078, %1079 : vector<1x128xi32>
    %1081 = arith.extui %1080 : vector<1x128xi1> to vector<1x128xi32>
    %1082 = arith.sitofp %1081 : vector<1x128xi32> to vector<1x128xf32>
    %cst_280 = arith.constant 0.000000e+00 : f32
    %1083 = vector.broadcast %cst_280 : f32 to vector<1x128xf32>
    %1084 = arith.cmpf ogt, %1082, %1083 : vector<1x128xf32>
    %cst_281 = arith.constant -1.000000e+30 : f32
    %1085 = vector.shape_cast %1084 : vector<1x128xi1> to vector<1x128xi1>
    %1086 = vector.broadcast %1085 : vector<1x128xi1> to vector<8x128xi1>
    %1087 = vector.broadcast %cst_281 : f32 to vector<8x128xf32>
    %1088 = arith.select %1086, %1077, %1087 : vector<8x128xi1>, vector<8x128xf32>
    %cst_282 = arith.constant dense<0xFF800000> : vector<8xf32>
    %1089 = vector.multi_reduction <maximumf>, %1088, %cst_282 [1] : vector<8x128xf32> to vector<8xf32>
    %1090 = vector.shape_cast %1089 : vector<8xf32> to vector<8x1xf32>
    %1091 = vector.broadcast %1090 : vector<8x1xf32> to vector<8x128xf32>
    %1092 = arith.subf %1077, %1091 : vector<8x128xf32>
    %1093 = math.exp %1092 : vector<8x128xf32>
    %1094 = vector.broadcast %1082 : vector<1x128xf32> to vector<8x128xf32>
    %1095 = arith.mulf %1093, %1094 : vector<8x128xf32>
    %cst_283 = arith.constant dense<0.000000e+00> : vector<8xf32>
    %1096 = vector.multi_reduction <add>, %1095, %cst_283 [1] : vector<8x128xf32> to vector<8xf32>
    %1097 = vector.shape_cast %1096 : vector<8xf32> to vector<8x1xf32>
    %1098 = math.log %1097 : vector<8x1xf32>
    %1099 = vector.broadcast %1098 : vector<8x1xf32> to vector<8x128xf32>
    %1100 = arith.subf %1092, %1099 : vector<8x128xf32>
    %c0_284 = arith.constant 0 : index
    %c0_285 = arith.constant 0 : index
    %1101 = vector.load %arg12[%c0_284, %c0_285] : memref<8x128xf32, #tpu.memory_space<vmem>>, vector<8x128xf32>
    tpu.vector_store %arg12[%c0_284, %c0_285], %1100 {strides = array<i32>} : memref<8x128xf32, #tpu.memory_space<vmem>>, vector<8x128xf32>,
    return
  }
  func.func @transform_0(%arg0: i32) -> (i32, i32) {
    %c0_i32 = arith.constant 0 : i32
    %c0_i32_0 = arith.constant 0 : i32
    return %arg0, %c0_i32 : i32, i32
  }
  func.func @transform_1(%arg0: i32) -> (i32, i32) {
    %c0_i32 = arith.constant 0 : i32
    %c0_i32_0 = arith.constant 0 : i32
    return %arg0, %c0_i32 : i32, i32
  }
  func.func @transform_2(%arg0: i32) -> (i32, i32) {
    %c0_i32 = arith.constant 0 : i32
    %c0_i32_0 = arith.constant 0 : i32
    %c0_i32_1 = arith.constant 0 : i32
    return %c0_i32, %c0_i32_0 : i32, i32
  }
  func.func @transform_3(%arg0: i32) -> (i32, i32) {
    %c0_i32 = arith.constant 0 : i32
    %c0_i32_0 = arith.constant 0 : i32
    %c0_i32_1 = arith.constant 0 : i32
    return %c0_i32, %c0_i32_0 : i32, i32
  }
  func.func @transform_4(%arg0: i32) -> (i32, i32) {
    %c0_i32 = arith.constant 0 : i32
    %c0_i32_0 = arith.constant 0 : i32
    %c0_i32_1 = arith.constant 0 : i32
    return %c0_i32, %c0_i32_0 : i32, i32
  }
  func.func @transform_5(%arg0: i32) -> (i32, i32) {
    %c0_i32 = arith.constant 0 : i32
    %c0_i32_0 = arith.constant 0 : i32
    %c0_i32_1 = arith.constant 0 : i32
    return %c0_i32, %c0_i32_0 : i32, i32
  }
  func.func @transform_6(%arg0: i32) -> (i32, i32) {
    %c0_i32 = arith.constant 0 : i32
    %c0_i32_0 = arith.constant 0 : i32
    %c0_i32_1 = arith.constant 0 : i32
    return %c0_i32, %c0_i32_0 : i32, i32
  }
  func.func @transform_7(%arg0: i32) -> (i32, i32) {
    %c0_i32 = arith.constant 0 : i32
    %c0_i32_0 = arith.constant 0 : i32
    %c0_i32_1 = arith.constant 0 : i32
    return %c0_i32, %c0_i32_0 : i32, i32
  }
  func.func @transform_8(%arg0: i32) -> (i32, i32) {
    %c0_i32 = arith.constant 0 : i32
    %c0_i32_0 = arith.constant 0 : i32
    %c0_i32_1 = arith.constant 0 : i32
    return %c0_i32, %c0_i32_0 : i32, i32
  }
  func.func @transform_9(%arg0: i32) -> (i32, i32) {
    %c0_i32 = arith.constant 0 : i32
    %c0_i32_0 = arith.constant 0 : i32
    %c0_i32_1 = arith.constant 0 : i32
    return %c0_i32, %c0_i32_0 : i32, i32
  }
  func.func @transform_10(%arg0: i32) -> (i32, i32) {
    %c0_i32 = arith.constant 0 : i32
    %c0_i32_0 = arith.constant 0 : i32
    %c0_i32_1 = arith.constant 0 : i32
    return %c0_i32, %c0_i32_0 : i32, i32
  }
  func.func @transform_11(%arg0: i32) -> (i32, i32) {
    %c0_i32 = arith.constant 0 : i32
    %c0_i32_0 = arith.constant 0 : i32
    return %arg0, %c0_i32 : i32, i32
  }
}

</mosaic_0001>

<bundles_post_ra>
// kernel: forward.4
= control target key start
LH: loop header
LB: loop body
LE: loop exit
PB: predicated region body
PF: predicated region fallthrough
CT: control target
= control target key end

     0   :  { %v733_v1 = vmov 0   ;;  %v51_v25 = vlaneseq  ;;  %s935_s1 = inlined_call_operand.vmem [shape: bf16[128,256], index: 1, kind: input, shape index: {}]   ;;  %s936_s0 = inlined_call_operand.vmem [shape: bf16[128,128], index: 0, kind: input, shape index: {}]   ;;  %s937_s2 = inlined_call_operand.vmem [shape: f32[1,256], index: 2, kind: input, shape index: {}]   ;;  %s938_s4 = inlined_call_operand.vmem [shape: bf16[128,128], index: 4, kind: output, shape index: {1}]   ;;  %s939_s3 = inlined_call_operand.vmem [shape: bf16[128,128], index: 3, kind: output, shape index: {0}]  }
   0x1   :  { %v701_v0 = vld [vmem:[%s935_s1 + $0x74] ss:$8 sps:$4 sm:$0xff]   ;;  %221 = vmatprep.mubr.bf16.mxu0 %v733_v1  ;;  %261 = vmatprep.mubr.bf16.mxu1 %v733_v1  ;;  %v703_v2 = vld [vmem:[%s935_s1 + $0x70] ss:$8 sps:$4 sm:$0xff]   ;;  %v704_v3 = vld [vmem:[%s935_s1 + $0x64] ss:$8 sps:$4 sm:$0xff]  }
   0x2   :  { %189 = vmatprep.subr.bf16.mxu0 %v701_v0  ;;  %684 = vmatprep.subr.bf16.mxu1 %v701_v0  ;;  %v706_v4 = vld [vmem:[%s935_s1 + $0x60] ss:$8 sps:$4 sm:$0xff]   ;;  %v707_v5 = vld [vmem:[%s935_s1 + $0x54] ss:$8 sps:$4 sm:$0xff]   ;;  %v709_v6 = vld [vmem:[%s935_s1 + $0x50] ss:$8 sps:$4 sm:$0xff]  }
   0x3   :  { %190 = vmatpush1.bf16.msra.mxu0 %v703_v2  ;;  %692 = vmatpush1.bf16.msra.mxu1 %v703_v2  ;;  %v710_v7 = vld [vmem:[%s935_s1 + $0x44] ss:$8 sps:$4 sm:$0xff]   ;;  %v712_v8 = vld [vmem:[%s935_s1 + $0x40] ss:$8 sps:$4 sm:$0xff]   ;;  %v713_v9 = vld [vmem:[%s935_s1 + $0x34] ss:$8 sps:$4 sm:$0xff]  }
   0x4   :  { %191 = vmatprep.subr.bf16.mxu0 %v704_v3  ;;  %685 = vmatprep.subr.bf16.mxu1 %v704_v3  ;;  %v715_v10 = vld [vmem:[%s935_s1 + $0x30] ss:$8 sps:$4 sm:$0xff]   ;;  %v716_v11 = vld [vmem:[%s935_s1 + $0x24] ss:$8 sps:$4 sm:$0xff]   ;;  %v718_v12 = vld [vmem:[%s935_s1 + $0x20] ss:$8 sps:$4 sm:$0xff]  }
   0x5   :  { %v719_v13 = vld [vmem:[%s935_s1 + $0x14] ss:$8 sps:$4 sm:$0xff]   ;;  %v721_v14 = vld [vmem:[%s935_s1 + $0x10] ss:$8 sps:$4 sm:$0xff]   ;;  %v722_v15 = vld [vmem:[%s935_s1 + $0x4] ss:$8 sps:$4 sm:$0xff]  }
   0x6   :  { %v724_v16 = vld [vmem:[%s935_s1] ss:$8 sps:$4 sm:$0xff]   ;;  %v727_v21 = vld [vmem:[%s936_s0 + $0x10] sm:$0xff]   ;;  %v728_v23 = vld [vmem:[%s936_s0 + $0x18] sm:$0xff]   ;;  %v52_v26 = vshrl.u32 %v51_v25, 7 }
   0x7   :  { %192 = vmatpush1.bf16.msra.mxu0 %v706_v4  ;;  %693 = vmatpush1.bf16.msra.mxu1 %v706_v4  ;;  %v725_v17 = vld [vmem:[%s936_s0] sm:$0xff]   ;;  %v726_v19 = vld [vmem:[%s936_s0 + $0x8] sm:$0xff]   ;;  %v731_v22 = vld [vmem:[%s936_s0 + $0x30] sm:$0xff]  }
   0x8   :  { %193 = vmatprep.subr.bf16.mxu0 %v707_v5  ;;  %686 = vmatprep.subr.bf16.mxu1 %v707_v5  ;;  %v729_v18 = vld [vmem:[%s936_s0 + $0x20] sm:$0xff]   ;;  %v730_v20 = vld [vmem:[%s936_s0 + $0x28] sm:$0xff]   ;;  %v732_v24 = vld [vmem:[%s936_s0 + $0x38] sm:$0xff]   ;;  %v53_v27 = vsub.s32 0, %v52_v26  ;;  %v57_v30 = vsub.s32 1, %v52_v26 }
   0x9   :  { %v49_v28 = vld [vmem:[%s937_s2] sm:$0x3] }
   0xa   :  { %v842_v29 = vrot.slane %v49_v28, %v53_v27  ;;  %v847_v36 = vrot.slane %v49_v28, %v57_v30 }
   0xb   :  { %194 = vmatpush1.bf16.msra.mxu0 %v709_v6  ;;  %694 = vmatpush1.bf16.msra.mxu1 %v709_v6 }
   0xc   :  { %195 = vmatprep.subr.bf16.mxu0 %v710_v7  ;;  %687 = vmatprep.subr.bf16.mxu1 %v710_v7 }
   0xf   :  { %196 = vmatpush1.bf16.msra.mxu0 %v712_v8  ;;  %695 = vmatpush1.bf16.msra.mxu1 %v712_v8 }
  0x10   :  { %197 = vmatprep.subr.bf16.mxu0 %v713_v9  ;;  %688 = vmatprep.subr.bf16.mxu1 %v713_v9 }
  0x13   :  { %198 = vmatpush1.bf16.msra.mxu0 %v715_v10  ;;  %696 = vmatpush1.bf16.msra.mxu1 %v715_v10 }
  0x14   :  { %199 = vmatprep.subr.bf16.mxu0 %v716_v11  ;;  %689 = vmatprep.subr.bf16.mxu1 %v716_v11 }
  0x17   :  { %200 = vmatpush1.bf16.msra.mxu0 %v718_v12  ;;  %697 = vmatpush1.bf16.msra.mxu1 %v718_v12 }
  0x18   :  { %201 = vmatprep.subr.bf16.mxu0 %v719_v13  ;;  %690 = vmatprep.subr.bf16.mxu1 %v719_v13 }
  0x1b   :  { %202 = vmatpush1.bf16.msra.mxu0 %v721_v14  ;;  %698 = vmatpush1.bf16.msra.mxu1 %v721_v14 }
  0x1c   :  { %203 = vmatprep.subr.bf16.mxu0 %v722_v15  ;;  %691 = vmatprep.subr.bf16.mxu1 %v722_v15 }
  0x1f   :  { %204 = vmatpush1.bf16.msra.mxu0 %v724_v16  ;;  %699 = vmatpush1.bf16.msra.mxu1 %v724_v16 }
  0x22   :  { %222 = vmatmul.mubr.bf16.vlgmr.msra.gmra.mxu0 %v725_v17  ;;  %262 = vmatmul.mubr.bf16.vlgmr.msra.gmra.mxu1 %v729_v18 }
  0x23   :  { %231 = vmatprep.mubr.bf16.mxu0 %v733_v1  ;;  %271 = vmatprep.mubr.bf16.mxu1 %v733_v1 }
  0x2a   :  { %232 = vmatmul.mubr.bf16.gmra.mxu0 %v726_v19  ;;  %272 = vmatmul.mubr.bf16.gmra.mxu1 %v730_v20 }
  0x2b   :  { %241 = vmatprep.mubr.bf16.mxu0 %v733_v1  ;;  %281 = vmatprep.mubr.bf16.mxu1 %v733_v1 }
  0x32   :  { %242 = vmatmul.mubr.bf16.gmra.mxu0 %v727_v21  ;;  %282 = vmatmul.mubr.bf16.gmra.mxu1 %v731_v22 }
  0x33   :  { %251 = vmatprep.mubr.bf16.mxu0 %v733_v1  ;;  %291 = vmatprep.mubr.bf16.mxu1 %v733_v1 }
  0x3a   :  { %252 = vmatmul.mubr.bf16.gmra.mxu0 %v728_v23  ;;  %292 = vmatmul.mubr.bf16.gmra.mxu1 %v732_v24 }
  0xe2   :  { %v223_v31 = vpop.f32.mrf.mxu0  ;;  %v844_v32 = vpop.f32.mrf.mxu1 }
  0xe3   :  { %v224_v33 = vadd.f32 %v223_v31, %v842_v29  ;;  %v264_v28 = vadd.f32 %v844_v32, %v842_v29 }
  0xe4   :  { %v225_v34 = vpop.f32.mrf.mxu0  ;;  %v265_v35 = vpop.f32.mrf.mxu1 }
  0xe5   :  { %302 = vxpose.xlu0.b32.start [1/16] %v224_v33, 128  ;;  %v266_v40 = vadd.f32 %v265_v35, %v847_v36  ;;  %v226_v43 = vadd.f32 %v225_v34, %v847_v36 }
  0xe6   :  { %v227_v37 = vpop.f32.mrf.mxu0  ;;  %v849_v38 = vpop.f32.mrf.mxu1 }
  0xe7   :  { %v228_v39 = vadd.f32 %v227_v37, %v842_v29  ;;  %v268_v35 = vadd.f32 %v849_v38, %v842_v29 }
  0xe8   :  { %v229_v41 = vpop.f32.mrf.mxu0  ;;  %v269_v42 = vpop.f32.mrf.mxu1 }
  0xe9   :  { %v230_v44 = vadd.f32 %v229_v41, %v847_v36  ;;  %303 = vxpose.xlu0.b32.cont [2/16] %v228_v39, 128  ;;  %v270_v45 = vadd.f32 %v269_v42, %v847_v36 }
  0xea   :  { %v233_v46 = vpop.f32.mrf.mxu0  ;;  %v856_v47 = vpop.f32.mrf.mxu1 }
  0xeb   :  { %v633_v48 = vpack.c.bf16 %v230_v44, %v226_v43  ;;  %v234_v49 = vadd.f32 %v233_v46, %v842_v29  ;;  %v653_v50 = vpack.c.bf16 %v270_v45, %v266_v40  ;;  %v274_v32 = vadd.f32 %v856_v47, %v842_v29 }
  0xec   :  { %v235_v51 = vpop.f32.mrf.mxu0  ;;  %v275_v52 = vpop.f32.mrf.mxu1 }
  0xed   :  { %634 = vst [vmem:[%s938_s4] sm:$0xff] %v633_v48   ;;  %304 = vxpose.xlu0.b32.cont [3/16] %v234_v49, 128  ;;  %680 = vst [vmem:[%s938_s4 + $0x20] sm:$0xff] %v653_v50   ;;  %v276_v56 = vadd.f32 %v275_v52, %v847_v36  ;;  %v236_v59 = vadd.f32 %v235_v51, %v847_v36 }
  0xee   :  { %v237_v53 = vpop.f32.mrf.mxu0  ;;  %v277_v54 = vpop.f32.mrf.mxu1 }
  0xef   :  { %v238_v55 = vadd.f32 %v237_v53, %v842_v29 }
  0xf0   :  { %v239_v57 = vpop.f32.mrf.mxu0  ;;  %v279_v58 = vpop.f32.mrf.mxu1 }
  0xf1   :  { %v240_v60 = vadd.f32 %v239_v57, %v847_v36  ;;  %305 = vxpose.xlu0.b32.cont [4/16] %v238_v55, 128  ;;  %v280_v61 = vadd.f32 %v279_v58, %v847_v36 }
  0xf2   :  { %v243_v62 = vpop.f32.mrf.mxu0  ;;  %v283_v63 = vpop.f32.mrf.mxu1 }
  0xf3   :  { %v638_v0 = vpack.c.bf16 %v240_v60, %v236_v59  ;;  %v244_v1 = vadd.f32 %v243_v62, %v842_v29  ;;  %v658_v2 = vpack.c.bf16 %v280_v61, %v276_v56  ;;  %v284_v37 = vadd.f32 %v283_v63, %v842_v29 }
  0xf4   :  { %v245_v3 = vpop.f32.mrf.mxu0  ;;  %v285_v4 = vpop.f32.mrf.mxu1 }
  0xf5   :  { %677 = vst [vmem:[%s938_s4 + $0x8] sm:$0xff] %v638_v0   ;;  %306 = vxpose.xlu0.b32.cont [5/16] %v244_v1, 128  ;;  %681 = vst [vmem:[%s938_s4 + $0x28] sm:$0xff] %v658_v2   ;;  %v286_v8 = vadd.f32 %v285_v4, %v847_v36  ;;  %v246_v11 = vadd.f32 %v245_v3, %v847_v36 }
  0xf6   :  { %v247_v5 = vpop.f32.mrf.mxu0  ;;  %v287_v6 = vpop.f32.mrf.mxu1 }
  0xf7   :  { %v248_v7 = vadd.f32 %v247_v5, %v842_v29  ;;  %v288_v39 = vadd.f32 %v287_v6, %v842_v29 }
  0xf8   :  { %v249_v9 = vpop.f32.mrf.mxu0  ;;  %v289_v10 = vpop.f32.mrf.mxu1 }
  0xf9   :  { %v250_v12 = vadd.f32 %v249_v9, %v847_v36  ;;  %307 = vxpose.xlu0.b32.cont [6/16] %v248_v7, 128  ;;  %v290_v13 = vadd.f32 %v289_v10, %v847_v36 }
  0xfa   :  { %v253_v14 = vpop.f32.mrf.mxu0  ;;  %v293_v15 = vpop.f32.mrf.mxu1 }
  0xfb   :  { %v643_v16 = vpack.c.bf16 %v250_v12, %v246_v11  ;;  %v254_v17 = vadd.f32 %v253_v14, %v842_v29  ;;  %v663_v18 = vpack.c.bf16 %v290_v13, %v286_v8  ;;  %v294_v40 = vadd.f32 %v293_v15, %v842_v29 }
  0xfc   :  { %v255_v19 = vpop.f32.mrf.mxu0  ;;  %v295_v20 = vpop.f32.mrf.mxu1 }
  0xfd   :  { %678 = vst [vmem:[%s938_s4 + $0x10] sm:$0xff] %v643_v16   ;;  %308 = vxpose.xlu0.b32.cont [7/16] %v254_v17, 128  ;;  %682 = vst [vmem:[%s938_s4 + $0x30] sm:$0xff] %v663_v18   ;;  %v296_v24 = vadd.f32 %v295_v20, %v847_v36  ;;  %v256_v27 = vadd.f32 %v255_v19, %v847_v36 }
  0xfe   :  { %v257_v21 = vpop.f32.mrf.mxu0  ;;  %v297_v22 = vpop.f32.mrf.mxu1 }
  0xff   :  { %v258_v23 = vadd.f32 %v257_v21, %v842_v29  ;;  %v298_v41 = vadd.f32 %v297_v22, %v842_v29 }
 0x100   :  { %v259_v25 = vpop.f32.mrf.mxu0  ;;  %v299_v26 = vpop.f32.mrf.mxu1 }
 0x101   :  { %v260_v30 = vadd.f32 %v259_v25, %v847_v36  ;;  %309 = vxpose.xlu0.b32.cont [8/16] %v258_v23, 128  ;;  %v300_v31 = vadd.f32 %v299_v26, %v847_v36  ;;  %v278_v36 = vadd.f32 %v277_v54, %v842_v29 }
 0x103   :  { %v648_v33 = vpack.c.bf16 %v260_v30, %v256_v27  ;;  %v668_v34 = vpack.c.bf16 %v300_v31, %v296_v24 }
 0x105   :  { %679 = vst [vmem:[%s938_s4 + $0x18] sm:$0xff] %v648_v33   ;;  %310 = vxpose.xlu0.b32.cont [9/16] %v264_v28, 128  ;;  %683 = vst [vmem:[%s938_s4 + $0x38] sm:$0xff] %v668_v34  }
 0x109   :  { %311 = vxpose.xlu0.b32.cont [10/16] %v268_v35, 128 }
 0x10d   :  { %312 = vxpose.xlu0.b32.cont [11/16] %v274_v32, 128 }
 0x111   :  { %313 = vxpose.xlu0.b32.cont [12/16] %v278_v36, 128 }
 0x115   :  { %314 = vxpose.xlu0.b32.cont [13/16] %v284_v37, 128 }
 0x119   :  { %315 = vxpose.xlu0.b32.cont [14/16] %v288_v39, 128 }
 0x11d   :  { %316 = vxpose.xlu0.b32.cont [15/16] %v294_v40, 128 }
 0x121   :  { %317 = vxpose.xlu0.b32.end [16/16] %v298_v41, 128 }
 0x161   :  { %v318_v38 = vpop.trf.xlu0 }
 0x165   :  { %v319_v42 = vpop.trf.xlu0 }
 0x166   :  { %v593_v43 = vpack.c.bf16 %v319_v42, %v318_v38 }
 0x168   :  { %594 = vst [vmem:[%s939_s3] sm:$0xff] %v593_v43  }
 0x169   :  { %v320_v44 = vpop.trf.xlu0 }
 0x16d   :  { %v321_v45 = vpop.trf.xlu0 }
 0x16e   :  { %v598_v46 = vpack.c.bf16 %v321_v45, %v320_v44 }
 0x170   :  { %670 = vst [vmem:[%s939_s3 + $0x8] sm:$0xff] %v598_v46  }
 0x171   :  { %v322_v47 = vpop.trf.xlu0 }
 0x175   :  { %v323_v48 = vpop.trf.xlu0 }
 0x176   :  { %v603_v49 = vpack.c.bf16 %v323_v48, %v322_v47 }
 0x178   :  { %671 = vst [vmem:[%s939_s3 + $0x10] sm:$0xff] %v603_v49  }
 0x179   :  { %v324_v29 = vpop.trf.xlu0 }
 0x17d   :  { %v325_v50 = vpop.trf.xlu0 }
 0x17e   :  { %v608_v51 = vpack.c.bf16 %v325_v50, %v324_v29 }
 0x180   :  { %672 = vst [vmem:[%s939_s3 + $0x18] sm:$0xff] %v608_v51  }
 0x181   :  { %v326_v52 = vpop.trf.xlu0 }
 0x185   :  { %v327_v53 = vpop.trf.xlu0 }
 0x186   :  { %v613_v54 = vpack.c.bf16 %v327_v53, %v326_v52 }
 0x188   :  { %673 = vst [vmem:[%s939_s3 + $0x20] sm:$0xff] %v613_v54  }
 0x189   :  { %v328_v55 = vpop.trf.xlu0 }
 0x18d   :  { %v329_v56 = vpop.trf.xlu0 }
 0x18e   :  { %v618_v57 = vpack.c.bf16 %v329_v56, %v328_v55 }
 0x190   :  { %674 = vst [vmem:[%s939_s3 + $0x28] sm:$0xff] %v618_v57  }
 0x191   :  { %v330_v58 = vpop.trf.xlu0 }
 0x195   :  { %v331_v59 = vpop.trf.xlu0 }
 0x196   :  { %v623_v60 = vpack.c.bf16 %v331_v59, %v330_v58 }
 0x198   :  { %675 = vst [vmem:[%s939_s3 + $0x30] sm:$0xff] %v623_v60  }
 0x199   :  { %v332_v61 = vpop.trf.xlu0 }
 0x19d   :  { %v333_v62 = vpop.trf.xlu0 }
 0x19e   :  { %v628_v63 = vpack.c.bf16 %v333_v62, %v332_v61 }
 0x1a0   :  { %676 = vst [vmem:[%s939_s3 + $0x38] sm:$0xff] %v628_v63  }

// kernel: forward.5
= control target key start
LH: loop header
LB: loop body
LE: loop exit
PB: predicated region body
PF: predicated region fallthrough
CT: control target
= control target key end

     0   :  { %v1868_v1 = vmov 0   ;;  %v1869_v2 = vmov 0.0   ;;  %vm2699_vm0 = vmmov 0   ;;  %v1871_v35 = vmov 2   ;;  %s2685_s4 = inlined_call_operand.vmem [shape: bf16[128,256], index: 4, kind: input, shape index: {}]   ;;  %s2686_s2 = inlined_call_operand.vmem [shape: bf16[128,128], index: 2, kind: input, shape index: {}]   ;;  %s2687_s6 = inlined_call_operand.vmem [shape: bf16[128,32], index: 6, kind: input, shape index: {}]   ;;  %s2688_s0 = inlined_call_operand.vmem [shape: bf16[8,128], index: 0, kind: input, shape index: {}]   ;;  %s2689_s5 = inlined_call_operand.vmem [shape: f32[1,256], index: 5, kind: input, shape index: {}]   ;;  %s2690_s1 = inlined_call_operand.vmem [shape: s32[8,128], index: 1, kind: input, shape index: {}]   ;;  %s2691_s3 = inlined_call_operand.vmem [shape: bf16[128,128], index: 3, kind: input, shape index: {}]   ;;  %s2692_s9 = inlined_call_operand.vmem [shape: f32[1,128], index: 9, kind: input, shape index: {}]   ;;  %s2693_s7 = inlined_call_operand.vmem [shape: bf16[64,128], index: 7, kind: input, shape index: {}]   ;;  %s2694_s8 = inlined_call_operand.vmem [shape: f32[1,128], index: 8, kind: input, shape index: {}]   ;;  %s2695_s10 = inlined_call_operand.vmem [shape: f32[1,128], index: 10, kind: input, shape index: {}]   ;;  %s2696_s11 = inlined_call_operand.vmem [shape: f32[1,128], index: 11, kind: input, shape index: {}]   ;;  %s2697_s12 = inlined_call_operand.vmem [shape: bf16[8,128], index: 12, kind: output, shape index: {}]  }
   0x1   :  { %v1801_v0 = vld [vmem:[%s2685_s4 + $0x74] ss:$8 sps:$4 sm:$0xff]   ;;  %232 = vmatprep.mubr.bf16.mxu0 %v1868_v1  ;;  %1597 = vmatprep.subr.bf16.mxu1 %v1869_v2  ;;  %v1803_v3 = vld [vmem:[%s2685_s4 + $0x70] ss:$8 sps:$4 sm:$0xff]   ;;  %v1804_v4 = vld [vmem:[%s2685_s4 + $0x64] ss:$8 sps:$4 sm:$0xff]   ;;  %v110_v36 = vlaneseq }
   0x2   :  { %1755 = vset.pattern.permute.xlu0 %v1868_v1  ;;  %200 = vmatprep.subr.bf16.mxu0 %v1801_v0  ;;  %v1806_v5 = vld [vmem:[%s2685_s4 + $0x60] ss:$8 sps:$4 sm:$0xff]   ;;  %v1807_v6 = vld [vmem:[%s2685_s4 + $0x54] ss:$8 sps:$4 sm:$0xff]   ;;  %v1809_v7 = vld [vmem:[%s2685_s4 + $0x50] ss:$8 sps:$4 sm:$0xff]  }
   0x3   :  { %201 = vmatpush1.bf16.msra.mxu0 %v1803_v3  ;;  %v1810_v8 = vld [vmem:[%s2685_s4 + $0x44] ss:$8 sps:$4 sm:$0xff]   ;;  %v1812_v9 = vld [vmem:[%s2685_s4 + $0x40] ss:$8 sps:$4 sm:$0xff]   ;;  %v1989_v10 = vld [vmem:[%s2686_s2 + $0x38] sm:$0xff]   ;;  %1613 = vmatprep.mubr.msk.bf16.mxu1 %vm2699_vm0, %v1869_v2  ;;  %v2113_v37 = vshrl.u32 %v110_v36, 7 }
   0x4   :  { %202 = vmatprep.subr.bf16.mxu0 %v1804_v4  ;;  %v1813_v11 = vld [vmem:[%s2685_s4 + $0x34] ss:$8 sps:$4 sm:$0xff]   ;;  %1598 = vmatpush3.bf16.msra.mxu1 %v1989_v10  ;;  %v1815_v13 = vld [vmem:[%s2685_s4 + $0x30] ss:$8 sps:$4 sm:$0xff]   ;;  %v1816_v14 = vld [vmem:[%s2685_s4 + $0x24] ss:$8 sps:$4 sm:$0xff]  }
   0x5   :  { %v1998_v12 = vld [vmem:[%s2686_s2 + $0x30] sm:$0xff]   ;;  %1599 = vmatprep.subr.bf16.mxu1 %v1869_v2  ;;  %v2011_v15 = vld [vmem:[%s2686_s2 + $0x28] sm:$0xff]   ;;  %v2024_v18 = vld [vmem:[%s2686_s2 + $0x20] sm:$0xff]   ;;  %1756 = vset.pattern.permute.xlu1 %v1871_v35  ;;  %v112_v38 = vsub.s32 0, %v2113_v37  ;;  %v2116_v39 = vand.u32 127, %v110_v36  ;;  %v1872_v59 = vmov 3  }
   0x6   :  { %v1818_v16 = vld [vmem:[%s2685_s4 + $0x20] ss:$8 sps:$4 sm:$0xff]   ;;  %v1819_v17 = vld [vmem:[%s2685_s4 + $0x14] ss:$8 sps:$4 sm:$0xff]   ;;  %v1821_v19 = vld [vmem:[%s2685_s4 + $0x10] ss:$8 sps:$4 sm:$0xff]  }
   0x7   :  { %203 = vmatpush1.bf16.msra.mxu0 %v1806_v5  ;;  %v1822_v20 = vld [vmem:[%s2685_s4 + $0x4] ss:$8 sps:$4 sm:$0xff]   ;;  %v2037_v21 = vld [vmem:[%s2686_s2 + $0x18] sm:$0xff]   ;;  %v1824_v22 = vld [vmem:[%s2685_s4] ss:$8 sps:$4 sm:$0xff]   ;;  %vm246_vm1 = vcmp.lt.s32.totalorder %v2116_v39, 8 }
   0x8   :  { %204 = vmatprep.subr.bf16.mxu0 %v1807_v6  ;;  %1600 = vmatpush3.bf16.msra.mxu1 %v1998_v12  ;;  %v2047_v23 = vld [vmem:[%s2686_s2 + $0x10] sm:$0xff]   ;;  %v42_v24 = vld [vmem:[%s2688_s0] sm:$0xf]  ;;  %v1826_v25 = vld [vmem:[%s2687_s6 + $0x38] sm:$0xff]   ;;  %v2123_v43 = vsel %vm246_vm1, 1.0, %v1869_v2  ;;  %vm428_vm2 = vcmp.ge.s32.totalorder %v2116_v39, 8 }
   0x9   :  { %1601 = vmatprep.subr.bf16.mxu1 %v1869_v2  ;;  %v2061_v26 = vld [vmem:[%s2686_s2 + $0x8] sm:$0xff]   ;;  %v1828_v27 = vld [vmem:[%s2687_s6 + $0x30] sm:$0xff]   ;;  %v1832_v29 = vld [vmem:[%s2687_s6 + $0x20] sm:$0xff]   ;;  %vm2698_vm3 = vcmp.lt.s32.totalorder %v2116_v39, 16  ;;  %v1873_v60 = vmov 1   ;;  %v1874_v63 = vmov 4  }
   0xa   :  { %v1830_v28 = vld [vmem:[%s2687_s6 + $0x28] sm:$0xff]   ;;  %v1834_v30 = vld [vmem:[%s2687_s6 + $0x18] sm:$0xff]   ;;  %v1836_v31 = vld [vmem:[%s2687_s6 + $0x10] sm:$0xff]   ;;  %v1875_v0 = vmov 5   ;;  %v1876_v3 = vmov 6   ;;  %v1877_v4 = vmov 8  }
   0xb   :  { %205 = vmatpush1.bf16.msra.mxu0 %v1809_v7  ;;  %v2089_v32 = vld [vmem:[%s2687_s6 + $0x8] sm:$0xff]   ;;  %v2097_v33 = vld [vmem:[%s2686_s2] sm:$0xff]   ;;  %vm430_vm4 = vmand %vm428_vm2, %vm2698_vm3  ;;  %v1878_v5 = vmov 7   ;;  %v1879_v6 = vmov 11   ;;  %v1880_v7 = vmov 9  }
   0xc   :  { %206 = vmatprep.subr.bf16.mxu0 %v1810_v8  ;;  %1602 = vmatpush3.bf16.msra.mxu1 %v2011_v15  ;;  %v2102_v34 = vld [vmem:[%s2687_s6] sm:$0xff]   ;;  %v2155_v50 = vsel %vm430_vm4, 1.0, %v1869_v2  ;;  %v1881_v8 = vmov 14  }
   0xd   :  { %1603 = vmatprep.subr.bf16.mxu1 %v1869_v2  ;;  %v108_v40 = vld [vmem:[%s2689_s5] sm:$0x3] }
   0xe   :  { %v113_v41 = vrot.slane %v108_v40, %v112_v38 }
   0xf   :  { %207 = vmatpush1.bf16.msra.mxu0 %v1812_v9  ;;  %v1882_v9 = vmov 10  }
  0x10   :  { %208 = vmatprep.subr.bf16.mxu0 %v1813_v11  ;;  %1604 = vmatpush3.bf16.msra.mxu1 %v2024_v18 }
  0x11   :  { %1605 = vmatprep.subr.bf16.mxu1 %v1869_v2 }
  0x13   :  { %209 = vmatpush1.bf16.msra.mxu0 %v1815_v13 }
  0x14   :  { %210 = vmatprep.subr.bf16.mxu0 %v1816_v14  ;;  %1606 = vmatpush3.bf16.msra.mxu1 %v2037_v21 }
  0x15   :  { %1607 = vmatprep.subr.bf16.mxu1 %v1869_v2 }
  0x17   :  { %211 = vmatpush1.bf16.msra.mxu0 %v1818_v16  ;;  %v1885_v16 = vmov 20  }
  0x18   :  { %212 = vmatprep.subr.bf16.mxu0 %v1819_v17  ;;  %1608 = vmatpush3.bf16.msra.mxu1 %v2047_v23 }
  0x19   :  { %1609 = vmatprep.subr.bf16.mxu1 %v1869_v2 }
  0x1b   :  { %213 = vmatpush1.bf16.msra.mxu0 %v1821_v19 }
  0x1c   :  { %214 = vmatprep.subr.bf16.mxu0 %v1822_v20  ;;  %1610 = vmatpush3.bf16.msra.mxu1 %v2061_v26 }
  0x1d   :  { %1611 = vmatprep.subr.bf16.mxu1 %v1869_v2 }
  0x1f   :  { %215 = vmatpush1.bf16.msra.mxu0 %v1824_v22  ;;  %v1887_v22 = vmov 15  }
  0x20   :  { %1617 = vmatprep.subr.bf16.mxu0 %v1869_v2  ;;  %1612 = vmatpush3.bf16.msra.mxu1 %v2097_v33 }
  0x21   :  { %1637 = vmatprep.subr.bf16.mxu1 %v1869_v2 }
  0x22   :  { %233 = vmatmul.mubr.bf16.vlgmr.msra.gmra.mxu0 %v42_v24  ;;  %v1889_v24 = vmov 18  }
  0x23   :  { %1618 = vmatpush3.bf16.msra.mxu0 %v1826_v25  ;;  %1633 = vmatprep.mubr.msk.bf16.mxu0 %vm2699_vm0, %v1869_v2 }
  0x24   :  { %1619 = vmatprep.subr.bf16.mxu0 %v1869_v2 }
  0x27   :  { %1620 = vmatpush3.bf16.msra.mxu0 %v1828_v27 }
  0x28   :  { %1621 = vmatprep.subr.bf16.mxu0 %v1869_v2 }
  0x2b   :  { %1622 = vmatpush3.bf16.msra.mxu0 %v1830_v28 }
  0x2c   :  { %1623 = vmatprep.subr.bf16.mxu0 %v1869_v2 }
  0x2f   :  { %1624 = vmatpush3.bf16.msra.mxu0 %v1832_v29 }
  0x30   :  { %1625 = vmatprep.subr.bf16.mxu0 %v1869_v2 }
  0x33   :  { %1626 = vmatpush3.bf16.msra.mxu0 %v1834_v30 }
  0x34   :  { %1627 = vmatprep.subr.bf16.mxu0 %v1869_v2 }
  0x37   :  { %1628 = vmatpush3.bf16.msra.mxu0 %v1836_v31 }
  0x38   :  { %1629 = vmatprep.subr.bf16.mxu0 %v1869_v2 }
  0x3b   :  { %1630 = vmatpush3.bf16.msra.mxu0 %v2089_v32 }
  0x3c   :  { %1631 = vmatprep.subr.bf16.mxu0 %v1869_v2 }
  0x3f   :  { %1632 = vmatpush3.bf16.msra.mxu0 %v2102_v34 }
  0x40   :  { %1657 = vmatprep.subr.bf16.mxu0 %v1869_v2 }
  0xe2   :  { %v234_v42 = vpop.f32.mrf.mxu0 }
  0xe3   :  { %v235_v44 = vadd.f32 %v234_v42, %v113_v41 }
  0xe4   :  { %v2125_v45 = vpop.f32.mrf.mxu0 }
  0xe5   :  { %v250_v46 = vmul.f32 %v2123_v43, %v235_v44  ;;  %v433_v51 = vmul.f32 %v2155_v50, %v235_v44 }
  0xe6   :  { %v238_v47 = vpop.f32.mrf.mxu0 }
  0xe7   :  { %v251_v48 = vpack.c.bf16 %v250_v46, %v250_v46  ;;  %v434_v52 = vpack.c.bf16 %v433_v51, %v433_v51 }
  0xe8   :  { %v239_v49 = vpop.f32.mrf.mxu0 }
  0xe9   :  { %1614 = vmatmul.mubr.bf16.vlgmr.msra.gmra.mxu1 %v251_v48  ;;  %1634 = vmatmul.mubr.bf16.vlgmr.msra.gmra.mxu0 %v251_v48 }
  0xea   :  { %1638 = vmatpush3.bf16.msra.mxu1 %v1989_v10  ;;  %1658 = vmatpush3.bf16.msra.mxu0 %v1826_v25  ;;  %v1883_v10 = vmov 17   ;;  %v1891_v25 = vmov 21  }
  0xeb   :  { %1639 = vmatprep.subr.bf16.mxu1 %v1869_v2  ;;  %1659 = vmatprep.subr.bf16.mxu0 %v1869_v2 }
  0xec   :  { %1653 = vmatprep.mubr.msk.bf16.mxu1 %vm2699_vm0, %v1869_v2  ;;  %1673 = vmatprep.mubr.msk.bf16.mxu0 %vm2699_vm0, %v1869_v2 }
  0xee   :  { %1640 = vmatpush3.bf16.msra.mxu1 %v1998_v12  ;;  %1660 = vmatpush3.bf16.msra.mxu0 %v1828_v27 }
  0xef   :  { %1641 = vmatprep.subr.bf16.mxu1 %v1869_v2  ;;  %1661 = vmatprep.subr.bf16.mxu0 %v1869_v2 }
  0xf2   :  { %1642 = vmatpush3.bf16.msra.mxu1 %v2011_v15  ;;  %1662 = vmatpush3.bf16.msra.mxu0 %v1830_v28  ;;  %v1884_v15 = vmov 12  }
  0xf3   :  { %1643 = vmatprep.subr.bf16.mxu1 %v1869_v2  ;;  %1663 = vmatprep.subr.bf16.mxu0 %v1869_v2 }
  0xf6   :  { %1644 = vmatpush3.bf16.msra.mxu1 %v2024_v18  ;;  %1664 = vmatpush3.bf16.msra.mxu0 %v1832_v29  ;;  %v2245_v29 = vld [vmem:[%s2690_s1] sm:$0xff] }
  0xf7   :  { %1645 = vmatprep.subr.bf16.mxu1 %v1869_v2  ;;  %1665 = vmatprep.subr.bf16.mxu0 %v1869_v2  ;;  %vm241_vm5 = vcmp.ge.s32.totalorder %v2245_v29, 0  ;;  %vm515_vm6 = vcmp.eq.s32.totalorder %v2245_v29, 0  ;;  %vm2709_vm7 = vcmp.eq.s32.totalorder %v2245_v29, 2  ;;  %vm2708_vm8 = vcmp.eq.s32.totalorder %v2245_v29, 4 }
  0xf8   :  { %vm2710_vm9 = vcmp.eq.s32.totalorder %v2245_v29, 6  ;;  %vm2711_vm10 = vcmp.eq.s32.totalorder %v2245_v29, 3  ;;  %vm530_vm11 = vcmp.eq.s32.totalorder %v2245_v29, 1  ;;  %vm582_vm12 = vcmp.eq.s32.totalorder %v2245_v29, 5 }
  0xf9   :  { %vm2703_vm13 = vcmp.eq.s32.totalorder %v2245_v29, 8  ;;  %vm2704_vm14 = vcmp.eq.s32.totalorder %v2245_v29, 10  ;;  %vm2702_vm15 = vcmp.eq.s32.totalorder %v2245_v29, 7  ;;  %vm2705_vm1 = vcmp.eq.s32.totalorder %v2245_v29, 9 }
  0xfa   :  { %1646 = vmatpush3.bf16.msra.mxu1 %v2037_v21  ;;  %1666 = vmatpush3.bf16.msra.mxu0 %v1834_v30  ;;  %v1886_v21 = vmov 13   ;;  %vm2700_vm2 = vcmp.eq.s32.totalorder %v2245_v29, 12  ;;  %vm2706_vm4 = vcmp.eq.s32.totalorder %v2245_v29, 11  ;;  %vm712_vm3 = vcmp.eq.s32.totalorder %v2245_v29, 15 }
  0xfb   :  { %1647 = vmatprep.subr.bf16.mxu1 %v1869_v2  ;;  %1667 = vmatprep.subr.bf16.mxu0 %v1869_v2 }
  0xfe   :  { %1648 = vmatpush3.bf16.msra.mxu1 %v2047_v23  ;;  %1668 = vmatpush3.bf16.msra.mxu0 %v1836_v31  ;;  %v1888_v23 = vmov 16  }
  0xff   :  { %1649 = vmatprep.subr.bf16.mxu1 %v1869_v2  ;;  %1669 = vmatprep.subr.bf16.mxu0 %v1869_v2 }
 0x102   :  { %1650 = vmatpush3.bf16.msra.mxu1 %v2061_v26  ;;  %1670 = vmatpush3.bf16.msra.mxu0 %v2089_v32  ;;  %v1892_v26 = vmov 22  }
 0x103   :  { %1651 = vmatprep.subr.bf16.mxu1 %v1869_v2  ;;  %1671 = vmatprep.subr.bf16.mxu0 %v1869_v2 }
 0x106   :  { %1652 = vmatpush3.bf16.msra.mxu1 %v2097_v33  ;;  %1672 = vmatpush3.bf16.msra.mxu0 %v2102_v34  ;;  %v1893_v33 = vmov -1e+30  }
 0x107   :  { %1677 = vmatprep.subr.bf16.mxu1 %v1869_v2  ;;  %1697 = vmatprep.subr.bf16.mxu0 %v1869_v2  ;;  %v2251_v34 = vsel %vm241_vm5, 0.0, %v1893_v33  ;;  %vm2701_vm5 = vcmp.eq.s32.totalorder %v2245_v29, 13 }
 0x109   :  { %1654 = vmatmul.mubr.bf16.vlgmr.msra.gmra.mxu1 %v434_v52  ;;  %1674 = vmatmul.mubr.bf16.vlgmr.msra.gmra.mxu0 %v434_v52 }
 0x10a   :  { %1693 = vmatprep.mubr.msk.bf16.mxu1 %vm2699_vm0, %v1869_v2  ;;  %1713 = vmatprep.mubr.msk.bf16.mxu0 %vm2699_vm0, %v1869_v2  ;;  %vm699_vm0 = vcmp.eq.s32.totalorder %v2245_v29, 14 }
 0x1a9   :  { %v2170_v53 = vpop.f32.mrf.mxu1  ;;  %v2172_v54 = vpop.f32.mrf.mxu0 }
 0x1aa   :  { %545 = vperm.xlu1 %1756, %v2172_v54   ;;  %518 = vperm.xlu0 %1755, %v2172_v54   ;;  %v335_v38 = vadd.f32 %v2170_v53, %v2251_v34 }
 0x1ab   :  { %v1615_v55 = vpop.f32.mrf.mxu1  ;;  %v1635_v56 = vpop.f32.mrf.mxu0 }
 0x1ad   :  { %v337_v57 = vpop.f32.mrf.mxu1  ;;  %v425_v58 = vpop.f32.mrf.mxu0 }
 0x1ae   :  { %1758 = vset.pattern.permute.xlu1 %v1872_v59  ;;  %1757 = vset.pattern.permute.xlu0 %v1873_v60 }
 0x1af   :  { %558 = vperm.xlu1 %1758, %v2172_v54   ;;  %532 = vperm.xlu0 %1757, %v2172_v54   ;;  %v1616_v61 = vpop.f32.mrf.mxu1  ;;  %v1636_v62 = vpop.f32.mrf.mxu0 }
 0x1b3   :  { %1759 = vset.pattern.permute.xlu1 %v1874_v63  ;;  %1760 = vset.pattern.permute.xlu0 %v1875_v0 }
 0x1b4   :  { %571 = vperm.xlu1 %1759, %v2172_v54   ;;  %584 = vperm.xlu0 %1760, %v2172_v54  }
 0x1b8   :  { %1761 = vset.pattern.permute.xlu1 %v1876_v3  ;;  %1763 = vset.pattern.permute.xlu0 %v1877_v4 }
 0x1b9   :  { %597 = vperm.xlu1 %1761, %v2172_v54   ;;  %623 = vperm.xlu0 %1763, %v2172_v54  }
 0x1bd   :  { %1762 = vset.pattern.permute.xlu1 %v1878_v5  ;;  %1766 = vset.pattern.permute.xlu0 %v1879_v6 }
 0x1be   :  { %610 = vperm.xlu1 %1762, %v2172_v54   ;;  %662 = vperm.xlu0 %1766, %v2172_v54  }
 0x1c2   :  { %1764 = vset.pattern.permute.xlu1 %v1880_v7  ;;  %1769 = vset.pattern.permute.xlu0 %v1881_v8 }
 0x1c3   :  { %636 = vperm.xlu1 %1764, %v2172_v54   ;;  %701 = vperm.xlu0 %1769, %v2172_v54  }
 0x1c7   :  { %1765 = vset.pattern.permute.xlu1 %v1882_v9  ;;  %1772 = vset.pattern.permute.xlu0 %v1883_v10 }
 0x1c8   :  { %649 = vperm.xlu1 %1765, %v2172_v54   ;;  %740 = vperm.xlu0 %1772, %v2172_v54  }
 0x1c9   :  { %v2197_v11 = vpop.f32.mrf.mxu1  ;;  %v2199_v12 = vpop.f32.mrf.mxu0 }
 0x1cb   :  { %v1655_v13 = vpop.f32.mrf.mxu1  ;;  %v1675_v14 = vpop.f32.mrf.mxu0 }
 0x1cc   :  { %1767 = vset.pattern.permute.xlu1 %v1884_v15  ;;  %1775 = vset.pattern.permute.xlu0 %v1885_v16 }
 0x1cd   :  { %v472_v17 = vpop.f32.mrf.mxu1  ;;  %v512_v18 = vpop.f32.mrf.mxu0  ;;  %675 = vperm.xlu1 %1767, %v2172_v54   ;;  %779 = vperm.xlu0 %1775, %v2172_v54  }
 0x1cf   :  { %v1656_v19 = vpop.f32.mrf.mxu1  ;;  %v1676_v20 = vpop.f32.mrf.mxu0 }
 0x1d1   :  { %1768 = vset.pattern.permute.xlu1 %v1886_v21  ;;  %1777 = vset.pattern.permute.xlu0 %v1868_v1  ;;  %v1890_v1 = vmov 19  }
 0x1d2   :  { %688 = vperm.xlu1 %1768, %v2172_v54   ;;  %525 = vperm.xlu0 %1777, %v2199_v12  }
 0x1d6   :  { %1770 = vset.pattern.permute.xlu1 %v1887_v22  ;;  %1780 = vset.pattern.permute.xlu0 %v1872_v59 }
 0x1d7   :  { %714 = vperm.xlu1 %1770, %v2172_v54   ;;  %564 = vperm.xlu0 %1780, %v2199_v12  }
 0x1db   :  { %1771 = vset.pattern.permute.xlu1 %v1888_v23  ;;  %1783 = vset.pattern.permute.xlu0 %v1876_v3 }
 0x1dc   :  { %727 = vperm.xlu1 %1771, %v2172_v54   ;;  %603 = vperm.xlu0 %1783, %v2199_v12  }
 0x1e0   :  { %1773 = vset.pattern.permute.xlu1 %v1889_v24  ;;  %1786 = vset.pattern.permute.xlu0 %v1880_v7 }
 0x1e1   :  { %753 = vperm.xlu1 %1773, %v2172_v54   ;;  %642 = vperm.xlu0 %1786, %v2199_v12  }
 0x1e5   :  { %1774 = vset.pattern.permute.xlu1 %v1890_v1  ;;  %1789 = vset.pattern.permute.xlu0 %v1884_v15 }
 0x1e6   :  { %766 = vperm.xlu1 %1774, %v2172_v54   ;;  %681 = vperm.xlu0 %1789, %v2199_v12  }
 0x1ea   :  { %1776 = vset.pattern.permute.xlu1 %v1891_v25  ;;  %1792 = vset.pattern.permute.xlu0 %v1887_v22 }
 0x1eb   :  { %792 = vperm.xlu1 %1776, %v2172_v54   ;;  %720 = vperm.xlu0 %1792, %v2199_v12  }
 0x1ef   :  { %1778 = vset.pattern.permute.xlu1 %v1871_v35  ;;  %1795 = vset.pattern.permute.xlu0 %v1889_v24 }
 0x1f0   :  { %551 = vperm.xlu1 %1778, %v2199_v12   ;;  %759 = vperm.xlu0 %1795, %v2199_v12  }
 0x1f4   :  { %1779 = vset.pattern.permute.xlu1 %v1873_v60  ;;  %1798 = vset.pattern.permute.xlu0 %v1891_v25 }
 0x1f5   :  { %538 = vperm.xlu1 %1779, %v2199_v12   ;;  %798 = vperm.xlu0 %1798, %v2199_v12  }
 0x1f9   :  { %1781 = vset.pattern.permute.xlu1 %v1874_v63  ;;  %1800 = vset.pattern.permute.xlu0 %v1892_v26 }
 0x1fa   :  { %577 = vperm.xlu1 %1781, %v2199_v12  }
 0x1fe   :  { %1782 = vset.pattern.permute.xlu1 %v1875_v0 }
 0x1ff   :  { %590 = vperm.xlu1 %1782, %v2199_v12  }
 0x203   :  { %1784 = vset.pattern.permute.xlu1 %v1878_v5 }
 0x204   :  { %616 = vperm.xlu1 %1784, %v2199_v12  }
 0x208   :  { %1785 = vset.pattern.permute.xlu1 %v1877_v4 }
 0x209   :  { %629 = vperm.xlu1 %1785, %v2199_v12  }
 0x20d   :  { %1787 = vset.pattern.permute.xlu1 %v1882_v9 }
 0x20e   :  { %655 = vperm.xlu1 %1787, %v2199_v12  }
 0x212   :  { %1788 = vset.pattern.permute.xlu1 %v1879_v6 }
 0x213   :  { %668 = vperm.xlu1 %1788, %v2199_v12  }
 0x217   :  { %1790 = vset.pattern.permute.xlu1 %v1886_v21 }
 0x218   :  { %694 = vperm.xlu1 %1790, %v2199_v12  }
 0x21c   :  { %1791 = vset.pattern.permute.xlu1 %v1881_v8 }
 0x21d   :  { %707 = vperm.xlu1 %1791, %v2199_v12  }
 0x221   :  { %1793 = vset.pattern.permute.xlu1 %v1888_v23 }
 0x222   :  { %733 = vperm.xlu1 %1793, %v2199_v12  }
 0x225   :  { %v546_v27 = vpop.permute.xlu1 %545  ;;  %v519_v31 = vpop.permute.xlu0 %518 }
 0x226   :  { %1794 = vset.pattern.permute.xlu1 %v1883_v10  ;;  %v521_v36 = vsel %vm515_vm6, %v519_v31, 0.0  ;;  %v548_v44 = vsel %vm2709_vm7, %v546_v27, 0.0 }
 0x227   :  { %746 = vperm.xlu1 %1794, %v2199_v12   ;;  %v522_v41 = vadd.f32 %v521_v36, %v335_v38 }
 0x229   :  { %v549_v47 = vadd.f32 %v548_v44, %v522_v41 }
 0x22a   :  { %v559_v28 = vpop.permute.xlu1 %558  ;;  %v533_v35 = vpop.permute.xlu0 %532 }
 0x22b   :  { %1796 = vset.pattern.permute.xlu1 %v1890_v1  ;;  %v535_v55 = vsel %vm530_vm11, %v533_v35, 0.0 }
 0x22c   :  { %772 = vperm.xlu1 %1796, %v2199_v12  }
 0x22f   :  { %v572_v30 = vpop.permute.xlu1 %571  ;;  %v585_v42 = vpop.permute.xlu0 %584 }
 0x230   :  { %1797 = vset.pattern.permute.xlu1 %v1885_v16  ;;  %v574_v46 = vsel %vm2708_vm8, %v572_v30, 0.0  ;;  %v587_v57 = vsel %vm582_vm12, %v585_v42, 0.0 }
 0x231   :  { %785 = vperm.xlu1 %1797, %v2199_v12   ;;  %v575_v51 = vadd.f32 %v574_v46, %v549_v47 }
 0x234   :  { %v598_v32 = vpop.permute.xlu1 %597  ;;  %v624_v53 = vpop.permute.xlu0 %623 }
 0x235   :  { %1799 = vset.pattern.permute.xlu1 %v1892_v26  ;;  %v600_v49 = vsel %vm2710_vm9, %v598_v32, 0.0  ;;  %v626_v58 = vsel %vm2703_vm13, %v624_v53, 0.0 }
 0x236   :  { %805 = vperm.xlu1 %1799, %v2172_v54   ;;  %v601_v52 = vadd.f32 %v600_v49, %v575_v51  ;;  %v561_v54 = vsel %vm2711_vm10, %v559_v28, 0.0 }
 0x237   :  { %v562_v60 = vadd.f32 %v561_v54, %v535_v55 }
 0x238   :  { %v627_v61 = vadd.f32 %v626_v58, %v601_v52  ;;  %v470_v52 = vadd.f32 %v2197_v11, %v2251_v34 }
 0x239   :  { %v611_v40 = vpop.permute.xlu1 %610  ;;  %v588_v63 = vadd.f32 %v587_v57, %v562_v60  ;;  %v663_v8 = vpop.permute.xlu0 %662 }
 0x23a   :  { %811 = vperm.xlu1 %1799, %v2199_v12   ;;  %v613_v62 = vsel %vm2702_vm15, %v611_v40, 0.0  ;;  %v665_v12 = vsel %vm2706_vm4, %v663_v8, 0.0 }
 0x23b   :  { %v614_v6 = vadd.f32 %v613_v62, %v588_v63 }
 0x23e   :  { %v637_v48 = vpop.permute.xlu1 %636  ;;  %v702_v17 = vpop.permute.xlu0 %701 }
 0x23f   :  { %v639_v4 = vsel %vm2705_vm1, %v637_v48, 0.0  ;;  %v704_v20 = vsel %vm699_vm0, %v702_v17, 0.0 }
 0x240   :  { %v640_v9 = vadd.f32 %v639_v4, %v614_v6 }
 0x242   :  { %v666_v14 = vadd.f32 %v665_v12, %v640_v9 }
 0x243   :  { %v650_v56 = vpop.permute.xlu1 %649  ;;  %v741_v35 = vpop.permute.xlu0 %740 }
 0x244   :  { %v652_v59 = vsel %vm2704_vm14, %v650_v56, 0.0 }
 0x245   :  { %v653_v0 = vadd.f32 %v652_v59, %v627_v61 }
 0x248   :  { %v676_v3 = vpop.permute.xlu1 %675  ;;  %v780_v38 = vpop.permute.xlu0 %779 }
 0x249   :  { %v678_v5 = vsel %vm2700_vm2, %v676_v3, 0.0  ;;  %vm725_vm2 = vcmp.eq.s32.totalorder %v2245_v29, 16 }
 0x24a   :  { %v679_v7 = vadd.f32 %v678_v5, %v653_v0 }
 0x24c   :  { %v705_v22 = vadd.f32 %v704_v20, %v679_v7 }
 0x24d   :  { %v689_v10 = vpop.permute.xlu1 %688  ;;  %v526_v41 = vpop.permute.xlu0 %525 }
 0x24e   :  { %v691_v13 = vsel %vm2701_vm5, %v689_v10, 0.0  ;;  %vm751_vm5 = vcmp.eq.s32.totalorder %v2245_v29, 18  ;;  %v528_v49 = vsel %vm515_vm6, %v526_v41, 0.0 }
 0x24f   :  { %v692_v15 = vadd.f32 %v691_v13, %v666_v14  ;;  %v529_v54 = vadd.f32 %v528_v49, %v470_v52 }
 0x252   :  { %v715_v16 = vpop.permute.xlu1 %714  ;;  %v565_v46 = vpop.permute.xlu0 %564 }
 0x253   :  { %v717_v18 = vsel %vm712_vm3, %v715_v16, 0.0  ;;  %v567_v60 = vsel %vm2711_vm10, %v565_v46, 0.0 }
 0x254   :  { %v2302_v19 = vadd.f32 %v717_v18, %v692_v15 }
 0x257   :  { %v728_v21 = vpop.permute.xlu1 %727  ;;  %v604_v48 = vpop.permute.xlu0 %603 }
 0x258   :  { %v730_v23 = vsel %vm725_vm2, %v728_v21, 0.0  ;;  %v606_v3 = vsel %vm2710_vm9, %v604_v48, 0.0 }
 0x259   :  { %v731_v24 = vadd.f32 %v730_v23, %v705_v22 }
 0x25c   :  { %v754_v1 = vpop.permute.xlu1 %753  ;;  %v643_v55 = vpop.permute.xlu0 %642 }
 0x25d   :  { %v756_v25 = vsel %vm751_vm5, %v754_v1, 0.0  ;;  %v645_v10 = vsel %vm2705_vm1, %v643_v55, 0.0  ;;  %vm764_vm1 = vcmp.eq.s32.totalorder %v2245_v29, 19 }
 0x25e   :  { %v2312_v26 = vadd.f32 %v756_v25, %v731_v24 }
 0x261   :  { %v767_v27 = vpop.permute.xlu1 %766  ;;  %v682_v63 = vpop.permute.xlu0 %681 }
 0x266   :  { %v2314_v28 = vpop.permute.xlu1 %792  ;;  %v721_v13 = vpop.permute.xlu0 %720 }
 0x26b   :  { %v552_v30 = vpop.permute.xlu1 %551  ;;  %v760_v25 = vpop.permute.xlu0 %759 }
 0x26c   :  { %v554_v53 = vsel %vm2709_vm7, %v552_v30, 0.0 }
 0x26d   :  { %v555_v58 = vadd.f32 %v554_v53, %v529_v54 }
 0x270   :  { %v539_v31 = vpop.permute.xlu1 %538  ;;  %v799_v53 = vpop.permute.xlu0 %798 }
 0x271   :  { %v541_v56 = vsel %vm530_vm11, %v539_v31, 0.0 }
 0x272   :  { %v568_v11 = vadd.f32 %v567_v60, %v541_v56 }
 0x275   :  { %v578_v32 = vpop.permute.xlu1 %577 }
 0x276   :  { %v580_v57 = vsel %vm2708_vm8, %v578_v32, 0.0  ;;  %v769_v32 = vsel %vm764_vm1, %v767_v27, 0.0 }
 0x277   :  { %v581_v34 = vadd.f32 %v580_v57, %v555_v58 }
 0x279   :  { %v607_v7 = vadd.f32 %v606_v3, %v581_v34  ;;  %v1841_v34 = vld [vmem:[%s2691_s3 + $0x38] sm:$0xff]  }
 0x27a   :  { %v591_v33 = vpop.permute.xlu1 %590  ;;  %1678 = vmatpush3.bf16.msra.mxu1 %v1841_v34  ;;  %1698 = vmatpush3.bf16.msra.mxu0 %v1841_v34 }
 0x27b   :  { %v593_v61 = vsel %vm582_vm12, %v591_v33, 0.0  ;;  %v723_v33 = vsel %vm712_vm3, %v721_v13, 0.0  ;;  %1679 = vmatprep.subr.bf16.mxu1 %v1869_v2  ;;  %1699 = vmatprep.subr.bf16.mxu0 %v1869_v2  ;;  %v1846_v13 = vld [vmem:[%s2691_s3 + $0x10] sm:$0xff]  }
 0x27c   :  { %v594_v0 = vadd.f32 %v593_v61, %v568_v11 }
 0x27f   :  { %v617_v36 = vpop.permute.xlu1 %616 }
 0x280   :  { %v619_v62 = vsel %vm2702_vm15, %v617_v36, 0.0  ;;  %vm2712_vm15 = vcmp.eq.s32.totalorder %v2245_v29, 13 }
 0x281   :  { %v620_v6 = vadd.f32 %v619_v62, %v594_v0  ;;  %v1842_v62 = vld [vmem:[%s2691_s3 + $0x30] sm:$0xff]   ;;  %v1844_v0 = vld [vmem:[%s2691_s3 + $0x20] sm:$0xff]  }
 0x282   :  { %1680 = vmatpush3.bf16.msra.mxu1 %v1842_v62  ;;  %1700 = vmatpush3.bf16.msra.mxu0 %v1842_v62 }
 0x283   :  { %v646_v15 = vadd.f32 %v645_v10, %v620_v6  ;;  %1681 = vmatprep.subr.bf16.mxu1 %v1869_v2  ;;  %1701 = vmatprep.subr.bf16.mxu0 %v1869_v2 }
 0x284   :  { %v630_v40 = vpop.permute.xlu1 %629 }
 0x285   :  { %v632_v4 = vsel %vm2703_vm13, %v630_v40, 0.0  ;;  %vm2713_vm13 = vcmp.eq.s32.totalorder %v2245_v29, 12 }
 0x286   :  { %v633_v9 = vadd.f32 %v632_v4, %v607_v7  ;;  %v684_v20 = vsel %vm2713_vm13, %v682_v63, 0.0  ;;  %vm803_vm13 = vcmp.eq.s32.totalorder %v2245_v29, 22  ;;  %v1843_v63 = vld [vmem:[%s2691_s3 + $0x28] sm:$0xff]  }
 0x287   :  { %1682 = vmatpush3.bf16.msra.mxu1 %v1843_v63  ;;  %1702 = vmatpush3.bf16.msra.mxu0 %v1843_v63 }
 0x288   :  { %1683 = vmatprep.subr.bf16.mxu1 %v1869_v2  ;;  %1703 = vmatprep.subr.bf16.mxu0 %v1869_v2 }
 0x289   :  { %v656_v42 = vpop.permute.xlu1 %655 }
 0x28a   :  { %v658_v8 = vsel %vm2704_vm14, %v656_v42, 0.0  ;;  %vm738_vm14 = vcmp.eq.s32.totalorder %v2245_v29, 17 }
 0x28b   :  { %v659_v14 = vadd.f32 %v658_v8, %v633_v9  ;;  %v743_v31 = vsel %vm738_vm14, %v741_v35, 0.0  ;;  %1684 = vmatpush3.bf16.msra.mxu1 %v1844_v0  ;;  %1704 = vmatpush3.bf16.msra.mxu0 %v1844_v0 }
 0x28c   :  { %v744_v40 = vadd.f32 %v743_v31, %v2302_v19  ;;  %v762_v19 = vsel %vm751_vm5, %v760_v25, 0.0  ;;  %1685 = vmatprep.subr.bf16.mxu1 %v1869_v2  ;;  %1705 = vmatprep.subr.bf16.mxu0 %v1869_v2 }
 0x28d   :  { %v685_v23 = vadd.f32 %v684_v20, %v659_v14  ;;  %v1847_v14 = vld [vmem:[%s2691_s3 + $0x8] sm:$0xff]  }
 0x28e   :  { %v669_v44 = vpop.permute.xlu1 %668  ;;  %v770_v46 = vadd.f32 %v769_v32, %v744_v40 }
 0x28f   :  { %v671_v12 = vsel %vm2706_vm4, %v669_v44, 0.0  ;;  %vm777_vm4 = vcmp.eq.s32.totalorder %v2245_v29, 20 }
 0x290   :  { %v672_v18 = vadd.f32 %v671_v12, %v646_v15  ;;  %v782_v44 = vsel %vm777_vm4, %v780_v38, 0.0  ;;  %v1845_v12 = vld [vmem:[%s2691_s3 + $0x18] sm:$0xff]   ;;  %v1848_v15 = vld [vmem:[%s2691_s3] sm:$0xff]  }
 0x291   :  { %v783_v49 = vadd.f32 %v782_v44, %v2312_v26  ;;  %1686 = vmatpush3.bf16.msra.mxu1 %v1845_v12  ;;  %1706 = vmatpush3.bf16.msra.mxu0 %v1845_v12 }
 0x292   :  { %1687 = vmatprep.subr.bf16.mxu1 %v1869_v2  ;;  %1707 = vmatprep.subr.bf16.mxu0 %v1869_v2 }
 0x293   :  { %v695_v47 = vpop.permute.xlu1 %694 }
 0x294   :  { %v697_v17 = vsel %vm2712_vm15, %v695_v47, 0.0  ;;  %vm2707_vm15 = vcmp.eq.s32.totalorder %v2245_v29, 21 }
 0x295   :  { %v698_v22 = vadd.f32 %v697_v17, %v672_v18  ;;  %v795_v35 = vsel %vm2707_vm15, %v2314_v28, 0.0  ;;  %v801_v26 = vsel %vm2707_vm15, %v799_v53, 0.0  ;;  %1688 = vmatpush3.bf16.msra.mxu1 %v1846_v13  ;;  %1708 = vmatpush3.bf16.msra.mxu0 %v1846_v13  ;;  %vm2714_vm15 = vmmov 0  }
 0x296   :  { %v796_v52 = vadd.f32 %v795_v35, %v770_v46  ;;  %1689 = vmatprep.subr.bf16.mxu1 %v1869_v2  ;;  %1709 = vmatprep.subr.bf16.mxu0 %v1869_v2 }
 0x297   :  { %v724_v42 = vadd.f32 %v723_v33, %v698_v22 }
 0x298   :  { %v708_v51 = vpop.permute.xlu1 %707 }
 0x299   :  { %v710_v21 = vsel %vm699_vm0, %v708_v51, 0.0  ;;  %1690 = vmatpush3.bf16.msra.mxu1 %v1847_v14  ;;  %1710 = vmatpush3.bf16.msra.mxu0 %v1847_v14 }
 0x29a   :  { %v711_v30 = vadd.f32 %v710_v21, %v685_v23  ;;  %1691 = vmatprep.subr.bf16.mxu1 %v1869_v2  ;;  %1711 = vmatprep.subr.bf16.mxu0 %v1869_v2 }
 0x29d   :  { %v734_v59 = vpop.permute.xlu1 %733  ;;  %1692 = vmatpush3.bf16.msra.mxu1 %v1848_v15  ;;  %1712 = vmatpush3.bf16.msra.mxu0 %v1848_v15 }
 0x29e   :  { %v736_v24 = vsel %vm725_vm2, %v734_v59, 0.0  ;;  %1717 = vmatprep.subr.bf16.mxu1 %v1869_v2 }
 0x29f   :  { %v737_v41 = vadd.f32 %v736_v24, %v711_v30 }
 0x2a1   :  { %v763_v54 = vadd.f32 %v762_v19, %v737_v41 }
 0x2a2   :  { %v747_v5 = vpop.permute.xlu1 %746 }
 0x2a3   :  { %v749_v36 = vsel %vm738_vm14, %v747_v5, 0.0 }
 0x2a4   :  { %v750_v47 = vadd.f32 %v749_v36, %v724_v42 }
 0x2a7   :  { %v773_v16 = vpop.permute.xlu1 %772 }
 0x2a8   :  { %v775_v27 = vsel %vm764_vm1, %v773_v16, 0.0 }
 0x2a9   :  { %v776_v28 = vadd.f32 %v775_v27, %v750_v47 }
 0x2ab   :  { %v802_v61 = vadd.f32 %v801_v26, %v776_v28 }
 0x2ac   :  { %v786_v1 = vpop.permute.xlu1 %785 }
 0x2ad   :  { %v788_v51 = vsel %vm777_vm4, %v786_v1, 0.0 }
 0x2ae   :  { %v789_v56 = vadd.f32 %v788_v51, %v763_v54 }
 0x2b1   :  { %v806_v48 = vpop.permute.xlu1 %805 }
 0x2b2   :  { %v808_v38 = vsel %vm803_vm13, %v806_v48, 0.0 }
 0x2b3   :  { %v809_v55 = vadd.f32 %v808_v38, %v783_v49 }
 0x2b5   :  { %v812_v57 = vpop.permute.xlu1 %811  ;;  %v816_v58 = vadd.f32 %v809_v55, %v796_v52 }
 0x2b6   :  { %v814_v59 = vsel %vm803_vm13, %v812_v57, 0.0 }
 0x2b7   :  { %v815_v60 = vadd.f32 %v814_v59, %v789_v56  ;;  %818 = vmax.xlane.f32.xlu0 %v816_v58 }
 0x2b9   :  { %v817_v11 = vadd.f32 %v815_v60, %v802_v61 }
 0x2bb   :  { %918 = vmax.xlane.f32.xlu1 %v817_v11 }
 0x340   :  { %v819_v3 = vpop.xlane.xlu0 %818 }
 0x341   :  { %v820_v4 = vsub.f32 %v816_v58, %v819_v3 }
 0x343   :  { %v821_v5 = vmul.f32 1.442695, %v820_v4 }
 0x344   :  { %v919_v6 = vpop.xlane.xlu1 %918 }
 0x345   :  { %1853 = vpow2.f32 %v821_v5  ;;  %v920_v7 = vsub.f32 %v817_v11, %v919_v6  ;;  %v116_v6 = vsub.s32 1, %v2113_v37 }
 0x347   :  { %v921_v8 = vmul.f32 1.442695, %v920_v7 }
 0x349   :  { %1855 = vpow2.f32 %v921_v8 }
 0x352   :  { %v1854_v9 = vpop.eup %1853 }
 0x353   :  { %823 = vadd.xlane.f32.xlu0 %v1854_v9 }
 0x356   :  { %v1856_v10 = vpop.eup %1855 }
 0x357   :  { %923 = vadd.xlane.f32.xlu0 %v1856_v10 }
 0x3dc   :  { %v824_v16 = vpop.xlane.xlu0 %823 }
 0x3dd   :  { %1857 = vrcp.f32 %v824_v16  ;;  %v1533_v16 = vld [vmem:[%s2692_s9] ss:$0 sm:$0xff] }
 0x3e0   :  { %v924_v17 = vpop.xlane.xlu0 %923 }
 0x3e1   :  { %1859 = vrcp.f32 %v924_v17 }
 0x3ea   :  { %v1858_v18 = vpop.eup %1857 }
 0x3eb   :  { %v826_v20 = vmul.f32 %v1858_v18, %v1854_v9  ;;  %v1867_v9 = vld [vmem:[%s2689_s5] sm:$0x3]  ;;  %v1851_v18 = vld [vmem:[%s2693_s7 + $0x8] sm:$0xff]  }
 0x3ed   :  { %v970_v21 = vsel %vm515_vm6, %v826_v20, 0.0  ;;  %v986_v22 = vsel %vm530_vm11, %v826_v20, 0.0  ;;  %v827_v23 = vpack.c.bf16 %v826_v20, %v826_v20  ;;  %v1002_v25 = vsel %vm2709_vm7, %v826_v20, 0.0 }
 0x3ee   :  { %v1860_v24 = vpop.eup %1859  ;;  %971 = vadd.xlane.f32.xlu1 %v970_v21  ;;  %987 = vadd.xlane.f32.xlu0 %v986_v22  ;;  %v1034_v30 = vsel %vm2708_vm8, %v826_v20, 0.0  ;;  %v1018_v32 = vsel %vm2711_vm10, %v826_v20, 0.0  ;;  %v1066_v33 = vsel %vm2710_vm9, %v826_v20, 0.0  ;;  %v1050_v36 = vsel %vm582_vm12, %v826_v20, 0.0 }
 0x3ef   :  { %v2425_v1 = vmul.f32 %v1860_v24, %v1856_v10  ;;  %1694 = vmatmul.mubr.bf16.vlgmr.msra.gmra.mxu1 %v827_v23  ;;  %vm2716_vm8 = vcmp.eq.s32.totalorder %v2245_v29, 7  ;;  %vm2717_vm7 = vcmp.eq.s32.totalorder %v2245_v29, 10  ;;  %vm2718_vm9 = vcmp.eq.s32.totalorder %v2245_v29, 9 }
 0x3f0   :  { %1725 = vmatprep.mubr.msk.bf16.mxu1 %vm2714_vm15, %v1869_v2  ;;  %vm2715_vm15 = vcmp.eq.s32.totalorder %v2245_v29, 8  ;;  %v1082_v41 = vsel %vm2716_vm8, %v826_v20, 0.0  ;;  %v1130_v42 = vsel %vm2717_vm7, %v826_v20, 0.0  ;;  %v1114_v44 = vsel %vm2718_vm9, %v826_v20, 0.0 }
 0x3f1   :  { %v927_v31 = vpack.c.bf16 %v2425_v1, %v2425_v1  ;;  %v1098_v40 = vsel %vm2715_vm15, %v826_v20, 0.0  ;;  %vm2719_vm10 = vcmp.eq.s32.totalorder %v2245_v29, 12  ;;  %vm2720_vm15 = vcmp.eq.s32.totalorder %v2245_v29, 11 }
 0x3f2   :  { %1003 = vadd.xlane.f32.xlu1 %v1002_v25  ;;  %1035 = vadd.xlane.f32.xlu0 %v1034_v30  ;;  %v1162_v35 = vsel %vm2719_vm10, %v826_v20, 0.0  ;;  %v1146_v27 = vsel %vm2720_vm15, %v826_v20, 0.0  ;;  %v1194_v46 = vsel %vm699_vm0, %v826_v20, 0.0  ;;  %vm2721_vm7 = vcmp.eq.s32.totalorder %v2245_v29, 13 }
 0x3f3   :  { %1714 = vmatmul.mubr.bf16.vlgmr.msra.gmra.mxu0 %v927_v31  ;;  %v1178_v47 = vsel %vm2721_vm7, %v826_v20, 0.0  ;;  %v1226_v48 = vsel %vm725_vm2, %v826_v20, 0.0  ;;  %v1210_v49 = vsel %vm712_vm3, %v826_v20, 0.0  ;;  %v1258_v19 = vsel %vm751_vm5, %v826_v20, 0.0 }
 0x3f4   :  { %v1242_v51 = vsel %vm738_vm14, %v826_v20, 0.0  ;;  %v1290_v38 = vsel %vm777_vm4, %v826_v20, 0.0  ;;  %v1274_v52 = vsel %vm764_vm1, %v826_v20, 0.0  ;;  %v1322_v53 = vsel %vm803_vm13, %v826_v20, 0.0 }
 0x3f5   :  { %vm2722_vm8 = vcmp.eq.s32.totalorder %v2245_v29, 21  ;;  %v978_v54 = vsel %vm515_vm6, %v2425_v1, 0.0  ;;  %v994_v55 = vsel %vm530_vm11, %v2425_v1, 0.0  ;;  %vm2723_vm9 = vcmp.eq.s32.totalorder %v2245_v29, 2 }
 0x3f6   :  { %1019 = vadd.xlane.f32.xlu1 %v1018_v32  ;;  %1067 = vadd.xlane.f32.xlu0 %v1066_v33  ;;  %v1306_v28 = vsel %vm2722_vm8, %v826_v20, 0.0  ;;  %v1010_v56 = vsel %vm2723_vm9, %v2425_v1, 0.0  ;;  %vm2724_vm10 = vcmp.eq.s32.totalorder %v2245_v29, 3  ;;  %vm2725_vm15 = vcmp.eq.s32.totalorder %v2245_v29, 4  ;;  %v1852_v20 = vld [vmem:[%s2693_s7] sm:$0xff]  }
 0x3f7   :  { %v1026_v57 = vsel %vm2724_vm10, %v2425_v1, 0.0  ;;  %v1042_v58 = vsel %vm2725_vm15, %v2425_v1, 0.0  ;;  %v1058_v26 = vsel %vm582_vm12, %v2425_v1, 0.0  ;;  %vm2726_vm6 = vcmp.eq.s32.totalorder %v2245_v29, 6 }
 0x3f8   :  { %v1074_v59 = vsel %vm2726_vm6, %v2425_v1, 0.0  ;;  %vm2727_vm11 = vcmp.eq.s32.totalorder %v2245_v29, 7  ;;  %vm2728_vm7 = vcmp.eq.s32.totalorder %v2245_v29, 8  ;;  %vm2729_vm8 = vcmp.eq.s32.totalorder %v2245_v29, 9 }
 0x3f9   :  { %v1090_v60 = vsel %vm2727_vm11, %v2425_v1, 0.0  ;;  %v1106_v61 = vsel %vm2728_vm7, %v2425_v1, 0.0  ;;  %v1122_v11 = vsel %vm2729_vm8, %v2425_v1, 0.0  ;;  %vm2730_vm12 = vcmp.eq.s32.totalorder %v2245_v29, 10 }
 0x3fa   :  { %1051 = vadd.xlane.f32.xlu1 %v1050_v36  ;;  %1099 = vadd.xlane.f32.xlu0 %v1098_v40  ;;  %v1138_v34 = vsel %vm2730_vm12, %v2425_v1, 0.0  ;;  %vm2731_vm9 = vcmp.eq.s32.totalorder %v2245_v29, 11  ;;  %vm2732_vm10 = vcmp.eq.s32.totalorder %v2245_v29, 12  ;;  %vm2733_vm15 = vcmp.eq.s32.totalorder %v2245_v29, 13 }
 0x3fb   :  { %v1154_v62 = vsel %vm2731_vm9, %v2425_v1, 0.0  ;;  %v1170_v63 = vsel %vm2732_vm10, %v2425_v1, 0.0  ;;  %v1186_v0 = vsel %vm2733_vm15, %v2425_v1, 0.0  ;;  %v1202_v3 = vsel %vm699_vm0, %v2425_v1, 0.0 }
 0x3fc   :  { %v1218_v4 = vsel %vm712_vm3, %v2425_v1, 0.0  ;;  %v1234_v5 = vsel %vm725_vm2, %v2425_v1, 0.0  ;;  %v1250_v7 = vsel %vm738_vm14, %v2425_v1, 0.0  ;;  %v1266_v8 = vsel %vm751_vm5, %v2425_v1, 0.0 }
 0x3fd   :  { %v117_v10 = vrot.slane %v1867_v9, %v116_v6  ;;  %v1282_v12 = vsel %vm764_vm1, %v2425_v1, 0.0  ;;  %v1298_v37 = vsel %vm777_vm4, %v2425_v1, 0.0  ;;  %vm2734_vm0 = vcmp.eq.s32.totalorder %v2245_v29, 21  ;;  %v1850_v29 = vld [vmem:[%s2693_s7 + $0x10] sm:$0xff]  }
 0x3fe   :  { %1083 = vadd.xlane.f32.xlu1 %v1082_v41  ;;  %1131 = vadd.xlane.f32.xlu0 %v1130_v42  ;;  %v1314_v14 = vsel %vm2734_vm0, %v2425_v1, 0.0  ;;  %v1330_v15 = vsel %vm803_vm13, %v2425_v1, 0.0  ;;  %vm973_vm3 = vcmp.eq.s32.totalorder %v2116_v39, 0  ;;  %vm981_vm14 = vcmp.eq.s32.totalorder %v2116_v39, 32 }
 0x3ff   :  { %v2541_v13 = vadd.f32 %v2125_v45, %v117_v10  ;;  %v1849_v45 = vld [vmem:[%s2693_s7 + $0x18] sm:$0xff]   ;;  %vm1005_vm1 = vcmp.eq.s32.totalorder %v2116_v39, 2  ;;  %vm989_vm2 = vcmp.eq.s32.totalorder %v2116_v39, 1  ;;  %vm1013_vm4 = vcmp.eq.s32.totalorder %v2116_v39, 34 }
 0x400   :  { %1718 = vmatpush3.bf16.msra.mxu1 %v1849_v45  ;;  %vm997_vm5 = vcmp.eq.s32.totalorder %v2116_v39, 33  ;;  %vm1037_vm13 = vcmp.eq.s32.totalorder %v2116_v39, 4  ;;  %vm1021_vm6 = vcmp.eq.s32.totalorder %v2116_v39, 3  ;;  %vm1045_vm11 = vcmp.eq.s32.totalorder %v2116_v39, 36 }
 0x401   :  { %v1434_v17 = vmul.f32 %v1533_v16, %v2541_v13  ;;  %1719 = vmatprep.subr.bf16.mxu1 %v1869_v2  ;;  %vm1029_vm7 = vcmp.eq.s32.totalorder %v2116_v39, 35  ;;  %vm1069_vm8 = vcmp.eq.s32.totalorder %v2116_v39, 6  ;;  %vm1053_vm12 = vcmp.eq.s32.totalorder %v2116_v39, 5 }
 0x402   :  { %1115 = vadd.xlane.f32.xlu1 %v1114_v44  ;;  %1163 = vadd.xlane.f32.xlu0 %v1162_v35  ;;  %vm1077_vm9 = vcmp.eq.s32.totalorder %v2116_v39, 38  ;;  %vm1061_vm10 = vcmp.eq.s32.totalorder %v2116_v39, 37  ;;  %vm1101_vm15 = vcmp.eq.s32.totalorder %v2116_v39, 8  ;;  %vm1085_vm0 = vcmp.eq.s32.totalorder %v2116_v39, 7 }
 0x404   :  { %1720 = vmatpush3.bf16.msra.mxu1 %v1850_v29 }
 0x405   :  { %1721 = vmatprep.subr.bf16.mxu1 %v1869_v2 }
 0x406   :  { %1147 = vadd.xlane.f32.xlu1 %v1146_v27  ;;  %1195 = vadd.xlane.f32.xlu0 %v1194_v46 }
 0x408   :  { %1722 = vmatpush3.bf16.msra.mxu1 %v1851_v18 }
 0x409   :  { %1723 = vmatprep.subr.bf16.mxu1 %v1869_v2 }
 0x40a   :  { %1179 = vadd.xlane.f32.xlu1 %v1178_v47  ;;  %1227 = vadd.xlane.f32.xlu0 %v1226_v48 }
 0x40c   :  { %1724 = vmatpush3.bf16.msra.mxu1 %v1852_v20 }
 0x40e   :  { %1211 = vadd.xlane.f32.xlu1 %v1210_v49  ;;  %1259 = vadd.xlane.f32.xlu0 %v1258_v19 }
 0x412   :  { %1243 = vadd.xlane.f32.xlu1 %v1242_v51  ;;  %1291 = vadd.xlane.f32.xlu0 %v1290_v38 }
 0x416   :  { %1275 = vadd.xlane.f32.xlu1 %v1274_v52  ;;  %1323 = vadd.xlane.f32.xlu0 %v1322_v53 }
 0x41a   :  { %1307 = vadd.xlane.f32.xlu1 %v1306_v28  ;;  %979 = vadd.xlane.f32.xlu0 %v978_v54 }
 0x41e   :  { %995 = vadd.xlane.f32.xlu1 %v994_v55  ;;  %1011 = vadd.xlane.f32.xlu0 %v1010_v56 }
 0x422   :  { %1027 = vadd.xlane.f32.xlu1 %v1026_v57  ;;  %1043 = vadd.xlane.f32.xlu0 %v1042_v58 }
 0x426   :  { %1059 = vadd.xlane.f32.xlu1 %v1058_v26  ;;  %1075 = vadd.xlane.f32.xlu0 %v1074_v59 }
 0x42a   :  { %1091 = vadd.xlane.f32.xlu1 %v1090_v60  ;;  %1107 = vadd.xlane.f32.xlu0 %v1106_v61 }
 0x42e   :  { %1123 = vadd.xlane.f32.xlu1 %v1122_v11  ;;  %1139 = vadd.xlane.f32.xlu0 %v1138_v34 }
 0x432   :  { %1155 = vadd.xlane.f32.xlu1 %v1154_v62  ;;  %1171 = vadd.xlane.f32.xlu0 %v1170_v63 }
 0x436   :  { %1187 = vadd.xlane.f32.xlu1 %v1186_v0  ;;  %1203 = vadd.xlane.f32.xlu0 %v1202_v3 }
 0x43a   :  { %1219 = vadd.xlane.f32.xlu1 %v1218_v4  ;;  %1235 = vadd.xlane.f32.xlu0 %v1234_v5 }
 0x43e   :  { %1251 = vadd.xlane.f32.xlu1 %v1250_v7  ;;  %1267 = vadd.xlane.f32.xlu0 %v1266_v8 }
 0x442   :  { %1283 = vadd.xlane.f32.xlu1 %v1282_v12  ;;  %1299 = vadd.xlane.f32.xlu0 %v1298_v37 }
 0x446   :  { %1315 = vadd.xlane.f32.xlu1 %v1314_v14  ;;  %1331 = vadd.xlane.f32.xlu0 %v1330_v15 }
 0x44a   :  { %1435 = vadd.xlane.f32.xlu0 %v1434_v17 }
 0x477   :  { %v988_v21 = vpop.xlane.xlu0 %987  ;;  %v972_v22 = vpop.xlane.xlu1 %971 }
 0x478   :  { %v976_v52 = vsel %vm973_vm3, %v972_v22, 0.0  ;;  %v992_v58 = vsel %vm989_vm2, %v988_v21, 0.0  ;;  %vm1109_vm3 = vcmp.eq.s32.totalorder %v2116_v39, 40  ;;  %vm1117_vm2 = vcmp.eq.s32.totalorder %v2116_v39, 9 }
 0x47b   :  { %v1036_v23 = vpop.xlane.xlu0 %1035  ;;  %v1004_v24 = vpop.xlane.xlu1 %1003 }
 0x47c   :  { %v1008_v54 = vsel %vm1005_vm1, %v1004_v24, 0.0  ;;  %v1040_v11 = vsel %vm1037_vm13, %v1036_v23, 0.0  ;;  %vm1133_vm1 = vcmp.eq.s32.totalorder %v2116_v39, 10  ;;  %vm1165_vm13 = vcmp.eq.s32.totalorder %v2116_v39, 12 }
 0x47f   :  { %v1068_v1 = vpop.xlane.xlu0 %1067  ;;  %v1020_v25 = vpop.xlane.xlu1 %1019 }
 0x480   :  { %v1024_v34 = vsel %vm1021_vm6, %v1020_v25, 0.0  ;;  %v1072_v8 = vsel %vm1069_vm8, %v1068_v1, 0.0  ;;  %vm1149_vm6 = vcmp.eq.s32.totalorder %v2116_v39, 11  ;;  %vm1197_vm8 = vcmp.eq.s32.totalorder %v2116_v39, 14 }
 0x483   :  { %v2568_v30 = vpop.xlane.xlu0 %1099  ;;  %v1052_v31 = vpop.xlane.xlu1 %1051 }
 0x484   :  { %v1056_v9 = vsel %vm1053_vm12, %v1052_v31, 0.0  ;;  %v1104_v18 = vsel %vm1101_vm15, %v2568_v30, 0.0  ;;  %vm1181_vm12 = vcmp.eq.s32.totalorder %v2116_v39, 13  ;;  %vm1229_vm15 = vcmp.eq.s32.totalorder %v2116_v39, 16 }
 0x487   :  { %v2570_v32 = vpop.xlane.xlu0 %1131  ;;  %v2572_v33 = vpop.xlane.xlu1 %1083 }
 0x488   :  { %v1088_v20 = vsel %vm1085_vm0, %v2572_v33, 0.0  ;;  %vm1213_vm0 = vcmp.eq.s32.totalorder %v2116_v39, 15 }
 0x48b   :  { %v2574_v36 = vpop.xlane.xlu0 %1163  ;;  %v2576_v40 = vpop.xlane.xlu1 %1115 }
 0x48f   :  { %v2578_v41 = vpop.xlane.xlu0 %1195  ;;  %v2580_v42 = vpop.xlane.xlu1 %1147 }
 0x493   :  { %v2582_v44 = vpop.xlane.xlu0 %1227  ;;  %v2584_v35 = vpop.xlane.xlu1 %1179 }
 0x497   :  { %v2586_v27 = vpop.xlane.xlu0 %1259  ;;  %v2588_v46 = vpop.xlane.xlu1 %1211 }
 0x49b   :  { %v2590_v47 = vpop.xlane.xlu0 %1291  ;;  %v2592_v48 = vpop.xlane.xlu1 %1243 }
 0x49f   :  { %v2594_v49 = vpop.xlane.xlu0 %1323  ;;  %v2596_v19 = vpop.xlane.xlu1 %1275 }
 0x4a3   :  { %v980_v51 = vpop.xlane.xlu0 %979  ;;  %v2601_v38 = vpop.xlane.xlu1 %1307 }
 0x4a4   :  { %v984_v53 = vsel %vm981_vm14, %v980_v51, 0.0  ;;  %vm1093_vm14 = vcmp.eq.s32.totalorder %v2116_v39, 39 }
 0x4a5   :  { %v985_v28 = vadd.f32 %v984_v53, %v976_v52 }
 0x4a7   :  { %v1012_v55 = vpop.xlane.xlu0 %1011  ;;  %v1009_v56 = vadd.f32 %v1008_v54, %v985_v28  ;;  %v996_v57 = vpop.xlane.xlu1 %995  ;;  %v1136_v54 = vsel %vm1133_vm1, %v2570_v32, 0.0  ;;  %vm1261_vm1 = vcmp.eq.s32.totalorder %v2116_v39, 18 }
 0x4a8   :  { %v1016_v26 = vsel %vm1013_vm4, %v1012_v55, 0.0  ;;  %v1000_v59 = vsel %vm997_vm5, %v996_v57, 0.0  ;;  %vm1141_vm4 = vcmp.eq.s32.totalorder %v2116_v39, 42  ;;  %vm1125_vm5 = vcmp.eq.s32.totalorder %v2116_v39, 41 }
 0x4a9   :  { %v1017_v60 = vadd.f32 %v1016_v26, %v1009_v56  ;;  %v1001_v61 = vadd.f32 %v1000_v59, %v992_v58 }
 0x4ab   :  { %v1044_v62 = vpop.xlane.xlu0 %1043  ;;  %v1041_v63 = vadd.f32 %v1040_v11, %v1017_v60  ;;  %v1025_v0 = vadd.f32 %v1024_v34, %v1001_v61  ;;  %v1028_v3 = vpop.xlane.xlu1 %1027 }
 0x4ac   :  { %v1048_v4 = vsel %vm1045_vm11, %v1044_v62, 0.0  ;;  %v1032_v5 = vsel %vm1029_vm7, %v1028_v3, 0.0  ;;  %vm1173_vm11 = vcmp.eq.s32.totalorder %v2116_v39, 44  ;;  %v1168_v62 = vsel %vm1165_vm13, %v2574_v36, 0.0 }
 0x4ad   :  { %v1049_v6 = vadd.f32 %v1048_v4, %v1041_v63  ;;  %v1033_v7 = vadd.f32 %v1032_v5, %v1025_v0  ;;  %vm1157_vm7 = vcmp.eq.s32.totalorder %v2116_v39, 43  ;;  %v1200_v36 = vsel %vm1197_vm8, %v2578_v41, 0.0 }
 0x4ae   :  { %v1232_v41 = vsel %vm1229_vm15, %v2582_v44, 0.0  ;;  %v1264_v44 = vsel %vm1261_vm1, %v2586_v27, 0.0  ;;  %vm1293_vm13 = vcmp.eq.s32.totalorder %v2116_v39, 20  ;;  %vm1325_vm8 = vcmp.eq.s32.totalorder %v2116_v39, 22 }
 0x4af   :  { %v1076_v10 = vpop.xlane.xlu0 %1075  ;;  %v1073_v12 = vadd.f32 %v1072_v8, %v1049_v6  ;;  %v1057_v37 = vadd.f32 %v1056_v9, %v1033_v7  ;;  %v1060_v14 = vpop.xlane.xlu1 %1059  ;;  %v1296_v27 = vsel %vm1293_vm13, %v2590_v47, 0.0  ;;  %v1328_v47 = vsel %vm1325_vm8, %v2594_v49, 0.0  ;;  %v1532_v49 = vld [vmem:[%s2694_s8] ss:$0 sm:$0xff] }
 0x4b0   :  { %v1080_v15 = vsel %vm1077_vm9, %v1076_v10, 0.0  ;;  %v1064_v16 = vsel %vm1061_vm10, %v1060_v14, 0.0  ;;  %v910_v17 = vpop.f32.mrf.mxu1  ;;  %vm1205_vm9 = vcmp.eq.s32.totalorder %v2116_v39, 46  ;;  %vm1189_vm10 = vcmp.eq.s32.totalorder %v2116_v39, 45 }
 0x4b1   :  { %v1081_v45 = vadd.f32 %v1080_v15, %v1073_v12  ;;  %v1065_v29 = vadd.f32 %v1064_v16, %v1057_v37  ;;  %v916_v25 = vmul.f32 %v2123_v43, %v910_v17  ;;  %v1120_v43 = vsel %vm1117_vm2, %v2576_v40, 0.0 }
 0x4b2   :  { %v1695_v21 = vpop.f32.mrf.mxu1  ;;  %v1152_v40 = vsel %vm1149_vm6, %v2580_v42, 0.0  ;;  %v1184_v42 = vsel %vm1181_vm12, %v2584_v35, 0.0  ;;  %v1216_v35 = vsel %vm1213_vm0, %v2588_v46, 0.0  ;;  %vm1245_vm2 = vcmp.eq.s32.totalorder %v2116_v39, 17 }
 0x4b3   :  { %v962_v22 = vpop.f32.mrf.mxu0  ;;  %v1108_v23 = vpop.xlane.xlu0 %1107  ;;  %v1105_v24 = vadd.f32 %v1104_v18, %v1081_v45  ;;  %v1089_v1 = vadd.f32 %v1088_v20, %v1065_v29  ;;  %v1248_v46 = vsel %vm1245_vm2, %v2592_v48, 0.0  ;;  %vm1277_vm6 = vcmp.eq.s32.totalorder %v2116_v39, 19 }
 0x4b4   :  { %v968_v31 = vmul.f32 %v2155_v50, %v962_v22  ;;  %v1112_v51 = vsel %vm1109_vm3, %v1108_v23, 0.0  ;;  %v1092_v52 = vpop.xlane.xlu1 %1091  ;;  %v913_v30 = vpop.f32.mrf.mxu1  ;;  %vm1237_vm3 = vcmp.eq.s32.totalorder %v2116_v39, 48  ;;  %v1280_v48 = vsel %vm1277_vm6, %v2596_v19, 0.0 }
 0x4b5   :  { %v1113_v53 = vadd.f32 %v1112_v51, %v1105_v24  ;;  %v1096_v33 = vsel %vm1093_vm14, %v1092_v52, 0.0  ;;  %v1715_v28 = vpop.f32.mrf.mxu0  ;;  %vm1221_vm14 = vcmp.eq.s32.totalorder %v2116_v39, 47  ;;  %vm1309_vm12 = vcmp.eq.s32.totalorder %v2116_v39, 21 }
 0x4b6   :  { %v1097_v55 = vadd.f32 %v1096_v33, %v1089_v1  ;;  %v1696_v56 = vpop.f32.mrf.mxu1  ;;  %v2627_v57 = vadd.f32 %v968_v31, %v916_v25  ;;  %vm1372_vm15 = vcmask 523264   ;;  %vm2735_vm0 = vcmp.lt.s32.totalorder %v2116_v39, 16 }
 0x4b7   :  { %v965_v50 = vpop.f32.mrf.mxu0  ;;  %v1140_v58 = vpop.xlane.xlu0 %1139  ;;  %v1137_v26 = vadd.f32 %v1136_v54, %v1113_v53 }
 0x4b8   :  { %v1144_v59 = vsel %vm1141_vm4, %v1140_v58, 0.0  ;;  %v1121_v60 = vadd.f32 %v1120_v43, %v1097_v55  ;;  %v1124_v32 = vpop.xlane.xlu1 %1123  ;;  %vm1269_vm4 = vcmp.eq.s32.totalorder %v2116_v39, 50 }
 0x4b9   :  { %v1145_v61 = vadd.f32 %v1144_v59, %v1137_v26  ;;  %v1128_v11 = vsel %vm1125_vm5, %v1124_v32, 0.0  ;;  %v1716_v34 = vpop.f32.mrf.mxu0  ;;  %vm1253_vm5 = vcmp.eq.s32.totalorder %v2116_v39, 49 }
 0x4ba   :  { %v1129_v63 = vadd.f32 %v1128_v11, %v1121_v60  ;;  %v1312_v60 = vsel %vm1309_vm12, %v2601_v38, 0.0 }
 0x4bb   :  { %v1172_v0 = vpop.xlane.xlu0 %1171  ;;  %v1169_v3 = vadd.f32 %v1168_v62, %v1145_v61 }
 0x4bc   :  { %v1176_v4 = vsel %vm1173_vm11, %v1172_v0, 0.0  ;;  %v1153_v5 = vadd.f32 %v1152_v40, %v1129_v63  ;;  %v1156_v6 = vpop.xlane.xlu1 %1155  ;;  %vm1301_vm11 = vcmp.eq.s32.totalorder %v2116_v39, 52 }
 0x4bd   :  { %v1177_v7 = vadd.f32 %v1176_v4, %v1169_v3  ;;  %v1160_v8 = vsel %vm1157_vm7, %v1156_v6, 0.0  ;;  %vm1285_vm7 = vcmp.eq.s32.totalorder %v2116_v39, 51 }
 0x4be   :  { %v1161_v9 = vadd.f32 %v1160_v8, %v1153_v5 }
 0x4bf   :  { %v1204_v10 = vpop.xlane.xlu0 %1203  ;;  %v1201_v12 = vadd.f32 %v1200_v36, %v1177_v7 }
 0x4c0   :  { %v1208_v37 = vsel %vm1205_vm9, %v1204_v10, 0.0  ;;  %v1185_v14 = vadd.f32 %v1184_v42, %v1161_v9  ;;  %v1188_v15 = vpop.xlane.xlu1 %1187  ;;  %vm1333_vm9 = vcmp.eq.s32.totalorder %v2116_v39, 54 }
 0x4c1   :  { %v1209_v16 = vadd.f32 %v1208_v37, %v1201_v12  ;;  %v1192_v17 = vsel %vm1189_vm10, %v1188_v15, 0.0  ;;  %vm1317_vm10 = vcmp.eq.s32.totalorder %v2116_v39, 53 }
 0x4c2   :  { %v1193_v45 = vadd.f32 %v1192_v17, %v1185_v14 }
 0x4c3   :  { %v1236_v29 = vpop.xlane.xlu0 %1235  ;;  %v1233_v18 = vadd.f32 %v1232_v41, %v1209_v16 }
 0x4c4   :  { %v1240_v20 = vsel %vm1237_vm3, %v1236_v29, 0.0  ;;  %v1217_v21 = vadd.f32 %v1216_v35, %v1193_v45  ;;  %v1220_v22 = vpop.xlane.xlu1 %1219  ;;  %v1535_v35 = vsel %vm2735_vm0, 1.0, %v1869_v2 }
 0x4c5   :  { %v1241_v23 = vadd.f32 %v1240_v20, %v1233_v18  ;;  %v1224_v24 = vsel %vm1221_vm14, %v1220_v22, 0.0 }
 0x4c6   :  { %v1225_v1 = vadd.f32 %v1224_v24, %v1217_v21 }
 0x4c7   :  { %v1268_v25 = vpop.xlane.xlu0 %1267  ;;  %v1265_v31 = vadd.f32 %v1264_v44, %v1241_v23 }
 0x4c8   :  { %v1272_v51 = vsel %vm1269_vm4, %v1268_v25, 0.0  ;;  %v1249_v52 = vadd.f32 %v1248_v46, %v1225_v1  ;;  %v1252_v30 = vpop.xlane.xlu1 %1251  ;;  %v1537_v1 = vld [vmem:[%s2696_s11] ss:$0 sm:$0xff] }
 0x4c9   :  { %v1273_v53 = vadd.f32 %v1272_v51, %v1265_v31  ;;  %v1256_v33 = vsel %vm1253_vm5, %v1252_v30, 0.0 }
 0x4ca   :  { %v1257_v28 = vadd.f32 %v1256_v33, %v1249_v52 }
 0x4cb   :  { %v1300_v54 = vpop.xlane.xlu0 %1299  ;;  %v1297_v55 = vadd.f32 %v1296_v27, %v1273_v53 }
 0x4cc   :  { %v1304_v56 = vsel %vm1301_vm11, %v1300_v54, 0.0  ;;  %v1281_v43 = vadd.f32 %v1280_v48, %v1257_v28  ;;  %v1284_v50 = vpop.xlane.xlu1 %1283 }
 0x4cd   :  { %v1305_v58 = vadd.f32 %v1304_v56, %v1297_v55  ;;  %v1288_v26 = vsel %vm1285_vm7, %v1284_v50, 0.0 }
 0x4ce   :  { %v1289_v59 = vadd.f32 %v1288_v26, %v1281_v43 }
 0x4cf   :  { %v1332_v32 = vpop.xlane.xlu0 %1331  ;;  %v1329_v19 = vadd.f32 %v1328_v47, %v1305_v58 }
 0x4d0   :  { %v1336_v61 = vsel %vm1333_vm9, %v1332_v32, 0.0  ;;  %v1313_v11 = vadd.f32 %v1312_v60, %v1289_v59  ;;  %v1316_v34 = vpop.xlane.xlu1 %1315 }
 0x4d1   :  { %v1337_v62 = vadd.f32 %v1336_v61, %v1329_v19  ;;  %v1320_v63 = vsel %vm1317_vm10, %v1316_v34, 0.0 }
 0x4d2   :  { %v1321_v40 = vadd.f32 %v1320_v63, %v1313_v11 }
 0x4d3   :  { %v1436_v36 = vpop.xlane.xlu0 %1435 }
 0x4d4   :  { %v1338_v0 = vadd.f32 %v1337_v62, %v1321_v40 }
 0x4d6   :  { %v1339_v3 = vpack.c.bf16 %v1338_v0, %v1338_v0 }
 0x4d8   :  { %1726 = vmatmul.mubr.msk.bf16.vlgmr.msra.gmra.mxu1 %vm1372_vm15, %v1339_v3 }
 0x598   :  { %v1410_v4 = vpop.f32.mrf.mxu1 }
 0x599   :  { %v1416_v5 = vadd.f32 %v1410_v4, %v2627_v57 }
 0x59a   :  { %v1727_v38 = vpop.f32.mrf.mxu1 }
 0x59b   :  { %v1424_v6 = vmul.f32 %v1532_v49, %v1416_v5 }
 0x59c   :  { %v1413_v7 = vpop.f32.mrf.mxu1 }
 0x59d   :  { %1425 = vadd.xlane.f32.xlu1 %v1424_v6 }
 0x59e   :  { %v1728_v8 = vpop.f32.mrf.mxu1 }
 0x626   :  { %v1426_v9 = vpop.xlane.xlu1 %1425 }
 0x627   :  { %v1437_v42 = vadd.f32 %v1436_v36, %v1426_v9 }
 0x629   :  { %v1534_v10 = vmul.f32 -1.442695, %v1437_v42 }
 0x62b   :  { %1861 = vpow2.f32 %v1534_v10 }
 0x638   :  { %v1862_v12 = vpop.eup %1861 }
 0x639   :  { %v1441_v37 = vadd.f32 1.0, %v1862_v12 }
 0x63b   :  { %1863 = vrcp.f32 %v1441_v37 }
 0x648   :  { %v1864_v14 = vpop.eup %1863 }
 0x649   :  { %v1445_v15 = vsub.f32 1.0, %v1864_v14  ;;  %v1444_v16 = vmul.f32 %v1864_v14, %v2541_v13  ;;  %v1536_v13 = vld [vmem:[%s2695_s10] ss:$0 sm:$0xff] }
 0x64b   :  { %v1446_v17 = vmul.f32 %v1445_v15, %v1416_v5 }
 0x64d   :  { %v1447_v41 = vadd.f32 %v1446_v17, %v1444_v16 }
 0x64f   :  { %1450 = vadd.xlane.f32.xlu1 %v1447_v41 }
 0x6d8   :  { %v1451_v57 = vpop.xlane.xlu1 %1450 }
 0x6d9   :  { %v1452_v45 = vmul.f32 0.0625, %v1451_v57 }
 0x6db   :  { %v1453_v29 = vsub.f32 %v1447_v41, %v1452_v45 }
 0x6dd   :  { %v1454_v18 = vmul.f32 %v1535_v35, %v1453_v29 }
 0x6df   :  { %v1455_v20 = vmul.f32 %v1454_v18, %v1454_v18 }
 0x6e1   :  { %1456 = vadd.xlane.f32.xlu0 %v1455_v20 }
 0x76a   :  { %v1457_v21 = vpop.xlane.xlu0 %1456 }
 0x76b   :  { %v1458_v22 = vmul.f32 0.0625, %v1457_v21 }
 0x76d   :  { %v1459_v23 = vadd.f32 1e-05, %v1458_v22 }
 0x76f   :  { %1865 = vrsqrt.f32 %v1459_v23 }
 0x77c   :  { %v1866_v24 = vpop.eup %1865 }
 0x77d   :  { %v1461_v44 = vmul.f32 %v1866_v24, %v1454_v18 }
 0x77f   :  { %v1469_v39 = vmul.f32 %v1536_v13, %v1461_v44 }
 0x781   :  { %v1477_v2 = vadd.f32 %v1537_v1, %v1469_v39 }
 0x783   :  { %v1478_v46 = vmax.f32 %v1477_v2, 0.0 }
 0x785   :  { %v1479_v25 = vpack.c.bf16 %v1478_v46, %v1478_v46 }
 0x787   :  { %1480 = vst [vmem:[%s2697_s12] sm:$0xf] %v1479_v25 }

// kernel: forward.7
= control target key start
LH: loop header
LB: loop body
LE: loop exit
PB: predicated region body
PF: predicated region fallthrough
CT: control target
= control target key end

     0   :  { %v1988_v1 = vmov 0   ;;  %v1989_v2 = vmov 0.0   ;;  %vm2869_vm0 = vmmov 0   ;;  %v1991_v35 = vmov 2   ;;  %s2857_s4 = inlined_call_operand.vmem [shape: bf16[128,256], index: 4, kind: input, shape index: {}]   ;;  %s2858_s2 = inlined_call_operand.vmem [shape: bf16[128,128], index: 2, kind: input, shape index: {}]   ;;  %s2859_s6 = inlined_call_operand.vmem [shape: bf16[128,32], index: 6, kind: input, shape index: {}]   ;;  %s2860_s0 = inlined_call_operand.vmem [shape: bf16[8,128], index: 0, kind: input, shape index: {}]   ;;  %s2861_s5 = inlined_call_operand.vmem [shape: f32[1,256], index: 5, kind: input, shape index: {}]   ;;  %s2862_s1 = inlined_call_operand.vmem [shape: s32[8,128], index: 1, kind: input, shape index: {}]   ;;  %s2863_s3 = inlined_call_operand.vmem [shape: bf16[128,128], index: 3, kind: input, shape index: {}]   ;;  %s2864_s9 = inlined_call_operand.vmem [shape: f32[1,128], index: 9, kind: input, shape index: {}]   ;;  %s2865_s7 = inlined_call_operand.vmem [shape: bf16[64,128], index: 7, kind: input, shape index: {}]   ;;  %s2866_s10 = inlined_call_operand.vmem [shape: f32[128,128], index: 10, kind: input, shape index: {}]   ;;  %s2867_s8 = inlined_call_operand.vmem [shape: f32[1,128], index: 8, kind: input, shape index: {}]   ;;  %s2868_s11 = inlined_call_operand.vmem [shape: f32[8,128], index: 11, kind: output, shape index: {}]  }
   0x1   :  { %v1919_v0 = vld [vmem:[%s2857_s4 + $0x74] ss:$8 sps:$4 sm:$0xff]   ;;  %229 = vmatprep.mubr.bf16.mxu0 %v1988_v1  ;;  %1680 = vmatprep.subr.bf16.mxu1 %v1989_v2  ;;  %v1921_v3 = vld [vmem:[%s2857_s4 + $0x70] ss:$8 sps:$4 sm:$0xff]   ;;  %v1922_v4 = vld [vmem:[%s2857_s4 + $0x64] ss:$8 sps:$4 sm:$0xff]   ;;  %v107_v36 = vlaneseq }
   0x2   :  { %1873 = vset.pattern.permute.xlu0 %v1988_v1  ;;  %197 = vmatprep.subr.bf16.mxu0 %v1919_v0  ;;  %v1924_v5 = vld [vmem:[%s2857_s4 + $0x60] ss:$8 sps:$4 sm:$0xff]   ;;  %v1925_v6 = vld [vmem:[%s2857_s4 + $0x54] ss:$8 sps:$4 sm:$0xff]   ;;  %v1927_v7 = vld [vmem:[%s2857_s4 + $0x50] ss:$8 sps:$4 sm:$0xff]  }
   0x3   :  { %198 = vmatpush1.bf16.msra.mxu0 %v1921_v3  ;;  %v1928_v8 = vld [vmem:[%s2857_s4 + $0x44] ss:$8 sps:$4 sm:$0xff]   ;;  %v1930_v9 = vld [vmem:[%s2857_s4 + $0x40] ss:$8 sps:$4 sm:$0xff]   ;;  %v2104_v10 = vld [vmem:[%s2858_s2 + $0x38] sm:$0xff]   ;;  %1696 = vmatprep.mubr.msk.bf16.mxu1 %vm2869_vm0, %v1989_v2  ;;  %v2228_v37 = vshrl.u32 %v107_v36, 7 }
   0x4   :  { %199 = vmatprep.subr.bf16.mxu0 %v1922_v4  ;;  %v1931_v11 = vld [vmem:[%s2857_s4 + $0x34] ss:$8 sps:$4 sm:$0xff]   ;;  %1681 = vmatpush3.bf16.msra.mxu1 %v2104_v10  ;;  %v1933_v13 = vld [vmem:[%s2857_s4 + $0x30] ss:$8 sps:$4 sm:$0xff]   ;;  %v1934_v14 = vld [vmem:[%s2857_s4 + $0x24] ss:$8 sps:$4 sm:$0xff]  }
   0x5   :  { %v2113_v12 = vld [vmem:[%s2858_s2 + $0x30] sm:$0xff]   ;;  %1682 = vmatprep.subr.bf16.mxu1 %v1989_v2  ;;  %v2126_v15 = vld [vmem:[%s2858_s2 + $0x28] sm:$0xff]   ;;  %v2139_v18 = vld [vmem:[%s2858_s2 + $0x20] sm:$0xff]   ;;  %1874 = vset.pattern.permute.xlu1 %v1991_v35  ;;  %v109_v38 = vsub.s32 0, %v2228_v37  ;;  %v2231_v39 = vand.u32 127, %v107_v36  ;;  %v1992_v59 = vmov 3  }
   0x6   :  { %v1936_v16 = vld [vmem:[%s2857_s4 + $0x20] ss:$8 sps:$4 sm:$0xff]   ;;  %v1937_v17 = vld [vmem:[%s2857_s4 + $0x14] ss:$8 sps:$4 sm:$0xff]   ;;  %v1939_v19 = vld [vmem:[%s2857_s4 + $0x10] ss:$8 sps:$4 sm:$0xff]  }
   0x7   :  { %200 = vmatpush1.bf16.msra.mxu0 %v1924_v5  ;;  %v1940_v20 = vld [vmem:[%s2857_s4 + $0x4] ss:$8 sps:$4 sm:$0xff]   ;;  %v2152_v21 = vld [vmem:[%s2858_s2 + $0x18] sm:$0xff]   ;;  %v1942_v22 = vld [vmem:[%s2857_s4] ss:$8 sps:$4 sm:$0xff]   ;;  %vm243_vm1 = vcmp.lt.s32.totalorder %v2231_v39, 5 }
   0x8   :  { %201 = vmatprep.subr.bf16.mxu0 %v1925_v6  ;;  %1683 = vmatpush3.bf16.msra.mxu1 %v2113_v12  ;;  %v2162_v23 = vld [vmem:[%s2858_s2 + $0x10] sm:$0xff]   ;;  %v39_v24 = vld [vmem:[%s2860_s0] sm:$0xf]  ;;  %v1944_v25 = vld [vmem:[%s2859_s6 + $0x38] sm:$0xff]   ;;  %v2238_v43 = vsel %vm243_vm1, 1.0, %v1989_v2  ;;  %vm425_vm2 = vcmp.ge.s32.totalorder %v2231_v39, 5 }
   0x9   :  { %1684 = vmatprep.subr.bf16.mxu1 %v1989_v2  ;;  %v2176_v26 = vld [vmem:[%s2858_s2 + $0x8] sm:$0xff]   ;;  %v1946_v27 = vld [vmem:[%s2859_s6 + $0x30] sm:$0xff]   ;;  %v1950_v29 = vld [vmem:[%s2859_s6 + $0x20] sm:$0xff]   ;;  %vm426_vm3 = vcmp.lt.s32.totalorder %v2231_v39, 10  ;;  %v1993_v60 = vmov 1   ;;  %v1994_v63 = vmov 4  }
   0xa   :  { %v1948_v28 = vld [vmem:[%s2859_s6 + $0x28] sm:$0xff]   ;;  %v1952_v30 = vld [vmem:[%s2859_s6 + $0x18] sm:$0xff]   ;;  %v1954_v31 = vld [vmem:[%s2859_s6 + $0x10] sm:$0xff]   ;;  %v1995_v0 = vmov 5   ;;  %v1996_v3 = vmov 6   ;;  %v1997_v4 = vmov 8  }
   0xb   :  { %202 = vmatpush1.bf16.msra.mxu0 %v1927_v7  ;;  %v2204_v32 = vld [vmem:[%s2859_s6 + $0x8] sm:$0xff]   ;;  %v2212_v33 = vld [vmem:[%s2858_s2] sm:$0xff]   ;;  %vm427_vm4 = vmand %vm425_vm2, %vm426_vm3  ;;  %v1998_v5 = vmov 7   ;;  %v1999_v6 = vmov 11   ;;  %v2000_v7 = vmov 9  }
   0xc   :  { %203 = vmatprep.subr.bf16.mxu0 %v1928_v8  ;;  %1685 = vmatpush3.bf16.msra.mxu1 %v2126_v15  ;;  %v2217_v34 = vld [vmem:[%s2859_s6] sm:$0xff]   ;;  %v2268_v50 = vsel %vm427_vm4, 1.0, %v1989_v2  ;;  %v2001_v8 = vmov 14  }
   0xd   :  { %1686 = vmatprep.subr.bf16.mxu1 %v1989_v2  ;;  %v105_v40 = vld [vmem:[%s2861_s5] sm:$0x3] }
   0xe   :  { %v110_v41 = vrot.slane %v105_v40, %v109_v38 }
   0xf   :  { %204 = vmatpush1.bf16.msra.mxu0 %v1930_v9  ;;  %v2002_v9 = vmov 10  }
  0x10   :  { %205 = vmatprep.subr.bf16.mxu0 %v1931_v11  ;;  %1687 = vmatpush3.bf16.msra.mxu1 %v2139_v18 }
  0x11   :  { %1688 = vmatprep.subr.bf16.mxu1 %v1989_v2 }
  0x13   :  { %206 = vmatpush1.bf16.msra.mxu0 %v1933_v13 }
  0x14   :  { %207 = vmatprep.subr.bf16.mxu0 %v1934_v14  ;;  %1689 = vmatpush3.bf16.msra.mxu1 %v2152_v21 }
  0x15   :  { %1690 = vmatprep.subr.bf16.mxu1 %v1989_v2 }
  0x17   :  { %208 = vmatpush1.bf16.msra.mxu0 %v1936_v16  ;;  %v2005_v16 = vmov 20  }
  0x18   :  { %209 = vmatprep.subr.bf16.mxu0 %v1937_v17  ;;  %1691 = vmatpush3.bf16.msra.mxu1 %v2162_v23 }
  0x19   :  { %1692 = vmatprep.subr.bf16.mxu1 %v1989_v2 }
  0x1b   :  { %210 = vmatpush1.bf16.msra.mxu0 %v1939_v19 }
  0x1c   :  { %211 = vmatprep.subr.bf16.mxu0 %v1940_v20  ;;  %1693 = vmatpush3.bf16.msra.mxu1 %v2176_v26 }
  0x1d   :  { %1694 = vmatprep.subr.bf16.mxu1 %v1989_v2 }
  0x1f   :  { %212 = vmatpush1.bf16.msra.mxu0 %v1942_v22  ;;  %v2007_v22 = vmov 15  }
  0x20   :  { %1700 = vmatprep.subr.bf16.mxu0 %v1989_v2  ;;  %1695 = vmatpush3.bf16.msra.mxu1 %v2212_v33 }
  0x21   :  { %1720 = vmatprep.subr.bf16.mxu1 %v1989_v2 }
  0x22   :  { %230 = vmatmul.mubr.bf16.vlgmr.msra.gmra.mxu0 %v39_v24  ;;  %v2009_v24 = vmov 18  }
  0x23   :  { %1701 = vmatpush3.bf16.msra.mxu0 %v1944_v25  ;;  %1716 = vmatprep.mubr.msk.bf16.mxu0 %vm2869_vm0, %v1989_v2 }
  0x24   :  { %1702 = vmatprep.subr.bf16.mxu0 %v1989_v2 }
  0x27   :  { %1703 = vmatpush3.bf16.msra.mxu0 %v1946_v27 }
  0x28   :  { %1704 = vmatprep.subr.bf16.mxu0 %v1989_v2 }
  0x2b   :  { %1705 = vmatpush3.bf16.msra.mxu0 %v1948_v28 }
  0x2c   :  { %1706 = vmatprep.subr.bf16.mxu0 %v1989_v2 }
  0x2f   :  { %1707 = vmatpush3.bf16.msra.mxu0 %v1950_v29 }
  0x30   :  { %1708 = vmatprep.subr.bf16.mxu0 %v1989_v2 }
  0x33   :  { %1709 = vmatpush3.bf16.msra.mxu0 %v1952_v30 }
  0x34   :  { %1710 = vmatprep.subr.bf16.mxu0 %v1989_v2 }
  0x37   :  { %1711 = vmatpush3.bf16.msra.mxu0 %v1954_v31 }
  0x38   :  { %1712 = vmatprep.subr.bf16.mxu0 %v1989_v2 }
  0x3b   :  { %1713 = vmatpush3.bf16.msra.mxu0 %v2204_v32 }
  0x3c   :  { %1714 = vmatprep.subr.bf16.mxu0 %v1989_v2 }
  0x3f   :  { %1715 = vmatpush3.bf16.msra.mxu0 %v2217_v34 }
  0x40   :  { %1740 = vmatprep.subr.bf16.mxu0 %v1989_v2 }
  0xe2   :  { %v231_v42 = vpop.f32.mrf.mxu0 }
  0xe3   :  { %v232_v44 = vadd.f32 %v231_v42, %v110_v41 }
  0xe4   :  { %v2240_v45 = vpop.f32.mrf.mxu0 }
  0xe5   :  { %v247_v46 = vmul.f32 %v2238_v43, %v232_v44  ;;  %v430_v51 = vmul.f32 %v2268_v50, %v232_v44 }
  0xe6   :  { %v235_v47 = vpop.f32.mrf.mxu0 }
  0xe7   :  { %v248_v48 = vpack.c.bf16 %v247_v46, %v247_v46  ;;  %v431_v52 = vpack.c.bf16 %v430_v51, %v430_v51 }
  0xe8   :  { %v236_v49 = vpop.f32.mrf.mxu0 }
  0xe9   :  { %1697 = vmatmul.mubr.bf16.vlgmr.msra.gmra.mxu1 %v248_v48  ;;  %1717 = vmatmul.mubr.bf16.vlgmr.msra.gmra.mxu0 %v248_v48 }
  0xea   :  { %1721 = vmatpush3.bf16.msra.mxu1 %v2104_v10  ;;  %1741 = vmatpush3.bf16.msra.mxu0 %v1944_v25  ;;  %v2003_v10 = vmov 17   ;;  %v2011_v25 = vmov 21  }
  0xeb   :  { %1722 = vmatprep.subr.bf16.mxu1 %v1989_v2  ;;  %1742 = vmatprep.subr.bf16.mxu0 %v1989_v2 }
  0xec   :  { %1736 = vmatprep.mubr.msk.bf16.mxu1 %vm2869_vm0, %v1989_v2  ;;  %1756 = vmatprep.mubr.msk.bf16.mxu0 %vm2869_vm0, %v1989_v2 }
  0xee   :  { %1723 = vmatpush3.bf16.msra.mxu1 %v2113_v12  ;;  %1743 = vmatpush3.bf16.msra.mxu0 %v1946_v27 }
  0xef   :  { %1724 = vmatprep.subr.bf16.mxu1 %v1989_v2  ;;  %1744 = vmatprep.subr.bf16.mxu0 %v1989_v2 }
  0xf2   :  { %1725 = vmatpush3.bf16.msra.mxu1 %v2126_v15  ;;  %1745 = vmatpush3.bf16.msra.mxu0 %v1948_v28  ;;  %v2004_v15 = vmov 12  }
  0xf3   :  { %1726 = vmatprep.subr.bf16.mxu1 %v1989_v2  ;;  %1746 = vmatprep.subr.bf16.mxu0 %v1989_v2 }
  0xf6   :  { %1727 = vmatpush3.bf16.msra.mxu1 %v2139_v18  ;;  %1747 = vmatpush3.bf16.msra.mxu0 %v1950_v29  ;;  %v2358_v29 = vld [vmem:[%s2862_s1] sm:$0xff] }
  0xf7   :  { %1728 = vmatprep.subr.bf16.mxu1 %v1989_v2  ;;  %1748 = vmatprep.subr.bf16.mxu0 %v1989_v2  ;;  %vm238_vm5 = vcmp.ge.s32.totalorder %v2358_v29, 0  ;;  %vm512_vm6 = vcmp.eq.s32.totalorder %v2358_v29, 0  ;;  %vm2879_vm7 = vcmp.eq.s32.totalorder %v2358_v29, 2  ;;  %vm2880_vm8 = vcmp.eq.s32.totalorder %v2358_v29, 4 }
  0xf8   :  { %vm2882_vm9 = vcmp.eq.s32.totalorder %v2358_v29, 6  ;;  %vm2883_vm10 = vcmp.eq.s32.totalorder %v2358_v29, 3  ;;  %vm2881_vm11 = vcmp.eq.s32.totalorder %v2358_v29, 1  ;;  %vm579_vm12 = vcmp.eq.s32.totalorder %v2358_v29, 5 }
  0xf9   :  { %vm2874_vm13 = vcmp.eq.s32.totalorder %v2358_v29, 8  ;;  %vm2875_vm14 = vcmp.eq.s32.totalorder %v2358_v29, 10  ;;  %vm2873_vm15 = vcmp.eq.s32.totalorder %v2358_v29, 7  ;;  %vm2876_vm1 = vcmp.eq.s32.totalorder %v2358_v29, 9 }
  0xfa   :  { %1729 = vmatpush3.bf16.msra.mxu1 %v2152_v21  ;;  %1749 = vmatpush3.bf16.msra.mxu0 %v1952_v30  ;;  %v2006_v21 = vmov 13   ;;  %vm2871_vm2 = vcmp.eq.s32.totalorder %v2358_v29, 12  ;;  %vm2877_vm3 = vcmp.eq.s32.totalorder %v2358_v29, 11  ;;  %vm2872_vm4 = vcmp.eq.s32.totalorder %v2358_v29, 13 }
  0xfb   :  { %1730 = vmatprep.subr.bf16.mxu1 %v1989_v2  ;;  %1750 = vmatprep.subr.bf16.mxu0 %v1989_v2 }
  0xfe   :  { %1731 = vmatpush3.bf16.msra.mxu1 %v2162_v23  ;;  %1751 = vmatpush3.bf16.msra.mxu0 %v1954_v31  ;;  %v2008_v23 = vmov 16  }
  0xff   :  { %1732 = vmatprep.subr.bf16.mxu1 %v1989_v2  ;;  %1752 = vmatprep.subr.bf16.mxu0 %v1989_v2 }
 0x102   :  { %1733 = vmatpush3.bf16.msra.mxu1 %v2176_v26  ;;  %1753 = vmatpush3.bf16.msra.mxu0 %v2204_v32  ;;  %v2012_v26 = vmov 22  }
 0x103   :  { %1734 = vmatprep.subr.bf16.mxu1 %v1989_v2  ;;  %1754 = vmatprep.subr.bf16.mxu0 %v1989_v2 }
 0x106   :  { %1735 = vmatpush3.bf16.msra.mxu1 %v2212_v33  ;;  %1755 = vmatpush3.bf16.msra.mxu0 %v2217_v34  ;;  %v2013_v33 = vmov -1e+30  }
 0x107   :  { %1760 = vmatprep.subr.bf16.mxu1 %v1989_v2  ;;  %1780 = vmatprep.subr.bf16.mxu0 %v1989_v2  ;;  %v2364_v34 = vsel %vm238_vm5, 0.0, %v2013_v33  ;;  %vm709_vm5 = vcmp.eq.s32.totalorder %v2358_v29, 15 }
 0x109   :  { %1737 = vmatmul.mubr.bf16.vlgmr.msra.gmra.mxu1 %v431_v52  ;;  %1757 = vmatmul.mubr.bf16.vlgmr.msra.gmra.mxu0 %v431_v52 }
 0x10a   :  { %1776 = vmatprep.mubr.msk.bf16.mxu1 %vm2869_vm0, %v1989_v2  ;;  %1796 = vmatprep.mubr.msk.bf16.mxu0 %vm2869_vm0, %v1989_v2  ;;  %vm696_vm0 = vcmp.eq.s32.totalorder %v2358_v29, 14 }
 0x1a9   :  { %v2283_v53 = vpop.f32.mrf.mxu1  ;;  %v2285_v54 = vpop.f32.mrf.mxu0 }
 0x1aa   :  { %542 = vperm.xlu1 %1874, %v2285_v54   ;;  %515 = vperm.xlu0 %1873, %v2285_v54   ;;  %v332_v38 = vadd.f32 %v2283_v53, %v2364_v34 }
 0x1ab   :  { %v1698_v55 = vpop.f32.mrf.mxu1  ;;  %v1718_v56 = vpop.f32.mrf.mxu0 }
 0x1ad   :  { %v334_v57 = vpop.f32.mrf.mxu1  ;;  %v422_v58 = vpop.f32.mrf.mxu0 }
 0x1ae   :  { %1876 = vset.pattern.permute.xlu1 %v1992_v59  ;;  %1875 = vset.pattern.permute.xlu0 %v1993_v60 }
 0x1af   :  { %555 = vperm.xlu1 %1876, %v2285_v54   ;;  %529 = vperm.xlu0 %1875, %v2285_v54   ;;  %v1699_v61 = vpop.f32.mrf.mxu1  ;;  %v1719_v62 = vpop.f32.mrf.mxu0 }
 0x1b3   :  { %1877 = vset.pattern.permute.xlu1 %v1994_v63  ;;  %1878 = vset.pattern.permute.xlu0 %v1995_v0 }
 0x1b4   :  { %568 = vperm.xlu1 %1877, %v2285_v54   ;;  %581 = vperm.xlu0 %1878, %v2285_v54  }
 0x1b8   :  { %1879 = vset.pattern.permute.xlu1 %v1996_v3  ;;  %1881 = vset.pattern.permute.xlu0 %v1997_v4 }
 0x1b9   :  { %594 = vperm.xlu1 %1879, %v2285_v54   ;;  %620 = vperm.xlu0 %1881, %v2285_v54  }
 0x1bd   :  { %1880 = vset.pattern.permute.xlu1 %v1998_v5  ;;  %1884 = vset.pattern.permute.xlu0 %v1999_v6 }
 0x1be   :  { %607 = vperm.xlu1 %1880, %v2285_v54   ;;  %659 = vperm.xlu0 %1884, %v2285_v54  }
 0x1c2   :  { %1882 = vset.pattern.permute.xlu1 %v2000_v7  ;;  %1887 = vset.pattern.permute.xlu0 %v2001_v8 }
 0x1c3   :  { %633 = vperm.xlu1 %1882, %v2285_v54   ;;  %698 = vperm.xlu0 %1887, %v2285_v54  }
 0x1c7   :  { %1883 = vset.pattern.permute.xlu1 %v2002_v9  ;;  %1890 = vset.pattern.permute.xlu0 %v2003_v10 }
 0x1c8   :  { %646 = vperm.xlu1 %1883, %v2285_v54   ;;  %737 = vperm.xlu0 %1890, %v2285_v54  }
 0x1c9   :  { %v2310_v11 = vpop.f32.mrf.mxu1  ;;  %v2312_v12 = vpop.f32.mrf.mxu0 }
 0x1cb   :  { %v1738_v13 = vpop.f32.mrf.mxu1  ;;  %v1758_v14 = vpop.f32.mrf.mxu0 }
 0x1cc   :  { %1885 = vset.pattern.permute.xlu1 %v2004_v15  ;;  %1893 = vset.pattern.permute.xlu0 %v2005_v16 }
 0x1cd   :  { %v469_v17 = vpop.f32.mrf.mxu1  ;;  %v509_v18 = vpop.f32.mrf.mxu0  ;;  %672 = vperm.xlu1 %1885, %v2285_v54   ;;  %776 = vperm.xlu0 %1893, %v2285_v54  }
 0x1cf   :  { %v1739_v19 = vpop.f32.mrf.mxu1  ;;  %v1759_v20 = vpop.f32.mrf.mxu0 }
 0x1d1   :  { %1886 = vset.pattern.permute.xlu1 %v2006_v21  ;;  %1895 = vset.pattern.permute.xlu0 %v1988_v1  ;;  %v2010_v1 = vmov 19  }
 0x1d2   :  { %685 = vperm.xlu1 %1886, %v2285_v54   ;;  %522 = vperm.xlu0 %1895, %v2312_v12  }
 0x1d6   :  { %1888 = vset.pattern.permute.xlu1 %v2007_v22  ;;  %1898 = vset.pattern.permute.xlu0 %v1992_v59 }
 0x1d7   :  { %711 = vperm.xlu1 %1888, %v2285_v54   ;;  %561 = vperm.xlu0 %1898, %v2312_v12  }
 0x1db   :  { %1889 = vset.pattern.permute.xlu1 %v2008_v23  ;;  %1901 = vset.pattern.permute.xlu0 %v1996_v3 }
 0x1dc   :  { %724 = vperm.xlu1 %1889, %v2285_v54   ;;  %600 = vperm.xlu0 %1901, %v2312_v12  }
 0x1e0   :  { %1891 = vset.pattern.permute.xlu1 %v2009_v24  ;;  %1904 = vset.pattern.permute.xlu0 %v2000_v7 }
 0x1e1   :  { %750 = vperm.xlu1 %1891, %v2285_v54   ;;  %639 = vperm.xlu0 %1904, %v2312_v12  }
 0x1e5   :  { %1892 = vset.pattern.permute.xlu1 %v2010_v1  ;;  %1907 = vset.pattern.permute.xlu0 %v2004_v15 }
 0x1e6   :  { %763 = vperm.xlu1 %1892, %v2285_v54   ;;  %678 = vperm.xlu0 %1907, %v2312_v12  }
 0x1ea   :  { %1894 = vset.pattern.permute.xlu1 %v2011_v25  ;;  %1910 = vset.pattern.permute.xlu0 %v2007_v22 }
 0x1eb   :  { %789 = vperm.xlu1 %1894, %v2285_v54   ;;  %717 = vperm.xlu0 %1910, %v2312_v12  }
 0x1ef   :  { %1896 = vset.pattern.permute.xlu1 %v1991_v35  ;;  %1913 = vset.pattern.permute.xlu0 %v2009_v24 }
 0x1f0   :  { %548 = vperm.xlu1 %1896, %v2312_v12   ;;  %756 = vperm.xlu0 %1913, %v2312_v12  }
 0x1f4   :  { %1897 = vset.pattern.permute.xlu1 %v1993_v60  ;;  %1916 = vset.pattern.permute.xlu0 %v2011_v25 }
 0x1f5   :  { %535 = vperm.xlu1 %1897, %v2312_v12   ;;  %795 = vperm.xlu0 %1916, %v2312_v12  }
 0x1f9   :  { %1899 = vset.pattern.permute.xlu1 %v1994_v63  ;;  %1918 = vset.pattern.permute.xlu0 %v2012_v26 }
 0x1fa   :  { %574 = vperm.xlu1 %1899, %v2312_v12  }
 0x1fe   :  { %1900 = vset.pattern.permute.xlu1 %v1995_v0 }
 0x1ff   :  { %587 = vperm.xlu1 %1900, %v2312_v12  }
 0x203   :  { %1902 = vset.pattern.permute.xlu1 %v1998_v5 }
 0x204   :  { %613 = vperm.xlu1 %1902, %v2312_v12  }
 0x208   :  { %1903 = vset.pattern.permute.xlu1 %v1997_v4 }
 0x209   :  { %626 = vperm.xlu1 %1903, %v2312_v12  }
 0x20d   :  { %1905 = vset.pattern.permute.xlu1 %v2002_v9 }
 0x20e   :  { %652 = vperm.xlu1 %1905, %v2312_v12  }
 0x212   :  { %1906 = vset.pattern.permute.xlu1 %v1999_v6 }
 0x213   :  { %665 = vperm.xlu1 %1906, %v2312_v12  }
 0x217   :  { %1908 = vset.pattern.permute.xlu1 %v2006_v21 }
 0x218   :  { %691 = vperm.xlu1 %1908, %v2312_v12  }
 0x21c   :  { %1909 = vset.pattern.permute.xlu1 %v2001_v8 }
 0x21d   :  { %704 = vperm.xlu1 %1909, %v2312_v12  }
 0x221   :  { %1911 = vset.pattern.permute.xlu1 %v2008_v23 }
 0x222   :  { %730 = vperm.xlu1 %1911, %v2312_v12  }
 0x225   :  { %v543_v27 = vpop.permute.xlu1 %542  ;;  %v516_v31 = vpop.permute.xlu0 %515 }
 0x226   :  { %1912 = vset.pattern.permute.xlu1 %v2003_v10  ;;  %v518_v36 = vsel %vm512_vm6, %v516_v31, 0.0  ;;  %v545_v44 = vsel %vm2879_vm7, %v543_v27, 0.0 }
 0x227   :  { %743 = vperm.xlu1 %1912, %v2312_v12   ;;  %v519_v41 = vadd.f32 %v518_v36, %v332_v38 }
 0x229   :  { %v546_v47 = vadd.f32 %v545_v44, %v519_v41 }
 0x22a   :  { %v556_v28 = vpop.permute.xlu1 %555  ;;  %v530_v35 = vpop.permute.xlu0 %529 }
 0x22b   :  { %1914 = vset.pattern.permute.xlu1 %v2010_v1  ;;  %v532_v55 = vsel %vm2881_vm11, %v530_v35, 0.0 }
 0x22c   :  { %769 = vperm.xlu1 %1914, %v2312_v12  }
 0x22f   :  { %v569_v30 = vpop.permute.xlu1 %568  ;;  %v582_v42 = vpop.permute.xlu0 %581 }
 0x230   :  { %1915 = vset.pattern.permute.xlu1 %v2005_v16  ;;  %v571_v46 = vsel %vm2880_vm8, %v569_v30, 0.0  ;;  %v584_v57 = vsel %vm579_vm12, %v582_v42, 0.0 }
 0x231   :  { %782 = vperm.xlu1 %1915, %v2312_v12   ;;  %v572_v51 = vadd.f32 %v571_v46, %v546_v47 }
 0x234   :  { %v595_v32 = vpop.permute.xlu1 %594  ;;  %v621_v53 = vpop.permute.xlu0 %620 }
 0x235   :  { %1917 = vset.pattern.permute.xlu1 %v2012_v26  ;;  %v597_v49 = vsel %vm2882_vm9, %v595_v32, 0.0  ;;  %v623_v58 = vsel %vm2874_vm13, %v621_v53, 0.0 }
 0x236   :  { %802 = vperm.xlu1 %1917, %v2285_v54   ;;  %v598_v52 = vadd.f32 %v597_v49, %v572_v51  ;;  %v558_v54 = vsel %vm2883_vm10, %v556_v28, 0.0 }
 0x237   :  { %v559_v60 = vadd.f32 %v558_v54, %v532_v55 }
 0x238   :  { %v624_v61 = vadd.f32 %v623_v58, %v598_v52  ;;  %v467_v52 = vadd.f32 %v2310_v11, %v2364_v34 }
 0x239   :  { %v608_v40 = vpop.permute.xlu1 %607  ;;  %v585_v63 = vadd.f32 %v584_v57, %v559_v60  ;;  %v660_v8 = vpop.permute.xlu0 %659 }
 0x23a   :  { %808 = vperm.xlu1 %1917, %v2312_v12   ;;  %v610_v62 = vsel %vm2873_vm15, %v608_v40, 0.0  ;;  %v662_v12 = vsel %vm2877_vm3, %v660_v8, 0.0 }
 0x23b   :  { %v611_v6 = vadd.f32 %v610_v62, %v585_v63 }
 0x23e   :  { %v634_v48 = vpop.permute.xlu1 %633  ;;  %v699_v17 = vpop.permute.xlu0 %698 }
 0x23f   :  { %v636_v4 = vsel %vm2876_vm1, %v634_v48, 0.0  ;;  %v701_v20 = vsel %vm696_vm0, %v699_v17, 0.0 }
 0x240   :  { %v637_v9 = vadd.f32 %v636_v4, %v611_v6 }
 0x242   :  { %v663_v14 = vadd.f32 %v662_v12, %v637_v9 }
 0x243   :  { %v647_v56 = vpop.permute.xlu1 %646  ;;  %v738_v35 = vpop.permute.xlu0 %737 }
 0x244   :  { %v649_v59 = vsel %vm2875_vm14, %v647_v56, 0.0 }
 0x245   :  { %v650_v0 = vadd.f32 %v649_v59, %v624_v61 }
 0x248   :  { %v673_v3 = vpop.permute.xlu1 %672  ;;  %v777_v38 = vpop.permute.xlu0 %776 }
 0x249   :  { %v675_v5 = vsel %vm2871_vm2, %v673_v3, 0.0  ;;  %vm722_vm2 = vcmp.eq.s32.totalorder %v2358_v29, 16 }
 0x24a   :  { %v676_v7 = vadd.f32 %v675_v5, %v650_v0 }
 0x24c   :  { %v702_v22 = vadd.f32 %v701_v20, %v676_v7 }
 0x24d   :  { %v686_v10 = vpop.permute.xlu1 %685  ;;  %v523_v41 = vpop.permute.xlu0 %522 }
 0x24e   :  { %v688_v13 = vsel %vm2872_vm4, %v686_v10, 0.0  ;;  %vm748_vm4 = vcmp.eq.s32.totalorder %v2358_v29, 18  ;;  %v525_v49 = vsel %vm512_vm6, %v523_v41, 0.0 }
 0x24f   :  { %v689_v15 = vadd.f32 %v688_v13, %v663_v14  ;;  %v526_v54 = vadd.f32 %v525_v49, %v467_v52 }
 0x252   :  { %v712_v16 = vpop.permute.xlu1 %711  ;;  %v562_v46 = vpop.permute.xlu0 %561 }
 0x253   :  { %v714_v18 = vsel %vm709_vm5, %v712_v16, 0.0  ;;  %v564_v60 = vsel %vm2883_vm10, %v562_v46, 0.0 }
 0x254   :  { %v2415_v19 = vadd.f32 %v714_v18, %v689_v15 }
 0x257   :  { %v725_v21 = vpop.permute.xlu1 %724  ;;  %v601_v48 = vpop.permute.xlu0 %600 }
 0x258   :  { %v727_v23 = vsel %vm722_vm2, %v725_v21, 0.0  ;;  %v603_v3 = vsel %vm2882_vm9, %v601_v48, 0.0 }
 0x259   :  { %v728_v24 = vadd.f32 %v727_v23, %v702_v22 }
 0x25c   :  { %v751_v1 = vpop.permute.xlu1 %750  ;;  %v640_v55 = vpop.permute.xlu0 %639 }
 0x25d   :  { %v753_v25 = vsel %vm748_vm4, %v751_v1, 0.0  ;;  %v642_v10 = vsel %vm2876_vm1, %v640_v55, 0.0  ;;  %vm761_vm1 = vcmp.eq.s32.totalorder %v2358_v29, 19 }
 0x25e   :  { %v2425_v26 = vadd.f32 %v753_v25, %v728_v24 }
 0x261   :  { %v764_v27 = vpop.permute.xlu1 %763  ;;  %v679_v63 = vpop.permute.xlu0 %678 }
 0x266   :  { %v2427_v28 = vpop.permute.xlu1 %789  ;;  %v718_v13 = vpop.permute.xlu0 %717 }
 0x26b   :  { %v549_v30 = vpop.permute.xlu1 %548  ;;  %v757_v25 = vpop.permute.xlu0 %756 }
 0x26c   :  { %v551_v53 = vsel %vm2879_vm7, %v549_v30, 0.0 }
 0x26d   :  { %v552_v58 = vadd.f32 %v551_v53, %v526_v54 }
 0x270   :  { %v536_v31 = vpop.permute.xlu1 %535  ;;  %v796_v53 = vpop.permute.xlu0 %795 }
 0x271   :  { %v538_v56 = vsel %vm2881_vm11, %v536_v31, 0.0 }
 0x272   :  { %v565_v11 = vadd.f32 %v564_v60, %v538_v56 }
 0x275   :  { %v575_v32 = vpop.permute.xlu1 %574 }
 0x276   :  { %v577_v57 = vsel %vm2880_vm8, %v575_v32, 0.0  ;;  %v766_v32 = vsel %vm761_vm1, %v764_v27, 0.0 }
 0x277   :  { %v578_v34 = vadd.f32 %v577_v57, %v552_v58 }
 0x279   :  { %v604_v7 = vadd.f32 %v603_v3, %v578_v34  ;;  %v1959_v34 = vld [vmem:[%s2863_s3 + $0x38] sm:$0xff]  }
 0x27a   :  { %v588_v33 = vpop.permute.xlu1 %587  ;;  %1761 = vmatpush3.bf16.msra.mxu1 %v1959_v34  ;;  %1781 = vmatpush3.bf16.msra.mxu0 %v1959_v34 }
 0x27b   :  { %v590_v61 = vsel %vm579_vm12, %v588_v33, 0.0  ;;  %v720_v33 = vsel %vm709_vm5, %v718_v13, 0.0  ;;  %1762 = vmatprep.subr.bf16.mxu1 %v1989_v2  ;;  %1782 = vmatprep.subr.bf16.mxu0 %v1989_v2  ;;  %v1964_v13 = vld [vmem:[%s2863_s3 + $0x10] sm:$0xff]  }
 0x27c   :  { %v591_v0 = vadd.f32 %v590_v61, %v565_v11 }
 0x27f   :  { %v614_v36 = vpop.permute.xlu1 %613 }
 0x280   :  { %v616_v62 = vsel %vm2873_vm15, %v614_v36, 0.0  ;;  %vm2884_vm15 = vcmp.eq.s32.totalorder %v2358_v29, 13 }
 0x281   :  { %v617_v6 = vadd.f32 %v616_v62, %v591_v0  ;;  %v1960_v62 = vld [vmem:[%s2863_s3 + $0x30] sm:$0xff]   ;;  %v1962_v0 = vld [vmem:[%s2863_s3 + $0x20] sm:$0xff]  }
 0x282   :  { %1763 = vmatpush3.bf16.msra.mxu1 %v1960_v62  ;;  %1783 = vmatpush3.bf16.msra.mxu0 %v1960_v62 }
 0x283   :  { %v643_v15 = vadd.f32 %v642_v10, %v617_v6  ;;  %1764 = vmatprep.subr.bf16.mxu1 %v1989_v2  ;;  %1784 = vmatprep.subr.bf16.mxu0 %v1989_v2 }
 0x284   :  { %v627_v40 = vpop.permute.xlu1 %626 }
 0x285   :  { %v629_v4 = vsel %vm2874_vm13, %v627_v40, 0.0  ;;  %vm2885_vm13 = vcmp.eq.s32.totalorder %v2358_v29, 12 }
 0x286   :  { %v630_v9 = vadd.f32 %v629_v4, %v604_v7  ;;  %v681_v20 = vsel %vm2885_vm13, %v679_v63, 0.0  ;;  %vm800_vm13 = vcmp.eq.s32.totalorder %v2358_v29, 22  ;;  %v1961_v63 = vld [vmem:[%s2863_s3 + $0x28] sm:$0xff]  }
 0x287   :  { %1765 = vmatpush3.bf16.msra.mxu1 %v1961_v63  ;;  %1785 = vmatpush3.bf16.msra.mxu0 %v1961_v63 }
 0x288   :  { %1766 = vmatprep.subr.bf16.mxu1 %v1989_v2  ;;  %1786 = vmatprep.subr.bf16.mxu0 %v1989_v2 }
 0x289   :  { %v653_v42 = vpop.permute.xlu1 %652 }
 0x28a   :  { %v655_v8 = vsel %vm2875_vm14, %v653_v42, 0.0  ;;  %vm735_vm14 = vcmp.eq.s32.totalorder %v2358_v29, 17 }
 0x28b   :  { %v656_v14 = vadd.f32 %v655_v8, %v630_v9  ;;  %v740_v31 = vsel %vm735_vm14, %v738_v35, 0.0  ;;  %1767 = vmatpush3.bf16.msra.mxu1 %v1962_v0  ;;  %1787 = vmatpush3.bf16.msra.mxu0 %v1962_v0 }
 0x28c   :  { %v741_v40 = vadd.f32 %v740_v31, %v2415_v19  ;;  %v759_v19 = vsel %vm748_vm4, %v757_v25, 0.0  ;;  %1768 = vmatprep.subr.bf16.mxu1 %v1989_v2  ;;  %1788 = vmatprep.subr.bf16.mxu0 %v1989_v2 }
 0x28d   :  { %v682_v23 = vadd.f32 %v681_v20, %v656_v14  ;;  %v1965_v14 = vld [vmem:[%s2863_s3 + $0x8] sm:$0xff]  }
 0x28e   :  { %v666_v44 = vpop.permute.xlu1 %665  ;;  %v767_v46 = vadd.f32 %v766_v32, %v741_v40 }
 0x28f   :  { %v668_v12 = vsel %vm2877_vm3, %v666_v44, 0.0  ;;  %vm774_vm3 = vcmp.eq.s32.totalorder %v2358_v29, 20 }
 0x290   :  { %v669_v18 = vadd.f32 %v668_v12, %v643_v15  ;;  %v779_v44 = vsel %vm774_vm3, %v777_v38, 0.0  ;;  %v1963_v12 = vld [vmem:[%s2863_s3 + $0x18] sm:$0xff]   ;;  %v1966_v15 = vld [vmem:[%s2863_s3] sm:$0xff]  }
 0x291   :  { %v780_v49 = vadd.f32 %v779_v44, %v2425_v26  ;;  %1769 = vmatpush3.bf16.msra.mxu1 %v1963_v12  ;;  %1789 = vmatpush3.bf16.msra.mxu0 %v1963_v12 }
 0x292   :  { %1770 = vmatprep.subr.bf16.mxu1 %v1989_v2  ;;  %1790 = vmatprep.subr.bf16.mxu0 %v1989_v2 }
 0x293   :  { %v692_v47 = vpop.permute.xlu1 %691 }
 0x294   :  { %v694_v17 = vsel %vm2884_vm15, %v692_v47, 0.0  ;;  %vm2878_vm15 = vcmp.eq.s32.totalorder %v2358_v29, 21 }
 0x295   :  { %v695_v22 = vadd.f32 %v694_v17, %v669_v18  ;;  %v792_v35 = vsel %vm2878_vm15, %v2427_v28, 0.0  ;;  %v798_v26 = vsel %vm2878_vm15, %v796_v53, 0.0  ;;  %1771 = vmatpush3.bf16.msra.mxu1 %v1964_v13  ;;  %1791 = vmatpush3.bf16.msra.mxu0 %v1964_v13  ;;  %vm2886_vm15 = vmmov 0  }
 0x296   :  { %v793_v52 = vadd.f32 %v792_v35, %v767_v46  ;;  %1772 = vmatprep.subr.bf16.mxu1 %v1989_v2  ;;  %1792 = vmatprep.subr.bf16.mxu0 %v1989_v2 }
 0x297   :  { %v721_v42 = vadd.f32 %v720_v33, %v695_v22 }
 0x298   :  { %v705_v51 = vpop.permute.xlu1 %704 }
 0x299   :  { %v707_v21 = vsel %vm696_vm0, %v705_v51, 0.0  ;;  %1773 = vmatpush3.bf16.msra.mxu1 %v1965_v14  ;;  %1793 = vmatpush3.bf16.msra.mxu0 %v1965_v14 }
 0x29a   :  { %v708_v30 = vadd.f32 %v707_v21, %v682_v23  ;;  %1774 = vmatprep.subr.bf16.mxu1 %v1989_v2  ;;  %1794 = vmatprep.subr.bf16.mxu0 %v1989_v2 }
 0x29d   :  { %v731_v59 = vpop.permute.xlu1 %730  ;;  %1775 = vmatpush3.bf16.msra.mxu1 %v1966_v15  ;;  %1795 = vmatpush3.bf16.msra.mxu0 %v1966_v15 }
 0x29e   :  { %v733_v24 = vsel %vm722_vm2, %v731_v59, 0.0  ;;  %1800 = vmatprep.subr.bf16.mxu1 %v1989_v2 }
 0x29f   :  { %v734_v41 = vadd.f32 %v733_v24, %v708_v30 }
 0x2a1   :  { %v760_v54 = vadd.f32 %v759_v19, %v734_v41 }
 0x2a2   :  { %v744_v5 = vpop.permute.xlu1 %743 }
 0x2a3   :  { %v746_v36 = vsel %vm735_vm14, %v744_v5, 0.0 }
 0x2a4   :  { %v747_v47 = vadd.f32 %v746_v36, %v721_v42 }
 0x2a7   :  { %v770_v16 = vpop.permute.xlu1 %769 }
 0x2a8   :  { %v772_v27 = vsel %vm761_vm1, %v770_v16, 0.0 }
 0x2a9   :  { %v773_v28 = vadd.f32 %v772_v27, %v747_v47 }
 0x2ab   :  { %v799_v61 = vadd.f32 %v798_v26, %v773_v28 }
 0x2ac   :  { %v783_v1 = vpop.permute.xlu1 %782 }
 0x2ad   :  { %v785_v51 = vsel %vm774_vm3, %v783_v1, 0.0 }
 0x2ae   :  { %v786_v56 = vadd.f32 %v785_v51, %v760_v54 }
 0x2b1   :  { %v803_v48 = vpop.permute.xlu1 %802 }
 0x2b2   :  { %v805_v38 = vsel %vm800_vm13, %v803_v48, 0.0 }
 0x2b3   :  { %v806_v55 = vadd.f32 %v805_v38, %v780_v49 }
 0x2b5   :  { %v809_v57 = vpop.permute.xlu1 %808  ;;  %v813_v58 = vadd.f32 %v806_v55, %v793_v52 }
 0x2b6   :  { %v811_v59 = vsel %vm800_vm13, %v809_v57, 0.0 }
 0x2b7   :  { %v812_v60 = vadd.f32 %v811_v59, %v786_v56  ;;  %815 = vmax.xlane.f32.xlu0 %v813_v58 }
 0x2b9   :  { %v814_v11 = vadd.f32 %v812_v60, %v799_v61 }
 0x2bb   :  { %915 = vmax.xlane.f32.xlu1 %v814_v11 }
 0x340   :  { %v816_v3 = vpop.xlane.xlu0 %815 }
 0x341   :  { %v817_v4 = vsub.f32 %v813_v58, %v816_v3 }
 0x343   :  { %v818_v5 = vmul.f32 1.442695, %v817_v4 }
 0x344   :  { %v916_v6 = vpop.xlane.xlu1 %915 }
 0x345   :  { %1971 = vpow2.f32 %v818_v5  ;;  %v917_v7 = vsub.f32 %v814_v11, %v916_v6  ;;  %v113_v6 = vsub.s32 1, %v2228_v37 }
 0x347   :  { %v918_v8 = vmul.f32 1.442695, %v917_v7 }
 0x349   :  { %1973 = vpow2.f32 %v918_v8 }
 0x352   :  { %v1972_v9 = vpop.eup %1971 }
 0x353   :  { %820 = vadd.xlane.f32.xlu0 %v1972_v9 }
 0x356   :  { %v1974_v10 = vpop.eup %1973 }
 0x357   :  { %920 = vadd.xlane.f32.xlu0 %v1974_v10 }
 0x3dc   :  { %v821_v16 = vpop.xlane.xlu0 %820 }
 0x3dd   :  { %1975 = vrcp.f32 %v821_v16  ;;  %v1601_v16 = vld [vmem:[%s2864_s9] ss:$0 sm:$0xff] }
 0x3e0   :  { %v921_v17 = vpop.xlane.xlu0 %920 }
 0x3e1   :  { %1977 = vrcp.f32 %v921_v17 }
 0x3ea   :  { %v1976_v18 = vpop.eup %1975 }
 0x3eb   :  { %v823_v20 = vmul.f32 %v1976_v18, %v1972_v9  ;;  %v1987_v9 = vld [vmem:[%s2861_s5] sm:$0x3]  ;;  %v1969_v18 = vld [vmem:[%s2865_s7 + $0x8] sm:$0xff]  }
 0x3ed   :  { %v967_v21 = vsel %vm512_vm6, %v823_v20, 0.0  ;;  %v983_v22 = vsel %vm2881_vm11, %v823_v20, 0.0  ;;  %v824_v23 = vpack.c.bf16 %v823_v20, %v823_v20  ;;  %v999_v25 = vsel %vm2879_vm7, %v823_v20, 0.0 }
 0x3ee   :  { %v1978_v24 = vpop.eup %1977  ;;  %968 = vadd.xlane.f32.xlu1 %v967_v21  ;;  %984 = vadd.xlane.f32.xlu0 %v983_v22  ;;  %v1031_v30 = vsel %vm2880_vm8, %v823_v20, 0.0  ;;  %v1015_v32 = vsel %vm2883_vm10, %v823_v20, 0.0  ;;  %v1063_v33 = vsel %vm2882_vm9, %v823_v20, 0.0  ;;  %v1047_v36 = vsel %vm579_vm12, %v823_v20, 0.0 }
 0x3ef   :  { %v2538_v1 = vmul.f32 %v1978_v24, %v1974_v10  ;;  %1777 = vmatmul.mubr.bf16.vlgmr.msra.gmra.mxu1 %v824_v23  ;;  %vm2887_vm7 = vcmp.eq.s32.totalorder %v2358_v29, 8  ;;  %vm2888_vm8 = vcmp.eq.s32.totalorder %v2358_v29, 7  ;;  %vm2889_vm11 = vcmp.eq.s32.totalorder %v2358_v29, 10 }
 0x3f0   :  { %1808 = vmatprep.mubr.msk.bf16.mxu1 %vm2886_vm15, %v1989_v2  ;;  %v1095_v40 = vsel %vm2887_vm7, %v823_v20, 0.0  ;;  %v1079_v41 = vsel %vm2888_vm8, %v823_v20, 0.0  ;;  %v1127_v42 = vsel %vm2889_vm11, %v823_v20, 0.0  ;;  %vm2890_vm9 = vcmp.eq.s32.totalorder %v2358_v29, 9 }
 0x3f1   :  { %v924_v31 = vpack.c.bf16 %v2538_v1, %v2538_v1  ;;  %v1111_v44 = vsel %vm2890_vm9, %v823_v20, 0.0  ;;  %vm2891_vm10 = vcmp.eq.s32.totalorder %v2358_v29, 12  ;;  %vm2892_vm7 = vcmp.eq.s32.totalorder %v2358_v29, 11 }
 0x3f2   :  { %1000 = vadd.xlane.f32.xlu1 %v999_v25  ;;  %1032 = vadd.xlane.f32.xlu0 %v1031_v30  ;;  %v1159_v35 = vsel %vm2891_vm10, %v823_v20, 0.0  ;;  %v1143_v27 = vsel %vm2892_vm7, %v823_v20, 0.0  ;;  %v1191_v46 = vsel %vm696_vm0, %v823_v20, 0.0  ;;  %vm2893_vm8 = vcmp.eq.s32.totalorder %v2358_v29, 13 }
 0x3f3   :  { %1797 = vmatmul.mubr.bf16.vlgmr.msra.gmra.mxu0 %v924_v31  ;;  %v1175_v47 = vsel %vm2893_vm8, %v823_v20, 0.0  ;;  %v1223_v48 = vsel %vm722_vm2, %v823_v20, 0.0  ;;  %v1207_v49 = vsel %vm709_vm5, %v823_v20, 0.0  ;;  %v1255_v19 = vsel %vm748_vm4, %v823_v20, 0.0 }
 0x3f4   :  { %v1239_v51 = vsel %vm735_vm14, %v823_v20, 0.0  ;;  %v1287_v38 = vsel %vm774_vm3, %v823_v20, 0.0  ;;  %v1271_v52 = vsel %vm761_vm1, %v823_v20, 0.0  ;;  %v1319_v53 = vsel %vm800_vm13, %v823_v20, 0.0 }
 0x3f5   :  { %vm2894_vm9 = vcmp.eq.s32.totalorder %v2358_v29, 21  ;;  %v975_v54 = vsel %vm512_vm6, %v2538_v1, 0.0  ;;  %vm2895_vm10 = vcmp.eq.s32.totalorder %v2358_v29, 1  ;;  %vm2896_vm11 = vcmp.eq.s32.totalorder %v2358_v29, 2 }
 0x3f6   :  { %1016 = vadd.xlane.f32.xlu1 %v1015_v32  ;;  %1064 = vadd.xlane.f32.xlu0 %v1063_v33  ;;  %v1303_v28 = vsel %vm2894_vm9, %v823_v20, 0.0  ;;  %v991_v55 = vsel %vm2895_vm10, %v2538_v1, 0.0  ;;  %v1007_v56 = vsel %vm2896_vm11, %v2538_v1, 0.0  ;;  %vm2897_vm7 = vcmp.eq.s32.totalorder %v2358_v29, 3  ;;  %v1970_v20 = vld [vmem:[%s2865_s7] sm:$0xff]  }
 0x3f7   :  { %v1023_v57 = vsel %vm2897_vm7, %v2538_v1, 0.0  ;;  %vm2898_vm8 = vcmp.eq.s32.totalorder %v2358_v29, 4  ;;  %v1055_v26 = vsel %vm579_vm12, %v2538_v1, 0.0  ;;  %vm2899_vm6 = vcmp.eq.s32.totalorder %v2358_v29, 6 }
 0x3f8   :  { %v1039_v58 = vsel %vm2898_vm8, %v2538_v1, 0.0  ;;  %v1071_v59 = vsel %vm2899_vm6, %v2538_v1, 0.0  ;;  %vm2900_vm9 = vcmp.eq.s32.totalorder %v2358_v29, 7  ;;  %vm2901_vm10 = vcmp.eq.s32.totalorder %v2358_v29, 8 }
 0x3f9   :  { %v1087_v60 = vsel %vm2900_vm9, %v2538_v1, 0.0  ;;  %v1103_v61 = vsel %vm2901_vm10, %v2538_v1, 0.0  ;;  %vm2902_vm11 = vcmp.eq.s32.totalorder %v2358_v29, 9  ;;  %vm2903_vm12 = vcmp.eq.s32.totalorder %v2358_v29, 10 }
 0x3fa   :  { %1048 = vadd.xlane.f32.xlu1 %v1047_v36  ;;  %1096 = vadd.xlane.f32.xlu0 %v1095_v40  ;;  %v1119_v11 = vsel %vm2902_vm11, %v2538_v1, 0.0  ;;  %v1135_v34 = vsel %vm2903_vm12, %v2538_v1, 0.0  ;;  %vm2904_vm7 = vcmp.eq.s32.totalorder %v2358_v29, 11  ;;  %vm2905_vm8 = vcmp.eq.s32.totalorder %v2358_v29, 12 }
 0x3fb   :  { %v1151_v62 = vsel %vm2904_vm7, %v2538_v1, 0.0  ;;  %v1167_v63 = vsel %vm2905_vm8, %v2538_v1, 0.0  ;;  %vm2906_vm6 = vcmp.eq.s32.totalorder %v2358_v29, 13  ;;  %v1199_v3 = vsel %vm696_vm0, %v2538_v1, 0.0 }
 0x3fc   :  { %v1183_v0 = vsel %vm2906_vm6, %v2538_v1, 0.0  ;;  %v1215_v4 = vsel %vm709_vm5, %v2538_v1, 0.0  ;;  %v1231_v5 = vsel %vm722_vm2, %v2538_v1, 0.0  ;;  %v1247_v7 = vsel %vm735_vm14, %v2538_v1, 0.0 }
 0x3fd   :  { %v1263_v8 = vsel %vm748_vm4, %v2538_v1, 0.0  ;;  %v114_v10 = vrot.slane %v1987_v9, %v113_v6  ;;  %v1279_v12 = vsel %vm761_vm1, %v2538_v1, 0.0  ;;  %v1295_v37 = vsel %vm774_vm3, %v2538_v1, 0.0 }
 0x3fe   :  { %1080 = vadd.xlane.f32.xlu1 %v1079_v41  ;;  %1128 = vadd.xlane.f32.xlu0 %v1127_v42  ;;  %vm2907_vm0 = vcmp.eq.s32.totalorder %v2358_v29, 21  ;;  %v1327_v15 = vsel %vm800_vm13, %v2538_v1, 0.0  ;;  %v1968_v29 = vld [vmem:[%s2865_s7 + $0x10] sm:$0xff]   ;;  %vm970_vm14 = vcmp.eq.s32.totalorder %v2231_v39, 0  ;;  %vm978_vm1 = vcmp.eq.s32.totalorder %v2231_v39, 32 }
 0x3ff   :  { %v2654_v13 = vadd.f32 %v2240_v45, %v114_v10  ;;  %v1311_v14 = vsel %vm2907_vm0, %v2538_v1, 0.0  ;;  %v1967_v45 = vld [vmem:[%s2865_s7 + $0x18] sm:$0xff]   ;;  %vm1002_vm2 = vcmp.eq.s32.totalorder %v2231_v39, 2  ;;  %vm986_vm3 = vcmp.eq.s32.totalorder %v2231_v39, 1 }
 0x400   :  { %1801 = vmatpush3.bf16.msra.mxu1 %v1967_v45  ;;  %vm1010_vm4 = vcmp.eq.s32.totalorder %v2231_v39, 34  ;;  %vm994_vm5 = vcmp.eq.s32.totalorder %v2231_v39, 33  ;;  %vm1034_vm13 = vcmp.eq.s32.totalorder %v2231_v39, 4  ;;  %vm1018_vm9 = vcmp.eq.s32.totalorder %v2231_v39, 3 }
 0x401   :  { %v1517_v17 = vmul.f32 %v1601_v16, %v2654_v13  ;;  %1802 = vmatprep.subr.bf16.mxu1 %v1989_v2  ;;  %vm1042_vm10 = vcmp.eq.s32.totalorder %v2231_v39, 36  ;;  %vm1026_vm11 = vcmp.eq.s32.totalorder %v2231_v39, 35  ;;  %vm1066_vm12 = vcmp.eq.s32.totalorder %v2231_v39, 6 }
 0x402   :  { %1112 = vadd.xlane.f32.xlu1 %v1111_v44  ;;  %1160 = vadd.xlane.f32.xlu0 %v1159_v35  ;;  %vm1050_vm7 = vcmp.eq.s32.totalorder %v2231_v39, 5  ;;  %vm1074_vm8 = vcmp.eq.s32.totalorder %v2231_v39, 38  ;;  %vm1058_vm6 = vcmp.eq.s32.totalorder %v2231_v39, 37  ;;  %vm1098_vm0 = vcmp.eq.s32.totalorder %v2231_v39, 8 }
 0x404   :  { %1803 = vmatpush3.bf16.msra.mxu1 %v1968_v29 }
 0x405   :  { %1804 = vmatprep.subr.bf16.mxu1 %v1989_v2 }
 0x406   :  { %1144 = vadd.xlane.f32.xlu1 %v1143_v27  ;;  %1192 = vadd.xlane.f32.xlu0 %v1191_v46 }
 0x408   :  { %1805 = vmatpush3.bf16.msra.mxu1 %v1969_v18 }
 0x409   :  { %1806 = vmatprep.subr.bf16.mxu1 %v1989_v2 }
 0x40a   :  { %1176 = vadd.xlane.f32.xlu1 %v1175_v47  ;;  %1224 = vadd.xlane.f32.xlu0 %v1223_v48 }
 0x40c   :  { %1807 = vmatpush3.bf16.msra.mxu1 %v1970_v20 }
 0x40d   :  { %1812 = vmatprep.subr.mxu1 %v1989_v2 }
 0x40e   :  { %1208 = vadd.xlane.f32.xlu1 %v1207_v49  ;;  %1256 = vadd.xlane.f32.xlu0 %v1255_v19 }
 0x412   :  { %1240 = vadd.xlane.f32.xlu1 %v1239_v51  ;;  %1288 = vadd.xlane.f32.xlu0 %v1287_v38 }
 0x416   :  { %1272 = vadd.xlane.f32.xlu1 %v1271_v52  ;;  %1320 = vadd.xlane.f32.xlu0 %v1319_v53 }
 0x41a   :  { %1304 = vadd.xlane.f32.xlu1 %v1303_v28  ;;  %976 = vadd.xlane.f32.xlu0 %v975_v54 }
 0x41e   :  { %992 = vadd.xlane.f32.xlu1 %v991_v55  ;;  %1008 = vadd.xlane.f32.xlu0 %v1007_v56 }
 0x422   :  { %1024 = vadd.xlane.f32.xlu1 %v1023_v57  ;;  %1040 = vadd.xlane.f32.xlu0 %v1039_v58 }
 0x426   :  { %1056 = vadd.xlane.f32.xlu1 %v1055_v26  ;;  %1072 = vadd.xlane.f32.xlu0 %v1071_v59 }
 0x42a   :  { %1088 = vadd.xlane.f32.xlu1 %v1087_v60  ;;  %1104 = vadd.xlane.f32.xlu0 %v1103_v61 }
 0x42e   :  { %1120 = vadd.xlane.f32.xlu1 %v1119_v11  ;;  %1136 = vadd.xlane.f32.xlu0 %v1135_v34 }
 0x432   :  { %1152 = vadd.xlane.f32.xlu1 %v1151_v62  ;;  %1168 = vadd.xlane.f32.xlu0 %v1167_v63 }
 0x436   :  { %1184 = vadd.xlane.f32.xlu1 %v1183_v0  ;;  %1200 = vadd.xlane.f32.xlu0 %v1199_v3 }
 0x43a   :  { %1216 = vadd.xlane.f32.xlu1 %v1215_v4  ;;  %1232 = vadd.xlane.f32.xlu0 %v1231_v5 }
 0x43e   :  { %1248 = vadd.xlane.f32.xlu1 %v1247_v7  ;;  %1264 = vadd.xlane.f32.xlu0 %v1263_v8 }
 0x442   :  { %1280 = vadd.xlane.f32.xlu1 %v1279_v12  ;;  %1296 = vadd.xlane.f32.xlu0 %v1295_v37 }
 0x446   :  { %1312 = vadd.xlane.f32.xlu1 %v1311_v14  ;;  %1328 = vadd.xlane.f32.xlu0 %v1327_v15 }
 0x44a   :  { %1518 = vadd.xlane.f32.xlu0 %v1517_v17 }
 0x477   :  { %v985_v21 = vpop.xlane.xlu0 %984  ;;  %v969_v22 = vpop.xlane.xlu1 %968 }
 0x478   :  { %v973_v52 = vsel %vm970_vm14, %v969_v22, 0.0  ;;  %v989_v58 = vsel %vm986_vm3, %v985_v21, 0.0  ;;  %vm1082_vm14 = vcmp.eq.s32.totalorder %v2231_v39, 7  ;;  %vm1130_vm3 = vcmp.eq.s32.totalorder %v2231_v39, 10 }
 0x47b   :  { %v1033_v23 = vpop.xlane.xlu0 %1032  ;;  %v1001_v24 = vpop.xlane.xlu1 %1000 }
 0x47c   :  { %v1005_v54 = vsel %vm1002_vm2, %v1001_v24, 0.0  ;;  %v1037_v11 = vsel %vm1034_vm13, %v1033_v23, 0.0  ;;  %vm1090_vm2 = vcmp.eq.s32.totalorder %v2231_v39, 39  ;;  %vm1122_vm13 = vcmp.eq.s32.totalorder %v2231_v39, 41 }
 0x47f   :  { %v1065_v1 = vpop.xlane.xlu0 %1064  ;;  %v1017_v25 = vpop.xlane.xlu1 %1016 }
 0x480   :  { %v1021_v34 = vsel %vm1018_vm9, %v1017_v25, 0.0  ;;  %v1069_v8 = vsel %vm1066_vm12, %v1065_v1, 0.0  ;;  %vm1162_vm9 = vcmp.eq.s32.totalorder %v2231_v39, 12  ;;  %vm1154_vm12 = vcmp.eq.s32.totalorder %v2231_v39, 43 }
 0x483   :  { %v2682_v30 = vpop.xlane.xlu0 %1096  ;;  %v1049_v31 = vpop.xlane.xlu1 %1048 }
 0x484   :  { %v1053_v9 = vsel %vm1050_vm7, %v1049_v31, 0.0  ;;  %v1101_v18 = vsel %vm1098_vm0, %v2682_v30, 0.0  ;;  %vm1194_vm7 = vcmp.eq.s32.totalorder %v2231_v39, 14  ;;  %vm1186_vm0 = vcmp.eq.s32.totalorder %v2231_v39, 45 }
 0x487   :  { %v2684_v32 = vpop.xlane.xlu0 %1128  ;;  %v2686_v33 = vpop.xlane.xlu1 %1080 }
 0x488   :  { %v1085_v20 = vsel %vm1082_vm14, %v2686_v33, 0.0  ;;  %vm1226_vm14 = vcmp.eq.s32.totalorder %v2231_v39, 16 }
 0x48b   :  { %v2688_v36 = vpop.xlane.xlu0 %1160  ;;  %v2690_v40 = vpop.xlane.xlu1 %1112 }
 0x48f   :  { %v2692_v41 = vpop.xlane.xlu0 %1192  ;;  %v2694_v42 = vpop.xlane.xlu1 %1144 }
 0x493   :  { %v2696_v44 = vpop.xlane.xlu0 %1224  ;;  %v2698_v35 = vpop.xlane.xlu1 %1176 }
 0x497   :  { %v2700_v27 = vpop.xlane.xlu0 %1256  ;;  %v2702_v46 = vpop.xlane.xlu1 %1208 }
 0x49b   :  { %v2704_v47 = vpop.xlane.xlu0 %1288  ;;  %v2706_v48 = vpop.xlane.xlu1 %1240 }
 0x49f   :  { %v2708_v49 = vpop.xlane.xlu0 %1320  ;;  %v2710_v19 = vpop.xlane.xlu1 %1272 }
 0x4a3   :  { %v977_v51 = vpop.xlane.xlu0 %976  ;;  %v2715_v38 = vpop.xlane.xlu1 %1304 }
 0x4a4   :  { %v981_v53 = vsel %vm978_vm1, %v977_v51, 0.0  ;;  %vm1106_vm1 = vcmp.eq.s32.totalorder %v2231_v39, 40 }
 0x4a5   :  { %v982_v28 = vadd.f32 %v981_v53, %v973_v52 }
 0x4a7   :  { %v1009_v55 = vpop.xlane.xlu0 %1008  ;;  %v1006_v56 = vadd.f32 %v1005_v54, %v982_v28  ;;  %v993_v57 = vpop.xlane.xlu1 %992  ;;  %v1133_v54 = vsel %vm1130_vm3, %v2684_v32, 0.0  ;;  %vm1218_vm3 = vcmp.eq.s32.totalorder %v2231_v39, 47 }
 0x4a8   :  { %v1013_v26 = vsel %vm1010_vm4, %v1009_v55, 0.0  ;;  %v997_v59 = vsel %vm994_vm5, %v993_v57, 0.0  ;;  %vm1114_vm4 = vcmp.eq.s32.totalorder %v2231_v39, 9  ;;  %vm1138_vm5 = vcmp.eq.s32.totalorder %v2231_v39, 42 }
 0x4a9   :  { %v1014_v60 = vadd.f32 %v1013_v26, %v1006_v56  ;;  %v998_v61 = vadd.f32 %v997_v59, %v989_v58 }
 0x4ab   :  { %v1041_v62 = vpop.xlane.xlu0 %1040  ;;  %v1038_v63 = vadd.f32 %v1037_v11, %v1014_v60  ;;  %v1022_v0 = vadd.f32 %v1021_v34, %v998_v61  ;;  %v1025_v3 = vpop.xlane.xlu1 %1024 }
 0x4ac   :  { %v1045_v4 = vsel %vm1042_vm10, %v1041_v62, 0.0  ;;  %v1029_v5 = vsel %vm1026_vm11, %v1025_v3, 0.0  ;;  %vm1146_vm10 = vcmp.eq.s32.totalorder %v2231_v39, 11  ;;  %vm1170_vm11 = vcmp.eq.s32.totalorder %v2231_v39, 44 }
 0x4ad   :  { %v1046_v6 = vadd.f32 %v1045_v4, %v1038_v63  ;;  %v1030_v7 = vadd.f32 %v1029_v5, %v1022_v0  ;;  %v1165_v63 = vsel %vm1162_vm9, %v2688_v36, 0.0  ;;  %v1197_v36 = vsel %vm1194_vm7, %v2692_v41, 0.0 }
 0x4ae   :  { %v1229_v41 = vsel %vm1226_vm14, %v2696_v44, 0.0  ;;  %vm1250_vm9 = vcmp.eq.s32.totalorder %v2231_v39, 49  ;;  %vm1282_vm7 = vcmp.eq.s32.totalorder %v2231_v39, 51  ;;  %vm1314_vm14 = vcmp.eq.s32.totalorder %v2231_v39, 53 }
 0x4af   :  { %v1073_v10 = vpop.xlane.xlu0 %1072  ;;  %v1070_v12 = vadd.f32 %v1069_v8, %v1046_v6  ;;  %v1054_v37 = vadd.f32 %v1053_v9, %v1030_v7  ;;  %v1057_v14 = vpop.xlane.xlu1 %1056 }
 0x4b0   :  { %v1077_v15 = vsel %vm1074_vm8, %v1073_v10, 0.0  ;;  %v1061_v16 = vsel %vm1058_vm6, %v1057_v14, 0.0  ;;  %v907_v17 = vpop.f32.mrf.mxu1  ;;  %vm1178_vm8 = vcmp.eq.s32.totalorder %v2231_v39, 13  ;;  %vm1202_vm6 = vcmp.eq.s32.totalorder %v2231_v39, 46 }
 0x4b1   :  { %v1078_v45 = vadd.f32 %v1077_v15, %v1070_v12  ;;  %v1062_v29 = vadd.f32 %v1061_v16, %v1054_v37  ;;  %v913_v25 = vmul.f32 %v2238_v43, %v907_v17 }
 0x4b2   :  { %v1778_v21 = vpop.f32.mrf.mxu1 }
 0x4b3   :  { %v959_v22 = vpop.f32.mrf.mxu0  ;;  %v1105_v23 = vpop.xlane.xlu0 %1104  ;;  %v1102_v24 = vadd.f32 %v1101_v18, %v1078_v45  ;;  %v1086_v1 = vadd.f32 %v1085_v20, %v1062_v29 }
 0x4b4   :  { %v965_v31 = vmul.f32 %v2268_v50, %v959_v22  ;;  %v1109_v51 = vsel %vm1106_vm1, %v1105_v23, 0.0  ;;  %v1089_v52 = vpop.xlane.xlu1 %1088  ;;  %v910_v30 = vpop.f32.mrf.mxu1  ;;  %v1117_v50 = vsel %vm1114_vm4, %v2690_v40, 0.0  ;;  %v1149_v40 = vsel %vm1146_vm10, %v2694_v42, 0.0 }
 0x4b5   :  { %v1110_v53 = vadd.f32 %v1109_v51, %v1102_v24  ;;  %v1093_v33 = vsel %vm1090_vm2, %v1089_v52, 0.0  ;;  %v1798_v28 = vpop.f32.mrf.mxu0  ;;  %v1181_v42 = vsel %vm1178_vm8, %v2698_v35, 0.0  ;;  %vm1210_vm1 = vcmp.eq.s32.totalorder %v2231_v39, 15 }
 0x4b6   :  { %v1094_v55 = vadd.f32 %v1093_v33, %v1086_v1  ;;  %v1779_v56 = vpop.f32.mrf.mxu1  ;;  %v2741_v57 = vadd.f32 %v965_v31, %v913_v25  ;;  %vm1234_vm2 = vcmp.eq.s32.totalorder %v2231_v39, 48  ;;  %vm1258_vm4 = vcmp.eq.s32.totalorder %v2231_v39, 18 }
 0x4b7   :  { %v962_v58 = vpop.f32.mrf.mxu0  ;;  %v1137_v26 = vpop.xlane.xlu0 %1136  ;;  %v1134_v59 = vadd.f32 %v1133_v54, %v1110_v53  ;;  %v1213_v35 = vsel %vm1210_vm1, %v2702_v46, 0.0  ;;  %v1261_v44 = vsel %vm1258_vm4, %v2700_v27, 0.0  ;;  %vm1290_vm10 = vcmp.eq.s32.totalorder %v2231_v39, 20 }
 0x4b8   :  { %v1141_v60 = vsel %vm1138_vm5, %v1137_v26, 0.0  ;;  %v1118_v61 = vadd.f32 %v1117_v50, %v1094_v55  ;;  %v1121_v32 = vpop.xlane.xlu1 %1120  ;;  %vm1242_vm5 = vcmp.eq.s32.totalorder %v2231_v39, 17  ;;  %v1293_v27 = vsel %vm1290_vm10, %v2704_v47, 0.0 }
 0x4b9   :  { %v1142_v11 = vadd.f32 %v1141_v60, %v1134_v59  ;;  %v1125_v34 = vsel %vm1122_vm13, %v1121_v32, 0.0  ;;  %v1799_v62 = vpop.f32.mrf.mxu0  ;;  %vm1266_vm13 = vcmp.eq.s32.totalorder %v2231_v39, 50  ;;  %v1245_v46 = vsel %vm1242_vm5, %v2706_v48, 0.0 }
 0x4ba   :  { %v1126_v0 = vadd.f32 %v1125_v34, %v1118_v61  ;;  %vm1322_vm8 = vcmp.eq.s32.totalorder %v2231_v39, 22  ;;  %vm1369_vm1 = vcmask 523264  }
 0x4bb   :  { %v1169_v3 = vpop.xlane.xlu0 %1168  ;;  %v1166_v4 = vadd.f32 %v1165_v63, %v1142_v11  ;;  %v1325_v47 = vsel %vm1322_vm8, %v2708_v49, 0.0  ;;  %v1429_v49 = vld [vmem:[%s2866_s10 + $0x78] sm:$0xff] }
 0x4bc   :  { %v1173_v5 = vsel %vm1170_vm11, %v1169_v3, 0.0  ;;  %v1150_v6 = vadd.f32 %v1149_v40, %v1126_v0  ;;  %v1153_v7 = vpop.xlane.xlu1 %1152  ;;  %vm1274_vm11 = vcmp.eq.s32.totalorder %v2231_v39, 19 }
 0x4bd   :  { %v1174_v8 = vadd.f32 %v1173_v5, %v1166_v4  ;;  %v1157_v9 = vsel %vm1154_vm12, %v1153_v7, 0.0  ;;  %vm1298_vm12 = vcmp.eq.s32.totalorder %v2231_v39, 52  ;;  %v1277_v48 = vsel %vm1274_vm11, %v2710_v19, 0.0  ;;  %v1425_v7 = vld [vmem:[%s2866_s10 + $0x58] sm:$0xff] }
 0x4be   :  { %v1158_v10 = vadd.f32 %v1157_v9, %v1150_v6  ;;  %v1426_v6 = vld [vmem:[%s2866_s10 + $0x60] sm:$0xff]  ;;  %v1423_v9 = vld [vmem:[%s2866_s10 + $0x48] sm:$0xff] }
 0x4bf   :  { %v1201_v12 = vpop.xlane.xlu0 %1200  ;;  %v1198_v37 = vadd.f32 %v1197_v36, %v1174_v8  ;;  %v1424_v8 = vld [vmem:[%s2866_s10 + $0x50] sm:$0xff]  ;;  %v1422_v36 = vld [vmem:[%s2866_s10 + $0x40] sm:$0xff] }
 0x4c0   :  { %v1205_v14 = vsel %vm1202_vm6, %v1201_v12, 0.0  ;;  %v1182_v15 = vadd.f32 %v1181_v42, %v1158_v10  ;;  %v1185_v16 = vpop.xlane.xlu1 %1184  ;;  %vm1306_vm6 = vcmp.eq.s32.totalorder %v2231_v39, 21  ;;  %v1421_v10 = vld [vmem:[%s2866_s10 + $0x38] sm:$0xff]  ;;  %v1420_v42 = vld [vmem:[%s2866_s10 + $0x30] sm:$0xff]  ;;  %v1419_v12 = vld [vmem:[%s2866_s10 + $0x28] sm:$0xff] }
 0x4c1   :  { %v1206_v17 = vadd.f32 %v1205_v14, %v1198_v37  ;;  %v1189_v45 = vsel %vm1186_vm0, %v1185_v16, 0.0  ;;  %vm1330_vm0 = vcmp.eq.s32.totalorder %v2231_v39, 54  ;;  %v1309_v32 = vsel %vm1306_vm6, %v2715_v38, 0.0  ;;  %v1428_v39 = vld [vmem:[%s2866_s10 + $0x70] sm:$0xff]  ;;  %v1427_v38 = vld [vmem:[%s2866_s10 + $0x68] sm:$0xff]  ;;  %v1418_v37 = vld [vmem:[%s2866_s10 + $0x20] sm:$0xff] }
 0x4c2   :  { %v1190_v29 = vadd.f32 %v1189_v45, %v1182_v15  ;;  %v1417_v14 = vld [vmem:[%s2866_s10 + $0x18] sm:$0xff]  ;;  %v1416_v15 = vld [vmem:[%s2866_s10 + $0x10] sm:$0xff]  ;;  %v1415_v16 = vld [vmem:[%s2866_s10 + $0x8] sm:$0xff] }
 0x4c3   :  { %v1233_v18 = vpop.xlane.xlu0 %1232  ;;  %v1230_v20 = vadd.f32 %v1229_v41, %v1206_v17  ;;  %v1414_v17 = vld [vmem:[%s2866_s10] sm:$0xff] }
 0x4c4   :  { %v1237_v21 = vsel %vm1234_vm2, %v1233_v18, 0.0  ;;  %v1214_v22 = vadd.f32 %v1213_v35, %v1190_v29  ;;  %v1217_v23 = vpop.xlane.xlu1 %1216 }
 0x4c5   :  { %v1238_v24 = vadd.f32 %v1237_v21, %v1230_v20  ;;  %v1221_v1 = vsel %vm1218_vm3, %v1217_v23, 0.0  ;;  %v1600_v20 = vld [vmem:[%s2867_s8] ss:$0 sm:$0xff] }
 0x4c6   :  { %v1222_v25 = vadd.f32 %v1221_v1, %v1214_v22 }
 0x4c7   :  { %v1265_v31 = vpop.xlane.xlu0 %1264  ;;  %v1262_v51 = vadd.f32 %v1261_v44, %v1238_v24 }
 0x4c8   :  { %v1269_v52 = vsel %vm1266_vm13, %v1265_v31, 0.0  ;;  %v1246_v30 = vadd.f32 %v1245_v46, %v1222_v25  ;;  %v1249_v53 = vpop.xlane.xlu1 %1248 }
 0x4c9   :  { %v1270_v33 = vadd.f32 %v1269_v52, %v1262_v51  ;;  %v1253_v28 = vsel %vm1250_vm9, %v1249_v53, 0.0 }
 0x4ca   :  { %v1254_v54 = vadd.f32 %v1253_v28, %v1246_v30 }
 0x4cb   :  { %v1297_v55 = vpop.xlane.xlu0 %1296  ;;  %v1294_v56 = vadd.f32 %v1293_v27, %v1270_v33 }
 0x4cc   :  { %v1301_v50 = vsel %vm1298_vm12, %v1297_v55, 0.0  ;;  %v1278_v58 = vadd.f32 %v1277_v48, %v1254_v54  ;;  %v1281_v26 = vpop.xlane.xlu1 %1280 }
 0x4cd   :  { %v1302_v59 = vadd.f32 %v1301_v50, %v1294_v56  ;;  %v1285_v60 = vsel %vm1282_vm7, %v1281_v26, 0.0 }
 0x4ce   :  { %v1286_v61 = vadd.f32 %v1285_v60, %v1278_v58 }
 0x4cf   :  { %v1329_v11 = vpop.xlane.xlu0 %1328  ;;  %v1326_v19 = vadd.f32 %v1325_v47, %v1302_v59 }
 0x4d0   :  { %v1333_v34 = vsel %vm1330_vm0, %v1329_v11, 0.0  ;;  %v1310_v62 = vadd.f32 %v1309_v32, %v1286_v61  ;;  %v1313_v63 = vpop.xlane.xlu1 %1312 }
 0x4d1   :  { %v1334_v0 = vadd.f32 %v1333_v34, %v1326_v19  ;;  %v1317_v40 = vsel %vm1314_vm14, %v1313_v63, 0.0 }
 0x4d2   :  { %v1318_v3 = vadd.f32 %v1317_v40, %v1310_v62 }
 0x4d3   :  { %v1519_v24 = vpop.xlane.xlu0 %1518 }
 0x4d4   :  { %v1335_v4 = vadd.f32 %v1334_v0, %v1318_v3 }
 0x4d6   :  { %v1336_v5 = vpack.c.bf16 %v1335_v4, %v1335_v4 }
 0x4d8   :  { %1809 = vmatmul.mubr.msk.bf16.vlgmr.msra.gmra.mxu1 %vm1369_vm1, %v1336_v5 }
 0x4d9   :  { %1813 = vmatpush3.msra.mxu1 %v1429_v49  ;;  %1844 = vmatprep.mubr.msk.f32.mxu1 %vm2886_vm15, %v1989_v2  ;;  %vm1533_vm15 = vcmp.gt.f32.partialorder %v2238_v43, 0.0 }
 0x4da   :  { %1814 = vmatprep.subr.mxu1 %v1989_v2 }
 0x4db   :  { %1815 = vmatpush3.msra.mxu1 %v1428_v39 }
 0x4dc   :  { %1816 = vmatprep.subr.mxu1 %v1989_v2 }
 0x4dd   :  { %1817 = vmatpush3.msra.mxu1 %v1427_v38 }
 0x4de   :  { %1818 = vmatprep.subr.mxu1 %v1989_v2 }
 0x4df   :  { %1819 = vmatpush3.msra.mxu1 %v1426_v6 }
 0x4e0   :  { %1820 = vmatprep.subr.mxu1 %v1989_v2 }
 0x4e1   :  { %1821 = vmatpush3.msra.mxu1 %v1425_v7 }
 0x4e2   :  { %1822 = vmatprep.subr.mxu1 %v1989_v2 }
 0x4e3   :  { %1823 = vmatpush3.msra.mxu1 %v1424_v8 }
 0x4e4   :  { %1824 = vmatprep.subr.mxu1 %v1989_v2 }
 0x4e5   :  { %1825 = vmatpush3.msra.mxu1 %v1423_v9 }
 0x4e6   :  { %1826 = vmatprep.subr.mxu1 %v1989_v2 }
 0x4e7   :  { %1827 = vmatpush3.msra.mxu1 %v1422_v36 }
 0x4e8   :  { %1828 = vmatprep.subr.mxu1 %v1989_v2 }
 0x4e9   :  { %1829 = vmatpush3.msra.mxu1 %v1421_v10 }
 0x4ea   :  { %1830 = vmatprep.subr.mxu1 %v1989_v2 }
 0x4eb   :  { %1831 = vmatpush3.msra.mxu1 %v1420_v42 }
 0x4ec   :  { %1832 = vmatprep.subr.mxu1 %v1989_v2 }
 0x4ed   :  { %1833 = vmatpush3.msra.mxu1 %v1419_v12 }
 0x4ee   :  { %1834 = vmatprep.subr.mxu1 %v1989_v2 }
 0x4ef   :  { %1835 = vmatpush3.msra.mxu1 %v1418_v37 }
 0x4f0   :  { %1836 = vmatprep.subr.mxu1 %v1989_v2 }
 0x4f1   :  { %1837 = vmatpush3.msra.mxu1 %v1417_v14 }
 0x4f2   :  { %1838 = vmatprep.subr.mxu1 %v1989_v2 }
 0x4f3   :  { %1839 = vmatpush3.msra.mxu1 %v1416_v15 }
 0x4f4   :  { %1840 = vmatprep.subr.mxu1 %v1989_v2 }
 0x4f5   :  { %1841 = vmatpush3.msra.mxu1 %v1415_v16 }
 0x4f6   :  { %1842 = vmatprep.subr.mxu1 %v1989_v2 }
 0x4f7   :  { %1843 = vmatpush3.msra.mxu1 %v1414_v17 }
 0x598   :  { %v1407_v45 = vpop.f32.mrf.mxu1 }
 0x599   :  { %v1413_v41 = vadd.f32 %v1407_v45, %v2741_v57 }
 0x59a   :  { %v1810_v29 = vpop.f32.mrf.mxu1 }
 0x59b   :  { %1845 = vmatmul.mubr.f32.vlgmr.msra.gmra.mxu1 %v1413_v41 }
 0x59c   :  { %v1410_v35 = vpop.f32.mrf.mxu1 }
 0x59e   :  { %v1811_v18 = vpop.f32.mrf.mxu1 }
 0x65b   :  { %v1496_v21 = vpop.f32.mrf.mxu1 }
 0x65c   :  { %v1507_v22 = vmul.f32 %v1600_v20, %v1496_v21 }
 0x65d   :  { %v1846_v23 = vpop.f32.mrf.mxu1 }
 0x65e   :  { %1508 = vadd.xlane.f32.xlu1 %v1507_v22 }
 0x6e7   :  { %v1509_v1 = vpop.xlane.xlu1 %1508 }
 0x6e8   :  { %v1520_v44 = vadd.f32 %v1519_v24, %v1509_v1 }
 0x6ea   :  { %v1602_v2 = vmul.f32 -1.442695, %v1520_v44 }
 0x6ec   :  { %1979 = vpow2.f32 %v1602_v2 }
 0x6f9   :  { %v1980_v25 = vpop.eup %1979 }
 0x6fa   :  { %v1524_v46 = vadd.f32 1.0, %v1980_v25 }
 0x6fc   :  { %1981 = vrcp.f32 %v1524_v46 }
 0x709   :  { %v1982_v57 = vpop.eup %1981 }
 0x70a   :  { %v1528_v31 = vsub.f32 1.0, %v1982_v57  ;;  %v1527_v51 = vmul.f32 %v1982_v57, %v2654_v13 }
 0x70c   :  { %v1529_v52 = vmul.f32 %v1528_v31, %v1496_v21 }
 0x70e   :  { %v1530_v30 = vadd.f32 %v1529_v52, %v1527_v51 }
 0x710   :  { %v1536_v53 = vsel %vm1533_vm15, %v1530_v30, -1e+30 }
 0x711   :  { %1537 = vmax.xlane.f32.xlu1 %v1536_v53 }
 0x79a   :  { %v1538_v33 = vpop.xlane.xlu1 %1537 }
 0x79b   :  { %v1539_v28 = vsub.f32 %v1530_v30, %v1538_v33 }
 0x79d   :  { %v1540_v27 = vmul.f32 1.442695, %v1539_v28 }
 0x79f   :  { %1983 = vpow2.f32 %v1540_v27 }
 0x7ac   :  { %v1984_v54 = vpop.eup %1983 }
 0x7ad   :  { %v1542_v48 = vmul.f32 %v1984_v54, %v2238_v43 }
 0x7af   :  { %1543 = vadd.xlane.f32.xlu0 %v1542_v48 }
 0x838   :  { %v1544_v55 = vpop.xlane.xlu0 %1543 }
 0x839   :  { %1985 = vlog2.f32 %v1544_v55 }
 0x846   :  { %v1986_v56 = vpop.eup %1985 }
 0x847   :  { %v1546_v50 = vmul.f32 0.6931472, %v1986_v56 }
 0x849   :  { %v1547_v58 = vsub.f32 %v1539_v28, %v1546_v50 }
 0x84b   :  { %1548 = vst [vmem:[%s2868_s11] sm:$0xff] %v1547_v58 }

</bundles_post_ra>
